<compile_context>
chip_gen: v6e
topology: v6e:2x2x1
jax: 0.10.0
libtpu: 0.0.40
codegen_flags: <defaults>
</compile_context>

<pallas_src>
import jax
import jax.numpy as jnp
from jax.experimental import pallas as pl
from jax.experimental.pallas import tpu as pltpu


def _round_up(n, m):
    return (n + m - 1) // m * m


# ----------------------------------------------------------------------------
# Fused kernel
# ----------------------------------------------------------------------------
def _make_fused_kernel(T, B, H, num_layers):
    """B / H are the *padded* batch / hidden sizes; gate order is [i,f,o|g]."""

    def kernel(*refs):
        x_ref = refs[0]                              # (B, T, D)   f32
        w_refs = refs[1:1 + 3 * num_layers]          # per layer: wx, wh, b
        fcw_ref = refs[1 + 3 * num_layers]           # (H, C) bf16
        fcb_ref = refs[2 + 3 * num_layers]           # (1, C) f32
        out_ref = refs[3 + 3 * num_layers]           # (B, C) f32
        seq_sc = refs[4 + 3 * num_layers]            # (T, B, H) bf16 scratch

        h_last = None
        for layer in range(num_layers):
            wx_ref, wh_ref, b_ref = w_refs[3 * layer:3 * layer + 3]

            # ---- Hoisted input projection: one well-shaped matmul/layer. ----
            if layer == 0:
                inp = x_ref[...].astype(jnp.bfloat16)        # (B, T, D)
                d_in = inp.shape[-1]
                gx = jnp.dot(inp.reshape(B * T, d_in), wx_ref[...],
                             preferred_element_type=jnp.float32) + b_ref[...]
                gx = gx.reshape(B, T, 4 * H)                 # batch-major
            else:
                inp = seq_sc[...]                            # (T, B, H) bf16
                gx = jnp.dot(inp.reshape(T * B, H), wx_ref[...],
                             preferred_element_type=jnp.float32) + b_ref[...]
                gx = gx.reshape(T, B, 4 * H)                 # time-major

            wh = wh_ref[...]                                 # (H, 4H) bf16, load once
            last_layer = layer == num_layers - 1

            # ---- Serial recurrence, fully unrolled (T is small). ----
            # TODO(synk): hold Wh resident in the MXU across steps via
            # pltpu.matmul_push_rhs / matmul_acc_lhs / matmul_pop, and on v7x
            # seed the MRB with gx[t] so the add fuses into the matmul.
            # TODO(synk): for T > ~16 switch to lax.fori_loop (small unroll)
            # plus a time-chunked "arbitrary" grid axis to bound live ranges
            # and VMEM; for production B add a parallel batch grid axis so
            # both v7x TensorCores are used and interleave two batch chunks
            # per step to overlap MXU with EUP/VPU.
            h = jnp.zeros((B, H), jnp.float32)
            c = jnp.zeros((B, H), jnp.float32)
            for t in range(T):
                gx_t = gx[:, t, :] if layer == 0 else gx[t]  # (B, 4H) f32
                gates = gx_t + jnp.dot(h.astype(jnp.bfloat16), wh,
                                       preferred_element_type=jnp.float32)
                # [i | f | o] share one sigmoid over a lane-aligned (B,3H) slab.
                sig = jax.nn.sigmoid(gates[:, :3 * H])
                g_g = jnp.tanh(gates[:, 3 * H:])
                i_g = sig[:, :H]
                f_g = sig[:, H:2 * H]
                o_g = sig[:, 2 * H:3 * H]
                c = f_g * c + i_g * g_g
                h = o_g * jnp.tanh(c)
                if not last_layer:
                    seq_sc[t] = h.astype(jnp.bfloat16)       # VMEM only, bf16
            h_last = h

        # ---- Final FC fused onto the last hidden state only. ----
        logits = jnp.dot(h_last.astype(jnp.bfloat16), fcw_ref[...],
                         preferred_element_type=jnp.float32) + fcb_ref[...]
        out_ref[...] = logits.astype(out_ref.dtype)

    return kernel


# ----------------------------------------------------------------------------
# Parameter preparation (reorder gates to [i,f,o,g], pad H/C, keep bf16)
# ----------------------------------------------------------------------------
def _reorder_and_pad_gates(w, H, Hp):
    """Last dim (4H) in [i,f,g,o] order -> (4Hp) in [i,f,o,g], zero-padded."""
    i, f, g, o = (w[..., k * H:(k + 1) * H] for k in range(4))
    pad = [(0, 0)] * (w.ndim - 1) + [(0, Hp - H)]
    return jnp.concatenate(
        [jnp.pad(i, pad), jnp.pad(f, pad), jnp.pad(o, pad), jnp.pad(g, pad)],
        axis=-1)


def prepare_kernel_params(params, Hp, Cp):
    H = params["lstm"][0][1].shape[0]
    C = params["fc_w"].shape[1]
    kp = {"lstm": []}
    for layer, (wx, wh, b) in enumerate(params["lstm"]):
        wx_p = _reorder_and_pad_gates(wx, H, Hp)              # (d_in, 4Hp)
        if layer > 0:
            wx_p = jnp.pad(wx_p, ((0, Hp - H), (0, 0)))       # input rows H->Hp
        wh_p = jnp.pad(_reorder_and_pad_gates(wh, H, Hp), ((0, Hp - H), (0, 0)))
        b_p = _reorder_and_pad_gates(b, H, Hp)                # (1, 4Hp) f32
        kp["lstm"].append((wx_p, wh_p, b_p))
    kp["fc_w"] = jnp.pad(params["fc_w"], ((0, Hp - H), (0, Cp - C)))  # bf16
    kp["fc_b"] = jnp.pad(params["fc_b"], ((0, 0), (0, Cp - C)))       # f32
    return kp


def _pick_vmem_limit(resident_bytes):
    """Scoped-VMEM limit from actual chip capacity, with compiler headroom."""
    try:
        cap = int(getattr(pltpu.get_tpu_info(), "vmem_capacity_bytes", 64 << 20))
    except Exception:  # pragma: no cover - conservative fallback
        cap = 64 << 20
    headroom = 8 << 20
    want = 2 * resident_bytes + (16 << 20)
    return int(max(16 << 20, min(cap - headroom, max(32 << 20, want))))


# ----------------------------------------------------------------------------
# Wrapper
# ----------------------------------------------------------------------------
def rnn_forward(x_btd, params):
    """Full RNN.forward: multi-layer LSTM (zero init state) + FC on last step.

    x_btd: (B, T, input_size), batch_first like the PyTorch module.
    """
    B, T, D = x_btd.shape
    num_layers = len(params["lstm"])
    H = params["lstm"][0][1].shape[0]
    C = params["fc_w"].shape[1]

    LANE, SUBLANE = 128, 8
    Hp = _round_up(H, LANE)
    Cp = _round_up(C, LANE)
    Bp = _round_up(B, SUBLANE)

    kp = prepare_kernel_params(params, Hp, Cp)
    x_p = jnp.pad(x_btd, ((0, Bp - B), (0, 0), (0, 0)))  # no HBM transpose

    inputs = [x_p]
    for (wx, wh, b) in kp["lstm"]:
        inputs += [wx, wh, b]
    inputs += [kp["fc_w"], kp["fc_b"]]

    # Whole-array VMEM operands: no pipelining machinery, single-buffered.
    vmem_spec = pl.BlockSpec(memory_space=pltpu.MemorySpace.VMEM)
    in_specs = [vmem_spec] * len(inputs)

    resident = sum(int(a.size) * a.dtype.itemsize for a in inputs)
    resident += Bp * Cp * 4                       # output
    resident += T * Bp * Hp * 2                   # bf16 inter-layer scratch
    resident += T * Bp * 4 * Hp * 4               # gx value (worst-case spill)
    vmem_limit = _pick_vmem_limit(resident)

    kernel = _make_fused_kernel(T, Bp, Hp, num_layers)
    out = pl.pallas_call(
        kernel,
        out_shape=jax.ShapeDtypeStruct((Bp, Cp), jnp.float32),
        in_specs=in_specs,
        out_specs=vmem_spec,
        scratch_shapes=[
            pltpu.VMEM((T, Bp, Hp), jnp.bfloat16),   # inter-layer hidden seq
        ],
        compiler_params=pltpu.CompilerParams(vmem_limit_bytes=vmem_limit),
    )(*inputs)
    return out[:B, :C]


# ----------------------------------------------------------------------------
# Deterministic parameter init (matches nn.LSTM / nn.Linear shapes)
# ----------------------------------------------------------------------------
def init_params(key, input_size, hidden_size, num_layers, num_classes):
    params = {"lstm": []}
    k = 1.0 / jnp.sqrt(hidden_size)
    for layer in range(num_layers):
        d_in = input_size if layer == 0 else hidden_size
        key, k1, k2, k3, k4 = jax.random.split(key, 5)
        w_ih = jax.random.uniform(k1, (4 * hidden_size, d_in), jnp.float32, -k, k)
        w_hh = jax.random.uniform(k2, (4 * hidden_size, hidden_size), jnp.float32, -k, k)
        b_ih = jax.random.uniform(k3, (4 * hidden_size,), jnp.float32, -k, k)
        b_hh = jax.random.uniform(k4, (4 * hidden_size,), jnp.float32, -k, k)
        params["lstm"].append((
            w_ih.T.astype(jnp.bfloat16),              # (D, 4H) bf16, [i,f,g,o]
            w_hh.T.astype(jnp.bfloat16),              # (H, 4H) bf16
            (b_ih + b_hh).reshape(1, -1),             # (1, 4H) f32
        ))
    key, k1, k2 = jax.random.split(key, 3)
    fc_w = jax.random.uniform(k1, (num_classes, hidden_size), jnp.float32, -k, k)
    fc_b = jax.random.uniform(k2, (num_classes,), jnp.float32, -k, k)
    params["fc_w"] = fc_w.T.astype(jnp.bfloat16)      # (H, C) bf16
    params["fc_b"] = fc_b.reshape(1, -1)              # (1, C) f32
    return params


# ----------------------------------------------------------------------------
# Pure-JAX reference (same bf16 weight quantization, f32 accumulation)
# ----------------------------------------------------------------------------
def rnn_reference(x_btd, params):
    B = x_btd.shape[0]
    h_seq = jnp.transpose(x_btd, (1, 0, 2))           # (T, B, D)
    for (wx, wh, b) in params["lstm"]:
        H = wh.shape[0]
        h = jnp.zeros((B, H), jnp.float32)
        c = jnp.zeros((B, H), jnp.float32)
        outs = []
        for t in range(h_seq.shape[0]):
            gates = (
                jnp.dot(h_seq[t].astype(jnp.bfloat16), wx,
                        preferred_element_type=jnp.float32)
                + jnp.dot(h.astype(jnp.bfloat16), wh,
                          preferred_element_type=jnp.float32)
                + b
            )
            i = jax.nn.sigmoid(gates[:, 0 * H:1 * H])
            f = jax.nn.sigmoid(gates[:, 1 * H:2 * H])
            g = jnp.tanh(gates[:, 2 * H:3 * H])
            o = jax.nn.sigmoid(gates[:, 3 * H:4 * H])
            c = f * c + i * g
            h = o * jnp.tanh(c)
            outs.append(h)
        h_seq = jnp.stack(outs, axis=0)
    return jnp.dot(h_seq[-1].astype(jnp.bfloat16), params["fc_w"],
                   preferred_element_type=jnp.float32) + params["fc_b"]


if __name__ == "__main__":
    # Small shapes consistent with the module's forward.
    batch, seq_len = 2, 8
    input_size, hidden_size, num_layers, num_classes = 16, 32, 2, 10

    key = jax.random.PRNGKey(0)
    key, kx = jax.random.split(key)
    x = jax.random.normal(kx, (batch, seq_len, input_size), jnp.float32)

    params = init_params(key, input_size, hidden_size, num_layers, num_classes)

    out = jax.block_until_ready(rnn_forward(x, params))
    ref = jax.block_until_ready(rnn_reference(x, params))

    assert out.shape == (batch, num_classes)
    err = float(jnp.max(jnp.abs(out - ref)))
    assert err < 1e-3, f"mismatch vs pure-JAX reference: {err}"

    print("KERNEL_OK")
</pallas_src>

<mosaic_0001>
module attributes {stable_mosaic.version = 11 : i64} {
  func.func @kernel(%arg0: memref<8x8x16xf32, #tpu.memory_space<vmem>>, %arg1: memref<16x512xbf16, #tpu.memory_space<vmem>>, %arg2: memref<128x512xbf16, #tpu.memory_space<vmem>>, %arg3: memref<1x512xf32, #tpu.memory_space<vmem>>, %arg4: memref<128x512xbf16, #tpu.memory_space<vmem>>, %arg5: memref<128x512xbf16, #tpu.memory_space<vmem>>, %arg6: memref<1x512xf32, #tpu.memory_space<vmem>>, %arg7: memref<128x128xbf16, #tpu.memory_space<vmem>>, %arg8: memref<1x128xf32, #tpu.memory_space<vmem>>, %arg9: memref<8x128xf32, #tpu.memory_space<vmem>>, %arg10: memref<8x8x128xbf16, #tpu.memory_space<vmem>>) attributes {dimension_semantics = [], scalar_prefetch = 0 : i64, scratch_operands = 1 : i64, tpu.core_type = #tpu.core_type<tc>} {
    %c0 = arith.constant 0 : index
    %c0_0 = arith.constant 0 : index
    %c0_1 = arith.constant 0 : index
    %0 = vector.load %arg0[%c0, %c0_0, %c0_1] : memref<8x8x16xf32, #tpu.memory_space<vmem>>, vector<8x8x16xf32>
    %1 = arith.truncf %0 : vector<8x8x16xf32> to vector<8x8x16xbf16>
    %2 = vector.shape_cast %1 : vector<8x8x16xbf16> to vector<64x16xbf16>
    %c0_2 = arith.constant 0 : index
    %c0_3 = arith.constant 0 : index
    %3 = vector.load %arg1[%c0_2, %c0_3] : memref<16x512xbf16, #tpu.memory_space<vmem>>, vector<16x512xbf16>
    %cst = arith.constant dense<0.000000e+00> : vector<64x512xf32>
    %4 = tpu.matmul %2, %3, %cst {dimension_numbers = #tpu.dot_dimension_numbers<[1], [0], [0], [1], [0, 0, 1, 1], [], []>} : vector<64x16xbf16>, vector<16x512xbf16>, vector<64x512xf32> -> vector<64x512xf32>
    %c0_4 = arith.constant 0 : index
    %c0_5 = arith.constant 0 : index
    %5 = vector.load %arg3[%c0_4, %c0_5] : memref<1x512xf32, #tpu.memory_space<vmem>>, vector<1x512xf32>
    %6 = vector.broadcast %5 : vector<1x512xf32> to vector<64x512xf32>
    %7 = arith.addf %4, %6 : vector<64x512xf32>
    %8 = vector.shape_cast %7 : vector<64x512xf32> to vector<8x8x512xf32>
    %c0_6 = arith.constant 0 : index
    %c0_7 = arith.constant 0 : index
    %9 = vector.load %arg2[%c0_6, %c0_7] : memref<128x512xbf16, #tpu.memory_space<vmem>>, vector<128x512xbf16>
    %cst_8 = arith.constant 0.000000e+00 : f32
    %10 = vector.broadcast %cst_8 : f32 to vector<8x128xf32>
    %cst_9 = arith.constant 0.000000e+00 : f32
    %11 = vector.broadcast %cst_9 : f32 to vector<8x128xf32>
    %12 = vector.extract_strided_slice %8 {offsets = [0, 0, 0], sizes = [8, 1, 512], strides = [1, 1, 1]} : vector<8x8x512xf32> to vector<8x1x512xf32>
    %13 = vector.shape_cast %12 : vector<8x1x512xf32> to vector<8x512xf32>
    %14 = arith.truncf %10 : vector<8x128xf32> to vector<8x128xbf16>
    %cst_10 = arith.constant dense<0.000000e+00> : vector<8x512xf32>
    %15 = tpu.matmul %14, %9, %cst_10 {dimension_numbers = #tpu.dot_dimension_numbers<[1], [0], [0], [1], [0, 0, 1, 1], [], []>} : vector<8x128xbf16>, vector<128x512xbf16>, vector<8x512xf32> -> vector<8x512xf32>
    %16 = arith.addf %13, %15 : vector<8x512xf32>
    %17 = vector.extract_strided_slice %16 {offsets = [0, 0], sizes = [8, 384], strides = [1, 1]} : vector<8x512xf32> to vector<8x384xf32>
    %18 = arith.negf %17 : vector<8x384xf32>
    %19 = math.exp %18 : vector<8x384xf32>
    %cst_11 = arith.constant 1.000000e+00 : f32
    %20 = vector.broadcast %cst_11 : f32 to vector<8x384xf32>
    %21 = arith.addf %20, %19 : vector<8x384xf32>
    %22 = arith.divf %20, %21 : vector<8x384xf32>
    %23 = vector.extract_strided_slice %16 {offsets = [0, 384], sizes = [8, 128], strides = [1, 1]} : vector<8x512xf32> to vector<8x128xf32>
    %24 = math.tanh %23 : vector<8x128xf32>
    %25 = vector.extract_strided_slice %22 {offsets = [0, 0], sizes = [8, 128], strides = [1, 1]} : vector<8x384xf32> to vector<8x128xf32>
    %26 = vector.extract_strided_slice %22 {offsets = [0, 128], sizes = [8, 128], strides = [1, 1]} : vector<8x384xf32> to vector<8x128xf32>
    %27 = vector.extract_strided_slice %22 {offsets = [0, 256], sizes = [8, 128], strides = [1, 1]} : vector<8x384xf32> to vector<8x128xf32>
    %28 = arith.mulf %26, %11 : vector<8x128xf32>
    %29 = arith.mulf %25, %24 : vector<8x128xf32>
    %30 = arith.addf %28, %29 : vector<8x128xf32>
    %31 = math.tanh %30 : vector<8x128xf32>
    %32 = arith.mulf %27, %31 : vector<8x128xf32>
    %33 = arith.truncf %32 : vector<8x128xf32> to vector<8x128xbf16>
    %c0_12 = arith.constant 0 : index
    %c0_13 = arith.constant 0 : index
    %c0_14 = arith.constant 0 : index
    %34 = vector.load %arg10[%c0_12, %c0_13, %c0_14] : memref<8x8x128xbf16, #tpu.memory_space<vmem>>, vector<1x8x128xbf16>
    %35 = vector.shape_cast %34 : vector<1x8x128xbf16> to vector<8x128xbf16>
    %36 = vector.shape_cast %33 : vector<8x128xbf16> to vector<1x8x128xbf16>
    tpu.vector_store %arg10[%c0_12, %c0_13, %c0_14], %36 {strides = array<i32>} : memref<8x8x128xbf16, #tpu.memory_space<vmem>>, vector<1x8x128xbf16>,
    %37 = vector.extract_strided_slice %8 {offsets = [0, 1, 0], sizes = [8, 1, 512], strides = [1, 1, 1]} : vector<8x8x512xf32> to vector<8x1x512xf32>
    %38 = vector.shape_cast %37 : vector<8x1x512xf32> to vector<8x512xf32>
    %39 = arith.truncf %32 : vector<8x128xf32> to vector<8x128xbf16>
    %cst_15 = arith.constant dense<0.000000e+00> : vector<8x512xf32>
    %40 = tpu.matmul %39, %9, %cst_15 {dimension_numbers = #tpu.dot_dimension_numbers<[1], [0], [0], [1], [0, 0, 1, 1], [], []>} : vector<8x128xbf16>, vector<128x512xbf16>, vector<8x512xf32> -> vector<8x512xf32>
    %41 = arith.addf %38, %40 : vector<8x512xf32>
    %42 = vector.extract_strided_slice %41 {offsets = [0, 0], sizes = [8, 384], strides = [1, 1]} : vector<8x512xf32> to vector<8x384xf32>
    %43 = arith.negf %42 : vector<8x384xf32>
    %44 = math.exp %43 : vector<8x384xf32>
    %cst_16 = arith.constant 1.000000e+00 : f32
    %45 = vector.broadcast %cst_16 : f32 to vector<8x384xf32>
    %46 = arith.addf %45, %44 : vector<8x384xf32>
    %47 = arith.divf %45, %46 : vector<8x384xf32>
    %48 = vector.extract_strided_slice %41 {offsets = [0, 384], sizes = [8, 128], strides = [1, 1]} : vector<8x512xf32> to vector<8x128xf32>
    %49 = math.tanh %48 : vector<8x128xf32>
    %50 = vector.extract_strided_slice %47 {offsets = [0, 0], sizes = [8, 128], strides = [1, 1]} : vector<8x384xf32> to vector<8x128xf32>
    %51 = vector.extract_strided_slice %47 {offsets = [0, 128], sizes = [8, 128], strides = [1, 1]} : vector<8x384xf32> to vector<8x128xf32>
    %52 = vector.extract_strided_slice %47 {offsets = [0, 256], sizes = [8, 128], strides = [1, 1]} : vector<8x384xf32> to vector<8x128xf32>
    %53 = arith.mulf %51, %30 : vector<8x128xf32>
    %54 = arith.mulf %50, %49 : vector<8x128xf32>
    %55 = arith.addf %53, %54 : vector<8x128xf32>
    %56 = math.tanh %55 : vector<8x128xf32>
    %57 = arith.mulf %52, %56 : vector<8x128xf32>
    %58 = arith.truncf %57 : vector<8x128xf32> to vector<8x128xbf16>
    %c1 = arith.constant 1 : index
    %c0_17 = arith.constant 0 : index
    %c0_18 = arith.constant 0 : index
    %59 = vector.load %arg10[%c1, %c0_17, %c0_18] : memref<8x8x128xbf16, #tpu.memory_space<vmem>>, vector<1x8x128xbf16>
    %60 = vector.shape_cast %59 : vector<1x8x128xbf16> to vector<8x128xbf16>
    %61 = vector.shape_cast %58 : vector<8x128xbf16> to vector<1x8x128xbf16>
    tpu.vector_store %arg10[%c1, %c0_17, %c0_18], %61 {strides = array<i32>} : memref<8x8x128xbf16, #tpu.memory_space<vmem>>, vector<1x8x128xbf16>,
    %62 = vector.extract_strided_slice %8 {offsets = [0, 2, 0], sizes = [8, 1, 512], strides = [1, 1, 1]} : vector<8x8x512xf32> to vector<8x1x512xf32>
    %63 = vector.shape_cast %62 : vector<8x1x512xf32> to vector<8x512xf32>
    %64 = arith.truncf %57 : vector<8x128xf32> to vector<8x128xbf16>
    %cst_19 = arith.constant dense<0.000000e+00> : vector<8x512xf32>
    %65 = tpu.matmul %64, %9, %cst_19 {dimension_numbers = #tpu.dot_dimension_numbers<[1], [0], [0], [1], [0, 0, 1, 1], [], []>} : vector<8x128xbf16>, vector<128x512xbf16>, vector<8x512xf32> -> vector<8x512xf32>
    %66 = arith.addf %63, %65 : vector<8x512xf32>
    %67 = vector.extract_strided_slice %66 {offsets = [0, 0], sizes = [8, 384], strides = [1, 1]} : vector<8x512xf32> to vector<8x384xf32>
    %68 = arith.negf %67 : vector<8x384xf32>
    %69 = math.exp %68 : vector<8x384xf32>
    %cst_20 = arith.constant 1.000000e+00 : f32
    %70 = vector.broadcast %cst_20 : f32 to vector<8x384xf32>
    %71 = arith.addf %70, %69 : vector<8x384xf32>
    %72 = arith.divf %70, %71 : vector<8x384xf32>
    %73 = vector.extract_strided_slice %66 {offsets = [0, 384], sizes = [8, 128], strides = [1, 1]} : vector<8x512xf32> to vector<8x128xf32>
    %74 = math.tanh %73 : vector<8x128xf32>
    %75 = vector.extract_strided_slice %72 {offsets = [0, 0], sizes = [8, 128], strides = [1, 1]} : vector<8x384xf32> to vector<8x128xf32>
    %76 = vector.extract_strided_slice %72 {offsets = [0, 128], sizes = [8, 128], strides = [1, 1]} : vector<8x384xf32> to vector<8x128xf32>
    %77 = vector.extract_strided_slice %72 {offsets = [0, 256], sizes = [8, 128], strides = [1, 1]} : vector<8x384xf32> to vector<8x128xf32>
    %78 = arith.mulf %76, %55 : vector<8x128xf32>
    %79 = arith.mulf %75, %74 : vector<8x128xf32>
    %80 = arith.addf %78, %79 : vector<8x128xf32>
    %81 = math.tanh %80 : vector<8x128xf32>
    %82 = arith.mulf %77, %81 : vector<8x128xf32>
    %83 = arith.truncf %82 : vector<8x128xf32> to vector<8x128xbf16>
    %c2 = arith.constant 2 : index
    %c0_21 = arith.constant 0 : index
    %c0_22 = arith.constant 0 : index
    %84 = vector.load %arg10[%c2, %c0_21, %c0_22] : memref<8x8x128xbf16, #tpu.memory_space<vmem>>, vector<1x8x128xbf16>
    %85 = vector.shape_cast %84 : vector<1x8x128xbf16> to vector<8x128xbf16>
    %86 = vector.shape_cast %83 : vector<8x128xbf16> to vector<1x8x128xbf16>
    tpu.vector_store %arg10[%c2, %c0_21, %c0_22], %86 {strides = array<i32>} : memref<8x8x128xbf16, #tpu.memory_space<vmem>>, vector<1x8x128xbf16>,
    %87 = vector.extract_strided_slice %8 {offsets = [0, 3, 0], sizes = [8, 1, 512], strides = [1, 1, 1]} : vector<8x8x512xf32> to vector<8x1x512xf32>
    %88 = vector.shape_cast %87 : vector<8x1x512xf32> to vector<8x512xf32>
    %89 = arith.truncf %82 : vector<8x128xf32> to vector<8x128xbf16>
    %cst_23 = arith.constant dense<0.000000e+00> : vector<8x512xf32>
    %90 = tpu.matmul %89, %9, %cst_23 {dimension_numbers = #tpu.dot_dimension_numbers<[1], [0], [0], [1], [0, 0, 1, 1], [], []>} : vector<8x128xbf16>, vector<128x512xbf16>, vector<8x512xf32> -> vector<8x512xf32>
    %91 = arith.addf %88, %90 : vector<8x512xf32>
    %92 = vector.extract_strided_slice %91 {offsets = [0, 0], sizes = [8, 384], strides = [1, 1]} : vector<8x512xf32> to vector<8x384xf32>
    %93 = arith.negf %92 : vector<8x384xf32>
    %94 = math.exp %93 : vector<8x384xf32>
    %cst_24 = arith.constant 1.000000e+00 : f32
    %95 = vector.broadcast %cst_24 : f32 to vector<8x384xf32>
    %96 = arith.addf %95, %94 : vector<8x384xf32>
    %97 = arith.divf %95, %96 : vector<8x384xf32>
    %98 = vector.extract_strided_slice %91 {offsets = [0, 384], sizes = [8, 128], strides = [1, 1]} : vector<8x512xf32> to vector<8x128xf32>
    %99 = math.tanh %98 : vector<8x128xf32>
    %100 = vector.extract_strided_slice %97 {offsets = [0, 0], sizes = [8, 128], strides = [1, 1]} : vector<8x384xf32> to vector<8x128xf32>
    %101 = vector.extract_strided_slice %97 {offsets = [0, 128], sizes = [8, 128], strides = [1, 1]} : vector<8x384xf32> to vector<8x128xf32>
    %102 = vector.extract_strided_slice %97 {offsets = [0, 256], sizes = [8, 128], strides = [1, 1]} : vector<8x384xf32> to vector<8x128xf32>
    %103 = arith.mulf %101, %80 : vector<8x128xf32>
    %104 = arith.mulf %100, %99 : vector<8x128xf32>
    %105 = arith.addf %103, %104 : vector<8x128xf32>
    %106 = math.tanh %105 : vector<8x128xf32>
    %107 = arith.mulf %102, %106 : vector<8x128xf32>
    %108 = arith.truncf %107 : vector<8x128xf32> to vector<8x128xbf16>
    %c3 = arith.constant 3 : index
    %c0_25 = arith.constant 0 : index
    %c0_26 = arith.constant 0 : index
    %109 = vector.load %arg10[%c3, %c0_25, %c0_26] : memref<8x8x128xbf16, #tpu.memory_space<vmem>>, vector<1x8x128xbf16>
    %110 = vector.shape_cast %109 : vector<1x8x128xbf16> to vector<8x128xbf16>
    %111 = vector.shape_cast %108 : vector<8x128xbf16> to vector<1x8x128xbf16>
    tpu.vector_store %arg10[%c3, %c0_25, %c0_26], %111 {strides = array<i32>} : memref<8x8x128xbf16, #tpu.memory_space<vmem>>, vector<1x8x128xbf16>,
    %112 = vector.extract_strided_slice %8 {offsets = [0, 4, 0], sizes = [8, 1, 512], strides = [1, 1, 1]} : vector<8x8x512xf32> to vector<8x1x512xf32>
    %113 = vector.shape_cast %112 : vector<8x1x512xf32> to vector<8x512xf32>
    %114 = arith.truncf %107 : vector<8x128xf32> to vector<8x128xbf16>
    %cst_27 = arith.constant dense<0.000000e+00> : vector<8x512xf32>
    %115 = tpu.matmul %114, %9, %cst_27 {dimension_numbers = #tpu.dot_dimension_numbers<[1], [0], [0], [1], [0, 0, 1, 1], [], []>} : vector<8x128xbf16>, vector<128x512xbf16>, vector<8x512xf32> -> vector<8x512xf32>
    %116 = arith.addf %113, %115 : vector<8x512xf32>
    %117 = vector.extract_strided_slice %116 {offsets = [0, 0], sizes = [8, 384], strides = [1, 1]} : vector<8x512xf32> to vector<8x384xf32>
    %118 = arith.negf %117 : vector<8x384xf32>
    %119 = math.exp %118 : vector<8x384xf32>
    %cst_28 = arith.constant 1.000000e+00 : f32
    %120 = vector.broadcast %cst_28 : f32 to vector<8x384xf32>
    %121 = arith.addf %120, %119 : vector<8x384xf32>
    %122 = arith.divf %120, %121 : vector<8x384xf32>
    %123 = vector.extract_strided_slice %116 {offsets = [0, 384], sizes = [8, 128], strides = [1, 1]} : vector<8x512xf32> to vector<8x128xf32>
    %124 = math.tanh %123 : vector<8x128xf32>
    %125 = vector.extract_strided_slice %122 {offsets = [0, 0], sizes = [8, 128], strides = [1, 1]} : vector<8x384xf32> to vector<8x128xf32>
    %126 = vector.extract_strided_slice %122 {offsets = [0, 128], sizes = [8, 128], strides = [1, 1]} : vector<8x384xf32> to vector<8x128xf32>
    %127 = vector.extract_strided_slice %122 {offsets = [0, 256], sizes = [8, 128], strides = [1, 1]} : vector<8x384xf32> to vector<8x128xf32>
    %128 = arith.mulf %126, %105 : vector<8x128xf32>
    %129 = arith.mulf %125, %124 : vector<8x128xf32>
    %130 = arith.addf %128, %129 : vector<8x128xf32>
    %131 = math.tanh %130 : vector<8x128xf32>
    %132 = arith.mulf %127, %131 : vector<8x128xf32>
    %133 = arith.truncf %132 : vector<8x128xf32> to vector<8x128xbf16>
    %c4 = arith.constant 4 : index
    %c0_29 = arith.constant 0 : index
    %c0_30 = arith.constant 0 : index
    %134 = vector.load %arg10[%c4, %c0_29, %c0_30] : memref<8x8x128xbf16, #tpu.memory_space<vmem>>, vector<1x8x128xbf16>
    %135 = vector.shape_cast %134 : vector<1x8x128xbf16> to vector<8x128xbf16>
    %136 = vector.shape_cast %133 : vector<8x128xbf16> to vector<1x8x128xbf16>
    tpu.vector_store %arg10[%c4, %c0_29, %c0_30], %136 {strides = array<i32>} : memref<8x8x128xbf16, #tpu.memory_space<vmem>>, vector<1x8x128xbf16>,
    %137 = vector.extract_strided_slice %8 {offsets = [0, 5, 0], sizes = [8, 1, 512], strides = [1, 1, 1]} : vector<8x8x512xf32> to vector<8x1x512xf32>
    %138 = vector.shape_cast %137 : vector<8x1x512xf32> to vector<8x512xf32>
    %139 = arith.truncf %132 : vector<8x128xf32> to vector<8x128xbf16>
    %cst_31 = arith.constant dense<0.000000e+00> : vector<8x512xf32>
    %140 = tpu.matmul %139, %9, %cst_31 {dimension_numbers = #tpu.dot_dimension_numbers<[1], [0], [0], [1], [0, 0, 1, 1], [], []>} : vector<8x128xbf16>, vector<128x512xbf16>, vector<8x512xf32> -> vector<8x512xf32>
    %141 = arith.addf %138, %140 : vector<8x512xf32>
    %142 = vector.extract_strided_slice %141 {offsets = [0, 0], sizes = [8, 384], strides = [1, 1]} : vector<8x512xf32> to vector<8x384xf32>
    %143 = arith.negf %142 : vector<8x384xf32>
    %144 = math.exp %143 : vector<8x384xf32>
    %cst_32 = arith.constant 1.000000e+00 : f32
    %145 = vector.broadcast %cst_32 : f32 to vector<8x384xf32>
    %146 = arith.addf %145, %144 : vector<8x384xf32>
    %147 = arith.divf %145, %146 : vector<8x384xf32>
    %148 = vector.extract_strided_slice %141 {offsets = [0, 384], sizes = [8, 128], strides = [1, 1]} : vector<8x512xf32> to vector<8x128xf32>
    %149 = math.tanh %148 : vector<8x128xf32>
    %150 = vector.extract_strided_slice %147 {offsets = [0, 0], sizes = [8, 128], strides = [1, 1]} : vector<8x384xf32> to vector<8x128xf32>
    %151 = vector.extract_strided_slice %147 {offsets = [0, 128], sizes = [8, 128], strides = [1, 1]} : vector<8x384xf32> to vector<8x128xf32>
    %152 = vector.extract_strided_slice %147 {offsets = [0, 256], sizes = [8, 128], strides = [1, 1]} : vector<8x384xf32> to vector<8x128xf32>
    %153 = arith.mulf %151, %130 : vector<8x128xf32>
    %154 = arith.mulf %150, %149 : vector<8x128xf32>
    %155 = arith.addf %153, %154 : vector<8x128xf32>
    %156 = math.tanh %155 : vector<8x128xf32>
    %157 = arith.mulf %152, %156 : vector<8x128xf32>
    %158 = arith.truncf %157 : vector<8x128xf32> to vector<8x128xbf16>
    %c5 = arith.constant 5 : index
    %c0_33 = arith.constant 0 : index
    %c0_34 = arith.constant 0 : index
    %159 = vector.load %arg10[%c5, %c0_33, %c0_34] : memref<8x8x128xbf16, #tpu.memory_space<vmem>>, vector<1x8x128xbf16>
    %160 = vector.shape_cast %159 : vector<1x8x128xbf16> to vector<8x128xbf16>
    %161 = vector.shape_cast %158 : vector<8x128xbf16> to vector<1x8x128xbf16>
    tpu.vector_store %arg10[%c5, %c0_33, %c0_34], %161 {strides = array<i32>} : memref<8x8x128xbf16, #tpu.memory_space<vmem>>, vector<1x8x128xbf16>,
    %162 = vector.extract_strided_slice %8 {offsets = [0, 6, 0], sizes = [8, 1, 512], strides = [1, 1, 1]} : vector<8x8x512xf32> to vector<8x1x512xf32>
    %163 = vector.shape_cast %162 : vector<8x1x512xf32> to vector<8x512xf32>
    %164 = arith.truncf %157 : vector<8x128xf32> to vector<8x128xbf16>
    %cst_35 = arith.constant dense<0.000000e+00> : vector<8x512xf32>
    %165 = tpu.matmul %164, %9, %cst_35 {dimension_numbers = #tpu.dot_dimension_numbers<[1], [0], [0], [1], [0, 0, 1, 1], [], []>} : vector<8x128xbf16>, vector<128x512xbf16>, vector<8x512xf32> -> vector<8x512xf32>
    %166 = arith.addf %163, %165 : vector<8x512xf32>
    %167 = vector.extract_strided_slice %166 {offsets = [0, 0], sizes = [8, 384], strides = [1, 1]} : vector<8x512xf32> to vector<8x384xf32>
    %168 = arith.negf %167 : vector<8x384xf32>
    %169 = math.exp %168 : vector<8x384xf32>
    %cst_36 = arith.constant 1.000000e+00 : f32
    %170 = vector.broadcast %cst_36 : f32 to vector<8x384xf32>
    %171 = arith.addf %170, %169 : vector<8x384xf32>
    %172 = arith.divf %170, %171 : vector<8x384xf32>
    %173 = vector.extract_strided_slice %166 {offsets = [0, 384], sizes = [8, 128], strides = [1, 1]} : vector<8x512xf32> to vector<8x128xf32>
    %174 = math.tanh %173 : vector<8x128xf32>
    %175 = vector.extract_strided_slice %172 {offsets = [0, 0], sizes = [8, 128], strides = [1, 1]} : vector<8x384xf32> to vector<8x128xf32>
    %176 = vector.extract_strided_slice %172 {offsets = [0, 128], sizes = [8, 128], strides = [1, 1]} : vector<8x384xf32> to vector<8x128xf32>
    %177 = vector.extract_strided_slice %172 {offsets = [0, 256], sizes = [8, 128], strides = [1, 1]} : vector<8x384xf32> to vector<8x128xf32>
    %178 = arith.mulf %176, %155 : vector<8x128xf32>
    %179 = arith.mulf %175, %174 : vector<8x128xf32>
    %180 = arith.addf %178, %179 : vector<8x128xf32>
    %181 = math.tanh %180 : vector<8x128xf32>
    %182 = arith.mulf %177, %181 : vector<8x128xf32>
    %183 = arith.truncf %182 : vector<8x128xf32> to vector<8x128xbf16>
    %c6 = arith.constant 6 : index
    %c0_37 = arith.constant 0 : index
    %c0_38 = arith.constant 0 : index
    %184 = vector.load %arg10[%c6, %c0_37, %c0_38] : memref<8x8x128xbf16, #tpu.memory_space<vmem>>, vector<1x8x128xbf16>
    %185 = vector.shape_cast %184 : vector<1x8x128xbf16> to vector<8x128xbf16>
    %186 = vector.shape_cast %183 : vector<8x128xbf16> to vector<1x8x128xbf16>
    tpu.vector_store %arg10[%c6, %c0_37, %c0_38], %186 {strides = array<i32>} : memref<8x8x128xbf16, #tpu.memory_space<vmem>>, vector<1x8x128xbf16>,
    %187 = vector.extract_strided_slice %8 {offsets = [0, 7, 0], sizes = [8, 1, 512], strides = [1, 1, 1]} : vector<8x8x512xf32> to vector<8x1x512xf32>
    %188 = vector.shape_cast %187 : vector<8x1x512xf32> to vector<8x512xf32>
    %189 = arith.truncf %182 : vector<8x128xf32> to vector<8x128xbf16>
    %cst_39 = arith.constant dense<0.000000e+00> : vector<8x512xf32>
    %190 = tpu.matmul %189, %9, %cst_39 {dimension_numbers = #tpu.dot_dimension_numbers<[1], [0], [0], [1], [0, 0, 1, 1], [], []>} : vector<8x128xbf16>, vector<128x512xbf16>, vector<8x512xf32> -> vector<8x512xf32>
    %191 = arith.addf %188, %190 : vector<8x512xf32>
    %192 = vector.extract_strided_slice %191 {offsets = [0, 0], sizes = [8, 384], strides = [1, 1]} : vector<8x512xf32> to vector<8x384xf32>
    %193 = arith.negf %192 : vector<8x384xf32>
    %194 = math.exp %193 : vector<8x384xf32>
    %cst_40 = arith.constant 1.000000e+00 : f32
    %195 = vector.broadcast %cst_40 : f32 to vector<8x384xf32>
    %196 = arith.addf %195, %194 : vector<8x384xf32>
    %197 = arith.divf %195, %196 : vector<8x384xf32>
    %198 = vector.extract_strided_slice %191 {offsets = [0, 384], sizes = [8, 128], strides = [1, 1]} : vector<8x512xf32> to vector<8x128xf32>
    %199 = math.tanh %198 : vector<8x128xf32>
    %200 = vector.extract_strided_slice %197 {offsets = [0, 0], sizes = [8, 128], strides = [1, 1]} : vector<8x384xf32> to vector<8x128xf32>
    %201 = vector.extract_strided_slice %197 {offsets = [0, 128], sizes = [8, 128], strides = [1, 1]} : vector<8x384xf32> to vector<8x128xf32>
    %202 = vector.extract_strided_slice %197 {offsets = [0, 256], sizes = [8, 128], strides = [1, 1]} : vector<8x384xf32> to vector<8x128xf32>
    %203 = arith.mulf %201, %180 : vector<8x128xf32>
    %204 = arith.mulf %200, %199 : vector<8x128xf32>
    %205 = arith.addf %203, %204 : vector<8x128xf32>
    %206 = math.tanh %205 : vector<8x128xf32>
    %207 = arith.mulf %202, %206 : vector<8x128xf32>
    %208 = arith.truncf %207 : vector<8x128xf32> to vector<8x128xbf16>
    %c7 = arith.constant 7 : index
    %c0_41 = arith.constant 0 : index
    %c0_42 = arith.constant 0 : index
    %209 = vector.load %arg10[%c7, %c0_41, %c0_42] : memref<8x8x128xbf16, #tpu.memory_space<vmem>>, vector<1x8x128xbf16>
    %210 = vector.shape_cast %209 : vector<1x8x128xbf16> to vector<8x128xbf16>
    %211 = vector.shape_cast %208 : vector<8x128xbf16> to vector<1x8x128xbf16>
    tpu.vector_store %arg10[%c7, %c0_41, %c0_42], %211 {strides = array<i32>} : memref<8x8x128xbf16, #tpu.memory_space<vmem>>, vector<1x8x128xbf16>,
    %c0_43 = arith.constant 0 : index
    %c0_44 = arith.constant 0 : index
    %c0_45 = arith.constant 0 : index
    %212 = vector.load %arg10[%c0_43, %c0_44, %c0_45] : memref<8x8x128xbf16, #tpu.memory_space<vmem>>, vector<8x8x128xbf16>
    %213 = vector.shape_cast %212 : vector<8x8x128xbf16> to vector<64x128xbf16>
    %c0_46 = arith.constant 0 : index
    %c0_47 = arith.constant 0 : index
    %214 = vector.load %arg4[%c0_46, %c0_47] : memref<128x512xbf16, #tpu.memory_space<vmem>>, vector<128x512xbf16>
    %cst_48 = arith.constant dense<0.000000e+00> : vector<64x512xf32>
    %215 = tpu.matmul %213, %214, %cst_48 {dimension_numbers = #tpu.dot_dimension_numbers<[1], [0], [0], [1], [0, 0, 1, 1], [], []>} : vector<64x128xbf16>, vector<128x512xbf16>, vector<64x512xf32> -> vector<64x512xf32>
    %c0_49 = arith.constant 0 : index
    %c0_50 = arith.constant 0 : index
    %216 = vector.load %arg6[%c0_49, %c0_50] : memref<1x512xf32, #tpu.memory_space<vmem>>, vector<1x512xf32>
    %217 = vector.broadcast %216 : vector<1x512xf32> to vector<64x512xf32>
    %218 = arith.addf %215, %217 : vector<64x512xf32>
    %219 = vector.shape_cast %218 : vector<64x512xf32> to vector<8x8x512xf32>
    %c0_51 = arith.constant 0 : index
    %c0_52 = arith.constant 0 : index
    %220 = vector.load %arg5[%c0_51, %c0_52] : memref<128x512xbf16, #tpu.memory_space<vmem>>, vector<128x512xbf16>
    %cst_53 = arith.constant 0.000000e+00 : f32
    %221 = vector.broadcast %cst_53 : f32 to vector<8x128xf32>
    %cst_54 = arith.constant 0.000000e+00 : f32
    %222 = vector.broadcast %cst_54 : f32 to vector<8x128xf32>
    %223 = vector.extract_strided_slice %219 {offsets = [0, 0, 0], sizes = [1, 8, 512], strides = [1, 1, 1]} : vector<8x8x512xf32> to vector<1x8x512xf32>
    %224 = vector.shape_cast %223 : vector<1x8x512xf32> to vector<8x512xf32>
    %225 = arith.truncf %221 : vector<8x128xf32> to vector<8x128xbf16>
    %cst_55 = arith.constant dense<0.000000e+00> : vector<8x512xf32>
    %226 = tpu.matmul %225, %220, %cst_55 {dimension_numbers = #tpu.dot_dimension_numbers<[1], [0], [0], [1], [0, 0, 1, 1], [], []>} : vector<8x128xbf16>, vector<128x512xbf16>, vector<8x512xf32> -> vector<8x512xf32>
    %227 = arith.addf %224, %226 : vector<8x512xf32>
    %228 = vector.extract_strided_slice %227 {offsets = [0, 0], sizes = [8, 384], strides = [1, 1]} : vector<8x512xf32> to vector<8x384xf32>
    %229 = arith.negf %228 : vector<8x384xf32>
    %230 = math.exp %229 : vector<8x384xf32>
    %cst_56 = arith.constant 1.000000e+00 : f32
    %231 = vector.broadcast %cst_56 : f32 to vector<8x384xf32>
    %232 = arith.addf %231, %230 : vector<8x384xf32>
    %233 = arith.divf %231, %232 : vector<8x384xf32>
    %234 = vector.extract_strided_slice %227 {offsets = [0, 384], sizes = [8, 128], strides = [1, 1]} : vector<8x512xf32> to vector<8x128xf32>
    %235 = math.tanh %234 : vector<8x128xf32>
    %236 = vector.extract_strided_slice %233 {offsets = [0, 0], sizes = [8, 128], strides = [1, 1]} : vector<8x384xf32> to vector<8x128xf32>
    %237 = vector.extract_strided_slice %233 {offsets = [0, 128], sizes = [8, 128], strides = [1, 1]} : vector<8x384xf32> to vector<8x128xf32>
    %238 = vector.extract_strided_slice %233 {offsets = [0, 256], sizes = [8, 128], strides = [1, 1]} : vector<8x384xf32> to vector<8x128xf32>
    %239 = arith.mulf %237, %222 : vector<8x128xf32>
    %240 = arith.mulf %236, %235 : vector<8x128xf32>
    %241 = arith.addf %239, %240 : vector<8x128xf32>
    %242 = math.tanh %241 : vector<8x128xf32>
    %243 = arith.mulf %238, %242 : vector<8x128xf32>
    %244 = vector.extract_strided_slice %219 {offsets = [1, 0, 0], sizes = [1, 8, 512], strides = [1, 1, 1]} : vector<8x8x512xf32> to vector<1x8x512xf32>
    %245 = vector.shape_cast %244 : vector<1x8x512xf32> to vector<8x512xf32>
    %246 = arith.truncf %243 : vector<8x128xf32> to vector<8x128xbf16>
    %cst_57 = arith.constant dense<0.000000e+00> : vector<8x512xf32>
    %247 = tpu.matmul %246, %220, %cst_57 {dimension_numbers = #tpu.dot_dimension_numbers<[1], [0], [0], [1], [0, 0, 1, 1], [], []>} : vector<8x128xbf16>, vector<128x512xbf16>, vector<8x512xf32> -> vector<8x512xf32>
    %248 = arith.addf %245, %247 : vector<8x512xf32>
    %249 = vector.extract_strided_slice %248 {offsets = [0, 0], sizes = [8, 384], strides = [1, 1]} : vector<8x512xf32> to vector<8x384xf32>
    %250 = arith.negf %249 : vector<8x384xf32>
    %251 = math.exp %250 : vector<8x384xf32>
    %cst_58 = arith.constant 1.000000e+00 : f32
    %252 = vector.broadcast %cst_58 : f32 to vector<8x384xf32>
    %253 = arith.addf %252, %251 : vector<8x384xf32>
    %254 = arith.divf %252, %253 : vector<8x384xf32>
    %255 = vector.extract_strided_slice %248 {offsets = [0, 384], sizes = [8, 128], strides = [1, 1]} : vector<8x512xf32> to vector<8x128xf32>
    %256 = math.tanh %255 : vector<8x128xf32>
    %257 = vector.extract_strided_slice %254 {offsets = [0, 0], sizes = [8, 128], strides = [1, 1]} : vector<8x384xf32> to vector<8x128xf32>
    %258 = vector.extract_strided_slice %254 {offsets = [0, 128], sizes = [8, 128], strides = [1, 1]} : vector<8x384xf32> to vector<8x128xf32>
    %259 = vector.extract_strided_slice %254 {offsets = [0, 256], sizes = [8, 128], strides = [1, 1]} : vector<8x384xf32> to vector<8x128xf32>
    %260 = arith.mulf %258, %241 : vector<8x128xf32>
    %261 = arith.mulf %257, %256 : vector<8x128xf32>
    %262 = arith.addf %260, %261 : vector<8x128xf32>
    %263 = math.tanh %262 : vector<8x128xf32>
    %264 = arith.mulf %259, %263 : vector<8x128xf32>
    %265 = vector.extract_strided_slice %219 {offsets = [2, 0, 0], sizes = [1, 8, 512], strides = [1, 1, 1]} : vector<8x8x512xf32> to vector<1x8x512xf32>
    %266 = vector.shape_cast %265 : vector<1x8x512xf32> to vector<8x512xf32>
    %267 = arith.truncf %264 : vector<8x128xf32> to vector<8x128xbf16>
    %cst_59 = arith.constant dense<0.000000e+00> : vector<8x512xf32>
    %268 = tpu.matmul %267, %220, %cst_59 {dimension_numbers = #tpu.dot_dimension_numbers<[1], [0], [0], [1], [0, 0, 1, 1], [], []>} : vector<8x128xbf16>, vector<128x512xbf16>, vector<8x512xf32> -> vector<8x512xf32>
    %269 = arith.addf %266, %268 : vector<8x512xf32>
    %270 = vector.extract_strided_slice %269 {offsets = [0, 0], sizes = [8, 384], strides = [1, 1]} : vector<8x512xf32> to vector<8x384xf32>
    %271 = arith.negf %270 : vector<8x384xf32>
    %272 = math.exp %271 : vector<8x384xf32>
    %cst_60 = arith.constant 1.000000e+00 : f32
    %273 = vector.broadcast %cst_60 : f32 to vector<8x384xf32>
    %274 = arith.addf %273, %272 : vector<8x384xf32>
    %275 = arith.divf %273, %274 : vector<8x384xf32>
    %276 = vector.extract_strided_slice %269 {offsets = [0, 384], sizes = [8, 128], strides = [1, 1]} : vector<8x512xf32> to vector<8x128xf32>
    %277 = math.tanh %276 : vector<8x128xf32>
    %278 = vector.extract_strided_slice %275 {offsets = [0, 0], sizes = [8, 128], strides = [1, 1]} : vector<8x384xf32> to vector<8x128xf32>
    %279 = vector.extract_strided_slice %275 {offsets = [0, 128], sizes = [8, 128], strides = [1, 1]} : vector<8x384xf32> to vector<8x128xf32>
    %280 = vector.extract_strided_slice %275 {offsets = [0, 256], sizes = [8, 128], strides = [1, 1]} : vector<8x384xf32> to vector<8x128xf32>
    %281 = arith.mulf %279, %262 : vector<8x128xf32>
    %282 = arith.mulf %278, %277 : vector<8x128xf32>
    %283 = arith.addf %281, %282 : vector<8x128xf32>
    %284 = math.tanh %283 : vector<8x128xf32>
    %285 = arith.mulf %280, %284 : vector<8x128xf32>
    %286 = vector.extract_strided_slice %219 {offsets = [3, 0, 0], sizes = [1, 8, 512], strides = [1, 1, 1]} : vector<8x8x512xf32> to vector<1x8x512xf32>
    %287 = vector.shape_cast %286 : vector<1x8x512xf32> to vector<8x512xf32>
    %288 = arith.truncf %285 : vector<8x128xf32> to vector<8x128xbf16>
    %cst_61 = arith.constant dense<0.000000e+00> : vector<8x512xf32>
    %289 = tpu.matmul %288, %220, %cst_61 {dimension_numbers = #tpu.dot_dimension_numbers<[1], [0], [0], [1], [0, 0, 1, 1], [], []>} : vector<8x128xbf16>, vector<128x512xbf16>, vector<8x512xf32> -> vector<8x512xf32>
    %290 = arith.addf %287, %289 : vector<8x512xf32>
    %291 = vector.extract_strided_slice %290 {offsets = [0, 0], sizes = [8, 384], strides = [1, 1]} : vector<8x512xf32> to vector<8x384xf32>
    %292 = arith.negf %291 : vector<8x384xf32>
    %293 = math.exp %292 : vector<8x384xf32>
    %cst_62 = arith.constant 1.000000e+00 : f32
    %294 = vector.broadcast %cst_62 : f32 to vector<8x384xf32>
    %295 = arith.addf %294, %293 : vector<8x384xf32>
    %296 = arith.divf %294, %295 : vector<8x384xf32>
    %297 = vector.extract_strided_slice %290 {offsets = [0, 384], sizes = [8, 128], strides = [1, 1]} : vector<8x512xf32> to vector<8x128xf32>
    %298 = math.tanh %297 : vector<8x128xf32>
    %299 = vector.extract_strided_slice %296 {offsets = [0, 0], sizes = [8, 128], strides = [1, 1]} : vector<8x384xf32> to vector<8x128xf32>
    %300 = vector.extract_strided_slice %296 {offsets = [0, 128], sizes = [8, 128], strides = [1, 1]} : vector<8x384xf32> to vector<8x128xf32>
    %301 = vector.extract_strided_slice %296 {offsets = [0, 256], sizes = [8, 128], strides = [1, 1]} : vector<8x384xf32> to vector<8x128xf32>
    %302 = arith.mulf %300, %283 : vector<8x128xf32>
    %303 = arith.mulf %299, %298 : vector<8x128xf32>
    %304 = arith.addf %302, %303 : vector<8x128xf32>
    %305 = math.tanh %304 : vector<8x128xf32>
    %306 = arith.mulf %301, %305 : vector<8x128xf32>
    %307 = vector.extract_strided_slice %219 {offsets = [4, 0, 0], sizes = [1, 8, 512], strides = [1, 1, 1]} : vector<8x8x512xf32> to vector<1x8x512xf32>
    %308 = vector.shape_cast %307 : vector<1x8x512xf32> to vector<8x512xf32>
    %309 = arith.truncf %306 : vector<8x128xf32> to vector<8x128xbf16>
    %cst_63 = arith.constant dense<0.000000e+00> : vector<8x512xf32>
    %310 = tpu.matmul %309, %220, %cst_63 {dimension_numbers = #tpu.dot_dimension_numbers<[1], [0], [0], [1], [0, 0, 1, 1], [], []>} : vector<8x128xbf16>, vector<128x512xbf16>, vector<8x512xf32> -> vector<8x512xf32>
    %311 = arith.addf %308, %310 : vector<8x512xf32>
    %312 = vector.extract_strided_slice %311 {offsets = [0, 0], sizes = [8, 384], strides = [1, 1]} : vector<8x512xf32> to vector<8x384xf32>
    %313 = arith.negf %312 : vector<8x384xf32>
    %314 = math.exp %313 : vector<8x384xf32>
    %cst_64 = arith.constant 1.000000e+00 : f32
    %315 = vector.broadcast %cst_64 : f32 to vector<8x384xf32>
    %316 = arith.addf %315, %314 : vector<8x384xf32>
    %317 = arith.divf %315, %316 : vector<8x384xf32>
    %318 = vector.extract_strided_slice %311 {offsets = [0, 384], sizes = [8, 128], strides = [1, 1]} : vector<8x512xf32> to vector<8x128xf32>
    %319 = math.tanh %318 : vector<8x128xf32>
    %320 = vector.extract_strided_slice %317 {offsets = [0, 0], sizes = [8, 128], strides = [1, 1]} : vector<8x384xf32> to vector<8x128xf32>
    %321 = vector.extract_strided_slice %317 {offsets = [0, 128], sizes = [8, 128], strides = [1, 1]} : vector<8x384xf32> to vector<8x128xf32>
    %322 = vector.extract_strided_slice %317 {offsets = [0, 256], sizes = [8, 128], strides = [1, 1]} : vector<8x384xf32> to vector<8x128xf32>
    %323 = arith.mulf %321, %304 : vector<8x128xf32>
    %324 = arith.mulf %320, %319 : vector<8x128xf32>
    %325 = arith.addf %323, %324 : vector<8x128xf32>
    %326 = math.tanh %325 : vector<8x128xf32>
    %327 = arith.mulf %322, %326 : vector<8x128xf32>
    %328 = vector.extract_strided_slice %219 {offsets = [5, 0, 0], sizes = [1, 8, 512], strides = [1, 1, 1]} : vector<8x8x512xf32> to vector<1x8x512xf32>
    %329 = vector.shape_cast %328 : vector<1x8x512xf32> to vector<8x512xf32>
    %330 = arith.truncf %327 : vector<8x128xf32> to vector<8x128xbf16>
    %cst_65 = arith.constant dense<0.000000e+00> : vector<8x512xf32>
    %331 = tpu.matmul %330, %220, %cst_65 {dimension_numbers = #tpu.dot_dimension_numbers<[1], [0], [0], [1], [0, 0, 1, 1], [], []>} : vector<8x128xbf16>, vector<128x512xbf16>, vector<8x512xf32> -> vector<8x512xf32>
    %332 = arith.addf %329, %331 : vector<8x512xf32>
    %333 = vector.extract_strided_slice %332 {offsets = [0, 0], sizes = [8, 384], strides = [1, 1]} : vector<8x512xf32> to vector<8x384xf32>
    %334 = arith.negf %333 : vector<8x384xf32>
    %335 = math.exp %334 : vector<8x384xf32>
    %cst_66 = arith.constant 1.000000e+00 : f32
    %336 = vector.broadcast %cst_66 : f32 to vector<8x384xf32>
    %337 = arith.addf %336, %335 : vector<8x384xf32>
    %338 = arith.divf %336, %337 : vector<8x384xf32>
    %339 = vector.extract_strided_slice %332 {offsets = [0, 384], sizes = [8, 128], strides = [1, 1]} : vector<8x512xf32> to vector<8x128xf32>
    %340 = math.tanh %339 : vector<8x128xf32>
    %341 = vector.extract_strided_slice %338 {offsets = [0, 0], sizes = [8, 128], strides = [1, 1]} : vector<8x384xf32> to vector<8x128xf32>
    %342 = vector.extract_strided_slice %338 {offsets = [0, 128], sizes = [8, 128], strides = [1, 1]} : vector<8x384xf32> to vector<8x128xf32>
    %343 = vector.extract_strided_slice %338 {offsets = [0, 256], sizes = [8, 128], strides = [1, 1]} : vector<8x384xf32> to vector<8x128xf32>
    %344 = arith.mulf %342, %325 : vector<8x128xf32>
    %345 = arith.mulf %341, %340 : vector<8x128xf32>
    %346 = arith.addf %344, %345 : vector<8x128xf32>
    %347 = math.tanh %346 : vector<8x128xf32>
    %348 = arith.mulf %343, %347 : vector<8x128xf32>
    %349 = vector.extract_strided_slice %219 {offsets = [6, 0, 0], sizes = [1, 8, 512], strides = [1, 1, 1]} : vector<8x8x512xf32> to vector<1x8x512xf32>
    %350 = vector.shape_cast %349 : vector<1x8x512xf32> to vector<8x512xf32>
    %351 = arith.truncf %348 : vector<8x128xf32> to vector<8x128xbf16>
    %cst_67 = arith.constant dense<0.000000e+00> : vector<8x512xf32>
    %352 = tpu.matmul %351, %220, %cst_67 {dimension_numbers = #tpu.dot_dimension_numbers<[1], [0], [0], [1], [0, 0, 1, 1], [], []>} : vector<8x128xbf16>, vector<128x512xbf16>, vector<8x512xf32> -> vector<8x512xf32>
    %353 = arith.addf %350, %352 : vector<8x512xf32>
    %354 = vector.extract_strided_slice %353 {offsets = [0, 0], sizes = [8, 384], strides = [1, 1]} : vector<8x512xf32> to vector<8x384xf32>
    %355 = arith.negf %354 : vector<8x384xf32>
    %356 = math.exp %355 : vector<8x384xf32>
    %cst_68 = arith.constant 1.000000e+00 : f32
    %357 = vector.broadcast %cst_68 : f32 to vector<8x384xf32>
    %358 = arith.addf %357, %356 : vector<8x384xf32>
    %359 = arith.divf %357, %358 : vector<8x384xf32>
    %360 = vector.extract_strided_slice %353 {offsets = [0, 384], sizes = [8, 128], strides = [1, 1]} : vector<8x512xf32> to vector<8x128xf32>
    %361 = math.tanh %360 : vector<8x128xf32>
    %362 = vector.extract_strided_slice %359 {offsets = [0, 0], sizes = [8, 128], strides = [1, 1]} : vector<8x384xf32> to vector<8x128xf32>
    %363 = vector.extract_strided_slice %359 {offsets = [0, 128], sizes = [8, 128], strides = [1, 1]} : vector<8x384xf32> to vector<8x128xf32>
    %364 = vector.extract_strided_slice %359 {offsets = [0, 256], sizes = [8, 128], strides = [1, 1]} : vector<8x384xf32> to vector<8x128xf32>
    %365 = arith.mulf %363, %346 : vector<8x128xf32>
    %366 = arith.mulf %362, %361 : vector<8x128xf32>
    %367 = arith.addf %365, %366 : vector<8x128xf32>
    %368 = math.tanh %367 : vector<8x128xf32>
    %369 = arith.mulf %364, %368 : vector<8x128xf32>
    %370 = vector.extract_strided_slice %219 {offsets = [7, 0, 0], sizes = [1, 8, 512], strides = [1, 1, 1]} : vector<8x8x512xf32> to vector<1x8x512xf32>
    %371 = vector.shape_cast %370 : vector<1x8x512xf32> to vector<8x512xf32>
    %372 = arith.truncf %369 : vector<8x128xf32> to vector<8x128xbf16>
    %cst_69 = arith.constant dense<0.000000e+00> : vector<8x512xf32>
    %373 = tpu.matmul %372, %220, %cst_69 {dimension_numbers = #tpu.dot_dimension_numbers<[1], [0], [0], [1], [0, 0, 1, 1], [], []>} : vector<8x128xbf16>, vector<128x512xbf16>, vector<8x512xf32> -> vector<8x512xf32>
    %374 = arith.addf %371, %373 : vector<8x512xf32>
    %375 = vector.extract_strided_slice %374 {offsets = [0, 0], sizes = [8, 384], strides = [1, 1]} : vector<8x512xf32> to vector<8x384xf32>
    %376 = arith.negf %375 : vector<8x384xf32>
    %377 = math.exp %376 : vector<8x384xf32>
    %cst_70 = arith.constant 1.000000e+00 : f32
    %378 = vector.broadcast %cst_70 : f32 to vector<8x384xf32>
    %379 = arith.addf %378, %377 : vector<8x384xf32>
    %380 = arith.divf %378, %379 : vector<8x384xf32>
    %381 = vector.extract_strided_slice %374 {offsets = [0, 384], sizes = [8, 128], strides = [1, 1]} : vector<8x512xf32> to vector<8x128xf32>
    %382 = math.tanh %381 : vector<8x128xf32>
    %383 = vector.extract_strided_slice %380 {offsets = [0, 0], sizes = [8, 128], strides = [1, 1]} : vector<8x384xf32> to vector<8x128xf32>
    %384 = vector.extract_strided_slice %380 {offsets = [0, 128], sizes = [8, 128], strides = [1, 1]} : vector<8x384xf32> to vector<8x128xf32>
    %385 = vector.extract_strided_slice %380 {offsets = [0, 256], sizes = [8, 128], strides = [1, 1]} : vector<8x384xf32> to vector<8x128xf32>
    %386 = arith.mulf %384, %367 : vector<8x128xf32>
    %387 = arith.mulf %383, %382 : vector<8x128xf32>
    %388 = arith.addf %386, %387 : vector<8x128xf32>
    %389 = math.tanh %388 : vector<8x128xf32>
    %390 = arith.mulf %385, %389 : vector<8x128xf32>
    %391 = arith.truncf %390 : vector<8x128xf32> to vector<8x128xbf16>
    %c0_71 = arith.constant 0 : index
    %c0_72 = arith.constant 0 : index
    %392 = vector.load %arg7[%c0_71, %c0_72] : memref<128x128xbf16, #tpu.memory_space<vmem>>, vector<128x128xbf16>
    %cst_73 = arith.constant dense<0.000000e+00> : vector<8x128xf32>
    %393 = tpu.matmul %391, %392, %cst_73 {dimension_numbers = #tpu.dot_dimension_numbers<[1], [0], [0], [1], [0, 0, 1, 1], [], []>} : vector<8x128xbf16>, vector<128x128xbf16>, vector<8x128xf32> -> vector<8x128xf32>
    %c0_74 = arith.constant 0 : index
    %c0_75 = arith.constant 0 : index
    %394 = vector.load %arg8[%c0_74, %c0_75] : memref<1x128xf32, #tpu.memory_space<vmem>>, vector<1x128xf32>
    %395 = vector.broadcast %394 : vector<1x128xf32> to vector<8x128xf32>
    %396 = arith.addf %393, %395 : vector<8x128xf32>
    %c0_76 = arith.constant 0 : index
    %c0_77 = arith.constant 0 : index
    %397 = vector.load %arg9[%c0_76, %c0_77] : memref<8x128xf32, #tpu.memory_space<vmem>>, vector<8x128xf32>
    tpu.vector_store %arg9[%c0_76, %c0_77], %396 {strides = array<i32>} : memref<8x128xf32, #tpu.memory_space<vmem>>, vector<8x128xf32>,
    return
  }
}

</mosaic_0001>

<bundles_post_ra>
// kernel: tpu_custom_call.1
= control target key start
LH: loop header
LB: loop body
LE: loop exit
PB: predicated region body
PF: predicated region fallthrough
CT: control target
= control target key end

     0   :  { %14 = vsyncpa [#allocation4], 0  ;;  %s10397_s0 = inlined_call_operand.hbm [shape: f32[8,8,16], index: 0, kind: input, shape index: {}]   ;;  %s10398_s1 = inlined_call_operand.hbm [shape: bf16[16,512], index: 1, kind: input, shape index: {}]   ;;  %s10399_s2 = inlined_call_operand.hbm [shape: bf16[128,512], index: 2, kind: input, shape index: {}]   ;;  %s10400_s3 = inlined_call_operand.vmem [shape: f32[1,512], index: 3, kind: input, shape index: {}]   ;;  %s10401_s4 = inlined_call_operand.hbm [shape: bf16[128,512], index: 4, kind: input, shape index: {}]   ;;  %s10402_s5 = inlined_call_operand.hbm [shape: bf16[128,512], index: 5, kind: input, shape index: {}]   ;;  %s10403_s6 = inlined_call_operand.vmem [shape: f32[1,512], index: 6, kind: input, shape index: {}]   ;;  %s10404_s7 = inlined_call_operand.hbm [shape: bf16[128,128], index: 7, kind: input, shape index: {}]   ;;  %s10405_s8 = inlined_call_operand.vmem [shape: f32[1,128], index: 8, kind: input, shape index: {}]   ;;  %s10406_s9 = inlined_call_operand.hbm [shape: f32[8,128], index: 9, kind: output, shape index: {}]  }
   0x1   :  { %15 = vsyncpa [#allocation7], 0 }
   0x2   :  { %16 = vsyncpa [#allocation10], 0 }
   0x3   :  { %17 = vsyncpa [#allocation13], 0 }
   0x4   :  { %18 = vsyncpa [#allocation5], 0  ;;  %s7971_s30 = smov [#allocation6]  }
   0x5   :  { %s36_s10 = sshll.u32 %s7971_s30, 4  ;;  %s37_s10 = int_to_ptr.vmem [resolvable:$true] %s36_s10 }
   0x6   :  { %s7829_s11 = scalar_lea.vmem %s37_s10, 512  ;;  %p7834_p1 = scmp.lt.s32.totalorder %s37_s10, %s37_s10 }
   0x7   :  { %p7830_p0 = scmp.ne.s32.totalorder %s37_s10, %s7829_s11  ;;  %p7835_p2 = scmp.lt.s32.totalorder %s7829_s11, %s7829_s11 }
   0x9   :  { %p7836_p3 = por %p7835_p2, %p7834_p1 }
   0xb   :  { %p7837_p4 = pnand %p7836_p3, %p7830_p0 }
   0xd   :  { %7840 = shalt.err (!%p7837_p4)
}
   0xe   :  { %s7972_s12 = smov 256   ;;  %s7973_s13 = smov 16  }
   0xf   :  { %42 = dma.hbm_to_vmem [thread:$0]  %s10398_s1, 512, %s37_s10, [#allocation7], %s7972_s12, %s7972_s12, %s7973_s13  }
  0x10   :  { %s7974_s16 = smov [#allocation9]   ;;  %s7975_s18 = smov [#allocation3]  }
  0x11   :  { %s62_s17 = sshll.u32 %s7974_s16, 4  ;;  %s24_s19 = sshll.u32 %s7975_s18, 4  ;;  %s63_s17 = int_to_ptr.vmem [resolvable:$true] %s62_s17  ;;  %s25_s19 = int_to_ptr.vmem [resolvable:$true] %s24_s19 }
  0x12   :  { %s7849_s20 = scalar_lea.vmem %s63_s17, 4096  ;;  %p7854_p6 = scmp.lt.s32.totalorder %s63_s17, %s63_s17 }
  0x13   :  { %p7850_p5 = scmp.ne.s32.totalorder %s63_s17, %s7849_s20  ;;  %p7855_p7 = scmp.lt.s32.totalorder %s7849_s20, %s7849_s20 }
  0x15   :  { %p7856_p8 = por %p7855_p7, %p7854_p6 }
  0x17   :  { %p7857_p9 = pnand %p7856_p8, %p7850_p5 }
  0x19   :  { %7860 = shalt.err (!%p7857_p9)
}
  0x1a   :  { %68 = dma.hbm_to_vmem [thread:$0]  %s10401_s4, 4096, %s63_s17, [#allocation10], %s7972_s12, %s7972_s12, %s7973_s13  }
  0x1b   :  { %s7869_s1 = scalar_lea.vmem %s25_s19, 1024  ;;  %p7874_p11 = scmp.lt.s32.totalorder %s25_s19, %s25_s19 }
  0x1c   :  { %p7870_p10 = scmp.ne.s32.totalorder %s25_s19, %s7869_s1  ;;  %p7875_p12 = scmp.lt.s32.totalorder %s7869_s1, %s7869_s1 }
  0x1e   :  { %p7876_p13 = por %p7875_p12, %p7874_p11 }
  0x20   :  { %p7877_p0 = pnand %p7876_p13, %p7870_p10 }
  0x22   :  { %7880 = shalt.err (!%p7877_p0)
}
  0x23   :  { %s7976_s23 = smov 128   ;;  %s7977_s24 = smov 8  }
  0x24   :  { %30 = dma.hbm_to_vmem [thread:$0]  %s10397_s0, 1024, %s25_s19, [#allocation4], %s7976_s23, %s7976_s23, %s7977_s24  }
  0x25   :  { %s7978_s27 = smov [#allocation8]   ;;  %s7979_s29 = smov [#allocation11]  }
  0x26   :  { %s48_s28 = sshll.u32 %s7978_s27, 4  ;;  %s74_s30 = sshll.u32 %s7979_s29, 4  ;;  %s49_s28 = int_to_ptr.vmem [resolvable:$true] %s48_s28  ;;  %s75_s30 = int_to_ptr.vmem [resolvable:$true] %s74_s30 }
  0x27   :  { %s7889_s4 = scalar_lea.vmem %s49_s28, 4096  ;;  %p7894_p2 = scmp.lt.s32.totalorder %s49_s28, %s49_s28 }
  0x28   :  { %p7890_p1 = scmp.ne.s32.totalorder %s49_s28, %s7889_s4  ;;  %p7895_p3 = scmp.lt.s32.totalorder %s7889_s4, %s7889_s4 }
  0x2a   :  { %p7896_p4 = por %p7895_p3, %p7894_p2 }
  0x2c   :  { %p7897_p5 = pnand %p7896_p4, %p7890_p1 }
  0x2e   :  { %7900 = shalt.err (!%p7897_p5)
}
  0x2f   :  { %54 = dma.hbm_to_vmem [thread:$0]  %s10399_s2, 4096, %s49_s28, [#allocation7], %s7972_s12, %s7972_s12, %s7973_s13  }
  0x30   :  { %s7909_s0 = scalar_lea.vmem %s75_s30, 4096  ;;  %p7914_p7 = scmp.lt.s32.totalorder %s75_s30, %s75_s30 }
  0x31   :  { %p7910_p6 = scmp.ne.s32.totalorder %s75_s30, %s7909_s0  ;;  %p7915_p8 = scmp.lt.s32.totalorder %s7909_s0, %s7909_s0 }
  0x33   :  { %p7916_p9 = por %p7915_p8, %p7914_p7 }
  0x35   :  { %p7917_p10 = pnand %p7916_p9, %p7910_p6 }
  0x37   :  { %7920 = shalt.err (!%p7917_p10)
}
  0x38   :  { %80 = dma.hbm_to_vmem [thread:$0]  %s10402_s5, 4096, %s75_s30, [#allocation10], %s7972_s12, %s7972_s12, %s7973_s13  }
  0x39   :  { %s7980_s16 = smov [#allocation12]  }
  0x3a   :  { %s88_s17 = sshll.u32 %s7980_s16, 4  ;;  %s89_s17 = int_to_ptr.vmem [resolvable:$true] %s88_s17 }
  0x3b   :  { %s7929_s18 = scalar_lea.vmem %s89_s17, 1024  ;;  %p7934_p12 = scmp.lt.s32.totalorder %s89_s17, %s89_s17 }
  0x3c   :  { %p7930_p11 = scmp.ne.s32.totalorder %s89_s17, %s7929_s18  ;;  %p7935_p13 = scmp.lt.s32.totalorder %s7929_s18, %s7929_s18 }
  0x3e   :  { %p7936_p0 = por %p7935_p13, %p7934_p12 }
  0x40   :  { %p7937_p1 = pnand %p7936_p0, %p7930_p11 }
  0x42   :  { %7940 = shalt.err (!%p7937_p1)
}
  0x43   :  { %s7981_s2 = smov 64   ;;  %s7982_s19 = smov 4  }
  0x44   :  { %94 = dma.hbm_to_vmem [thread:$0]  %s10404_s7, 1024, %s89_s17, [#allocation13], %s7981_s2, %s7981_s2, %s7982_s19  }
  0x45   :  { %7961 = dma.done.wait [#allocation4], 1024  }
  0x46   :  { %7962 = vsyncadd [#allocation4], 4294966272 }
  0x47   :  { %7963 = dma.done.wait [#allocation7], 4608  }
  0x48   :  { %7964 = vsyncadd [#allocation7], 4294962688 }
  0x49   :  { %7965 = dma.done.wait [#allocation10], 8192  }
  0x4a   :  { %7966 = vsyncadd [#allocation10], 4294959104 }
  0x4b   :  { %7967 = dma.done.wait [#allocation13], 1024  }
  0x4c   :  { %7968 = vsyncadd [#allocation13], 4294966272  ;;  %v10411_v0 = vmov 0   ;;  %v6379_v1 = vld [vmem:[#allocation6 + $0x4] ss:$16 sps:$4 sm:$0xff]   ;;  %v117_v6 = vld [vmem:[#allocation3 + $0x8] sm:$0xff] }
  0x4d   :  { %243 = vmatprep.mubr.bf16.mxu0 %v10411_v0  ;;  %316 = vmatprep.mubr.bf16.mxu1 %v10411_v0  ;;  %v6381_v2 = vld [vmem:[#allocation6 + $0xc] ss:$16 sps:$4 sm:$0xff]   ;;  %v6383_v3 = vld [vmem:[#allocation6] ss:$16 sps:$4 sm:$0xff]   ;;  %v6384_v4 = vld [vmem:[#allocation6 + $0x8] ss:$16 sps:$4 sm:$0xff]  }
  0x4e   :  { %225 = vmatprep.subr.bf16.mxu0 %v6379_v1  ;;  %v116_v5 = vld [vmem:[#allocation3] sm:$0xff]  ;;  %298 = vmatprep.subr.bf16.mxu1 %v6381_v2  ;;  %vm198_vm0 = vcmask 130048   ;;  %v8071_v9 = vld [vmem:[#allocation8 + $0xec] ss:$16 sps:$4 sm:$0xff]   ;;  %v8075_v11 = vld [vmem:[#allocation8 + $0xe8] ss:$16 sps:$4 sm:$0xff]   ;;  %v138_v2 = vlaneseq }
  0x4f   :  { %226 = vmatpush1.bf16.msra.mxu0 %v6383_v3  ;;  %299 = vmatpush1.bf16.msra.mxu1 %v6384_v4  ;;  %v6266_v7 = vpack.c.bf16 %v117_v6, %v116_v5  ;;  %v8069_v8 = vld [vmem:[#allocation8 + $0xe4] ss:$16 sps:$4 sm:$0xff]   ;;  %v8073_v10 = vld [vmem:[#allocation8 + $0xe0] ss:$16 sps:$4 sm:$0xff]   ;;  %v8082_v13 = vld [vmem:[#allocation8 + $0xcc] ss:$16 sps:$4 sm:$0xff]  }
  0x50   :  { %549 = vmatprep.subr.bf16.mxu0 %v8069_v8  ;;  %v8078_v12 = vld [vmem:[#allocation8 + $0xc4] ss:$16 sps:$4 sm:$0xff]   ;;  %590 = vmatprep.subr.bf16.mxu1 %v8071_v9  ;;  %v8086_v14 = vld [vmem:[#allocation8 + $0xc0] ss:$16 sps:$4 sm:$0xff]   ;;  %v8088_v15 = vld [vmem:[#allocation8 + $0xc8] ss:$16 sps:$4 sm:$0xff]  }
  0x51   :  { %v118_v16 = vld [vmem:[#allocation3 + $0x10] sm:$0xff]  ;;  %v119_v17 = vld [vmem:[#allocation3 + $0x18] sm:$0xff]  ;;  %v120_v26 = vld [vmem:[#allocation3 + $0x20] sm:$0xff]  ;;  %vm960_vm1 = vcmask 1041409   ;;  %vm963_vm2 = vcmask 1042434   ;;  %vm966_vm3 = vcmask 1043459  }
  0x52   :  { %5869 = vmatmul.mubr.msk.bf16.vlgmr.msra.gmra.mxu0 %vm198_vm0, %v6266_v7  ;;  %5873 = vmatmul.mubr.msk.bf16.vlgmr.msra.gmra.mxu1 %vm198_vm0, %v6266_v7  ;;  %v8094_v18 = vld [vmem:[#allocation8 + $0xa4] ss:$16 sps:$4 sm:$0xff]   ;;  %v6267_v19 = vpack.c.bf16 %v119_v17, %v118_v16  ;;  %v8097_v20 = vld [vmem:[#allocation8 + $0xac] ss:$16 sps:$4 sm:$0xff]   ;;  %v8099_v21 = vld [vmem:[#allocation8 + $0xa0] ss:$16 sps:$4 sm:$0xff]  }
  0x53   :  { %550 = vmatpush1.bf16.msra.mxu0 %v8073_v10  ;;  %591 = vmatpush1.bf16.msra.mxu1 %v8075_v11  ;;  %v8102_v22 = vld [vmem:[#allocation8 + $0xa8] ss:$16 sps:$4 sm:$0xff]   ;;  %v8106_v23 = vld [vmem:[#allocation8 + $0x84] ss:$16 sps:$4 sm:$0xff]   ;;  %v8109_v24 = vld [vmem:[#allocation8 + $0x8c] ss:$16 sps:$4 sm:$0xff]  }
  0x54   :  { %551 = vmatprep.subr.bf16.mxu0 %v8078_v12  ;;  %592 = vmatprep.subr.bf16.mxu1 %v8082_v13  ;;  %v8111_v25 = vld [vmem:[#allocation8 + $0x80] ss:$16 sps:$4 sm:$0xff]   ;;  %v121_v27 = vld [vmem:[#allocation3 + $0x28] sm:$0xff]  ;;  %v8121_v29 = vld [vmem:[#allocation8 + $0x64] ss:$16 sps:$4 sm:$0xff]   ;;  %v8201_v7 = vshrl.u32 %v138_v2, 7 }
  0x55   :  { %253 = vmatprep.mubr.bf16.mxu0 %v10411_v0  ;;  %326 = vmatprep.mubr.bf16.mxu1 %v10411_v0  ;;  %v8119_v28 = vld [vmem:[#allocation8 + $0x88] ss:$16 sps:$4 sm:$0xff]   ;;  %v8125_v30 = vld [vmem:[#allocation8 + $0x6c] ss:$16 sps:$4 sm:$0xff]   ;;  %v6268_v31 = vpack.c.bf16 %v121_v27, %v120_v26  ;;  %v8128_v32 = vld [vmem:[#allocation8 + $0x60] ss:$16 sps:$4 sm:$0xff]  }
  0x56   :  { %v8130_v33 = vld [vmem:[#allocation8 + $0x68] ss:$16 sps:$4 sm:$0xff]   ;;  %v6415_v34 = vld [vmem:[#allocation8 + $0x44] ss:$16 sps:$4 sm:$0xff]   ;;  %v6417_v35 = vld [vmem:[#allocation8 + $0x4c] ss:$16 sps:$4 sm:$0xff]  }
  0x57   :  { %552 = vmatpush1.bf16.msra.mxu0 %v8086_v14  ;;  %593 = vmatpush1.bf16.msra.mxu1 %v8088_v15  ;;  %v6419_v36 = vld [vmem:[#allocation8 + $0x40] ss:$16 sps:$4 sm:$0xff]   ;;  %v6420_v37 = vld [vmem:[#allocation8 + $0x48] ss:$16 sps:$4 sm:$0xff]   ;;  %v6421_v40 = vld [vmem:[#allocation8 + $0x24] ss:$16 sps:$4 sm:$0xff]  }
  0x58   :  { %553 = vmatprep.subr.bf16.mxu0 %v8094_v18  ;;  %594 = vmatprep.subr.bf16.mxu1 %v8097_v20  ;;  %v122_v38 = vld [vmem:[#allocation3 + $0x30] sm:$0xff]  ;;  %v123_v39 = vld [vmem:[#allocation3 + $0x38] sm:$0xff]  ;;  %10586 = vst [vmem:[#allocation20_spill] sm:$0xff] %v8201_v7  ;;  %vm969_vm4 = vcmask 1044484   ;;  %vm972_vm5 = vcmask 1045509   ;;  %vm975_vm6 = vcmask 1046534  }
  0x59   :  { %v6423_v41 = vld [vmem:[#allocation8 + $0x2c] ss:$16 sps:$4 sm:$0xff]   ;;  %v6425_v42 = vld [vmem:[#allocation8 + $0x20] ss:$16 sps:$4 sm:$0xff]   ;;  %v6269_v43 = vpack.c.bf16 %v123_v39, %v122_v38  ;;  %v6426_v44 = vld [vmem:[#allocation8 + $0x28] ss:$16 sps:$4 sm:$0xff]  }
  0x5a   :  { %5870 = vmatmul.mubr.msk.bf16.gmra.mxu0 %vm198_vm0, %v6267_v19  ;;  %5874 = vmatmul.mubr.msk.bf16.gmra.mxu1 %vm198_vm0, %v6267_v19  ;;  %v6427_v45 = vld [vmem:[#allocation8 + $0x4] ss:$16 sps:$4 sm:$0xff]   ;;  %v6429_v46 = vld [vmem:[#allocation8 + $0xc] ss:$16 sps:$4 sm:$0xff]   ;;  %v6431_v47 = vld [vmem:[#allocation8] ss:$16 sps:$4 sm:$0xff]  }
  0x5b   :  { %554 = vmatpush1.bf16.msra.mxu0 %v8099_v21  ;;  %263 = vmatprep.mubr.bf16.mxu0 %v10411_v0  ;;  %v6432_v48 = vld [vmem:[#allocation8 + $0x8] ss:$16 sps:$4 sm:$0xff]   ;;  %vm978_vm7 = vcmask 1047559   ;;  %vm7985_vm8 = vmmov 0   ;;  %s7986_s22 = smov [#allocation14]  }
  0x5c   :  { %595 = vmatpush1.bf16.msra.mxu1 %v8102_v22  ;;  %555 = vmatprep.subr.bf16.mxu0 %v8106_v23  ;;  %s5849_s1 = sshll.u32 %s7986_s22, 4  ;;  %s5850_s1 = int_to_ptr.vmem [resolvable:$true] %s5849_s1 }
  0x5d   :  { %596 = vmatprep.subr.bf16.mxu1 %v8109_v24  ;;  %336 = vmatprep.mubr.bf16.mxu1 %v10411_v0  ;;  %s7941_s23 = scalar_lea.vmem %s5850_s1, 128  ;;  %p7946_p3 = scmp.lt.s32.totalorder %s5850_s1, %s5850_s1 }
  0x5e   :  { %p7942_p2 = scmp.ne.s32.totalorder %s5850_s1, %s7941_s23  ;;  %p7947_p4 = scmp.lt.s32.totalorder %s7941_s23, %s7941_s23 }
  0x5f   :  { %556 = vmatpush1.bf16.msra.mxu0 %v8111_v25 }
  0x60   :  { %597 = vmatpush1.bf16.msra.mxu1 %v8119_v28  ;;  %557 = vmatprep.subr.bf16.mxu0 %v8121_v29  ;;  %p7948_p5 = por %p7947_p4, %p7946_p3 }
  0x61   :  { %598 = vmatprep.subr.bf16.mxu1 %v8125_v30 }
  0x62   :  { %5871 = vmatmul.mubr.msk.bf16.gmra.mxu0 %vm198_vm0, %v6268_v31  ;;  %5875 = vmatmul.mubr.msk.bf16.gmra.mxu1 %vm198_vm0, %v6268_v31  ;;  %p7949_p6 = pnand %p7948_p5, %p7942_p2 }
  0x63   :  { %558 = vmatpush1.bf16.msra.mxu0 %v8128_v32  ;;  %273 = vmatprep.mubr.bf16.mxu0 %v10411_v0 }
  0x64   :  { %599 = vmatpush1.bf16.msra.mxu1 %v8130_v33  ;;  %559 = vmatprep.subr.bf16.mxu0 %v6415_v34 }
  0x65   :  { %600 = vmatprep.subr.bf16.mxu1 %v6417_v35  ;;  %346 = vmatprep.mubr.bf16.mxu1 %v10411_v0 }
  0x67   :  { %560 = vmatpush1.bf16.msra.mxu0 %v6419_v36 }
  0x68   :  { %601 = vmatpush1.bf16.msra.mxu1 %v6420_v37  ;;  %561 = vmatprep.subr.bf16.mxu0 %v6421_v40 }
  0x69   :  { %602 = vmatprep.subr.bf16.mxu1 %v6423_v41 }
  0x6a   :  { %5872 = vmatmul.mubr.msk.bf16.gmra.mxu0 %vm198_vm0, %v6269_v43  ;;  %5876 = vmatmul.mubr.msk.bf16.gmra.mxu1 %vm198_vm0, %v6269_v43 }
  0x6b   :  { %562 = vmatpush1.bf16.msra.mxu0 %v6425_v42  ;;  %581 = vmatprep.mubr.bf16.mxu0 %v10411_v0 }
  0x6c   :  { %603 = vmatpush1.bf16.msra.mxu1 %v6426_v44  ;;  %563 = vmatprep.subr.bf16.mxu0 %v6427_v45 }
  0x6d   :  { %604 = vmatprep.subr.bf16.mxu1 %v6429_v46  ;;  %622 = vmatprep.mubr.bf16.mxu1 %v10411_v0 }
  0x6f   :  { %564 = vmatpush1.bf16.msra.mxu0 %v6431_v47 }
  0x70   :  { %605 = vmatpush1.bf16.msra.mxu1 %v6432_v48  ;;  %999 = vmatprep.subr.bf16.mxu0 %v8069_v8 }
  0x71   :  { %1040 = vmatprep.subr.bf16.mxu1 %v8071_v9 }
  0x72   :  { %582 = vmatmul.mubr.bf16.vlgmr.msra.gmra.mxu0 %v10411_v0 }
  0x73   :  { %623 = vmatmul.mubr.bf16.vlgmr.msra.gmra.mxu1 %v10411_v0  ;;  %1000 = vmatpush1.bf16.msra.mxu0 %v8073_v10 }
  0x74   :  { %1041 = vmatpush1.bf16.msra.mxu1 %v8075_v11  ;;  %1001 = vmatprep.subr.bf16.mxu0 %v8078_v12  ;;  %v10410_v12 = vsub.s32 0, %v8201_v7 }
  0x75   :  { %1042 = vmatprep.subr.bf16.mxu1 %v8082_v13  ;;  %1031 = vmatprep.mubr.bf16.mxu0 %v10411_v0 }
  0x76   :  { %1072 = vmatprep.mubr.bf16.mxu1 %v10411_v0 }
  0x77   :  { %1002 = vmatpush1.bf16.msra.mxu0 %v8086_v14 }
  0x78   :  { %1043 = vmatpush1.bf16.msra.mxu1 %v8088_v15  ;;  %1003 = vmatprep.subr.bf16.mxu0 %v8094_v18  ;;  %v8215_v15 = vld [vmem:[%s10400_s3] sm:$0xf] }
  0x79   :  { %1044 = vmatprep.subr.bf16.mxu1 %v8097_v20  ;;  %v141_v18 = vrot.slane %v8215_v15, %v10410_v12 }
  0x7b   :  { %1004 = vmatpush1.bf16.msra.mxu0 %v8099_v21 }
  0x7c   :  { %1045 = vmatpush1.bf16.msra.mxu1 %v8102_v22  ;;  %1005 = vmatprep.subr.bf16.mxu0 %v8106_v23 }
  0x7d   :  { %1046 = vmatprep.subr.bf16.mxu1 %v8109_v24 }
  0x7f   :  { %1006 = vmatpush1.bf16.msra.mxu0 %v8111_v25 }
  0x80   :  { %1047 = vmatpush1.bf16.msra.mxu1 %v8119_v28  ;;  %1007 = vmatprep.subr.bf16.mxu0 %v8121_v29 }
  0x81   :  { %1048 = vmatprep.subr.bf16.mxu1 %v8125_v30  ;;  %v10408_v30 = vsub.s32 2, %v8201_v7 }
  0x83   :  { %1008 = vmatpush1.bf16.msra.mxu0 %v8128_v32 }
  0x84   :  { %1049 = vmatpush1.bf16.msra.mxu1 %v8130_v33  ;;  %1009 = vmatprep.subr.bf16.mxu0 %v6415_v34 }
  0x85   :  { %1050 = vmatprep.subr.bf16.mxu1 %v6417_v35 }
  0x87   :  { %1010 = vmatpush1.bf16.msra.mxu0 %v6419_v36 }
  0x88   :  { %1051 = vmatpush1.bf16.msra.mxu1 %v6420_v37  ;;  %1011 = vmatprep.subr.bf16.mxu0 %v6421_v40 }
  0x89   :  { %1052 = vmatprep.subr.bf16.mxu1 %v6423_v41 }
  0x8b   :  { %1012 = vmatpush1.bf16.msra.mxu0 %v6425_v42 }
  0x8c   :  { %1053 = vmatpush1.bf16.msra.mxu1 %v6426_v44  ;;  %1013 = vmatprep.subr.bf16.mxu0 %v6427_v45 }
  0x8d   :  { %1054 = vmatprep.subr.bf16.mxu1 %v6429_v46 }
  0x8f   :  { %1014 = vmatpush1.bf16.msra.mxu0 %v6431_v47  ;;  %v149_v47 = vrot.slane %v8215_v15, %v10408_v30 }
  0x90   :  { %1055 = vmatpush1.bf16.msra.mxu1 %v6432_v48  ;;  %1467 = vmatprep.subr.bf16.mxu0 %v8069_v8 }
  0x91   :  { %1508 = vmatprep.subr.bf16.mxu1 %v8071_v9 }
 0x112   :  { %v245_v49 = vpop.f32.mrf.mxu0  ;;  %v8171_v50 = vpop.f32.mrf.mxu1 }
 0x113   :  { %v8230_v23 = vadd.f32 %v245_v49, %v141_v18 }
 0x114   :  { %v8173_v51 = vpop.f32.mrf.mxu0  ;;  %v8175_v52 = vpop.f32.mrf.mxu1 }
 0x115   :  { %10587 = vst [vmem:[#allocation21_spill] sm:$0xff] %v8230_v23 }
 0x116   :  { %v249_v53 = vpop.f32.mrf.mxu0  ;;  %v8177_v54 = vpop.f32.mrf.mxu1 }
 0x117   :  { %v8232_v25 = vadd.f32 %v249_v53, %v141_v18 }
 0x118   :  { %v8179_v55 = vpop.f32.mrf.mxu0  ;;  %v8181_v56 = vpop.f32.mrf.mxu1 }
 0x119   :  { %10588 = vst [vmem:[#allocation22_spill] sm:$0xff] %v8232_v25 }
 0x11a   :  { %v255_v57 = vpop.f32.mrf.mxu0  ;;  %v8183_v58 = vpop.f32.mrf.mxu1 }
 0x11b   :  { %v8237_v31 = vadd.f32 %v255_v57, %v141_v18 }
 0x11c   :  { %v8185_v59 = vpop.f32.mrf.mxu0  ;;  %v8187_v60 = vpop.f32.mrf.mxu1 }
 0x11e   :  { %v259_v61 = vpop.f32.mrf.mxu0  ;;  %v8189_v62 = vpop.f32.mrf.mxu1 }
 0x11f   :  { %v8242_v35 = vadd.f32 %v259_v61, %v141_v18 }
 0x120   :  { %v8191_v63 = vpop.f32.mrf.mxu0  ;;  %v8193_v1 = vpop.f32.mrf.mxu1 }
 0x121   :  { %10589 = vst [vmem:[#allocation23_spill] sm:$0xff] %v8242_v35 }
 0x122   :  { %v265_v3 = vpop.f32.mrf.mxu0  ;;  %v8195_v4 = vpop.f32.mrf.mxu1 }
 0x123   :  { %v8247_v39 = vadd.f32 %v265_v3, %v141_v18 }
 0x124   :  { %v8197_v5 = vpop.f32.mrf.mxu0  ;;  %v8199_v6 = vpop.f32.mrf.mxu1 }
 0x126   :  { %v269_v8 = vpop.f32.mrf.mxu0  ;;  %v8203_v9 = vpop.f32.mrf.mxu1 }
 0x127   :  { %v8250_v43 = vadd.f32 %v269_v8, %v141_v18 }
 0x128   :  { %v8205_v10 = vpop.f32.mrf.mxu0  ;;  %v8207_v11 = vpop.f32.mrf.mxu1 }
 0x129   :  { %10590 = vst [vmem:[#allocation24_spill] sm:$0xff] %v8250_v43 }
 0x12a   :  { %v275_v13 = vpop.f32.mrf.mxu0  ;;  %v8210_v14 = vpop.f32.mrf.mxu1 }
 0x12b   :  { %v8256_v48 = vadd.f32 %v275_v13, %v141_v18  ;;  %v10409_v13 = vsub.s32 1, %v8201_v7 }
 0x12c   :  { %v8217_v16 = vpop.f32.mrf.mxu0  ;;  %v8219_v17 = vpop.f32.mrf.mxu1 }
 0x12e   :  { %v279_v19 = vpop.f32.mrf.mxu0  ;;  %v8224_v20 = vpop.f32.mrf.mxu1 }
 0x12f   :  { %v8259_v61 = vadd.f32 %v279_v19, %v141_v18  ;;  %v8269_v18 = vadd.f32 %v8177_v54, %v149_v47  ;;  %v8281_v54 = vadd.f32 %v8195_v4, %v149_v47 }
 0x130   :  { %v8226_v21 = vpop.f32.mrf.mxu0  ;;  %v8228_v22 = vpop.f32.mrf.mxu1 }
 0x132   :  { %v583_v24 = vpop.f32.mrf.mxu0 }
 0x133   :  { %v635_v26 = vrot.slane %v583_v24, 1  ;;  %v639_v27 = vrot.slane %v583_v24, 2  ;;  %v643_v28 = vrot.slane %v583_v24, 3  ;;  %v8234_v29 = vpop.f32.mrf.mxu1  ;;  %v647_v32 = vrot.slane %v583_v24, 4 }
 0x134   :  { %v695_v33 = vadd.f32 %v583_v24, %v8230_v23  ;;  %v8240_v34 = vpop.f32.mrf.mxu0  ;;  %v651_v36 = vrot.slane %v583_v24, 5  ;;  %v655_v40 = vrot.slane %v583_v24, 6  ;;  %v659_v44 = vrot.slane %v583_v24, 7 }
 0x135   :  { %v699_v37 = vadd.f32 %v635_v26, %v8232_v25  ;;  %v8245_v38 = vpop.f32.mrf.mxu1  ;;  %v703_v41 = vadd.f32 %v639_v27, %v8237_v31  ;;  %v707_v45 = vadd.f32 %v643_v28, %v8242_v35  ;;  %v711_v49 = vadd.f32 %v647_v32, %v8247_v39 }
 0x136   :  { %v587_v42 = vpop.f32.mrf.mxu0  ;;  %v5909_v53 = vmul.f32 -1.442695, %v695_v33  ;;  %v715_v2 = vadd.f32 %v651_v36, %v8250_v43  ;;  %v719_v24 = vadd.f32 %v655_v40, %v8256_v48  ;;  %v723_v27 = vadd.f32 %v659_v44, %v8259_v61 }
 0x137   :  { %v628_v46 = vpop.f32.mrf.mxu1  ;;  %v5912_v3 = vmul.f32 -1.442695, %v699_v37  ;;  %v5915_v26 = vmul.f32 -1.442695, %v703_v41  ;;  %v5918_v28 = vmul.f32 -1.442695, %v707_v45  ;;  %v8265_v42 = vadd.f32 %v8171_v50, %v149_v47 }
 0x138   :  { %v588_v57 = vpop.f32.mrf.mxu0  ;;  %6541 = vpow2.f32 %v5909_v53  ;;  %v5921_v32 = vmul.f32 -1.442695, %v711_v49  ;;  %v5924_v19 = vmul.f32 -1.442695, %v715_v2  ;;  %v637_v33 = vrot.slane %v8234_v29, 1 }
 0x139   :  { %v629_v8 = vpop.f32.mrf.mxu1  ;;  %6543 = vpow2.f32 %v5912_v3  ;;  %v8273_v36 = vadd.f32 %v8183_v58, %v149_v47  ;;  %v5927_v37 = vmul.f32 -1.442695, %v719_v24  ;;  %v641_v40 = vrot.slane %v8234_v29, 2 }
 0x13a   :  { %6545 = vpow2.f32 %v5915_v26  ;;  %v8277_v50 = vadd.f32 %v8189_v62, %v149_v47  ;;  %v5930_v41 = vmul.f32 -1.442695, %v723_v27  ;;  %v645_v44 = vrot.slane %v8234_v29, 3 }
 0x13b   :  { %6547 = vpow2.f32 %v5918_v28  ;;  %v649_v45 = vrot.slane %v8234_v29, 4  ;;  %v697_v58 = vadd.f32 %v8234_v29, %v8265_v42  ;;  %v8287_v46 = vadd.f32 %v8203_v9, %v149_v47 }
 0x13c   :  { %6549 = vpow2.f32 %v5921_v32  ;;  %v653_v62 = vrot.slane %v8234_v29, 5  ;;  %v701_v49 = vadd.f32 %v637_v33, %v8269_v18  ;;  %v8292_v53 = vadd.f32 %v8210_v14, %v149_v47 }
 0x13d   :  { %10591 = vst [vmem:[#allocation25_spill] sm:$0xff] %v8287_v46  ;;  %6551 = vpow2.f32 %v5924_v19  ;;  %v657_v4 = vrot.slane %v8234_v29, 6  ;;  %v705_v57 = vadd.f32 %v641_v40, %v8273_v36  ;;  %v8297_v2 = vadd.f32 %v8224_v20, %v149_v47 }
 0x13e   :  { %10592 = vst [vmem:[#allocation26_spill] sm:$0xff] %v8292_v53  ;;  %6553 = vpow2.f32 %v5927_v37  ;;  %v661_v9 = vrot.slane %v8234_v29, 7  ;;  %v709_v3 = vadd.f32 %v645_v44, %v8277_v50  ;;  %v713_v8 = vadd.f32 %v649_v45, %v8281_v54 }
 0x13f   :  { %10593 = vst [vmem:[#allocation27_spill] sm:$0xff] %v8297_v2  ;;  %6555 = vpow2.f32 %v5930_v41  ;;  %v5911_v24 = vmul.f32 -1.442695, %v697_v58  ;;  %v717_v26 = vadd.f32 %v653_v62, %v8287_v46  ;;  %v5914_v14 = vmul.f32 -1.442695, %v701_v49 }
 0x140   :  { %v721_v27 = vadd.f32 %v657_v4, %v8292_v53  ;;  %v5917_v28 = vmul.f32 -1.442695, %v705_v57  ;;  %v145_v32 = vrot.slane %v8215_v15, %v10409_v13  ;;  %v10407_v20 = vsub.s32 3, %v8201_v7 }
 0x141   :  { %v725_v47 = vadd.f32 %v661_v9, %v8297_v2  ;;  %v5920_v29 = vmul.f32 -1.442695, %v709_v3  ;;  %6557 = vpow2.f32 %v5911_v24  ;;  %v5923_v19 = vmul.f32 -1.442695, %v713_v8 }
 0x142   :  { %6559 = vpow2.f32 %v5914_v14  ;;  %v5926_v37 = vmul.f32 -1.442695, %v717_v26  ;;  %v5929_v41 = vmul.f32 -1.442695, %v721_v27  ;;  %v8310_v45 = vadd.f32 %v8173_v51, %v145_v32 }
 0x143   :  { %6561 = vpow2.f32 %v5917_v28  ;;  %v8315_v58 = vrot.slane %v8215_v15, %v10407_v20  ;;  %v5932_v62 = vmul.f32 -1.442695, %v725_v47  ;;  %v8318_v4 = vadd.f32 %v8179_v55, %v145_v32 }
 0x144   :  { %10594 = vst [vmem:[#allocation28_spill] sm:$0xff] %v8310_v45  ;;  %6563 = vpow2.f32 %v5920_v29  ;;  %v8321_v57 = vadd.f32 %v8185_v59, %v145_v32  ;;  %v8324_v51 = vadd.f32 %v8191_v63, %v145_v32  ;;  %v636_v15 = vrot.slane %v8240_v34, 1 }
 0x145   :  { %v6542_v33 = vpop.eup %6541  ;;  %10595 = vst [vmem:[#allocation29_spill] sm:$0xff] %v8318_v4  ;;  %6565 = vpow2.f32 %v5923_v19  ;;  %v8328_v26 = vadd.f32 %v8197_v5, %v145_v32  ;;  %v640_v55 = vrot.slane %v8240_v34, 2  ;;  %v8332_v27 = vadd.f32 %v8205_v10, %v145_v32 }
 0x146   :  { %v6544_v40 = vpop.eup %6543  ;;  %10596 = vst [vmem:[#allocation30_spill] sm:$0xff] %v8321_v57  ;;  %v799_v9 = vadd.f32 1.0, %v6542_v33  ;;  %10597 = vst [vmem:[#allocation31_spill] sm:$0xff] %v8324_v51  ;;  %6567 = vpow2.f32 %v5926_v37  ;;  %v644_v63 = vrot.slane %v8240_v34, 3  ;;  %v648_v19 = vrot.slane %v8240_v34, 4 }
 0x147   :  { %v6546_v44 = vpop.eup %6545  ;;  %v802_v8 = vadd.f32 1.0, %v6544_v40  ;;  %10598 = vst [vmem:[#allocation32_spill] sm:$0xff] %v8328_v26  ;;  %6569 = vpow2.f32 %v5929_v41  ;;  %10599 = vst [vmem:[#allocation33_spill] sm:$0xff] %v8332_v27  ;;  %v696_v5 = vadd.f32 %v8240_v34, %v8310_v45  ;;  %v652_v37 = vrot.slane %v8240_v34, 5 }
 0x148   :  { %v6548_v49 = vpop.eup %6547  ;;  %v805_v14 = vadd.f32 1.0, %v6546_v44  ;;  %6571 = vpow2.f32 %v5932_v62  ;;  %v700_v40 = vadd.f32 %v636_v15, %v8318_v4  ;;  %v656_v41 = vrot.slane %v8240_v34, 6 }
 0x149   :  { %v6550_v3 = vpop.eup %6549  ;;  %v808_v28 = vadd.f32 1.0, %v6548_v49  ;;  %6573 = vrcp.f32 %v799_v9  ;;  %v704_v44 = vadd.f32 %v640_v55, %v8321_v57  ;;  %v660_v49 = vrot.slane %v8240_v34, 7 }
 0x14a   :  { %v6552_v24 = vpop.eup %6551  ;;  %v811_v29 = vadd.f32 1.0, %v6550_v3  ;;  %6575 = vrcp.f32 %v802_v8  ;;  %v708_v9 = vadd.f32 %v644_v63, %v8324_v51  ;;  %v8345_v3 = vadd.f32 %v8217_v16, %v145_v32 }
 0x14b   :  { %v6554_v59 = vpop.eup %6553  ;;  %v814_v33 = vadd.f32 1.0, %v6552_v24  ;;  %6577 = vrcp.f32 %v805_v14  ;;  %v712_v8 = vadd.f32 %v648_v19, %v8328_v26  ;;  %v5910_v24 = vmul.f32 -1.442695, %v696_v5 }
 0x14c   :  { %v6556_v47 = vpop.eup %6555  ;;  %v817_v10 = vadd.f32 1.0, %v6554_v59  ;;  %6579 = vrcp.f32 %v808_v28  ;;  %10600 = vst [vmem:[#allocation34_spill] sm:$0xff] %v8345_v3  ;;  %v8351_v14 = vadd.f32 %v8226_v21, %v145_v32  ;;  %v716_v55 = vadd.f32 %v652_v37, %v8332_v27 }
 0x14d   :  { %v820_v62 = vadd.f32 1.0, %v6556_v47  ;;  %6581 = vrcp.f32 %v811_v29  ;;  %v5913_v59 = vmul.f32 -1.442695, %v700_v40  ;;  %v720_v34 = vadd.f32 %v656_v41, %v8345_v3 }
 0x14e   :  { %v8348_v15 = vpop.eup %6557  ;;  %10601 = vst [vmem:[#allocation35_spill] sm:$0xff] %v8351_v14  ;;  %6583 = vrcp.f32 %v814_v33  ;;  %v5916_v16 = vmul.f32 -1.442695, %v704_v44  ;;  %v724_v47 = vadd.f32 %v660_v49, %v8351_v14  ;;  %v5919_v29 = vmul.f32 -1.442695, %v708_v9 }
 0x14f   :  { %v8354_v28 = vpop.eup %6559  ;;  %6585 = vrcp.f32 %v817_v10  ;;  %v8364_v21 = vadd.f32 %v8175_v52, %v8315_v58  ;;  %v5922_v32 = vmul.f32 -1.442695, %v712_v8  ;;  %v8370_v33 = vadd.f32 %v8181_v56, %v8315_v58 }
 0x150   :  { %v8357_v63 = vpop.eup %6561  ;;  %6587 = vrcp.f32 %v820_v62  ;;  %v5925_v37 = vmul.f32 -1.442695, %v716_v55  ;;  %v638_v40 = vrot.slane %v8245_v38, 1  ;;  %v8377_v41 = vadd.f32 %v8187_v60, %v8315_v58 }
 0x151   :  { %v8360_v19 = vpop.eup %6563  ;;  %10602 = vst [vmem:[#allocation36_spill] sm:$0xff] %v8364_v21  ;;  %6589 = vpow2.f32 %v5910_v24  ;;  %10603 = vst [vmem:[#allocation37_spill] sm:$0xff] %v8370_v33  ;;  %v5928_v52 = vmul.f32 -1.442695, %v720_v34  ;;  %v642_v44 = vrot.slane %v8245_v38, 2  ;;  %v8384_v56 = vadd.f32 %v8193_v1, %v8315_v58 }
 0x152   :  { %v8366_v5 = vpop.eup %6565  ;;  %6591 = vpow2.f32 %v5913_v59  ;;  %10604 = vst [vmem:[#allocation38_spill] sm:$0xff] %v8377_v41  ;;  %v5931_v49 = vmul.f32 -1.442695, %v724_v47  ;;  %v646_v9 = vrot.slane %v8245_v38, 3  ;;  %v8391_v60 = vadd.f32 %v8199_v6, %v8315_v58 }
 0x153   :  { %v8373_v10 = vpop.eup %6567  ;;  %6593 = vpow2.f32 %v5916_v16  ;;  %10605 = vst [vmem:[#allocation39_spill] sm:$0xff] %v8384_v56  ;;  %v650_v24 = vrot.slane %v8245_v38, 4  ;;  %v698_v55 = vadd.f32 %v8245_v38, %v8364_v21  ;;  %v8400_v1 = vadd.f32 %v8207_v11, %v8315_v58 }
 0x154   :  { %v8380_v62 = vpop.eup %6569  ;;  %6595 = vpow2.f32 %v5919_v29  ;;  %10606 = vst [vmem:[#allocation40_spill] sm:$0xff] %v8391_v60  ;;  %v654_v34 = vrot.slane %v8245_v38, 5  ;;  %v702_v16 = vadd.f32 %v638_v40, %v8370_v33  ;;  %v8408_v6 = vadd.f32 %v8219_v17, %v8315_v58 }
 0x155   :  { %v8387_v8 = vpop.eup %6571  ;;  %6597 = vpow2.f32 %v5922_v32  ;;  %10607 = vst [vmem:[#allocation41_spill] sm:$0xff] %v8400_v1  ;;  %v658_v29 = vrot.slane %v8245_v38, 6  ;;  %v706_v32 = vadd.f32 %v642_v44, %v8377_v41  ;;  %v8416_v11 = vadd.f32 %v8228_v22, %v8315_v58 }
 0x156   :  { %v8396_v59 = vpop.eup %6573  ;;  %6599 = vpow2.f32 %v5925_v37  ;;  %10608 = vst [vmem:[#allocation42_spill] sm:$0xff] %v8408_v6  ;;  %v662_v37 = vrot.slane %v8245_v38, 7  ;;  %v710_v40 = vadd.f32 %v646_v9, %v8384_v56  ;;  %v714_v17 = vadd.f32 %v650_v24, %v8391_v60 }
 0x157   :  { %v8404_v47 = vpop.eup %6575  ;;  %6601 = vpow2.f32 %v5928_v52  ;;  %10609 = vst [vmem:[#allocation43_spill] sm:$0xff] %v8416_v11  ;;  %v718_v44 = vadd.f32 %v654_v34, %v8400_v1  ;;  %v722_v22 = vadd.f32 %v658_v29, %v8408_v6 }
 0x158   :  { %v8412_v20 = vpop.eup %6577  ;;  %6603 = vpow2.f32 %v5931_v49  ;;  %v726_v38 = vadd.f32 %v662_v37, %v8416_v11 }
 0x159   :  { %v8420_v30 = vpop.eup %6579  ;;  %6605 = vtanh.f32 %v698_v55 }
 0x15a   :  { %v8423_v52 = vpop.eup %6581  ;;  %6607 = vtanh.f32 %v702_v16 }
 0x15b   :  { %v8426_v13 = vpop.eup %6583  ;;  %6609 = vtanh.f32 %v706_v32 }
 0x15c   :  { %v8429_v58 = vpop.eup %6585  ;;  %6611 = vtanh.f32 %v710_v40 }
 0x15d   :  { %v8432_v49 = vpop.eup %6587  ;;  %6613 = vtanh.f32 %v714_v17 }
 0x15e   :  { %v6590_v9 = vpop.eup %6589  ;;  %6615 = vtanh.f32 %v718_v44 }
 0x15f   :  { %v6592_v24 = vpop.eup %6591  ;;  %v800_v55 = vadd.f32 1.0, %v6590_v9  ;;  %6617 = vtanh.f32 %v722_v22 }
 0x160   :  { %v6594_v34 = vpop.eup %6593  ;;  %v803_v16 = vadd.f32 1.0, %v6592_v24  ;;  %6619 = vtanh.f32 %v726_v38  ;;  %v801_v38 = vadd.f32 1.0, %v8348_v15 }
 0x161   :  { %v6596_v12 = vpop.eup %6595  ;;  %v806_v0 = vadd.f32 1.0, %v6594_v34  ;;  %6621 = vrcp.f32 %v800_v55 }
 0x162   :  { %v6598_v29 = vpop.eup %6597  ;;  %v809_v32 = vadd.f32 1.0, %v6596_v12  ;;  %6623 = vrcp.f32 %v803_v16  ;;  %v804_v12 = vadd.f32 1.0, %v8354_v28 }
 0x163   :  { %v6600_v7 = vpop.eup %6599  ;;  %v812_v37 = vadd.f32 1.0, %v6598_v29  ;;  %6625 = vrcp.f32 %v806_v0  ;;  %v807_v0 = vadd.f32 1.0, %v8357_v63 }
 0x164   :  { %v6602_v40 = vpop.eup %6601  ;;  %v815_v11 = vadd.f32 1.0, %v6600_v7  ;;  %6627 = vrcp.f32 %v809_v32  ;;  %v810_v7 = vadd.f32 1.0, %v8360_v19  ;;  %v813_v32 = vadd.f32 1.0, %v8366_v5 }
 0x165   :  { %v6604_v17 = vpop.eup %6603  ;;  %v818_v44 = vadd.f32 1.0, %v6602_v40  ;;  %6629 = vrcp.f32 %v812_v37  ;;  %v819_v40 = vadd.f32 1.0, %v8380_v62 }
 0x166   :  { %v6606_v9 = vpop.eup %6605  ;;  %v821_v22 = vadd.f32 1.0, %v6604_v17  ;;  %6631 = vrcp.f32 %v815_v11  ;;  %v816_v11 = vadd.f32 1.0, %v8373_v10  ;;  %v822_v17 = vadd.f32 1.0, %v8387_v8 }
 0x167   :  { %v6608_v24 = vpop.eup %6607  ;;  %6633 = vrcp.f32 %v818_v44  ;;  %v887_v19 = vmul.f32 %v6606_v9, %v8396_v59 }
 0x168   :  { %v6610_v55 = vpop.eup %6609  ;;  %6635 = vrcp.f32 %v821_v22 }
 0x169   :  { %v6612_v34 = vpop.eup %6611  ;;  %6637 = vrcp.f32 %v801_v38  ;;  %v888_v38 = vmul.f32 %v6608_v24, %v8404_v47  ;;  %v889_v62 = vmul.f32 %v6610_v55, %v8412_v20 }
 0x16a   :  { %v6614_v16 = vpop.eup %6613  ;;  %6639 = vrcp.f32 %v804_v12 }
 0x16b   :  { %v6616_v29 = vpop.eup %6615  ;;  %6641 = vrcp.f32 %v807_v0 }
 0x16c   :  { %v6618_v37 = vpop.eup %6617  ;;  %6643 = vrcp.f32 %v810_v7  ;;  %v890_v7 = vmul.f32 %v6612_v34, %v8420_v30  ;;  %v892_v55 = vmul.f32 %v6616_v29, %v8426_v13 }
 0x16d   :  { %v6620_v15 = vpop.eup %6619  ;;  %6645 = vrcp.f32 %v813_v32  ;;  %v893_v34 = vmul.f32 %v6618_v37, %v8429_v58 }
 0x16e   :  { %v6622_v28 = vpop.eup %6621  ;;  %6647 = vrcp.f32 %v816_v11  ;;  %v891_v11 = vmul.f32 %v6614_v16, %v8423_v52  ;;  %v894_v52 = vmul.f32 %v6620_v15, %v8432_v49 }
 0x16f   :  { %v6624_v63 = vpop.eup %6623  ;;  %v879_v44 = vmul.f32 0.0, %v6622_v28  ;;  %6649 = vrcp.f32 %v819_v40 }
 0x170   :  { %v6626_v22 = vpop.eup %6625  ;;  %v880_v5 = vmul.f32 0.0, %v6624_v63  ;;  %6651 = vrcp.f32 %v822_v17 }
 0x171   :  { %v6628_v10 = vpop.eup %6627  ;;  %v881_v12 = vmul.f32 0.0, %v6626_v22  ;;  %v8445_v0 = vadd.f32 %v887_v19, %v879_v44 }
 0x172   :  { %v6630_v6 = vpop.eup %6629  ;;  %v882_v8 = vmul.f32 0.0, %v6628_v10  ;;  %v8448_v32 = vadd.f32 %v888_v38, %v880_v5 }
 0x173   :  { %v6632_v59 = vpop.eup %6631  ;;  %v883_v9 = vmul.f32 0.0, %v6630_v6  ;;  %v8451_v28 = vadd.f32 %v889_v62, %v881_v12  ;;  %6653 = vtanh.f32 %v8445_v0 }
 0x174   :  { %v6634_v47 = vpop.eup %6633  ;;  %v884_v24 = vmul.f32 0.0, %v6632_v59  ;;  %v8454_v20 = vadd.f32 %v890_v7, %v882_v8  ;;  %6655 = vtanh.f32 %v8448_v32 }
 0x175   :  { %v6636_v40 = vpop.eup %6635  ;;  %v885_v30 = vmul.f32 0.0, %v6634_v47  ;;  %v8459_v17 = vadd.f32 %v891_v11, %v883_v9  ;;  %6657 = vtanh.f32 %v8451_v28 }
 0x176   :  { %v886_v6 = vmul.f32 0.0, %v6636_v40  ;;  %v8463_v16 = vadd.f32 %v892_v55, %v884_v24  ;;  %6659 = vtanh.f32 %v8454_v20  ;;  %v6638_v13 = vpop.eup %6637 }
 0x177   :  { %v8466_v63 = vadd.f32 %v893_v34, %v885_v30  ;;  %6661 = vtanh.f32 %v8459_v17  ;;  %v6640_v58 = vpop.eup %6639 }
 0x178   :  { %v8469_v29 = vadd.f32 %v894_v52, %v886_v6  ;;  %6663 = vtanh.f32 %v8463_v16  ;;  %v6642_v37 = vpop.eup %6641 }
 0x179   :  { %6665 = vtanh.f32 %v8466_v63  ;;  %v6644_v49 = vpop.eup %6643 }
 0x17a   :  { %10610 = vst [vmem:[#allocation44_spill] sm:$0xff] %v8469_v29  ;;  %6667 = vtanh.f32 %v8469_v29  ;;  %v6646_v15 = vpop.eup %6645 }
 0x17b   :  { %v6648_v44 = vpop.eup %6647 }
 0x17c   :  { %v6650_v19 = vpop.eup %6649 }
 0x17d   :  { %v6652_v22 = vpop.eup %6651 }
 0x180   :  { %v6654_v5 = vpop.eup %6653 }
 0x181   :  { %v6656_v38 = vpop.eup %6655  ;;  %v911_v10 = vmul.f32 %v6654_v5, %v6638_v13 }
 0x182   :  { %v6658_v12 = vpop.eup %6657  ;;  %v912_v62 = vmul.f32 %v6656_v38, %v6640_v58 }
 0x183   :  { %v6660_v8 = vpop.eup %6659  ;;  %v913_v7 = vmul.f32 %v6658_v12, %v6642_v37  ;;  %v919_v59 = vpack.c.bf16 %v911_v10, %v911_v10 }
 0x184   :  { %v6662_v9 = vpop.eup %6661  ;;  %v914_v11 = vmul.f32 %v6660_v8, %v6644_v49  ;;  %v920_v47 = vpack.c.bf16 %v912_v62, %v912_v62 }
 0x185   :  { %v6664_v24 = vpop.eup %6663  ;;  %v915_v55 = vmul.f32 %v6662_v9, %v6646_v15  ;;  %v921_v40 = vpack.c.bf16 %v913_v7, %v913_v7  ;;  %v935_v58 = vunpack.c.l.b16 %v919_v59 }
 0x186   :  { %v6666_v30 = vpop.eup %6665  ;;  %v916_v34 = vmul.f32 %v6664_v24, %v6648_v44  ;;  %v922_v6 = vpack.c.bf16 %v914_v11, %v914_v11  ;;  %v936_v52 = vunpack.c.l.b16 %v920_v47 }
 0x187   :  { %v6668_v29 = vpop.eup %6667  ;;  %v917_v13 = vmul.f32 %v6666_v30, %v6650_v19  ;;  %v923_v5 = vpack.c.bf16 %v915_v55, %v915_v55  ;;  %v937_v38 = vunpack.c.l.b16 %v921_v40 }
 0x188   :  { %v918_v37 = vmul.f32 %v6668_v29, %v6652_v22  ;;  %v924_v10 = vpack.c.bf16 %v916_v34, %v916_v34  ;;  %v938_v12 = vunpack.c.l.b16 %v922_v6  ;;  %v959_v49 = vrot.slane %v936_v52, 7 }
 0x189   :  { %v925_v62 = vpack.c.bf16 %v917_v13, %v917_v13  ;;  %v939_v8 = vunpack.c.l.b16 %v923_v5  ;;  %v962_v15 = vrot.slane %v937_v38, 6  ;;  %v8481_v5 = vld [vmem:[#allocation8 + $0xe0] ss:$16 sps:$4 sm:$0xff]   ;;  %v8487_v38 = vld [vmem:[#allocation8 + $0xc4] ss:$16 sps:$4 sm:$0xff]  }
 0x18a   :  { %v926_v7 = vpack.c.bf16 %v918_v37, %v918_v37  ;;  %v940_v9 = vunpack.c.l.b16 %v924_v10  ;;  %v961_v44 = vsel %vm960_vm1, %v959_v49, %v935_v58  ;;  %v965_v11 = vrot.slane %v938_v12, 5  ;;  %v8484_v58 = vld [vmem:[#allocation8 + $0xe8] ss:$16 sps:$4 sm:$0xff]   ;;  %v8490_v37 = vld [vmem:[#allocation8 + $0xcc] ss:$16 sps:$4 sm:$0xff]  }
 0x18b   :  { %v941_v47 = vunpack.c.l.b16 %v925_v62  ;;  %v964_v24 = vsel %vm963_vm2, %v962_v15, %v961_v44  ;;  %v968_v19 = vrot.slane %v939_v8, 4  ;;  %10611 = vst [vmem:[#allocation45_spill] sm:$0xff] %v8490_v37  ;;  %v10612_v10 = vmov 0   ;;  %v8495_v12 = vld [vmem:[#allocation8 + $0xc0] ss:$16 sps:$4 sm:$0xff]  }
 0x18c   :  { %v942_v59 = vunpack.c.l.b16 %v926_v7  ;;  %v967_v29 = vsel %vm966_vm3, %v965_v11, %v964_v24  ;;  %v971_v22 = vrot.slane %v940_v9, 3  ;;  %10613 = vst [vmem:[#allocation46_spill] sm:$0xff] %v8495_v12  ;;  %v8498_v49 = vld [vmem:[#allocation8 + $0xc8] ss:$16 sps:$4 sm:$0xff]   ;;  %v8501_v62 = vld [vmem:[#allocation8 + $0xa4] ss:$16 sps:$4 sm:$0xff]  }
 0x18d   :  { %v970_v55 = vsel %vm969_vm4, %v968_v19, %v967_v29  ;;  %v974_v40 = vrot.slane %v941_v47, 2  ;;  %10614 = vst [vmem:[#allocation47_spill] sm:$0xff] %v8498_v49  ;;  %10615 = vst [vmem:[#allocation48_spill] sm:$0xff] %v8501_v62  ;;  %v8504_v8 = vld [vmem:[#allocation8 + $0xac] ss:$16 sps:$4 sm:$0xff]  }
 0x18e   :  { %v973_v30 = vsel %vm972_vm5, %v971_v22, %v970_v55  ;;  %v977_v34 = vrot.slane %v942_v59, 1  ;;  %10616 = vst [vmem:[#allocation49_spill] sm:$0xff] %v8504_v8  ;;  %v8507_v15 = vld [vmem:[#allocation8 + $0xa0] ss:$16 sps:$4 sm:$0xff]   ;;  %v8510_v7 = vld [vmem:[#allocation8 + $0xa8] ss:$16 sps:$4 sm:$0xff]  }
 0x18f   :  { %v976_v6 = vsel %vm975_vm6, %v974_v40, %v973_v30  ;;  %10617 = vst [vmem:[#allocation50_spill] sm:$0xff] %v8507_v15  ;;  %10618 = vst [vmem:[#allocation51_spill] sm:$0xff] %v8510_v7  ;;  %v8513_v9 = vld [vmem:[#allocation8 + $0x84] ss:$16 sps:$4 sm:$0xff]   ;;  %v8516_v44 = vld [vmem:[#allocation8 + $0x8c] ss:$16 sps:$4 sm:$0xff]  }
 0x190   :  { %v979_v52 = vsel %vm978_vm7, %v977_v34, %v976_v6  ;;  %10619 = vst [vmem:[#allocation52_spill] sm:$0xff] %v8513_v9  ;;  %10620 = vst [vmem:[#allocation53_spill] sm:$0xff] %v8516_v44  ;;  %v8519_v11 = vld [vmem:[#allocation8 + $0x80] ss:$16 sps:$4 sm:$0xff]   ;;  %v8522_v47 = vld [vmem:[#allocation8 + $0x88] ss:$16 sps:$4 sm:$0xff]  }
 0x191   :  { %v980_v13 = vpack.c.b16 %v979_v52, %v979_v52  ;;  %10621 = vst [vmem:[#allocation54_spill] sm:$0xff] %v8519_v11  ;;  %10622 = vst [vmem:[#allocation55_spill] sm:$0xff] %v8522_v47  ;;  %v8525_v24 = vld [vmem:[#allocation8 + $0x64] ss:$16 sps:$4 sm:$0xff]   ;;  %v8528_v19 = vld [vmem:[#allocation8 + $0x6c] ss:$16 sps:$4 sm:$0xff]  }
 0x192   :  { %10623 = vst [vmem:[#allocation56_spill] sm:$0xff] %v8525_v24  ;;  %10624 = vst [vmem:[#allocation57_spill] sm:$0xff] %v8528_v19  ;;  %v8531_v59 = vld [vmem:[#allocation8 + $0x60] ss:$16 sps:$4 sm:$0xff]   ;;  %v8534_v29 = vld [vmem:[#allocation8 + $0x68] ss:$16 sps:$4 sm:$0xff]  }
 0x193   :  { %982 = vst [vmem:[#allocation2] sm:$0xf] %v980_v13  ;;  %1032 = vmatmul.mubr.bf16.vlgmr.msra.gmra.mxu0 %v980_v13  ;;  %1073 = vmatmul.mubr.bf16.vlgmr.msra.gmra.mxu1 %v980_v13  ;;  %10625 = vst [vmem:[#allocation58_spill] sm:$0xff] %v8531_v59  ;;  %v8537_v22 = vld [vmem:[#allocation8 + $0x44] ss:$16 sps:$4 sm:$0xff]  }
 0x194   :  { %1468 = vmatpush1.bf16.msra.mxu0 %v8481_v5  ;;  %1509 = vmatpush1.bf16.msra.mxu1 %v8484_v58  ;;  %10626 = vst [vmem:[#allocation59_spill] sm:$0xff] %v8534_v29  ;;  %10627 = vst [vmem:[#allocation60_spill] sm:$0xff] %v8537_v22  ;;  %v8540_v55 = vld [vmem:[#allocation8 + $0x4c] ss:$16 sps:$4 sm:$0xff]   ;;  %v8543_v40 = vld [vmem:[#allocation8 + $0x40] ss:$16 sps:$4 sm:$0xff]  }
 0x195   :  { %1469 = vmatprep.subr.bf16.mxu0 %v8487_v38  ;;  %1510 = vmatprep.subr.bf16.mxu1 %v8490_v37  ;;  %10628 = vst [vmem:[#allocation61_spill] sm:$0xff] %v8540_v55  ;;  %10629 = vst [vmem:[#allocation62_spill] sm:$0xff] %v8543_v40  ;;  %v8546_v30 = vld [vmem:[#allocation8 + $0x48] ss:$16 sps:$4 sm:$0xff]   ;;  %v8549_v34 = vld [vmem:[#allocation8 + $0x24] ss:$16 sps:$4 sm:$0xff]  }
 0x196   :  { %1499 = vmatprep.mubr.bf16.mxu0 %v10612_v10  ;;  %1540 = vmatprep.mubr.bf16.mxu1 %v10612_v10  ;;  %10630 = vst [vmem:[#allocation63_spill] sm:$0xff] %v8546_v30  ;;  %10631 = vst [vmem:[#allocation64_spill] sm:$0xff] %v8549_v34  ;;  %v8552_v6 = vld [vmem:[#allocation8 + $0x2c] ss:$16 sps:$4 sm:$0xff]   ;;  %v8555_v52 = vld [vmem:[#allocation8 + $0x20] ss:$16 sps:$4 sm:$0xff]  }
 0x197   :  { %10632 = vst [vmem:[#allocation65_spill] sm:$0xff] %v8552_v6  ;;  %10633 = vst [vmem:[#allocation66_spill] sm:$0xff] %v8555_v52  ;;  %v8558_v13 = vld [vmem:[#allocation8 + $0x28] ss:$16 sps:$4 sm:$0xff]  }
 0x198   :  { %1470 = vmatpush1.bf16.msra.mxu0 %v8495_v12  ;;  %1511 = vmatpush1.bf16.msra.mxu1 %v8498_v49  ;;  %10634 = vst [vmem:[#allocation67_spill] sm:$0xff] %v8558_v13 }
 0x199   :  { %1471 = vmatprep.subr.bf16.mxu0 %v8501_v62  ;;  %1512 = vmatprep.subr.bf16.mxu1 %v8504_v8 }
 0x19c   :  { %1472 = vmatpush1.bf16.msra.mxu0 %v8507_v15  ;;  %1513 = vmatpush1.bf16.msra.mxu1 %v8510_v7 }
 0x19d   :  { %1473 = vmatprep.subr.bf16.mxu0 %v8513_v9  ;;  %1514 = vmatprep.subr.bf16.mxu1 %v8516_v44 }
 0x1a0   :  { %1474 = vmatpush1.bf16.msra.mxu0 %v8519_v11  ;;  %1515 = vmatpush1.bf16.msra.mxu1 %v8522_v47 }
 0x1a1   :  { %1475 = vmatprep.subr.bf16.mxu0 %v8525_v24  ;;  %1516 = vmatprep.subr.bf16.mxu1 %v8528_v19 }
 0x1a4   :  { %1476 = vmatpush1.bf16.msra.mxu0 %v8531_v59  ;;  %1517 = vmatpush1.bf16.msra.mxu1 %v8534_v29 }
 0x1a5   :  { %1477 = vmatprep.subr.bf16.mxu0 %v8537_v22  ;;  %1518 = vmatprep.subr.bf16.mxu1 %v8540_v55 }
 0x1a8   :  { %1478 = vmatpush1.bf16.msra.mxu0 %v8543_v40  ;;  %1519 = vmatpush1.bf16.msra.mxu1 %v8546_v30  ;;  %v8561_v40 = vld [vmem:[#allocation8 + $0x4] ss:$16 sps:$4 sm:$0xff]   ;;  %v8564_v30 = vld [vmem:[#allocation8 + $0xc] ss:$16 sps:$4 sm:$0xff]  }
 0x1a9   :  { %1479 = vmatprep.subr.bf16.mxu0 %v8549_v34  ;;  %1520 = vmatprep.subr.bf16.mxu1 %v8552_v6  ;;  %10635 = vst [vmem:[#allocation68_spill] sm:$0xff] %v8561_v40  ;;  %10636 = vst [vmem:[#allocation69_spill] sm:$0xff] %v8564_v30  ;;  %v8567_v34 = vld [vmem:[#allocation8] ss:$16 sps:$4 sm:$0xff]   ;;  %v8570_v6 = vld [vmem:[#allocation8 + $0x8] ss:$16 sps:$4 sm:$0xff]  }
 0x1aa   :  { %10637 = vst [vmem:[#allocation70_spill] sm:$0xff] %v8567_v34  ;;  %10638 = vst [vmem:[#allocation71_spill] sm:$0xff] %v8570_v6 }
 0x1ac   :  { %1480 = vmatpush1.bf16.msra.mxu0 %v8555_v52  ;;  %1521 = vmatpush1.bf16.msra.mxu1 %v8558_v13  ;;  %v8573_v52 = vld [vmem:[#allocation8 + $0xe4] ss:$16 sps:$4 sm:$0xff]   ;;  %v8576_v13 = vld [vmem:[#allocation8 + $0xec] ss:$16 sps:$4 sm:$0xff]  }
 0x1ad   :  { %1481 = vmatprep.subr.bf16.mxu0 %v8561_v40  ;;  %1522 = vmatprep.subr.bf16.mxu1 %v8564_v30  ;;  %10639 = vst [vmem:[#allocation72_spill] sm:$0xff] %v8573_v52  ;;  %10640 = vst [vmem:[#allocation73_spill] sm:$0xff] %v8576_v13 }
 0x1b0   :  { %1482 = vmatpush1.bf16.msra.mxu0 %v8567_v34  ;;  %1523 = vmatpush1.bf16.msra.mxu1 %v8570_v6 }
 0x1b1   :  { %1935 = vmatprep.subr.bf16.mxu0 %v8573_v52  ;;  %1976 = vmatprep.subr.bf16.mxu1 %v8576_v13 }
 0x253   :  { %v1033_v40 = vpop.f32.mrf.mxu0  ;;  %v1074_v55 = vpop.f32.mrf.mxu1 }
 0x254   :  { %v1085_v22 = vrot.slane %v1033_v40, 7  ;;  %v1089_v30 = vrot.slane %v1033_v40, 1  ;;  %v1093_v29 = vrot.slane %v1033_v40, 2  ;;  %v1097_v59 = vrot.slane %v1033_v40, 3 }
 0x255   :  { %v1149_v34 = vadd.f32 %v1033_v40, %v8232_v25  ;;  %v8580_v19 = vpop.f32.mrf.mxu0  ;;  %v8582_v24 = vpop.f32.mrf.mxu1  ;;  %v1101_v6 = vrot.slane %v1033_v40, 4  ;;  %v1105_v52 = vrot.slane %v1033_v40, 5  ;;  %v1109_v9 = vrot.slane %v1033_v40, 6 }
 0x256   :  { %v1145_v47 = vadd.f32 %v1085_v22, %v8230_v23  ;;  %v1153_v11 = vadd.f32 %v1089_v30, %v8237_v31  ;;  %v1157_v7 = vadd.f32 %v1093_v29, %v8242_v35  ;;  %v1161_v15 = vadd.f32 %v1097_v59, %v8247_v39 }
 0x257   :  { %v1037_v44 = vpop.f32.mrf.mxu0  ;;  %v1078_v13 = vpop.f32.mrf.mxu1  ;;  %v5944_v8 = vmul.f32 -1.442695, %v1149_v34  ;;  %v1165_v49 = vadd.f32 %v1101_v6, %v8250_v43  ;;  %v1169_v10 = vadd.f32 %v1105_v52, %v8256_v48  ;;  %v1173_v22 = vadd.f32 %v1109_v9, %v8259_v61 }
 0x258   :  { %v5941_v12 = vmul.f32 -1.442695, %v1145_v47  ;;  %v5947_v37 = vmul.f32 -1.442695, %v1153_v11  ;;  %v5950_v23 = vmul.f32 -1.442695, %v1157_v7  ;;  %v1151_v9 = vadd.f32 %v1074_v55, %v8269_v18 }
 0x259   :  { %v1038_v62 = vpop.f32.mrf.mxu0  ;;  %v1079_v25 = vpop.f32.mrf.mxu1  ;;  %6669 = vpow2.f32 %v5944_v8  ;;  %v5953_v44 = vmul.f32 -1.442695, %v1161_v15  ;;  %v1087_v30 = vrot.slane %v1074_v55, 7  ;;  %v5956_v40 = vmul.f32 -1.442695, %v1165_v49 }
 0x25a   :  { %6671 = vpow2.f32 %v5941_v12  ;;  %v5959_v29 = vmul.f32 -1.442695, %v1169_v10  ;;  %v1091_v59 = vrot.slane %v1074_v55, 1  ;;  %v5962_v62 = vmul.f32 -1.442695, %v1173_v22 }
 0x25b   :  { %6673 = vpow2.f32 %v5947_v37  ;;  %v1095_v25 = vrot.slane %v1074_v55, 2  ;;  %v1099_v34 = vrot.slane %v1074_v55, 3  ;;  %v1147_v47 = vadd.f32 %v1087_v30, %v8265_v42 }
 0x25c   :  { %6675 = vpow2.f32 %v5950_v23  ;;  %v1103_v11 = vrot.slane %v1074_v55, 4  ;;  %v1107_v8 = vrot.slane %v1074_v55, 5  ;;  %v1155_v15 = vadd.f32 %v1091_v59, %v8273_v36 }
 0x25d   :  { %6677 = vpow2.f32 %v5953_v44  ;;  %v1111_v12 = vrot.slane %v1074_v55, 6  ;;  %v1159_v37 = vadd.f32 %v1095_v25, %v8277_v50  ;;  %v1163_v23 = vadd.f32 %v1099_v34, %v8281_v54 }
 0x25e   :  { %6679 = vpow2.f32 %v5956_v40  ;;  %v5943_v10 = vmul.f32 -1.442695, %v1147_v47  ;;  %v1167_v49 = vadd.f32 %v1103_v11, %v8287_v46  ;;  %v5946_v7 = vmul.f32 -1.442695, %v1151_v9 }
 0x25f   :  { %6681 = vpow2.f32 %v5959_v29  ;;  %v1171_v6 = vadd.f32 %v1107_v8, %v8292_v53  ;;  %v5949_v52 = vmul.f32 -1.442695, %v1155_v15  ;;  %v1175_v13 = vadd.f32 %v1111_v12, %v8297_v2 }
 0x260   :  { %6683 = vpow2.f32 %v5962_v62  ;;  %v5952_v22 = vmul.f32 -1.442695, %v1159_v37  ;;  %v5955_v44 = vmul.f32 -1.442695, %v1163_v23  ;;  %v5958_v40 = vmul.f32 -1.442695, %v1167_v49 }
 0x261   :  { %6685 = vpow2.f32 %v5943_v10  ;;  %v5961_v29 = vmul.f32 -1.442695, %v1171_v6  ;;  %v5964_v62 = vmul.f32 -1.442695, %v1175_v13  ;;  %v1086_v47 = vrot.slane %v8580_v19, 7 }
 0x262   :  { %6687 = vpow2.f32 %v5946_v7  ;;  %v1090_v12 = vrot.slane %v8580_v19, 1  ;;  %v1094_v10 = vrot.slane %v8580_v19, 2  ;;  %v1098_v6 = vrot.slane %v8580_v19, 3 }
 0x263   :  { %6689 = vpow2.f32 %v5949_v52  ;;  %v1146_v52 = vadd.f32 %v1086_v47, %v8310_v45 }
 0x264   :  { %6691 = vpow2.f32 %v5952_v22  ;;  %v1102_v22 = vrot.slane %v8580_v19, 4 }
 0x265   :  { %6693 = vpow2.f32 %v5955_v44  ;;  %v1150_v44 = vadd.f32 %v8580_v19, %v8318_v4 }
 0x266   :  { %v6670_v30 = vpop.eup %6669  ;;  %6695 = vpow2.f32 %v5958_v40  ;;  %v1106_v40 = vrot.slane %v8580_v19, 5 }
 0x267   :  { %v6672_v55 = vpop.eup %6671  ;;  %v1252_v34 = vadd.f32 1.0, %v6670_v30  ;;  %6697 = vpow2.f32 %v5961_v29 }
 0x268   :  { %v6674_v59 = vpop.eup %6673  ;;  %v1249_v9 = vadd.f32 1.0, %v6672_v55  ;;  %6699 = vpow2.f32 %v5964_v62  ;;  %v1154_v55 = vadd.f32 %v1090_v12, %v8321_v57  ;;  %v1158_v62 = vadd.f32 %v1094_v10, %v8324_v51 }
 0x269   :  { %v6676_v25 = vpop.eup %6675  ;;  %v1255_v15 = vadd.f32 1.0, %v6674_v59  ;;  %6701 = vrcp.f32 %v1252_v34  ;;  %v1110_v59 = vrot.slane %v8580_v19, 6  ;;  %v5942_v34 = vmul.f32 -1.442695, %v1146_v52 }
 0x26a   :  { %v6678_v11 = vpop.eup %6677  ;;  %v1258_v23 = vadd.f32 1.0, %v6676_v25  ;;  %6703 = vrcp.f32 %v1249_v9  ;;  %v1162_v25 = vadd.f32 %v1098_v6, %v8328_v26  ;;  %v5945_v9 = vmul.f32 -1.442695, %v1150_v44 }
 0x26b   :  { %v6680_v8 = vpop.eup %6679  ;;  %v1261_v7 = vadd.f32 1.0, %v6678_v11  ;;  %6705 = vrcp.f32 %v1255_v15  ;;  %v1166_v11 = vadd.f32 %v1102_v22, %v8332_v27  ;;  %v1170_v15 = vadd.f32 %v1106_v40, %v8345_v3 }
 0x26c   :  { %v6682_v37 = vpop.eup %6681  ;;  %v1264_v13 = vadd.f32 1.0, %v6680_v8  ;;  %6707 = vrcp.f32 %v1258_v23  ;;  %v5948_v12 = vmul.f32 -1.442695, %v1154_v55  ;;  %v1174_v19 = vadd.f32 %v1110_v59, %v8351_v14 }
 0x26d   :  { %v6684_v49 = vpop.eup %6683  ;;  %v1267_v30 = vadd.f32 1.0, %v6682_v37  ;;  %6709 = vrcp.f32 %v1261_v7  ;;  %v5951_v23 = vmul.f32 -1.442695, %v1158_v62  ;;  %v1088_v7 = vrot.slane %v8582_v24, 7 }
 0x26e   :  { %v1270_v29 = vadd.f32 1.0, %v6684_v49  ;;  %v8612_v47 = vpop.eup %6685  ;;  %6711 = vrcp.f32 %v1264_v13  ;;  %v5954_v49 = vmul.f32 -1.442695, %v1162_v25  ;;  %v5957_v52 = vmul.f32 -1.442695, %v1166_v11 }
 0x26f   :  { %v8615_v8 = vpop.eup %6687  ;;  %6713 = vrcp.f32 %v1267_v30  ;;  %v5960_v22 = vmul.f32 -1.442695, %v1170_v15  ;;  %v1092_v44 = vrot.slane %v8582_v24, 1  ;;  %v5963_v40 = vmul.f32 -1.442695, %v1174_v19 }
 0x270   :  { %v8618_v37 = vpop.eup %6689  ;;  %6715 = vrcp.f32 %v1270_v29  ;;  %v1096_v55 = vrot.slane %v8582_v24, 2  ;;  %v1100_v59 = vrot.slane %v8582_v24, 3  ;;  %v1148_v62 = vadd.f32 %v1088_v7, %v8364_v21 }
 0x271   :  { %v8621_v10 = vpop.eup %6691  ;;  %6717 = vpow2.f32 %v5942_v34  ;;  %v1104_v34 = vrot.slane %v8582_v24, 4  ;;  %v1152_v11 = vadd.f32 %v8582_v24, %v8370_v33  ;;  %v1108_v15 = vrot.slane %v8582_v24, 5 }
 0x272   :  { %v8624_v6 = vpop.eup %6693  ;;  %6719 = vpow2.f32 %v5945_v9 }
 0x273   :  { %v8626_v13 = vpop.eup %6695  ;;  %6721 = vpow2.f32 %v5948_v12  ;;  %v1156_v12 = vadd.f32 %v1092_v44, %v8377_v41  ;;  %v10641_v44 = vld [vmem:[#allocation42_spill] sm:$0xff] }
 0x274   :  { %v8629_v30 = vpop.eup %6697  ;;  %6723 = vpow2.f32 %v5951_v23  ;;  %v1112_v23 = vrot.slane %v8582_v24, 6  ;;  %v1172_v41 = vadd.f32 %v1108_v15, %v10641_v44  ;;  %v10642_v24 = vld [vmem:[#allocation43_spill] sm:$0xff] }
 0x275   :  { %v8632_v29 = vpop.eup %6699  ;;  %6725 = vpow2.f32 %v5954_v49  ;;  %v1160_v49 = vadd.f32 %v1096_v55, %v8384_v56 }
 0x276   :  { %v8636_v25 = vpop.eup %6701  ;;  %6727 = vpow2.f32 %v5957_v52  ;;  %v1164_v52 = vadd.f32 %v1100_v59, %v8391_v60  ;;  %v1176_v14 = vadd.f32 %v1112_v23, %v10642_v24 }
 0x277   :  { %v8641_v9 = vpop.eup %6703  ;;  %6729 = vpow2.f32 %v5960_v22  ;;  %v1168_v22 = vadd.f32 %v1104_v34, %v8400_v1 }
 0x278   :  { %v8645_v19 = vpop.eup %6705  ;;  %6731 = vpow2.f32 %v5963_v40 }
 0x279   :  { %v8649_v7 = vpop.eup %6707  ;;  %6733 = vtanh.f32 %v1148_v62 }
 0x27a   :  { %v8652_v33 = vpop.eup %6709  ;;  %6735 = vtanh.f32 %v1152_v11 }
 0x27b   :  { %v8655_v21 = vpop.eup %6711  ;;  %6737 = vtanh.f32 %v1156_v12 }
 0x27c   :  { %v8658_v40 = vpop.eup %6713  ;;  %6739 = vtanh.f32 %v1160_v49 }
 0x27d   :  { %v8661_v55 = vpop.eup %6715  ;;  %6741 = vtanh.f32 %v1164_v52 }
 0x27e   :  { %v6718_v59 = vpop.eup %6717  ;;  %6743 = vtanh.f32 %v1168_v22 }
 0x27f   :  { %v6720_v62 = vpop.eup %6719  ;;  %v1250_v60 = vadd.f32 1.0, %v6718_v59  ;;  %6745 = vtanh.f32 %v1172_v41 }
 0x280   :  { %v6722_v34 = vpop.eup %6721  ;;  %v1253_v11 = vadd.f32 1.0, %v6720_v62  ;;  %6747 = vtanh.f32 %v1176_v14  ;;  %v1251_v14 = vadd.f32 1.0, %v8612_v47  ;;  %v1266_v47 = vadd.f32 1.0, %v8626_v13 }
 0x281   :  { %v6724_v1 = vpop.eup %6723  ;;  %v1256_v56 = vadd.f32 1.0, %v6722_v34  ;;  %6749 = vrcp.f32 %v1250_v60 }
 0x282   :  { %v6726_v15 = vpop.eup %6725  ;;  %v1259_v12 = vadd.f32 1.0, %v6724_v1  ;;  %6751 = vrcp.f32 %v1253_v11  ;;  %v1254_v1 = vadd.f32 1.0, %v8615_v8 }
 0x283   :  { %v6728_v44 = vpop.eup %6727  ;;  %v1262_v23 = vadd.f32 1.0, %v6726_v15  ;;  %6753 = vrcp.f32 %v1256_v56  ;;  %v1257_v56 = vadd.f32 1.0, %v8618_v37  ;;  %v1340_v37 = vrot.slane %v8454_v20, 7  ;;  %v10643_v20 = vld [vmem:[#allocation44_spill] sm:$0xff] }
 0x284   :  { %v6730_v49 = vpop.eup %6729  ;;  %v1265_v24 = vadd.f32 1.0, %v6728_v44  ;;  %6755 = vrcp.f32 %v1259_v12  ;;  %v1260_v44 = vadd.f32 1.0, %v8621_v10  ;;  %v1263_v12 = vadd.f32 1.0, %v8624_v6 }
 0x285   :  { %v6732_v52 = vpop.eup %6731  ;;  %v1268_v22 = vadd.f32 1.0, %v6730_v49  ;;  %6757 = vrcp.f32 %v1262_v23  ;;  %v1338_v49 = vrot.slane %v8448_v32, 7  ;;  %v1341_v6 = vrot.slane %v8459_v17, 7 }
 0x286   :  { %v6734_v59 = vpop.eup %6733  ;;  %v1271_v41 = vadd.f32 1.0, %v6732_v52  ;;  %6759 = vrcp.f32 %v1265_v24  ;;  %v1337_v24 = vrot.slane %v8445_v0, 7  ;;  %v1339_v52 = vrot.slane %v8451_v28, 7 }
 0x287   :  { %v6736_v62 = vpop.eup %6735  ;;  %6761 = vrcp.f32 %v1268_v22  ;;  %v1269_v22 = vadd.f32 1.0, %v8629_v30  ;;  %v1272_v0 = vadd.f32 1.0, %v8632_v29  ;;  %v1361_v28 = vmul.f32 %v6734_v59, %v8641_v9 }
 0x288   :  { %v6738_v60 = vpop.eup %6737  ;;  %6763 = vrcp.f32 %v1271_v41  ;;  %v1342_v41 = vrot.slane %v8463_v16, 7  ;;  %v1344_v3 = vrot.slane %v10643_v20, 7 }
 0x289   :  { %v6740_v34 = vpop.eup %6739  ;;  %6765 = vrcp.f32 %v1251_v14  ;;  %v1343_v14 = vrot.slane %v8466_v63, 7  ;;  %v1363_v29 = vmul.f32 %v6738_v60, %v8645_v19 }
 0x28a   :  { %v6742_v11 = vpop.eup %6741  ;;  %6767 = vrcp.f32 %v1254_v1 }
 0x28b   :  { %v6744_v15 = vpop.eup %6743  ;;  %6769 = vrcp.f32 %v1257_v56  ;;  %v1362_v56 = vmul.f32 %v6736_v62, %v8636_v25 }
 0x28c   :  { %v6746_v23 = vpop.eup %6745  ;;  %6771 = vrcp.f32 %v1260_v44  ;;  %v1366_v60 = vmul.f32 %v6744_v15, %v8655_v21 }
 0x28d   :  { %v6748_v8 = vpop.eup %6747  ;;  %6773 = vrcp.f32 %v1263_v12  ;;  %v1364_v12 = vmul.f32 %v6740_v34, %v8649_v7  ;;  %v1367_v34 = vmul.f32 %v6746_v23, %v8658_v40 }
 0x28e   :  { %v6750_v10 = vpop.eup %6749  ;;  %6775 = vrcp.f32 %v1266_v47 }
 0x28f   :  { %v6752_v13 = vpop.eup %6751  ;;  %v1353_v32 = vmul.f32 %v6750_v10, %v1337_v24  ;;  %6777 = vrcp.f32 %v1269_v22  ;;  %v1365_v24 = vmul.f32 %v6742_v11, %v8652_v33  ;;  %v1368_v11 = vmul.f32 %v6748_v8, %v8661_v55 }
 0x290   :  { %v6754_v1 = vpop.eup %6753  ;;  %v1354_v30 = vmul.f32 %v6752_v13, %v1338_v49  ;;  %6779 = vrcp.f32 %v1272_v0 }
 0x291   :  { %v6756_v17 = vpop.eup %6755  ;;  %v1355_v16 = vmul.f32 %v6754_v1, %v1339_v52  ;;  %v8682_v44 = vadd.f32 %v1361_v28, %v1353_v32 }
 0x292   :  { %v6758_v27 = vpop.eup %6757  ;;  %v1356_v63 = vmul.f32 %v6756_v17, %v1340_v37  ;;  %v8685_v9 = vadd.f32 %v1362_v56, %v1354_v30 }
 0x293   :  { %v6760_v59 = vpop.eup %6759  ;;  %v8688_v47 = vadd.f32 %v1363_v29, %v1355_v16  ;;  %6781 = vtanh.f32 %v8682_v44  ;;  %v1357_v25 = vmul.f32 %v6758_v27, %v1341_v6 }
 0x294   :  { %v6762_v62 = vpop.eup %6761  ;;  %v8691_v49 = vadd.f32 %v1364_v12, %v1356_v63  ;;  %6783 = vtanh.f32 %v8685_v9  ;;  %v1358_v19 = vmul.f32 %v6760_v59, %v1342_v41 }
 0x295   :  { %v6764_v52 = vpop.eup %6763  ;;  %v1359_v7 = vmul.f32 %v6762_v62, %v1343_v14  ;;  %v8696_v37 = vadd.f32 %v1365_v24, %v1357_v25  ;;  %6785 = vtanh.f32 %v8688_v47 }
 0x296   :  { %v1360_v33 = vmul.f32 %v6764_v52, %v1344_v3  ;;  %v8700_v27 = vadd.f32 %v1366_v60, %v1358_v19  ;;  %6787 = vtanh.f32 %v8691_v49  ;;  %v6766_v21 = vpop.eup %6765 }
 0x297   :  { %v8703_v22 = vadd.f32 %v1367_v34, %v1359_v7  ;;  %6789 = vtanh.f32 %v8696_v37  ;;  %v6768_v40 = vpop.eup %6767 }
 0x298   :  { %v8706_v15 = vadd.f32 %v1368_v11, %v1360_v33  ;;  %6791 = vtanh.f32 %v8700_v27  ;;  %v6770_v23 = vpop.eup %6769 }
 0x299   :  { %6793 = vtanh.f32 %v8703_v22  ;;  %v6772_v3 = vpop.eup %6771 }
 0x29a   :  { %6795 = vtanh.f32 %v8706_v15  ;;  %v6774_v55 = vpop.eup %6773 }
 0x29b   :  { %v6776_v8 = vpop.eup %6775 }
 0x29c   :  { %v6778_v10 = vpop.eup %6777 }
 0x29d   :  { %v6780_v6 = vpop.eup %6779 }
 0x2a0   :  { %v6782_v41 = vpop.eup %6781 }
 0x2a1   :  { %v6784_v0 = vpop.eup %6783  ;;  %v1385_v13 = vmul.f32 %v6782_v41, %v6766_v21 }
 0x2a2   :  { %v6786_v14 = vpop.eup %6785  ;;  %v1386_v32 = vmul.f32 %v6784_v0, %v6768_v40 }
 0x2a3   :  { %v6788_v28 = vpop.eup %6787  ;;  %v1387_v1 = vmul.f32 %v6786_v14, %v6770_v23  ;;  %v1393_v20 = vpack.c.bf16 %v1385_v13, %v1385_v13 }
 0x2a4   :  { %v6790_v30 = vpop.eup %6789  ;;  %v1388_v56 = vmul.f32 %v6788_v28, %v6772_v3  ;;  %v1394_v17 = vpack.c.bf16 %v1386_v32, %v1386_v32 }
 0x2a5   :  { %v6792_v16 = vpop.eup %6791  ;;  %v1389_v29 = vmul.f32 %v6790_v30, %v6774_v55  ;;  %v1395_v63 = vpack.c.bf16 %v1387_v1, %v1387_v1  ;;  %v1409_v12 = vunpack.c.l.b16 %v1393_v20 }
 0x2a6   :  { %v6794_v59 = vpop.eup %6793  ;;  %v1390_v24 = vmul.f32 %v6792_v16, %v6776_v8  ;;  %v1396_v25 = vpack.c.bf16 %v1388_v56, %v1388_v56  ;;  %v1410_v62 = vunpack.c.l.b16 %v1394_v17 }
 0x2a7   :  { %v6796_v19 = vpop.eup %6795  ;;  %v1391_v60 = vmul.f32 %v6794_v59, %v6778_v10  ;;  %v1397_v52 = vpack.c.bf16 %v1389_v29, %v1389_v29  ;;  %v1411_v7 = vunpack.c.l.b16 %v1395_v63  ;;  %v1433_v34 = vrot.slane %v1409_v12, 1  ;;  %v10644_v63 = vld [vmem:[#allocation45_spill] sm:$0xff]  ;;  %v10646_v59 = vld [vmem:[#allocation46_spill] sm:$0xff] }
 0x2a8   :  { %v1392_v33 = vmul.f32 %v6796_v19, %v6780_v6  ;;  %v1398_v11 = vpack.c.bf16 %v1390_v24, %v1390_v24  ;;  %v1412_v21 = vunpack.c.l.b16 %v1396_v25  ;;  %v10645_v12 = vmov 0   ;;  %v10647_v24 = vld [vmem:[#allocation47_spill] sm:$0xff]  ;;  %v10648_v25 = vld [vmem:[#allocation48_spill] sm:$0xff]  ;;  %v10650_v19 = vld [vmem:[#allocation50_spill] sm:$0xff] }
 0x2a9   :  { %v1399_v40 = vpack.c.bf16 %v1391_v60, %v1391_v60  ;;  %v1413_v23 = vunpack.c.l.b16 %v1397_v52  ;;  %v1434_v3 = vsel %vm960_vm1, %v1410_v62, %v1433_v34  ;;  %v1435_v41 = vrot.slane %v1411_v7, 7  ;;  %v10649_v62 = vld [vmem:[#allocation49_spill] sm:$0xff]  ;;  %v10654_v60 = vld [vmem:[#allocation54_spill] sm:$0xff]  ;;  %v10655_v52 = vld [vmem:[#allocation55_spill] sm:$0xff] }
 0x2aa   :  { %v1400_v55 = vpack.c.bf16 %v1392_v33, %v1392_v33  ;;  %v1414_v0 = vunpack.c.l.b16 %v1398_v11  ;;  %v1437_v13 = vrot.slane %v1412_v21, 6  ;;  %v10656_v7 = vld [vmem:[#allocation56_spill] sm:$0xff]  ;;  %v10657_v34 = vld [vmem:[#allocation57_spill] sm:$0xff]  ;;  %v10658_v33 = vld [vmem:[#allocation58_spill] sm:$0xff] }
 0x2ab   :  { %v1415_v14 = vunpack.c.l.b16 %v1399_v40  ;;  %v1436_v8 = vsel %vm963_vm2, %v1435_v41, %v1434_v3  ;;  %v1439_v32 = vrot.slane %v1413_v23, 5  ;;  %v10659_v11 = vld [vmem:[#allocation59_spill] sm:$0xff]  ;;  %v10660_v21 = vld [vmem:[#allocation60_spill] sm:$0xff]  ;;  %v10661_v40 = vld [vmem:[#allocation61_spill] sm:$0xff] }
 0x2ac   :  { %v1416_v28 = vunpack.c.l.b16 %v1400_v55  ;;  %v1438_v10 = vsel %vm966_vm3, %v1437_v13, %v1436_v8  ;;  %v1441_v1 = vrot.slane %v1414_v0, 4  ;;  %v10662_v23 = vld [vmem:[#allocation62_spill] sm:$0xff]  ;;  %v10663_v3 = vld [vmem:[#allocation63_spill] sm:$0xff]  ;;  %v10664_v41 = vld [vmem:[#allocation64_spill] sm:$0xff] }
 0x2ad   :  { %v1440_v6 = vsel %vm969_vm4, %v1439_v32, %v1438_v10  ;;  %v1443_v20 = vrot.slane %v1415_v14, 3  ;;  %v10665_v55 = vld [vmem:[#allocation65_spill] sm:$0xff]  ;;  %v10666_v0 = vld [vmem:[#allocation66_spill] sm:$0xff]  ;;  %v10667_v13 = vld [vmem:[#allocation67_spill] sm:$0xff] }
 0x2ae   :  { %v1442_v30 = vsel %vm972_vm5, %v1441_v1, %v1440_v6  ;;  %v1445_v56 = vrot.slane %v1416_v28, 2  ;;  %v10668_v14 = vld [vmem:[#allocation68_spill] sm:$0xff]  ;;  %v10669_v8 = vld [vmem:[#allocation69_spill] sm:$0xff]  ;;  %v10670_v32 = vld [vmem:[#allocation70_spill] sm:$0xff] }
 0x2af   :  { %v1444_v17 = vsel %vm975_vm6, %v1443_v20, %v1442_v30  ;;  %v10671_v28 = vld [vmem:[#allocation71_spill] sm:$0xff]  ;;  %v10672_v10 = vld [vmem:[#allocation72_spill] sm:$0xff]  ;;  %v10673_v1 = vld [vmem:[#allocation73_spill] sm:$0xff] }
 0x2b0   :  { %v1446_v16 = vsel %vm978_vm7, %v1445_v56, %v1444_v17 }
 0x2b1   :  { %v1447_v29 = vpack.c.b16 %v1446_v16, %v1446_v16 }
 0x2b3   :  { %1450 = vst [vmem:[#allocation2 + $0x4] sm:$0xf] %v1447_v29  ;;  %1500 = vmatmul.mubr.bf16.vlgmr.msra.gmra.mxu0 %v1447_v29  ;;  %1541 = vmatmul.mubr.bf16.vlgmr.msra.gmra.mxu1 %v1447_v29 }
 0x2b4   :  { %1936 = vmatpush1.bf16.msra.mxu0 %v8481_v5  ;;  %1977 = vmatpush1.bf16.msra.mxu1 %v8484_v58  ;;  %v10651_v5 = vld [vmem:[#allocation51_spill] sm:$0xff]  ;;  %v10652_v58 = vld [vmem:[#allocation52_spill] sm:$0xff] }
 0x2b5   :  { %1937 = vmatprep.subr.bf16.mxu0 %v8487_v38  ;;  %1978 = vmatprep.subr.bf16.mxu1 %v10644_v63  ;;  %v10653_v38 = vld [vmem:[#allocation53_spill] sm:$0xff] }
 0x2b6   :  { %1967 = vmatprep.mubr.bf16.mxu0 %v10645_v12  ;;  %2008 = vmatprep.mubr.bf16.mxu1 %v10645_v12 }
 0x2b8   :  { %1938 = vmatpush1.bf16.msra.mxu0 %v10646_v59  ;;  %1979 = vmatpush1.bf16.msra.mxu1 %v10647_v24 }
 0x2b9   :  { %1939 = vmatprep.subr.bf16.mxu0 %v10648_v25  ;;  %1980 = vmatprep.subr.bf16.mxu1 %v10649_v62  ;;  %v10674_v25 = vld [vmem:[#allocation21_spill] sm:$0xff] }
 0x2bc   :  { %1940 = vmatpush1.bf16.msra.mxu0 %v10650_v19  ;;  %1981 = vmatpush1.bf16.msra.mxu1 %v10651_v5  ;;  %v10675_v5 = vld [vmem:[#allocation22_spill] sm:$0xff] }
 0x2bd   :  { %1941 = vmatprep.subr.bf16.mxu0 %v10652_v58  ;;  %1982 = vmatprep.subr.bf16.mxu1 %v10653_v38 }
 0x2c0   :  { %1942 = vmatpush1.bf16.msra.mxu0 %v10654_v60  ;;  %1983 = vmatpush1.bf16.msra.mxu1 %v10655_v52 }
 0x2c1   :  { %1943 = vmatprep.subr.bf16.mxu0 %v10656_v7  ;;  %1984 = vmatprep.subr.bf16.mxu1 %v10657_v34 }
 0x2c4   :  { %1944 = vmatpush1.bf16.msra.mxu0 %v10658_v33  ;;  %1985 = vmatpush1.bf16.msra.mxu1 %v10659_v11 }
 0x2c5   :  { %1945 = vmatprep.subr.bf16.mxu0 %v10660_v21  ;;  %1986 = vmatprep.subr.bf16.mxu1 %v10661_v40 }
 0x2c8   :  { %1946 = vmatpush1.bf16.msra.mxu0 %v10662_v23  ;;  %1987 = vmatpush1.bf16.msra.mxu1 %v10663_v3 }
 0x2c9   :  { %1947 = vmatprep.subr.bf16.mxu0 %v10664_v41  ;;  %1988 = vmatprep.subr.bf16.mxu1 %v10665_v55 }
 0x2cc   :  { %1948 = vmatpush1.bf16.msra.mxu0 %v10666_v0  ;;  %1989 = vmatpush1.bf16.msra.mxu1 %v10667_v13 }
 0x2cd   :  { %1949 = vmatprep.subr.bf16.mxu0 %v10668_v14  ;;  %1990 = vmatprep.subr.bf16.mxu1 %v10669_v8 }
 0x2d0   :  { %1950 = vmatpush1.bf16.msra.mxu0 %v10670_v32  ;;  %1991 = vmatpush1.bf16.msra.mxu1 %v10671_v28 }
 0x2d1   :  { %2403 = vmatprep.subr.bf16.mxu0 %v10672_v10  ;;  %2444 = vmatprep.subr.bf16.mxu1 %v10673_v1 }
 0x373   :  { %v1501_v6 = vpop.f32.mrf.mxu0  ;;  %v1542_v20 = vpop.f32.mrf.mxu1 }
 0x374   :  { %v1553_v30 = vrot.slane %v1501_v6, 6  ;;  %v1557_v56 = vrot.slane %v1501_v6, 7  ;;  %v1561_v17 = vrot.slane %v1501_v6, 1  ;;  %v1565_v16 = vrot.slane %v1501_v6, 2 }
 0x375   :  { %v1621_v29 = vadd.f32 %v1501_v6, %v8237_v31  ;;  %v8753_v63 = vpop.f32.mrf.mxu0  ;;  %v8755_v59 = vpop.f32.mrf.mxu1  ;;  %v1569_v24 = vrot.slane %v1501_v6, 3  ;;  %v1573_v19 = vrot.slane %v1501_v6, 4  ;;  %v1577_v52 = vrot.slane %v1501_v6, 5 }
 0x376   :  { %v1613_v62 = vadd.f32 %v1553_v30, %v10674_v25  ;;  %v1617_v58 = vadd.f32 %v1557_v56, %v10675_v5  ;;  %v1625_v7 = vadd.f32 %v1561_v17, %v8242_v35  ;;  %v1629_v34 = vadd.f32 %v1565_v16, %v8247_v39 }
 0x377   :  { %v1505_v38 = vpop.f32.mrf.mxu0  ;;  %v1546_v60 = vpop.f32.mrf.mxu1  ;;  %v5979_v33 = vmul.f32 -1.442695, %v1621_v29  ;;  %v1633_v40 = vadd.f32 %v1569_v24, %v8250_v43  ;;  %v1637_v3 = vadd.f32 %v1573_v19, %v8256_v48  ;;  %v1641_v55 = vadd.f32 %v1577_v52, %v8259_v61 }
 0x378   :  { %v5973_v23 = vmul.f32 -1.442695, %v1613_v62  ;;  %v5976_v41 = vmul.f32 -1.442695, %v1617_v58  ;;  %v5982_v0 = vmul.f32 -1.442695, %v1625_v7  ;;  %v1623_v29 = vadd.f32 %v1542_v20, %v8273_v36 }
 0x379   :  { %v1506_v11 = vpop.f32.mrf.mxu0  ;;  %v1547_v21 = vpop.f32.mrf.mxu1  ;;  %6797 = vpow2.f32 %v5979_v33  ;;  %v5985_v13 = vmul.f32 -1.442695, %v1629_v34  ;;  %v1555_v14 = vrot.slane %v1542_v20, 6  ;;  %v5988_v8 = vmul.f32 -1.442695, %v1633_v40 }
 0x37a   :  { %6799 = vpow2.f32 %v5973_v23  ;;  %v1559_v32 = vrot.slane %v1542_v20, 7  ;;  %v5991_v28 = vmul.f32 -1.442695, %v1637_v3  ;;  %v5994_v10 = vmul.f32 -1.442695, %v1641_v55 }
 0x37b   :  { %6801 = vpow2.f32 %v5976_v41  ;;  %v1563_v1 = vrot.slane %v1542_v20, 1  ;;  %v1567_v6 = vrot.slane %v1542_v20, 2  ;;  %v1615_v30 = vadd.f32 %v1555_v14, %v8265_v42 }
 0x37c   :  { %6803 = vpow2.f32 %v5982_v0  ;;  %v1571_v56 = vrot.slane %v1542_v20, 3  ;;  %v1619_v17 = vadd.f32 %v1559_v32, %v8269_v18  ;;  %v1575_v16 = vrot.slane %v1542_v20, 4 }
 0x37d   :  { %6805 = vpow2.f32 %v5985_v13  ;;  %v1579_v24 = vrot.slane %v1542_v20, 5  ;;  %v1627_v62 = vadd.f32 %v1563_v1, %v8277_v50  ;;  %v1631_v19 = vadd.f32 %v1567_v6, %v8281_v54 }
 0x37e   :  { %6807 = vpow2.f32 %v5988_v8  ;;  %v5975_v58 = vmul.f32 -1.442695, %v1615_v30  ;;  %v1635_v38 = vadd.f32 %v1571_v56, %v8287_v46  ;;  %v5978_v60 = vmul.f32 -1.442695, %v1619_v17 }
 0x37f   :  { %6809 = vpow2.f32 %v5991_v28  ;;  %v1639_v52 = vadd.f32 %v1575_v16, %v8292_v53  ;;  %v5981_v7 = vmul.f32 -1.442695, %v1623_v29  ;;  %v1643_v34 = vadd.f32 %v1579_v24, %v8297_v2 }
 0x380   :  { %6811 = vpow2.f32 %v5994_v10  ;;  %v5984_v33 = vmul.f32 -1.442695, %v1627_v62  ;;  %v5987_v11 = vmul.f32 -1.442695, %v1631_v19  ;;  %v5990_v40 = vmul.f32 -1.442695, %v1635_v38 }
 0x381   :  { %6813 = vpow2.f32 %v5975_v58  ;;  %v5993_v23 = vmul.f32 -1.442695, %v1639_v52  ;;  %v5996_v41 = vmul.f32 -1.442695, %v1643_v34  ;;  %v1554_v13 = vrot.slane %v8753_v63, 6 }
 0x382   :  { %6815 = vpow2.f32 %v5978_v60  ;;  %v1558_v32 = vrot.slane %v8753_v63, 7  ;;  %v1562_v30 = vrot.slane %v8753_v63, 1  ;;  %v1566_v16 = vrot.slane %v8753_v63, 2 }
 0x383   :  { %6817 = vpow2.f32 %v5981_v7  ;;  %v1614_v29 = vadd.f32 %v1554_v13, %v8310_v45  ;;  %v1570_v62 = vrot.slane %v8753_v63, 3  ;;  %v1574_v38 = vrot.slane %v8753_v63, 4 }
 0x384   :  { %6819 = vpow2.f32 %v5984_v33  ;;  %v1618_v19 = vadd.f32 %v1558_v32, %v8318_v4  ;;  %v1622_v60 = vadd.f32 %v8753_v63, %v8321_v57  ;;  %v1578_v7 = vrot.slane %v8753_v63, 5  ;;  %v10678_v63 = vld [vmem:[#allocation35_spill] sm:$0xff] }
 0x385   :  { %6821 = vpow2.f32 %v5987_v11  ;;  %v1626_v34 = vadd.f32 %v1562_v30, %v8324_v51  ;;  %v1630_v33 = vadd.f32 %v1566_v16, %v8328_v26  ;;  %v5974_v11 = vmul.f32 -1.442695, %v1614_v29 }
 0x386   :  { %v6798_v21 = vpop.eup %6797  ;;  %6823 = vpow2.f32 %v5990_v40  ;;  %v10676_v40 = vld [vmem:[#allocation33_spill] sm:$0xff]  ;;  %v1560_v30 = vrot.slane %v8755_v59, 7 }
 0x387   :  { %v6800_v20 = vpop.eup %6799  ;;  %v1723_v0 = vadd.f32 1.0, %v6798_v21  ;;  %6825 = vpow2.f32 %v5993_v23  ;;  %v5977_v23 = vmul.f32 -1.442695, %v1618_v19  ;;  %v1568_v19 = vrot.slane %v8755_v59, 2 }
 0x388   :  { %v6802_v3 = vpop.eup %6801  ;;  %v1717_v8 = vadd.f32 1.0, %v6800_v20  ;;  %6827 = vpow2.f32 %v5996_v41  ;;  %v1634_v20 = vadd.f32 %v1570_v62, %v10676_v40  ;;  %v10677_v41 = vld [vmem:[#allocation34_spill] sm:$0xff] }
 0x389   :  { %v6804_v55 = vpop.eup %6803  ;;  %v1720_v10 = vadd.f32 1.0, %v6802_v3  ;;  %6829 = vrcp.f32 %v1723_v0  ;;  %v5980_v0 = vmul.f32 -1.442695, %v1622_v60 }
 0x38a   :  { %v6806_v14 = vpop.eup %6805  ;;  %v1726_v6 = vadd.f32 1.0, %v6804_v55  ;;  %6831 = vrcp.f32 %v1717_v8  ;;  %v1638_v55 = vadd.f32 %v1574_v38, %v10677_v41  ;;  %v5983_v8 = vmul.f32 -1.442695, %v1626_v34 }
 0x38b   :  { %v6808_v28 = vpop.eup %6807  ;;  %v1729_v17 = vadd.f32 1.0, %v6806_v14  ;;  %6833 = vrcp.f32 %v1720_v10  ;;  %v1642_v14 = vadd.f32 %v1578_v7, %v10678_v63  ;;  %v1556_v10 = vrot.slane %v8755_v59, 6  ;;  %v10680_v7 = vld [vmem:[#allocation37_spill] sm:$0xff] }
 0x38c   :  { %v6810_v1 = vpop.eup %6809  ;;  %v1732_v24 = vadd.f32 1.0, %v6808_v28  ;;  %6835 = vrcp.f32 %v1726_v6  ;;  %v5986_v28 = vmul.f32 -1.442695, %v1630_v33  ;;  %v5989_v6 = vmul.f32 -1.442695, %v1634_v20  ;;  %v10681_v20 = vld [vmem:[#allocation38_spill] sm:$0xff] }
 0x38d   :  { %v6812_v56 = vpop.eup %6811  ;;  %v1735_v58 = vadd.f32 1.0, %v6810_v1  ;;  %6837 = vrcp.f32 %v1729_v17  ;;  %v5992_v17 = vmul.f32 -1.442695, %v1638_v55  ;;  %v5995_v29 = vmul.f32 -1.442695, %v1642_v14  ;;  %v10682_v14 = vld [vmem:[#allocation39_spill] sm:$0xff] }
 0x38e   :  { %v1738_v52 = vadd.f32 1.0, %v6812_v56  ;;  %v8785_v21 = vpop.eup %6813  ;;  %6839 = vrcp.f32 %v1732_v24  ;;  %v1564_v24 = vrot.slane %v8755_v59, 1  ;;  %v1620_v34 = vadd.f32 %v1560_v30, %v10680_v7 }
 0x38f   :  { %v8788_v3 = vpop.eup %6815  ;;  %6841 = vrcp.f32 %v1735_v58  ;;  %v10679_v58 = vld [vmem:[#allocation36_spill] sm:$0xff] }
 0x390   :  { %v8791_v13 = vpop.eup %6817  ;;  %6843 = vrcp.f32 %v1738_v52  ;;  %v1616_v38 = vadd.f32 %v1556_v10, %v10679_v58  ;;  %v1572_v52 = vrot.slane %v8755_v59, 3  ;;  %v10683_v10 = vld [vmem:[#allocation40_spill] sm:$0xff] }
 0x391   :  { %v8794_v32 = vpop.eup %6819  ;;  %6845 = vpow2.f32 %v5974_v11  ;;  %v1576_v11 = vrot.slane %v8755_v59, 4 }
 0x392   :  { %v8797_v1 = vpop.eup %6821  ;;  %6847 = vpow2.f32 %v5977_v23  ;;  %v1624_v23 = vadd.f32 %v8755_v59, %v10681_v20  ;;  %v10685_v20 = vld [vmem:[#allocation42_spill] sm:$0xff] }
 0x393   :  { %v8800_v56 = vpop.eup %6823  ;;  %6849 = vpow2.f32 %v5980_v0  ;;  %v1580_v0 = vrot.slane %v8755_v59, 5  ;;  %v1640_v63 = vadd.f32 %v1576_v11, %v10685_v20  ;;  %v10686_v59 = vld [vmem:[#allocation43_spill] sm:$0xff] }
 0x394   :  { %v8802_v16 = vpop.eup %6825  ;;  %6851 = vpow2.f32 %v5983_v8  ;;  %v1628_v8 = vadd.f32 %v1564_v24, %v10682_v14 }
 0x395   :  { %v8805_v62 = vpop.eup %6827  ;;  %6853 = vpow2.f32 %v5986_v28  ;;  %v1644_v41 = vadd.f32 %v1580_v0, %v10686_v59 }
 0x396   :  { %v8809_v60 = vpop.eup %6829  ;;  %6855 = vpow2.f32 %v5989_v6  ;;  %v1632_v6 = vadd.f32 %v1568_v19, %v10683_v10 }
 0x397   :  { %v8813_v33 = vpop.eup %6831  ;;  %6857 = vpow2.f32 %v5992_v17  ;;  %v10684_v17 = vld [vmem:[#allocation41_spill] sm:$0xff] }
 0x398   :  { %v8818_v55 = vpop.eup %6833  ;;  %6859 = vpow2.f32 %v5995_v29  ;;  %v1636_v7 = vadd.f32 %v1572_v52, %v10684_v17 }
 0x399   :  { %v8822_v28 = vpop.eup %6835  ;;  %6861 = vtanh.f32 %v1616_v38 }
 0x39a   :  { %v8825_v30 = vpop.eup %6837  ;;  %6863 = vtanh.f32 %v1620_v34 }
 0x39b   :  { %v8828_v58 = vpop.eup %6839  ;;  %6865 = vtanh.f32 %v1624_v23 }
 0x39c   :  { %v8831_v29 = vpop.eup %6841  ;;  %6867 = vtanh.f32 %v1628_v8 }
 0x39d   :  { %v8834_v24 = vpop.eup %6843  ;;  %6869 = vtanh.f32 %v1632_v6 }
 0x39e   :  { %v6846_v19 = vpop.eup %6845  ;;  %6871 = vtanh.f32 %v1636_v7 }
 0x39f   :  { %v6848_v38 = vpop.eup %6847  ;;  %v1718_v10 = vadd.f32 1.0, %v6846_v19  ;;  %6873 = vtanh.f32 %v1640_v63 }
 0x3a0   :  { %v6850_v52 = vpop.eup %6849  ;;  %v1721_v34 = vadd.f32 1.0, %v6848_v38  ;;  %6875 = vtanh.f32 %v1644_v41  ;;  %v1719_v41 = vadd.f32 1.0, %v8785_v21  ;;  %v1806_v21 = vrot.slane %v8685_v9, 7 }
 0x3a1   :  { %v6852_v17 = vpop.eup %6851  ;;  %v1724_v14 = vadd.f32 1.0, %v6850_v52  ;;  %6877 = vrcp.f32 %v1718_v10 }
 0x3a2   :  { %v6854_v11 = vpop.eup %6853  ;;  %v1727_v23 = vadd.f32 1.0, %v6852_v17  ;;  %6879 = vrcp.f32 %v1721_v34  ;;  %v1722_v17 = vadd.f32 1.0, %v8788_v3 }
 0x3a3   :  { %v6856_v20 = vpop.eup %6855  ;;  %v1730_v0 = vadd.f32 1.0, %v6854_v11  ;;  %6881 = vrcp.f32 %v1724_v14  ;;  %v1725_v14 = vadd.f32 1.0, %v8791_v13  ;;  %v1737_v13 = vadd.f32 1.0, %v8802_v16 }
 0x3a4   :  { %v6858_v8 = vpop.eup %6857  ;;  %v1733_v59 = vadd.f32 1.0, %v6856_v20  ;;  %6883 = vrcp.f32 %v1727_v23  ;;  %v1728_v20 = vadd.f32 1.0, %v8794_v32  ;;  %v1731_v23 = vadd.f32 1.0, %v8797_v1 }
 0x3a5   :  { %v6860_v6 = vpop.eup %6859  ;;  %v1736_v7 = vadd.f32 1.0, %v6858_v8  ;;  %6885 = vrcp.f32 %v1730_v0  ;;  %v1734_v8 = vadd.f32 1.0, %v8800_v56  ;;  %v1807_v32 = vrot.slane %v8688_v47, 7 }
 0x3a6   :  { %v6862_v19 = vpop.eup %6861  ;;  %v1739_v63 = vadd.f32 1.0, %v6860_v6  ;;  %6887 = vrcp.f32 %v1733_v59  ;;  %v1805_v59 = vrot.slane %v8682_v44, 7  ;;  %v1808_v6 = vrot.slane %v8691_v49, 7 }
 0x3a7   :  { %v6864_v38 = vpop.eup %6863  ;;  %6889 = vrcp.f32 %v1736_v7  ;;  %v1809_v1 = vrot.slane %v8696_v37, 7  ;;  %v1740_v44 = vadd.f32 1.0, %v8805_v62  ;;  %v1811_v56 = vrot.slane %v8703_v22, 7 }
 0x3a8   :  { %v6866_v10 = vpop.eup %6865  ;;  %6891 = vrcp.f32 %v1739_v63  ;;  %v1810_v63 = vrot.slane %v8700_v27, 7  ;;  %v1829_v49 = vmul.f32 %v6862_v19, %v8813_v33  ;;  %v1812_v16 = vrot.slane %v8706_v15, 7 }
 0x3a9   :  { %v6868_v52 = vpop.eup %6867  ;;  %6893 = vrcp.f32 %v1719_v41  ;;  %v1831_v62 = vmul.f32 %v6866_v10, %v8809_v60 }
 0x3aa   :  { %v6870_v34 = vpop.eup %6869  ;;  %6895 = vrcp.f32 %v1722_v17 }
 0x3ab   :  { %v6872_v11 = vpop.eup %6871  ;;  %6897 = vrcp.f32 %v1725_v14  ;;  %v1830_v14 = vmul.f32 %v6864_v38, %v8818_v55  ;;  %v1833_v15 = vmul.f32 %v6870_v34, %v8825_v30 }
 0x3ac   :  { %v6874_v0 = vpop.eup %6873  ;;  %6899 = vrcp.f32 %v1728_v20  ;;  %v1834_v10 = vmul.f32 %v6872_v11, %v8828_v58 }
 0x3ad   :  { %v6876_v3 = vpop.eup %6875  ;;  %6901 = vrcp.f32 %v1731_v23  ;;  %v1832_v23 = vmul.f32 %v6868_v52, %v8822_v28  ;;  %v1835_v52 = vmul.f32 %v6874_v0, %v8831_v29 }
 0x3ae   :  { %v6878_v7 = vpop.eup %6877  ;;  %6903 = vrcp.f32 %v1734_v8 }
 0x3af   :  { %v6880_v9 = vpop.eup %6879  ;;  %v1821_v41 = vmul.f32 %v6878_v7, %v1805_v59  ;;  %6905 = vrcp.f32 %v1737_v13 }
 0x3b0   :  { %v6882_v17 = vpop.eup %6881  ;;  %v1822_v47 = vmul.f32 %v6880_v9, %v1806_v21  ;;  %6907 = vrcp.f32 %v1740_v44 }
 0x3b1   :  { %v6884_v37 = vpop.eup %6883  ;;  %v1823_v27 = vmul.f32 %v6882_v17, %v1807_v32  ;;  %v8855_v20 = vadd.f32 %v1829_v49, %v1821_v41 }
 0x3b2   :  { %v6886_v40 = vpop.eup %6885  ;;  %v1824_v22 = vmul.f32 %v6884_v37, %v1808_v6  ;;  %v8858_v33 = vadd.f32 %v1830_v14, %v1822_v47  ;;  %v1836_v6 = vmul.f32 %v6876_v3, %v8834_v24 }
 0x3b3   :  { %v6888_v19 = vpop.eup %6887  ;;  %v8861_v59 = vadd.f32 %v1831_v62, %v1823_v27  ;;  %6909 = vtanh.f32 %v8855_v20  ;;  %v1825_v55 = vmul.f32 %v6886_v40, %v1809_v1 }
 0x3b4   :  { %v6890_v38 = vpop.eup %6889  ;;  %v8864_v21 = vadd.f32 %v1832_v23, %v1824_v22  ;;  %6911 = vtanh.f32 %v8858_v33  ;;  %v1826_v60 = vmul.f32 %v6888_v19, %v1810_v63 }
 0x3b5   :  { %v6892_v8 = vpop.eup %6891  ;;  %6913 = vtanh.f32 %v8861_v59  ;;  %v1827_v28 = vmul.f32 %v6890_v38, %v1811_v56  ;;  %v8870_v30 = vadd.f32 %v1833_v15, %v1825_v55 }
 0x3b6   :  { %v1828_v34 = vmul.f32 %v6892_v8, %v1812_v16  ;;  %v8873_v40 = vadd.f32 %v1834_v10, %v1826_v60  ;;  %6915 = vtanh.f32 %v8864_v21  ;;  %v6894_v58 = vpop.eup %6893 }
 0x3b7   :  { %v8876_v13 = vadd.f32 %v1835_v52, %v1827_v28  ;;  %6917 = vtanh.f32 %v8870_v30  ;;  %v6896_v32 = vpop.eup %6895 }
 0x3b8   :  { %v8879_v11 = vadd.f32 %v1836_v6, %v1828_v34  ;;  %6919 = vtanh.f32 %v8873_v40  ;;  %v6898_v29 = vpop.eup %6897 }
 0x3b9   :  { %6921 = vtanh.f32 %v8876_v13  ;;  %v6900_v24 = vpop.eup %6899 }
 0x3ba   :  { %6923 = vtanh.f32 %v8879_v11  ;;  %v6902_v0 = vpop.eup %6901 }
 0x3bb   :  { %v6904_v3 = vpop.eup %6903 }
 0x3bc   :  { %v6906_v7 = vpop.eup %6905 }
 0x3bd   :  { %v6908_v1 = vpop.eup %6907 }
 0x3c0   :  { %v6910_v63 = vpop.eup %6909 }
 0x3c1   :  { %v6912_v44 = vpop.eup %6911  ;;  %v1853_v9 = vmul.f32 %v6910_v63, %v6894_v58 }
 0x3c2   :  { %v6914_v56 = vpop.eup %6913  ;;  %v1854_v41 = vmul.f32 %v6912_v44, %v6896_v32 }
 0x3c3   :  { %v6916_v49 = vpop.eup %6915  ;;  %v1855_v17 = vmul.f32 %v6914_v56, %v6898_v29  ;;  %v1861_v16 = vpack.c.bf16 %v1853_v9, %v1853_v9 }
 0x3c4   :  { %v6918_v47 = vpop.eup %6917  ;;  %v1856_v14 = vmul.f32 %v6916_v49, %v6900_v24  ;;  %v1862_v37 = vpack.c.bf16 %v1854_v41, %v1854_v41 }
 0x3c5   :  { %v6920_v27 = vpop.eup %6919  ;;  %v1857_v62 = vmul.f32 %v6918_v47, %v6902_v0  ;;  %v1863_v22 = vpack.c.bf16 %v1855_v17, %v1855_v17  ;;  %v1877_v23 = vunpack.c.l.b16 %v1861_v16 }
 0x3c6   :  { %v6922_v19 = vpop.eup %6921  ;;  %v1858_v15 = vmul.f32 %v6920_v27, %v6904_v3  ;;  %v1864_v55 = vpack.c.bf16 %v1856_v14, %v1856_v14  ;;  %v1878_v38 = vunpack.c.l.b16 %v1862_v37 }
 0x3c7   :  { %v6924_v60 = vpop.eup %6923  ;;  %v1859_v10 = vmul.f32 %v6922_v19, %v6906_v7  ;;  %v1865_v8 = vpack.c.bf16 %v1857_v62, %v1857_v62  ;;  %v1901_v28 = vrot.slane %v1877_v23, 2  ;;  %v1879_v29 = vunpack.c.l.b16 %v1863_v22  ;;  %v8891_v22 = vld [vmem:[#allocation8 + $0xe0] ss:$16 sps:$4 sm:$0xff]   ;;  %v8894_v23 = vld [vmem:[#allocation8 + $0xe8] ss:$16 sps:$4 sm:$0xff]  }
 0x3c8   :  { %v1860_v52 = vmul.f32 %v6924_v60, %v6908_v1  ;;  %v1866_v34 = vpack.c.bf16 %v1858_v15, %v1858_v15  ;;  %v1880_v6 = vunpack.c.l.b16 %v1864_v55  ;;  %v1902_v58 = vrot.slane %v1878_v38, 1  ;;  %v8897_v19 = vld [vmem:[#allocation8 + $0xc4] ss:$16 sps:$4 sm:$0xff]   ;;  %v8900_v15 = vld [vmem:[#allocation8 + $0xcc] ss:$16 sps:$4 sm:$0xff]  }
 0x3c9   :  { %v1867_v32 = vpack.c.bf16 %v1859_v10, %v1859_v10  ;;  %v1881_v24 = vunpack.c.l.b16 %v1865_v8  ;;  %v8905_v55 = vld [vmem:[#allocation8 + $0xc0] ss:$16 sps:$4 sm:$0xff]   ;;  %v8908_v38 = vld [vmem:[#allocation8 + $0xc8] ss:$16 sps:$4 sm:$0xff]   ;;  %v8911_v60 = vld [vmem:[#allocation8 + $0xa4] ss:$16 sps:$4 sm:$0xff]  }
 0x3ca   :  { %v1868_v63 = vpack.c.bf16 %v1860_v52, %v1860_v52  ;;  %v1882_v44 = vunpack.c.l.b16 %v1866_v34  ;;  %v1903_v0 = vsel %vm960_vm1, %v1902_v58, %v1901_v28  ;;  %v1905_v9 = vrot.slane %v1880_v6, 7  ;;  %v8914_v10 = vld [vmem:[#allocation8 + $0xac] ss:$16 sps:$4 sm:$0xff]   ;;  %v8917_v8 = vld [vmem:[#allocation8 + $0xa0] ss:$16 sps:$4 sm:$0xff]  }
 0x3cb   :  { %v1883_v56 = vunpack.c.l.b16 %v1867_v32  ;;  %v1904_v3 = vsel %vm963_vm2, %v1879_v29, %v1903_v0  ;;  %v1907_v41 = vrot.slane %v1881_v24, 6  ;;  %v8920_v28 = vld [vmem:[#allocation8 + $0xa8] ss:$16 sps:$4 sm:$0xff]   ;;  %v8923_v52 = vld [vmem:[#allocation8 + $0x84] ss:$16 sps:$4 sm:$0xff]  }
 0x3cc   :  { %v1884_v49 = vunpack.c.l.b16 %v1868_v63  ;;  %v1906_v7 = vsel %vm966_vm3, %v1905_v9, %v1904_v3  ;;  %v1909_v17 = vrot.slane %v1882_v44, 5  ;;  %10687 = vst [vmem:[#allocation44_spill] sm:$0xff] %v8923_v52  ;;  %v8926_v34 = vld [vmem:[#allocation8 + $0x8c] ss:$16 sps:$4 sm:$0xff]   ;;  %v8929_v6 = vld [vmem:[#allocation8 + $0x80] ss:$16 sps:$4 sm:$0xff]  }
 0x3cd   :  { %v1908_v1 = vsel %vm969_vm4, %v1907_v41, %v1906_v7  ;;  %v1911_v16 = vrot.slane %v1883_v56, 4  ;;  %10688 = vst [vmem:[#allocation45_spill] sm:$0xff] %v8926_v34  ;;  %10689 = vst [vmem:[#allocation46_spill] sm:$0xff] %v8929_v6  ;;  %v8932_v58 = vld [vmem:[#allocation8 + $0x88] ss:$16 sps:$4 sm:$0xff]  }
 0x3ce   :  { %v1910_v47 = vsel %vm972_vm5, %v1909_v17, %v1908_v1  ;;  %v1913_v14 = vrot.slane %v1884_v49, 3  ;;  %10690 = vst [vmem:[#allocation47_spill] sm:$0xff] %v8932_v58  ;;  %v8935_v32 = vld [vmem:[#allocation8 + $0x64] ss:$16 sps:$4 sm:$0xff]   ;;  %v8938_v29 = vld [vmem:[#allocation8 + $0x6c] ss:$16 sps:$4 sm:$0xff]  }
 0x3cf   :  { %v1912_v37 = vsel %vm975_vm6, %v1911_v16, %v1910_v47  ;;  %10691 = vst [vmem:[#allocation48_spill] sm:$0xff] %v8935_v32  ;;  %10692 = vst [vmem:[#allocation49_spill] sm:$0xff] %v8938_v29  ;;  %v8941_v24 = vld [vmem:[#allocation8 + $0x60] ss:$16 sps:$4 sm:$0xff]   ;;  %v8944_v63 = vld [vmem:[#allocation8 + $0x68] ss:$16 sps:$4 sm:$0xff]  }
 0x3d0   :  { %v1914_v27 = vsel %vm978_vm7, %v1913_v14, %v1912_v37  ;;  %10693 = vst [vmem:[#allocation50_spill] sm:$0xff] %v8941_v24  ;;  %10694 = vst [vmem:[#allocation51_spill] sm:$0xff] %v8944_v63  ;;  %v8947_v44 = vld [vmem:[#allocation8 + $0x44] ss:$16 sps:$4 sm:$0xff]   ;;  %v8950_v0 = vld [vmem:[#allocation8 + $0x4c] ss:$16 sps:$4 sm:$0xff]  }
 0x3d1   :  { %v1915_v62 = vpack.c.b16 %v1914_v27, %v1914_v27  ;;  %10695 = vst [vmem:[#allocation52_spill] sm:$0xff] %v8947_v44  ;;  %10696 = vst [vmem:[#allocation53_spill] sm:$0xff] %v8950_v0  ;;  %v8953_v9 = vld [vmem:[#allocation8 + $0x40] ss:$16 sps:$4 sm:$0xff]   ;;  %v8956_v56 = vld [vmem:[#allocation8 + $0x48] ss:$16 sps:$4 sm:$0xff]  }
 0x3d2   :  { %10697 = vst [vmem:[#allocation54_spill] sm:$0xff] %v8953_v9  ;;  %10698 = vst [vmem:[#allocation55_spill] sm:$0xff] %v8956_v56  ;;  %v8959_v3 = vld [vmem:[#allocation8 + $0x24] ss:$16 sps:$4 sm:$0xff]   ;;  %v8962_v41 = vld [vmem:[#allocation8 + $0x2c] ss:$16 sps:$4 sm:$0xff]  }
 0x3d3   :  { %1918 = vst [vmem:[#allocation2 + $0x8] sm:$0xf] %v1915_v62  ;;  %1968 = vmatmul.mubr.bf16.vlgmr.msra.gmra.mxu0 %v1915_v62  ;;  %2009 = vmatmul.mubr.bf16.vlgmr.msra.gmra.mxu1 %v1915_v62  ;;  %10699 = vst [vmem:[#allocation56_spill] sm:$0xff] %v8959_v3  ;;  %v8965_v49 = vld [vmem:[#allocation8 + $0x20] ss:$16 sps:$4 sm:$0xff]  }
 0x3d4   :  { %2404 = vmatpush1.bf16.msra.mxu0 %v8891_v22  ;;  %2445 = vmatpush1.bf16.msra.mxu1 %v8894_v23  ;;  %10700 = vst [vmem:[#allocation57_spill] sm:$0xff] %v8962_v41  ;;  %10701 = vst [vmem:[#allocation58_spill] sm:$0xff] %v8965_v49  ;;  %v8968_v7 = vld [vmem:[#allocation8 + $0x28] ss:$16 sps:$4 sm:$0xff]   ;;  %v8971_v17 = vld [vmem:[#allocation8 + $0x4] ss:$16 sps:$4 sm:$0xff]  }
 0x3d5   :  { %2405 = vmatprep.subr.bf16.mxu0 %v8897_v19  ;;  %2446 = vmatprep.subr.bf16.mxu1 %v8900_v15  ;;  %10702 = vst [vmem:[#allocation59_spill] sm:$0xff] %v8968_v7  ;;  %10703 = vst [vmem:[#allocation60_spill] sm:$0xff] %v8971_v17  ;;  %v8974_v1 = vld [vmem:[#allocation8 + $0xc] ss:$16 sps:$4 sm:$0xff]   ;;  %v8977_v16 = vld [vmem:[#allocation8] ss:$16 sps:$4 sm:$0xff]  }
 0x3d6   :  { %2435 = vmatprep.mubr.bf16.mxu0 %v10645_v12  ;;  %2476 = vmatprep.mubr.bf16.mxu1 %v10645_v12  ;;  %10704 = vst [vmem:[#allocation61_spill] sm:$0xff] %v8974_v1  ;;  %10705 = vst [vmem:[#allocation62_spill] sm:$0xff] %v8977_v16  ;;  %v8980_v47 = vld [vmem:[#allocation8 + $0x8] ss:$16 sps:$4 sm:$0xff]   ;;  %v8983_v14 = vld [vmem:[#allocation8 + $0xe4] ss:$16 sps:$4 sm:$0xff]  }
 0x3d7   :  { %10706 = vst [vmem:[#allocation63_spill] sm:$0xff] %v8980_v47  ;;  %10707 = vst [vmem:[#allocation64_spill] sm:$0xff] %v8983_v14  ;;  %v8986_v37 = vld [vmem:[#allocation8 + $0xec] ss:$16 sps:$4 sm:$0xff]  }
 0x3d8   :  { %2406 = vmatpush1.bf16.msra.mxu0 %v8905_v55  ;;  %2447 = vmatpush1.bf16.msra.mxu1 %v8908_v38  ;;  %10708 = vst [vmem:[#allocation65_spill] sm:$0xff] %v8986_v37 }
 0x3d9   :  { %2407 = vmatprep.subr.bf16.mxu0 %v8911_v60  ;;  %2448 = vmatprep.subr.bf16.mxu1 %v8914_v10 }
 0x3dc   :  { %2408 = vmatpush1.bf16.msra.mxu0 %v8917_v8  ;;  %2449 = vmatpush1.bf16.msra.mxu1 %v8920_v28 }
 0x3dd   :  { %2409 = vmatprep.subr.bf16.mxu0 %v8923_v52  ;;  %2450 = vmatprep.subr.bf16.mxu1 %v8926_v34 }
 0x3e0   :  { %2410 = vmatpush1.bf16.msra.mxu0 %v8929_v6  ;;  %2451 = vmatpush1.bf16.msra.mxu1 %v8932_v58 }
 0x3e1   :  { %2411 = vmatprep.subr.bf16.mxu0 %v8935_v32  ;;  %2452 = vmatprep.subr.bf16.mxu1 %v8938_v29 }
 0x3e4   :  { %2412 = vmatpush1.bf16.msra.mxu0 %v8941_v24  ;;  %2453 = vmatpush1.bf16.msra.mxu1 %v8944_v63 }
 0x3e5   :  { %2413 = vmatprep.subr.bf16.mxu0 %v8947_v44  ;;  %2454 = vmatprep.subr.bf16.mxu1 %v8950_v0 }
 0x3e8   :  { %2414 = vmatpush1.bf16.msra.mxu0 %v8953_v9  ;;  %2455 = vmatpush1.bf16.msra.mxu1 %v8956_v56 }
 0x3e9   :  { %2415 = vmatprep.subr.bf16.mxu0 %v8959_v3  ;;  %2456 = vmatprep.subr.bf16.mxu1 %v8962_v41 }
 0x3ec   :  { %2416 = vmatpush1.bf16.msra.mxu0 %v8965_v49  ;;  %2457 = vmatpush1.bf16.msra.mxu1 %v8968_v7 }
 0x3ed   :  { %2417 = vmatprep.subr.bf16.mxu0 %v8971_v17  ;;  %2458 = vmatprep.subr.bf16.mxu1 %v8974_v1 }
 0x3f0   :  { %2418 = vmatpush1.bf16.msra.mxu0 %v8977_v16  ;;  %2459 = vmatpush1.bf16.msra.mxu1 %v8980_v47 }
 0x3f1   :  { %2871 = vmatprep.subr.bf16.mxu0 %v8983_v14  ;;  %2912 = vmatprep.subr.bf16.mxu1 %v8986_v37 }
 0x493   :  { %v1969_v27 = vpop.f32.mrf.mxu0  ;;  %v2010_v62 = vpop.f32.mrf.mxu1 }
 0x494   :  { %v2021_v17 = vrot.slane %v1969_v27, 5  ;;  %v2025_v1 = vrot.slane %v1969_v27, 6  ;;  %v2029_v7 = vrot.slane %v1969_v27, 7  ;;  %v2033_v49 = vrot.slane %v1969_v27, 1 }
 0x495   :  { %v2093_v16 = vadd.f32 %v1969_v27, %v8242_v35  ;;  %v8990_v41 = vpop.f32.mrf.mxu0  ;;  %v8992_v3 = vpop.f32.mrf.mxu1  ;;  %v2037_v47 = vrot.slane %v1969_v27, 2  ;;  %v2041_v14 = vrot.slane %v1969_v27, 3  ;;  %v2045_v44 = vrot.slane %v1969_v27, 4 }
 0x496   :  { %v2081_v56 = vadd.f32 %v2021_v17, %v10674_v25  ;;  %v2085_v9 = vadd.f32 %v2025_v1, %v10675_v5  ;;  %v2089_v63 = vadd.f32 %v2029_v7, %v8237_v31  ;;  %v2097_v24 = vadd.f32 %v2033_v49, %v8247_v39 }
 0x497   :  { %v1973_v0 = vpop.f32.mrf.mxu0  ;;  %v2014_v37 = vpop.f32.mrf.mxu1  ;;  %v6014_v29 = vmul.f32 -1.442695, %v2093_v16  ;;  %v2101_v58 = vadd.f32 %v2037_v47, %v8250_v43  ;;  %v2105_v34 = vadd.f32 %v2041_v14, %v8256_v48  ;;  %v2109_v17 = vadd.f32 %v2045_v44, %v8259_v61 }
 0x498   :  { %v6005_v6 = vmul.f32 -1.442695, %v2081_v56  ;;  %v6008_v52 = vmul.f32 -1.442695, %v2085_v9  ;;  %v6011_v25 = vmul.f32 -1.442695, %v2089_v63 }
 0x499   :  { %v1974_v32 = vpop.f32.mrf.mxu0  ;;  %v2015_v35 = vpop.f32.mrf.mxu1  ;;  %6925 = vpow2.f32 %v6014_v29  ;;  %v6017_v0 = vmul.f32 -1.442695, %v2097_v24  ;;  %v2023_v1 = vrot.slane %v2010_v62, 5  ;;  %v6020_v37 = vmul.f32 -1.442695, %v2101_v58 }
 0x49a   :  { %6927 = vpow2.f32 %v6005_v6  ;;  %v2027_v7 = vrot.slane %v2010_v62, 6  ;;  %v6023_v49 = vmul.f32 -1.442695, %v2105_v34  ;;  %v2031_v16 = vrot.slane %v2010_v62, 7 }
 0x49b   :  { %6929 = vpow2.f32 %v6008_v52  ;;  %v6026_v35 = vmul.f32 -1.442695, %v2109_v17  ;;  %v2035_v32 = vrot.slane %v2010_v62, 1  ;;  %v2083_v56 = vadd.f32 %v2023_v1, %v8265_v42 }
 0x49c   :  { %6931 = vpow2.f32 %v6011_v25  ;;  %v2039_v9 = vrot.slane %v2010_v62, 2  ;;  %v2087_v44 = vadd.f32 %v2027_v7, %v8269_v18  ;;  %v2043_v29 = vrot.slane %v2010_v62, 3 }
 0x49d   :  { %6933 = vpow2.f32 %v6017_v0  ;;  %v2091_v24 = vadd.f32 %v2031_v16, %v8273_v36  ;;  %v2047_v6 = vrot.slane %v2010_v62, 4  ;;  %v2095_v52 = vadd.f32 %v2010_v62, %v8277_v50 }
 0x49e   :  { %6935 = vpow2.f32 %v6020_v37  ;;  %v2099_v34 = vadd.f32 %v2035_v32, %v8281_v54  ;;  %v6007_v25 = vmul.f32 -1.442695, %v2083_v56  ;;  %v2103_v58 = vadd.f32 %v2039_v9, %v8287_v46 }
 0x49f   :  { %6937 = vpow2.f32 %v6023_v49  ;;  %v6010_v63 = vmul.f32 -1.442695, %v2087_v44  ;;  %v2107_v47 = vadd.f32 %v2043_v29, %v8292_v53  ;;  %v6013_v14 = vmul.f32 -1.442695, %v2091_v24 }
 0x4a0   :  { %6939 = vpow2.f32 %v6026_v35  ;;  %v2111_v27 = vadd.f32 %v2047_v6, %v8297_v2  ;;  %v6016_v17 = vmul.f32 -1.442695, %v2095_v52  ;;  %v6019_v0 = vmul.f32 -1.442695, %v2099_v34  ;;  %v10719_v2 = vld [vmem:[#allocation43_spill] sm:$0xff] }
 0x4a1   :  { %6941 = vpow2.f32 %v6007_v25  ;;  %v6022_v37 = vmul.f32 -1.442695, %v2103_v58  ;;  %v6025_v62 = vmul.f32 -1.442695, %v2107_v47  ;;  %v2022_v56 = vrot.slane %v8990_v41, 5 }
 0x4a2   :  { %6943 = vpow2.f32 %v6010_v63  ;;  %v6028_v16 = vmul.f32 -1.442695, %v2111_v27  ;;  %v2026_v29 = vrot.slane %v8990_v41, 6  ;;  %v2030_v52 = vrot.slane %v8990_v41, 7 }
 0x4a3   :  { %6945 = vpow2.f32 %v6013_v14  ;;  %v2034_v47 = vrot.slane %v8990_v41, 1  ;;  %v2082_v14 = vadd.f32 %v2022_v56, %v8310_v45 }
 0x4a4   :  { %6947 = vpow2.f32 %v6016_v17  ;;  %v2038_v17 = vrot.slane %v8990_v41, 2 }
 0x4a5   :  { %6949 = vpow2.f32 %v6019_v0  ;;  %v2086_v0 = vadd.f32 %v2026_v29, %v8318_v4 }
 0x4a6   :  { %v6926_v1 = vpop.eup %6925  ;;  %6951 = vpow2.f32 %v6022_v37  ;;  %v2042_v37 = vrot.slane %v8990_v41, 3 }
 0x4a7   :  { %v6928_v7 = vpop.eup %6927  ;;  %v2194_v32 = vadd.f32 1.0, %v6926_v1  ;;  %6953 = vpow2.f32 %v6025_v62  ;;  %v6009_v29 = vmul.f32 -1.442695, %v2086_v0 }
 0x4a8   :  { %v6930_v49 = vpop.eup %6929  ;;  %v2185_v44 = vadd.f32 1.0, %v6928_v7  ;;  %6955 = vpow2.f32 %v6028_v16  ;;  %v2090_v7 = vadd.f32 %v2030_v52, %v8321_v57  ;;  %v2094_v16 = vadd.f32 %v8990_v41, %v8324_v51  ;;  %v10716_v57 = vld [vmem:[#allocation40_spill] sm:$0xff] }
 0x4a9   :  { %v6932_v35 = vpop.eup %6931  ;;  %v2188_v6 = vadd.f32 1.0, %v6930_v49  ;;  %6957 = vrcp.f32 %v2194_v32  ;;  %v2046_v49 = vrot.slane %v8990_v41, 4  ;;  %v6006_v32 = vmul.f32 -1.442695, %v2082_v14  ;;  %v10711_v41 = vld [vmem:[#allocation35_spill] sm:$0xff] }
 0x4aa   :  { %v6934_v9 = vpop.eup %6933  ;;  %v2191_v25 = vadd.f32 1.0, %v6932_v35  ;;  %6959 = vrcp.f32 %v2185_v44  ;;  %v2098_v35 = vadd.f32 %v2034_v47, %v8328_v26 }
 0x4ab   :  { %v6936_v24 = vpop.eup %6935  ;;  %v2197_v63 = vadd.f32 1.0, %v6934_v9  ;;  %6961 = vrcp.f32 %v2188_v6  ;;  %v10709_v9 = vld [vmem:[#allocation33_spill] sm:$0xff]  ;;  %v10710_v6 = vld [vmem:[#allocation34_spill] sm:$0xff] }
 0x4ac   :  { %v6938_v34 = vpop.eup %6937  ;;  %v2200_v27 = vadd.f32 1.0, %v6936_v24  ;;  %6963 = vrcp.f32 %v2191_v25  ;;  %v2102_v44 = vadd.f32 %v2038_v17, %v10709_v9  ;;  %v2106_v52 = vadd.f32 %v2042_v37, %v10710_v6 }
 0x4ad   :  { %v6940_v58 = vpop.eup %6939  ;;  %v2203_v1 = vadd.f32 1.0, %v6938_v34  ;;  %6965 = vrcp.f32 %v2197_v63  ;;  %v6012_v34 = vmul.f32 -1.442695, %v2090_v7  ;;  %v6015_v63 = vmul.f32 -1.442695, %v2094_v16 }
 0x4ae   :  { %v2206_v62 = vadd.f32 1.0, %v6940_v58  ;;  %v9022_v56 = vpop.eup %6941  ;;  %6967 = vrcp.f32 %v2200_v27  ;;  %v2110_v58 = vadd.f32 %v2046_v49, %v10711_v41  ;;  %v6018_v14 = vmul.f32 -1.442695, %v2098_v35  ;;  %v10712_v41 = vld [vmem:[#allocation36_spill] sm:$0xff] }
 0x4af   :  { %v9025_v24 = vpop.eup %6943  ;;  %6969 = vrcp.f32 %v2203_v1  ;;  %v2024_v27 = vrot.slane %v8992_v3, 5  ;;  %v6021_v0 = vmul.f32 -1.442695, %v2102_v44  ;;  %v2028_v1 = vrot.slane %v8992_v3, 6 }
 0x4b0   :  { %v9028_v25 = vpop.eup %6945  ;;  %6971 = vrcp.f32 %v2206_v62  ;;  %v6024_v7 = vmul.f32 -1.442695, %v2106_v52  ;;  %v2032_v62 = vrot.slane %v8992_v3, 7  ;;  %v6027_v16 = vmul.f32 -1.442695, %v2110_v58  ;;  %v10714_v58 = vld [vmem:[#allocation38_spill] sm:$0xff] }
 0x4b1   :  { %v9031_v47 = vpop.eup %6947  ;;  %6973 = vpow2.f32 %v6006_v32  ;;  %v2036_v35 = vrot.slane %v8992_v3, 1  ;;  %v2040_v6 = vrot.slane %v8992_v3, 2 }
 0x4b2   :  { %v9034_v17 = vpop.eup %6949  ;;  %6975 = vpow2.f32 %v6009_v29  ;;  %v2084_v29 = vadd.f32 %v2024_v27, %v10712_v41  ;;  %v2092_v26 = vadd.f32 %v2032_v62, %v10714_v58  ;;  %v10715_v27 = vld [vmem:[#allocation39_spill] sm:$0xff]  ;;  %v10718_v62 = vld [vmem:[#allocation42_spill] sm:$0xff] }
 0x4b3   :  { %v9037_v37 = vpop.eup %6951  ;;  %6977 = vpow2.f32 %v6012_v34  ;;  %v10713_v34 = vld [vmem:[#allocation37_spill] sm:$0xff]  ;;  %v2096_v41 = vadd.f32 %v8992_v3, %v10715_v27  ;;  %v2100_v4 = vadd.f32 %v2036_v35, %v10716_v57 }
 0x4b4   :  { %v9040_v49 = vpop.eup %6953  ;;  %6979 = vpow2.f32 %v6015_v63  ;;  %v2088_v52 = vadd.f32 %v2028_v1, %v10713_v34  ;;  %v2044_v63 = vrot.slane %v8992_v3, 3 }
 0x4b5   :  { %v9042_v32 = vpop.eup %6955  ;;  %6981 = vpow2.f32 %v6018_v14  ;;  %v2048_v14 = vrot.slane %v8992_v3, 4 }
 0x4b6   :  { %v9046_v44 = vpop.eup %6957  ;;  %6983 = vpow2.f32 %v6021_v0  ;;  %v2108_v58 = vadd.f32 %v2044_v63, %v10718_v62 }
 0x4b7   :  { %v9050_v9 = vpop.eup %6959  ;;  %6985 = vpow2.f32 %v6024_v7  ;;  %v10717_v7 = vld [vmem:[#allocation41_spill] sm:$0xff]  ;;  %v2112_v53 = vadd.f32 %v2048_v14, %v10719_v2 }
 0x4b8   :  { %v9054_v51 = vpop.eup %6961  ;;  %6987 = vpow2.f32 %v6027_v16  ;;  %v2104_v34 = vadd.f32 %v2040_v6, %v10717_v7 }
 0x4b9   :  { %v9059_v0 = vpop.eup %6963  ;;  %6989 = vtanh.f32 %v2084_v29 }
 0x4ba   :  { %v9062_v1 = vpop.eup %6965  ;;  %6991 = vtanh.f32 %v2088_v52 }
 0x4bb   :  { %v9065_v45 = vpop.eup %6967  ;;  %6993 = vtanh.f32 %v2092_v26 }
 0x4bc   :  { %v9068_v16 = vpop.eup %6969  ;;  %6995 = vtanh.f32 %v2096_v41 }
 0x4bd   :  { %v9071_v3 = vpop.eup %6971  ;;  %6997 = vtanh.f32 %v2100_v4 }
 0x4be   :  { %v6974_v35 = vpop.eup %6973  ;;  %6999 = vtanh.f32 %v2104_v34 }
 0x4bf   :  { %v6976_v29 = vpop.eup %6975  ;;  %v2186_v57 = vadd.f32 1.0, %v6974_v35  ;;  %7001 = vtanh.f32 %v2108_v58 }
 0x4c0   :  { %v6978_v6 = vpop.eup %6977  ;;  %v2189_v52 = vadd.f32 1.0, %v6976_v29  ;;  %7003 = vtanh.f32 %v2112_v53  ;;  %v2187_v53 = vadd.f32 1.0, %v9022_v56  ;;  %v2274_v56 = vrot.slane %v8858_v33, 7 }
 0x4c1   :  { %v6980_v7 = vpop.eup %6979  ;;  %v2192_v27 = vadd.f32 1.0, %v6978_v6  ;;  %7005 = vrcp.f32 %v2186_v57 }
 0x4c2   :  { %v6982_v26 = vpop.eup %6981  ;;  %v2195_v63 = vadd.f32 1.0, %v6980_v7  ;;  %7007 = vrcp.f32 %v2189_v52  ;;  %v2190_v7 = vadd.f32 1.0, %v9025_v24 }
 0x4c3   :  { %v6984_v62 = vpop.eup %6983  ;;  %v2198_v14 = vadd.f32 1.0, %v6982_v26  ;;  %7009 = vrcp.f32 %v2192_v27  ;;  %v2193_v27 = vadd.f32 1.0, %v9028_v25  ;;  %v2205_v25 = vadd.f32 1.0, %v9040_v49 }
 0x4c4   :  { %v6986_v41 = vpop.eup %6985  ;;  %v2201_v2 = vadd.f32 1.0, %v6984_v62  ;;  %7011 = vrcp.f32 %v2195_v63  ;;  %v2196_v62 = vadd.f32 1.0, %v9031_v47  ;;  %v2199_v63 = vadd.f32 1.0, %v9034_v17 }
 0x4c5   :  { %v6988_v4 = vpop.eup %6987  ;;  %v2204_v34 = vadd.f32 1.0, %v6986_v41  ;;  %7013 = vrcp.f32 %v2198_v14  ;;  %v2202_v41 = vadd.f32 1.0, %v9037_v37  ;;  %v2276_v47 = vrot.slane %v8864_v21, 7 }
 0x4c6   :  { %v6990_v35 = vpop.eup %6989  ;;  %v2207_v58 = vadd.f32 1.0, %v6988_v4  ;;  %7015 = vrcp.f32 %v2201_v2  ;;  %v2273_v2 = vrot.slane %v8855_v20, 7  ;;  %v2275_v4 = vrot.slane %v8861_v59, 7 }
 0x4c7   :  { %v6992_v29 = vpop.eup %6991  ;;  %7017 = vrcp.f32 %v2204_v34  ;;  %v2277_v17 = vrot.slane %v8870_v30, 7  ;;  %v2208_v20 = vadd.f32 1.0, %v9042_v32  ;;  %v2279_v37 = vrot.slane %v8876_v13, 7 }
 0x4c8   :  { %v6994_v57 = vpop.eup %6993  ;;  %7019 = vrcp.f32 %v2207_v58  ;;  %v2278_v58 = vrot.slane %v8873_v40, 7  ;;  %v2297_v59 = vmul.f32 %v6990_v35, %v9050_v9  ;;  %v2280_v49 = vrot.slane %v8879_v11, 7 }
 0x4c9   :  { %v6996_v6 = vpop.eup %6995  ;;  %7021 = vrcp.f32 %v2187_v53  ;;  %v2299_v32 = vmul.f32 %v6994_v57, %v9059_v0 }
 0x4ca   :  { %v6998_v52 = vpop.eup %6997  ;;  %7023 = vrcp.f32 %v2190_v7 }
 0x4cb   :  { %v7000_v26 = vpop.eup %6999  ;;  %7025 = vrcp.f32 %v2193_v27  ;;  %v2298_v27 = vmul.f32 %v6992_v29, %v9054_v51  ;;  %v2301_v11 = vmul.f32 %v6998_v52, %v9062_v1 }
 0x4cc   :  { %v7002_v14 = vpop.eup %7001  ;;  %7027 = vrcp.f32 %v2196_v62  ;;  %v2302_v57 = vmul.f32 %v7000_v26, %v9065_v45 }
 0x4cd   :  { %v7004_v24 = vpop.eup %7003  ;;  %7029 = vrcp.f32 %v2199_v63  ;;  %v2300_v63 = vmul.f32 %v6996_v6, %v9046_v44  ;;  %v2303_v6 = vmul.f32 %v7002_v14, %v9068_v16 }
 0x4ce   :  { %v7006_v34 = vpop.eup %7005  ;;  %7031 = vrcp.f32 %v2202_v41  ;;  %v2304_v52 = vmul.f32 %v7004_v24, %v9071_v3 }
 0x4cf   :  { %v7008_v33 = vpop.eup %7007  ;;  %v2289_v53 = vmul.f32 %v7006_v34, %v2273_v2  ;;  %7033 = vrcp.f32 %v2205_v25 }
 0x4d0   :  { %v7010_v7 = vpop.eup %7009  ;;  %v2290_v21 = vmul.f32 %v7008_v33, %v2274_v56  ;;  %7035 = vrcp.f32 %v2208_v20 }
 0x4d1   :  { %v7012_v30 = vpop.eup %7011  ;;  %v2291_v40 = vmul.f32 %v7010_v7, %v2275_v4  ;;  %v9092_v62 = vadd.f32 %v2297_v59, %v2289_v53 }
 0x4d2   :  { %v7014_v46 = vpop.eup %7013  ;;  %v2292_v13 = vmul.f32 %v7012_v30, %v2276_v47  ;;  %v9095_v9 = vadd.f32 %v2298_v27, %v2290_v21 }
 0x4d3   :  { %v7016_v35 = vpop.eup %7015  ;;  %v9098_v2 = vadd.f32 %v2299_v32, %v2291_v40  ;;  %7037 = vtanh.f32 %v9092_v62  ;;  %v2293_v51 = vmul.f32 %v7014_v46, %v2277_v17 }
 0x4d4   :  { %v7018_v29 = vpop.eup %7017  ;;  %v9101_v56 = vadd.f32 %v2300_v63, %v2292_v13  ;;  %7039 = vtanh.f32 %v9095_v9  ;;  %v2294_v0 = vmul.f32 %v7016_v35, %v2278_v58 }
 0x4d5   :  { %v7020_v41 = vpop.eup %7019  ;;  %v2295_v44 = vmul.f32 %v7018_v29, %v2279_v37  ;;  %v9106_v4 = vadd.f32 %v2301_v11, %v2293_v51  ;;  %7041 = vtanh.f32 %v9098_v2 }
 0x4d6   :  { %v2296_v1 = vmul.f32 %v7020_v41, %v2280_v49  ;;  %v9110_v46 = vadd.f32 %v2302_v57, %v2294_v0  ;;  %7043 = vtanh.f32 %v9101_v56  ;;  %v7022_v45 = vpop.eup %7021 }
 0x4d7   :  { %v9113_v25 = vadd.f32 %v2303_v6, %v2295_v44  ;;  %7045 = vtanh.f32 %v9106_v4  ;;  %v7024_v16 = vpop.eup %7023 }
 0x4d8   :  { %v9116_v26 = vadd.f32 %v2304_v52, %v2296_v1  ;;  %7047 = vtanh.f32 %v9110_v46  ;;  %v7026_v14 = vpop.eup %7025 }
 0x4d9   :  { %7049 = vtanh.f32 %v9113_v25  ;;  %v7028_v3 = vpop.eup %7027 }
 0x4da   :  { %7051 = vtanh.f32 %v9116_v26  ;;  %v7030_v24 = vpop.eup %7029 }
 0x4db   :  { %v7032_v47 = vpop.eup %7031 }
 0x4dc   :  { %v7034_v34 = vpop.eup %7033 }
 0x4dd   :  { %v7036_v17 = vpop.eup %7035 }
 0x4e0   :  { %v7038_v58 = vpop.eup %7037 }
 0x4e1   :  { %v7040_v20 = vpop.eup %7039  ;;  %v2321_v33 = vmul.f32 %v7038_v58, %v7022_v45 }
 0x4e2   :  { %v7042_v37 = vpop.eup %7041  ;;  %v2322_v53 = vmul.f32 %v7040_v20, %v7024_v16 }
 0x4e3   :  { %v7044_v59 = vpop.eup %7043  ;;  %v2323_v7 = vmul.f32 %v7042_v37, %v7026_v14  ;;  %v2329_v49 = vpack.c.bf16 %v2321_v33, %v2321_v33 }
 0x4e4   :  { %v7046_v21 = vpop.eup %7045  ;;  %v2324_v27 = vmul.f32 %v7044_v59, %v7028_v3  ;;  %v2330_v30 = vpack.c.bf16 %v2322_v53, %v2322_v53 }
 0x4e5   :  { %v7048_v40 = vpop.eup %7047  ;;  %v2325_v32 = vmul.f32 %v7046_v21, %v7030_v24  ;;  %v2331_v13 = vpack.c.bf16 %v2323_v7, %v2323_v7  ;;  %v2345_v63 = vunpack.c.l.b16 %v2329_v49 }
 0x4e6   :  { %v7050_v35 = vpop.eup %7049  ;;  %v2326_v11 = vmul.f32 %v7048_v40, %v7032_v47  ;;  %v2332_v51 = vpack.c.bf16 %v2324_v27, %v2324_v27  ;;  %v2346_v29 = vunpack.c.l.b16 %v2330_v30 }
 0x4e7   :  { %v7052_v0 = vpop.eup %7051  ;;  %v2327_v57 = vmul.f32 %v7050_v35, %v7034_v34  ;;  %v2333_v41 = vpack.c.bf16 %v2325_v32, %v2325_v32  ;;  %v2347_v44 = vunpack.c.l.b16 %v2331_v13  ;;  %v2369_v6 = vrot.slane %v2345_v63, 3  ;;  %v10724_v13 = vld [vmem:[#allocation48_spill] sm:$0xff]  ;;  %v10731_v63 = vld [vmem:[#allocation55_spill] sm:$0xff] }
 0x4e8   :  { %v2328_v1 = vmul.f32 %v7052_v0, %v7036_v17  ;;  %v2334_v52 = vpack.c.bf16 %v2326_v11, %v2326_v11  ;;  %v2370_v45 = vrot.slane %v2346_v29, 2  ;;  %v2348_v20 = vunpack.c.l.b16 %v2332_v51  ;;  %v10732_v35 = vld [vmem:[#allocation56_spill] sm:$0xff]  ;;  %v10733_v11 = vld [vmem:[#allocation57_spill] sm:$0xff]  ;;  %v10734_v51 = vld [vmem:[#allocation58_spill] sm:$0xff] }
 0x4e9   :  { %v2335_v16 = vpack.c.bf16 %v2327_v57, %v2327_v57  ;;  %v2349_v14 = vunpack.c.l.b16 %v2333_v41  ;;  %v2372_v3 = vrot.slane %v2347_v44, 1  ;;  %v10735_v29 = vld [vmem:[#allocation59_spill] sm:$0xff]  ;;  %v10736_v0 = vld [vmem:[#allocation60_spill] sm:$0xff]  ;;  %v10737_v57 = vld [vmem:[#allocation61_spill] sm:$0xff] }
 0x4ea   :  { %v2336_v58 = vpack.c.bf16 %v2328_v1, %v2328_v1  ;;  %v2350_v24 = vunpack.c.l.b16 %v2334_v52  ;;  %v2371_v33 = vsel %vm960_vm1, %v2370_v45, %v2369_v6  ;;  %v10738_v41 = vld [vmem:[#allocation62_spill] sm:$0xff]  ;;  %v10739_v44 = vld [vmem:[#allocation63_spill] sm:$0xff]  ;;  %v10740_v6 = vld [vmem:[#allocation64_spill] sm:$0xff] }
 0x4eb   :  { %v2351_v37 = vunpack.c.l.b16 %v2335_v16  ;;  %v2373_v47 = vsel %vm963_vm2, %v2372_v3, %v2371_v33  ;;  %v2375_v53 = vrot.slane %v2349_v14, 7  ;;  %v10741_v1 = vld [vmem:[#allocation65_spill] sm:$0xff] }
 0x4ec   :  { %v2352_v59 = vunpack.c.l.b16 %v2336_v58  ;;  %v2374_v34 = vsel %vm966_vm3, %v2348_v20, %v2373_v47  ;;  %v2377_v7 = vrot.slane %v2350_v24, 6  ;;  %v10742_v47 = vld [vmem:[#allocation21_spill] sm:$0xff] }
 0x4ed   :  { %v2376_v17 = vsel %vm969_vm4, %v2375_v53, %v2374_v34  ;;  %v2379_v49 = vrot.slane %v2351_v37, 5 }
 0x4ee   :  { %v2378_v21 = vsel %vm972_vm5, %v2377_v7, %v2376_v17  ;;  %v2381_v27 = vrot.slane %v2352_v59, 4 }
 0x4ef   :  { %v2380_v30 = vsel %vm975_vm6, %v2379_v49, %v2378_v21 }
 0x4f0   :  { %v2382_v40 = vsel %vm978_vm7, %v2381_v27, %v2380_v30  ;;  %v10743_v27 = vld [vmem:[#allocation23_spill] sm:$0xff] }
 0x4f1   :  { %v2383_v32 = vpack.c.b16 %v2382_v40, %v2382_v40 }
 0x4f3   :  { %2386 = vst [vmem:[#allocation2 + $0xc] sm:$0xf] %v2383_v32  ;;  %2436 = vmatmul.mubr.bf16.vlgmr.msra.gmra.mxu0 %v2383_v32  ;;  %2477 = vmatmul.mubr.bf16.vlgmr.msra.gmra.mxu1 %v2383_v32 }
 0x4f4   :  { %2872 = vmatpush1.bf16.msra.mxu0 %v8891_v22  ;;  %2913 = vmatpush1.bf16.msra.mxu1 %v8894_v23  ;;  %v10720_v22 = vld [vmem:[#allocation44_spill] sm:$0xff]  ;;  %v10721_v23 = vld [vmem:[#allocation45_spill] sm:$0xff] }
 0x4f5   :  { %2873 = vmatprep.subr.bf16.mxu0 %v8897_v19  ;;  %2914 = vmatprep.subr.bf16.mxu1 %v8900_v15  ;;  %v10722_v19 = vld [vmem:[#allocation46_spill] sm:$0xff]  ;;  %v10723_v15 = vld [vmem:[#allocation47_spill] sm:$0xff] }
 0x4f6   :  { %2903 = vmatprep.mubr.bf16.mxu0 %v10645_v12  ;;  %2944 = vmatprep.mubr.bf16.mxu1 %v10645_v12 }
 0x4f8   :  { %2874 = vmatpush1.bf16.msra.mxu0 %v8905_v55  ;;  %2915 = vmatpush1.bf16.msra.mxu1 %v8908_v38  ;;  %v10725_v55 = vld [vmem:[#allocation49_spill] sm:$0xff]  ;;  %v10726_v38 = vld [vmem:[#allocation50_spill] sm:$0xff] }
 0x4f9   :  { %2875 = vmatprep.subr.bf16.mxu0 %v8911_v60  ;;  %2916 = vmatprep.subr.bf16.mxu1 %v8914_v10  ;;  %v10727_v60 = vld [vmem:[#allocation51_spill] sm:$0xff]  ;;  %v10728_v10 = vld [vmem:[#allocation52_spill] sm:$0xff] }
 0x4fc   :  { %2876 = vmatpush1.bf16.msra.mxu0 %v8917_v8  ;;  %2917 = vmatpush1.bf16.msra.mxu1 %v8920_v28  ;;  %v10729_v8 = vld [vmem:[#allocation53_spill] sm:$0xff]  ;;  %v10730_v28 = vld [vmem:[#allocation54_spill] sm:$0xff] }
 0x4fd   :  { %2877 = vmatprep.subr.bf16.mxu0 %v10720_v22  ;;  %2918 = vmatprep.subr.bf16.mxu1 %v10721_v23 }
 0x500   :  { %2878 = vmatpush1.bf16.msra.mxu0 %v10722_v19  ;;  %2919 = vmatpush1.bf16.msra.mxu1 %v10723_v15 }
 0x501   :  { %2879 = vmatprep.subr.bf16.mxu0 %v10724_v13  ;;  %2920 = vmatprep.subr.bf16.mxu1 %v10725_v55 }
 0x504   :  { %2880 = vmatpush1.bf16.msra.mxu0 %v10726_v38  ;;  %2921 = vmatpush1.bf16.msra.mxu1 %v10727_v60 }
 0x505   :  { %2881 = vmatprep.subr.bf16.mxu0 %v10728_v10  ;;  %2922 = vmatprep.subr.bf16.mxu1 %v10729_v8 }
 0x508   :  { %2882 = vmatpush1.bf16.msra.mxu0 %v10730_v28  ;;  %2923 = vmatpush1.bf16.msra.mxu1 %v10731_v63 }
 0x509   :  { %2883 = vmatprep.subr.bf16.mxu0 %v10732_v35  ;;  %2924 = vmatprep.subr.bf16.mxu1 %v10733_v11 }
 0x50c   :  { %2884 = vmatpush1.bf16.msra.mxu0 %v10734_v51  ;;  %2925 = vmatpush1.bf16.msra.mxu1 %v10735_v29 }
 0x50d   :  { %2885 = vmatprep.subr.bf16.mxu0 %v10736_v0  ;;  %2926 = vmatprep.subr.bf16.mxu1 %v10737_v57 }
 0x510   :  { %2886 = vmatpush1.bf16.msra.mxu0 %v10738_v41  ;;  %2927 = vmatpush1.bf16.msra.mxu1 %v10739_v44 }
 0x511   :  { %3339 = vmatprep.subr.bf16.mxu0 %v10740_v6  ;;  %3380 = vmatprep.subr.bf16.mxu1 %v10741_v1 }
 0x5b3   :  { %v2437_v52 = vpop.f32.mrf.mxu0  ;;  %v2478_v45 = vpop.f32.mrf.mxu1 }
 0x5b4   :  { %v2489_v16 = vrot.slane %v2437_v52, 4  ;;  %v2493_v14 = vrot.slane %v2437_v52, 5  ;;  %v2497_v3 = vrot.slane %v2437_v52, 6  ;;  %v2501_v58 = vrot.slane %v2437_v52, 7 }
 0x5b5   :  { %v2565_v20 = vadd.f32 %v2437_v52, %v8247_v39  ;;  %v9163_v24 = vpop.f32.mrf.mxu0  ;;  %v9165_v33 = vpop.f32.mrf.mxu1  ;;  %v2505_v37 = vrot.slane %v2437_v52, 1  ;;  %v2509_v59 = vrot.slane %v2437_v52, 2  ;;  %v2513_v49 = vrot.slane %v2437_v52, 3 }
 0x5b6   :  { %v2549_v53 = vadd.f32 %v2489_v16, %v10742_v47  ;;  %v2553_v34 = vadd.f32 %v2493_v14, %v10675_v5  ;;  %v2557_v21 = vadd.f32 %v2497_v3, %v8237_v31  ;;  %v2561_v30 = vadd.f32 %v2501_v58, %v10743_v27  ;;  %v10744_v14 = vld [vmem:[#allocation25_spill] sm:$0xff] }
 0x5b7   :  { %v2441_v7 = vpop.f32.mrf.mxu0  ;;  %v2482_v17 = vpop.f32.mrf.mxu1  ;;  %v6049_v40 = vmul.f32 -1.442695, %v2565_v20  ;;  %v2569_v23 = vadd.f32 %v2505_v37, %v8250_v43  ;;  %v2573_v15 = vadd.f32 %v2509_v59, %v8256_v48  ;;  %v2577_v55 = vadd.f32 %v2513_v49, %v8259_v61  ;;  %v10745_v20 = vld [vmem:[#allocation26_spill] sm:$0xff]  ;;  %v10746_v59 = vld [vmem:[#allocation27_spill] sm:$0xff] }
 0x5b8   :  { %v6037_v19 = vmul.f32 -1.442695, %v2549_v53  ;;  %v6040_v13 = vmul.f32 -1.442695, %v2553_v34  ;;  %v6043_v38 = vmul.f32 -1.442695, %v2557_v21  ;;  %v2567_v52 = vadd.f32 %v2478_v45, %v8281_v54 }
 0x5b9   :  { %v2442_v32 = vpop.f32.mrf.mxu0  ;;  %v2483_v22 = vpop.f32.mrf.mxu1  ;;  %v6046_v60 = vmul.f32 -1.442695, %v2561_v30  ;;  %7053 = vpow2.f32 %v6049_v40  ;;  %v2491_v10 = vrot.slane %v2478_v45, 4  ;;  %v6052_v8 = vmul.f32 -1.442695, %v2569_v23 }
 0x5ba   :  { %7055 = vpow2.f32 %v6037_v19  ;;  %v2495_v28 = vrot.slane %v2478_v45, 5  ;;  %v6055_v63 = vmul.f32 -1.442695, %v2573_v15  ;;  %v2499_v35 = vrot.slane %v2478_v45, 6 }
 0x5bb   :  { %7057 = vpow2.f32 %v6040_v13  ;;  %v6058_v11 = vmul.f32 -1.442695, %v2577_v55  ;;  %v2503_v51 = vrot.slane %v2478_v45, 7  ;;  %v2551_v29 = vadd.f32 %v2491_v10, %v8265_v42 }
 0x5bc   :  { %7059 = vpow2.f32 %v6043_v38  ;;  %v2507_v0 = vrot.slane %v2478_v45, 1  ;;  %v2555_v57 = vadd.f32 %v2495_v28, %v8269_v18  ;;  %v2511_v41 = vrot.slane %v2478_v45, 2 }
 0x5bd   :  { %7061 = vpow2.f32 %v6046_v60  ;;  %v2559_v44 = vadd.f32 %v2499_v35, %v8273_v36  ;;  %v2515_v6 = vrot.slane %v2478_v45, 3  ;;  %v2563_v1 = vadd.f32 %v2503_v51, %v8277_v50  ;;  %v10747_v51 = vld [vmem:[#allocation28_spill] sm:$0xff] }
 0x5be   :  { %7063 = vpow2.f32 %v6052_v8  ;;  %v6039_v16 = vmul.f32 -1.442695, %v2551_v29  ;;  %v2571_v3 = vadd.f32 %v2507_v0, %v10744_v14  ;;  %v6042_v58 = vmul.f32 -1.442695, %v2555_v57 }
 0x5bf   :  { %7065 = vpow2.f32 %v6055_v63  ;;  %v2575_v37 = vadd.f32 %v2511_v41, %v10745_v20  ;;  %v6045_v53 = vmul.f32 -1.442695, %v2559_v44  ;;  %v2579_v34 = vadd.f32 %v2515_v6, %v10746_v59  ;;  %v10748_v41 = vld [vmem:[#allocation29_spill] sm:$0xff] }
 0x5c0   :  { %7067 = vpow2.f32 %v6058_v11  ;;  %v6048_v7 = vmul.f32 -1.442695, %v2563_v1  ;;  %v6051_v17 = vmul.f32 -1.442695, %v2567_v52  ;;  %v6054_v21 = vmul.f32 -1.442695, %v2571_v3 }
 0x5c1   :  { %7069 = vpow2.f32 %v6039_v16  ;;  %v6057_v40 = vmul.f32 -1.442695, %v2575_v37  ;;  %v6060_v45 = vmul.f32 -1.442695, %v2579_v34  ;;  %v2490_v19 = vrot.slane %v9163_v24, 4  ;;  %v10749_v52 = vld [vmem:[#allocation30_spill] sm:$0xff] }
 0x5c2   :  { %7071 = vpow2.f32 %v6042_v58  ;;  %v2494_v55 = vrot.slane %v9163_v24, 5  ;;  %v2498_v10 = vrot.slane %v9163_v24, 6  ;;  %v2502_v63 = vrot.slane %v9163_v24, 7  ;;  %v10750_v37 = vld [vmem:[#allocation31_spill] sm:$0xff]  ;;  %v10751_v34 = vld [vmem:[#allocation32_spill] sm:$0xff] }
 0x5c3   :  { %7073 = vpow2.f32 %v6045_v53  ;;  %v2550_v29 = vadd.f32 %v2490_v19, %v10747_v51  ;;  %v2506_v57 = vrot.slane %v9163_v24, 1  ;;  %v2510_v1 = vrot.slane %v9163_v24, 2 }
 0x5c4   :  { %7075 = vpow2.f32 %v6048_v7  ;;  %v2554_v44 = vadd.f32 %v2494_v55, %v10748_v41  ;;  %v2558_v16 = vadd.f32 %v2498_v10, %v10749_v52  ;;  %v2514_v58 = vrot.slane %v9163_v24, 3 }
 0x5c5   :  { %7077 = vpow2.f32 %v6051_v17  ;;  %v2562_v53 = vadd.f32 %v2502_v63, %v10750_v37  ;;  %v2566_v7 = vadd.f32 %v9163_v24, %v10751_v34  ;;  %v6038_v17 = vmul.f32 -1.442695, %v2550_v29 }
 0x5c6   :  { %v7054_v49 = vpop.eup %7053  ;;  %7079 = vpow2.f32 %v6054_v21  ;;  %v10752_v21 = vld [vmem:[#allocation33_spill] sm:$0xff] }
 0x5c7   :  { %v7056_v30 = vpop.eup %7055  ;;  %v2665_v23 = vadd.f32 1.0, %v7054_v49  ;;  %7081 = vpow2.f32 %v6057_v40  ;;  %v6041_v40 = vmul.f32 -1.442695, %v2554_v44  ;;  %v6047_v55 = vmul.f32 -1.442695, %v2562_v53 }
 0x5c8   :  { %v7058_v32 = vpop.eup %7057  ;;  %v2653_v13 = vadd.f32 1.0, %v7056_v30  ;;  %7083 = vpow2.f32 %v6060_v45  ;;  %v2570_v30 = vadd.f32 %v2506_v57, %v10752_v21  ;;  %v10753_v45 = vld [vmem:[#allocation34_spill] sm:$0xff]  ;;  %v2504_v57 = vrot.slane %v9165_v33, 7 }
 0x5c9   :  { %v7060_v22 = vpop.eup %7059  ;;  %v2656_v60 = vadd.f32 1.0, %v7058_v32  ;;  %7085 = vrcp.f32 %v2665_v23  ;;  %v6044_v23 = vmul.f32 -1.442695, %v2558_v16 }
 0x5ca   :  { %v7062_v15 = vpop.eup %7061  ;;  %v2659_v28 = vadd.f32 1.0, %v7060_v22  ;;  %7087 = vrcp.f32 %v2653_v13  ;;  %v2574_v22 = vadd.f32 %v2510_v1, %v10753_v45 }
 0x5cb   :  { %v7064_v38 = vpop.eup %7063  ;;  %v2662_v11 = vadd.f32 1.0, %v7062_v15  ;;  %7089 = vrcp.f32 %v2656_v60  ;;  %v10754_v15 = vld [vmem:[#allocation35_spill] sm:$0xff]  ;;  %v2492_v60 = vrot.slane %v9165_v33, 4 }
 0x5cc   :  { %v7066_v8 = vpop.eup %7065  ;;  %v2668_v0 = vadd.f32 1.0, %v7064_v38  ;;  %7091 = vrcp.f32 %v2659_v28  ;;  %v2578_v13 = vadd.f32 %v2514_v58, %v10754_v15  ;;  %v6050_v38 = vmul.f32 -1.442695, %v2566_v7  ;;  %v10756_v58 = vld [vmem:[#allocation37_spill] sm:$0xff]  ;;  %v10762_v15 = vld [vmem:[#allocation43_spill] sm:$0xff] }
 0x5cd   :  { %v7068_v35 = vpop.eup %7067  ;;  %v2671_v6 = vadd.f32 1.0, %v7066_v8  ;;  %7093 = vrcp.f32 %v2662_v11  ;;  %v6053_v8 = vmul.f32 -1.442695, %v2570_v30  ;;  %v2496_v28 = vrot.slane %v9165_v33, 5  ;;  %v10757_v30 = vld [vmem:[#allocation38_spill] sm:$0xff] }
 0x5ce   :  { %v2674_v3 = vadd.f32 1.0, %v7068_v35  ;;  %v9195_v49 = vpop.eup %7069  ;;  %7095 = vrcp.f32 %v2668_v0  ;;  %v6056_v35 = vmul.f32 -1.442695, %v2574_v22  ;;  %v2500_v11 = vrot.slane %v9165_v33, 6 }
 0x5cf   :  { %v9198_v32 = vpop.eup %7071  ;;  %7097 = vrcp.f32 %v2671_v6  ;;  %v6059_v0 = vmul.f32 -1.442695, %v2578_v13  ;;  %v10755_v6 = vld [vmem:[#allocation36_spill] sm:$0xff]  ;;  %v2556_v53 = vadd.f32 %v2496_v28, %v10756_v58  ;;  %v10758_v13 = vld [vmem:[#allocation39_spill] sm:$0xff] }
 0x5d0   :  { %v9201_v19 = vpop.eup %7073  ;;  %7099 = vrcp.f32 %v2674_v3  ;;  %v2552_v1 = vadd.f32 %v2492_v60, %v10755_v6  ;;  %v2508_v3 = vrot.slane %v9165_v33, 1  ;;  %v10759_v60 = vld [vmem:[#allocation40_spill] sm:$0xff] }
 0x5d1   :  { %v9204_v24 = vpop.eup %7075  ;;  %7101 = vpow2.f32 %v6038_v17  ;;  %v2512_v17 = vrot.slane %v9165_v33, 2 }
 0x5d2   :  { %v9207_v10 = vpop.eup %7077  ;;  %7103 = vpow2.f32 %v6041_v40  ;;  %v2560_v40 = vadd.f32 %v2500_v11, %v10757_v30  ;;  %v10761_v11 = vld [vmem:[#allocation42_spill] sm:$0xff] }
 0x5d3   :  { %v9210_v63 = vpop.eup %7079  ;;  %7105 = vpow2.f32 %v6044_v23  ;;  %v2516_v23 = vrot.slane %v9165_v33, 3  ;;  %v2576_v30 = vadd.f32 %v2512_v17, %v10761_v11 }
 0x5d4   :  { %v9213_v29 = vpop.eup %7081  ;;  %7107 = vpow2.f32 %v6047_v55  ;;  %v2564_v55 = vadd.f32 %v2504_v57, %v10758_v13 }
 0x5d5   :  { %v9216_v44 = vpop.eup %7083  ;;  %7109 = vpow2.f32 %v6050_v38  ;;  %v2580_v57 = vadd.f32 %v2516_v23, %v10762_v15 }
 0x5d6   :  { %v9219_v16 = vpop.eup %7085  ;;  %7111 = vpow2.f32 %v6053_v8  ;;  %v2568_v8 = vadd.f32 %v9165_v33, %v10759_v60 }
 0x5d7   :  { %v9223_v7 = vpop.eup %7087  ;;  %7113 = vpow2.f32 %v6056_v35  ;;  %v10760_v35 = vld [vmem:[#allocation41_spill] sm:$0xff] }
 0x5d8   :  { %v9227_v22 = vpop.eup %7089  ;;  %7115 = vpow2.f32 %v6059_v0  ;;  %v2572_v58 = vadd.f32 %v2508_v3, %v10760_v35 }
 0x5d9   :  { %v9231_v38 = vpop.eup %7091  ;;  %7117 = vtanh.f32 %v2552_v1 }
 0x5da   :  { %v9235_v28 = vpop.eup %7093  ;;  %7119 = vtanh.f32 %v2556_v53 }
 0x5db   :  { %v9238_v6 = vpop.eup %7095  ;;  %7121 = vtanh.f32 %v2560_v40 }
 0x5dc   :  { %v9241_v0 = vpop.eup %7097  ;;  %7123 = vtanh.f32 %v2564_v55 }
 0x5dd   :  { %v9244_v13 = vpop.eup %7099  ;;  %7125 = vtanh.f32 %v2568_v8 }
 0x5de   :  { %v7102_v33 = vpop.eup %7101  ;;  %7127 = vtanh.f32 %v2572_v58 }
 0x5df   :  { %v7104_v1 = vpop.eup %7103  ;;  %v2654_v60 = vadd.f32 1.0, %v7102_v33  ;;  %7129 = vtanh.f32 %v2576_v30 }
 0x5e0   :  { %v7106_v3 = vpop.eup %7105  ;;  %v2657_v53 = vadd.f32 1.0, %v7104_v1  ;;  %7131 = vtanh.f32 %v2580_v57  ;;  %v2655_v57 = vadd.f32 1.0, %v9195_v49  ;;  %v2742_v49 = vrot.slane %v9095_v9, 7 }
 0x5e1   :  { %v7108_v35 = vpop.eup %7107  ;;  %v2660_v45 = vadd.f32 1.0, %v7106_v3  ;;  %7133 = vrcp.f32 %v2654_v60 }
 0x5e2   :  { %v7110_v17 = vpop.eup %7109  ;;  %v2663_v40 = vadd.f32 1.0, %v7108_v35  ;;  %7135 = vrcp.f32 %v2657_v53  ;;  %v2658_v35 = vadd.f32 1.0, %v9198_v32 }
 0x5e3   :  { %v7112_v11 = vpop.eup %7111  ;;  %v2666_v23 = vadd.f32 1.0, %v7110_v17  ;;  %7137 = vrcp.f32 %v2660_v45  ;;  %v2661_v45 = vadd.f32 1.0, %v9201_v19  ;;  %v2744_v19 = vrot.slane %v9101_v56, 7 }
 0x5e4   :  { %v7114_v55 = vpop.eup %7113  ;;  %v2669_v15 = vadd.f32 1.0, %v7112_v11  ;;  %7139 = vrcp.f32 %v2663_v40  ;;  %v2664_v11 = vadd.f32 1.0, %v9204_v24  ;;  %v2667_v40 = vadd.f32 1.0, %v9207_v10 }
 0x5e5   :  { %v7116_v8 = vpop.eup %7115  ;;  %v2672_v58 = vadd.f32 1.0, %v7114_v55  ;;  %7141 = vrcp.f32 %v2666_v23  ;;  %v2670_v55 = vadd.f32 1.0, %v9210_v63  ;;  %v2745_v10 = vrot.slane %v9106_v4, 7 }
 0x5e6   :  { %v7118_v33 = vpop.eup %7117  ;;  %v2675_v30 = vadd.f32 1.0, %v7116_v8  ;;  %7143 = vrcp.f32 %v2669_v15  ;;  %v2741_v15 = vrot.slane %v9092_v62, 7  ;;  %v2743_v8 = vrot.slane %v9098_v2, 7 }
 0x5e7   :  { %v7120_v1 = vpop.eup %7119  ;;  %7145 = vrcp.f32 %v2672_v58  ;;  %v2673_v58 = vadd.f32 1.0, %v9213_v29  ;;  %v2676_v62 = vadd.f32 1.0, %v9216_v44  ;;  %v2747_v63 = vrot.slane %v9113_v25, 7 }
 0x5e8   :  { %v7122_v60 = vpop.eup %7121  ;;  %7147 = vrcp.f32 %v2675_v30  ;;  %v2746_v30 = vrot.slane %v9110_v46, 7  ;;  %v2765_v2 = vmul.f32 %v7118_v33, %v9223_v7  ;;  %v2748_v56 = vrot.slane %v9116_v26, 7 }
 0x5e9   :  { %v7124_v3 = vpop.eup %7123  ;;  %7149 = vrcp.f32 %v2655_v57  ;;  %v2767_v44 = vmul.f32 %v7122_v60, %v9231_v38 }
 0x5ea   :  { %v7126_v53 = vpop.eup %7125  ;;  %7151 = vrcp.f32 %v2658_v35 }
 0x5eb   :  { %v7128_v17 = vpop.eup %7127  ;;  %7153 = vrcp.f32 %v2661_v45  ;;  %v2766_v45 = vmul.f32 %v7120_v1, %v9227_v22  ;;  %v2769_v26 = vmul.f32 %v7126_v53, %v9219_v16 }
 0x5ec   :  { %v7130_v23 = vpop.eup %7129  ;;  %7155 = vrcp.f32 %v2664_v11  ;;  %v2770_v60 = vmul.f32 %v7128_v17, %v9238_v6 }
 0x5ed   :  { %v7132_v32 = vpop.eup %7131  ;;  %7157 = vrcp.f32 %v2667_v40  ;;  %v2768_v40 = vmul.f32 %v7124_v3, %v9235_v28  ;;  %v2771_v3 = vmul.f32 %v7130_v23, %v9241_v0 }
 0x5ee   :  { %v7134_v24 = vpop.eup %7133  ;;  %7159 = vrcp.f32 %v2670_v55  ;;  %v2772_v53 = vmul.f32 %v7132_v32, %v9244_v13 }
 0x5ef   :  { %v7136_v9 = vpop.eup %7135  ;;  %v2757_v57 = vmul.f32 %v7134_v24, %v2741_v15  ;;  %7161 = vrcp.f32 %v2673_v58 }
 0x5f0   :  { %v7138_v35 = vpop.eup %7137  ;;  %v2758_v29 = vmul.f32 %v7136_v9, %v2742_v49  ;;  %7163 = vrcp.f32 %v2676_v62 }
 0x5f1   :  { %v7140_v4 = vpop.eup %7139  ;;  %v2759_v46 = vmul.f32 %v7138_v35, %v2743_v8  ;;  %v9265_v11 = vadd.f32 %v2765_v2, %v2757_v57 }
 0x5f2   :  { %v7142_v21 = vpop.eup %7141  ;;  %v2760_v25 = vmul.f32 %v7140_v4, %v2744_v19  ;;  %v9268_v7 = vadd.f32 %v2766_v45, %v2758_v29 }
 0x5f3   :  { %v7144_v33 = vpop.eup %7143  ;;  %v9271_v15 = vadd.f32 %v2767_v44, %v2759_v46  ;;  %7165 = vtanh.f32 %v9265_v11  ;;  %v2761_v22 = vmul.f32 %v7142_v21, %v2745_v10 }
 0x5f4   :  { %v7146_v1 = vpop.eup %7145  ;;  %v9274_v49 = vadd.f32 %v2768_v40, %v2760_v25  ;;  %7167 = vtanh.f32 %v9268_v7  ;;  %v2762_v38 = vmul.f32 %v7144_v33, %v2746_v30 }
 0x5f5   :  { %v7148_v55 = vpop.eup %7147  ;;  %v2763_v28 = vmul.f32 %v7146_v1, %v2747_v63  ;;  %v9279_v8 = vadd.f32 %v2769_v26, %v2761_v22  ;;  %7169 = vtanh.f32 %v9271_v15 }
 0x5f6   :  { %v2764_v16 = vmul.f32 %v7148_v55, %v2748_v56  ;;  %v9283_v21 = vadd.f32 %v2770_v60, %v2762_v38  ;;  %7171 = vtanh.f32 %v9274_v49  ;;  %v7150_v6 = vpop.eup %7149 }
 0x5f7   :  { %v9286_v19 = vadd.f32 %v2771_v3, %v2763_v28  ;;  %7173 = vtanh.f32 %v9279_v8  ;;  %v7152_v0 = vpop.eup %7151 }
 0x5f8   :  { %v9289_v17 = vadd.f32 %v2772_v53, %v2764_v16  ;;  %7175 = vtanh.f32 %v9283_v21  ;;  %v7154_v23 = vpop.eup %7153 }
 0x5f9   :  { %7177 = vtanh.f32 %v9286_v19  ;;  %v7156_v13 = vpop.eup %7155 }
 0x5fa   :  { %7179 = vtanh.f32 %v9289_v17  ;;  %v7158_v32 = vpop.eup %7157 }
 0x5fb   :  { %v7160_v58 = vpop.eup %7159 }
 0x5fc   :  { %v7162_v24 = vpop.eup %7161 }
 0x5fd   :  { %v7164_v10 = vpop.eup %7163 }
 0x600   :  { %v7166_v30 = vpop.eup %7165 }
 0x601   :  { %v7168_v62 = vpop.eup %7167  ;;  %v2789_v9 = vmul.f32 %v7166_v30, %v7150_v6 }
 0x602   :  { %v7170_v63 = vpop.eup %7169  ;;  %v2790_v57 = vmul.f32 %v7168_v62, %v7152_v0 }
 0x603   :  { %v7172_v2 = vpop.eup %7171  ;;  %v2791_v35 = vmul.f32 %v7170_v63, %v7154_v23  ;;  %v2797_v56 = vpack.c.bf16 %v2789_v9, %v2789_v9 }
 0x604   :  { %v7174_v29 = vpop.eup %7173  ;;  %v2792_v45 = vmul.f32 %v7172_v2, %v7156_v13  ;;  %v2798_v4 = vpack.c.bf16 %v2790_v57, %v2790_v57 }
 0x605   :  { %v7176_v46 = vpop.eup %7175  ;;  %v2793_v44 = vmul.f32 %v7174_v29, %v7158_v32  ;;  %v2799_v25 = vpack.c.bf16 %v2791_v35, %v2791_v35  ;;  %v2813_v40 = vunpack.c.l.b16 %v2797_v56 }
 0x606   :  { %v7178_v33 = vpop.eup %7177  ;;  %v2794_v26 = vmul.f32 %v7176_v46, %v7160_v58  ;;  %v2800_v22 = vpack.c.bf16 %v2792_v45, %v2792_v45  ;;  %v2814_v1 = vunpack.c.l.b16 %v2798_v4 }
 0x607   :  { %v7180_v38 = vpop.eup %7179  ;;  %v2795_v60 = vmul.f32 %v7178_v33, %v7162_v24  ;;  %v2801_v55 = vpack.c.bf16 %v2793_v44, %v2793_v44  ;;  %v2815_v28 = vunpack.c.l.b16 %v2799_v25  ;;  %v2837_v3 = vrot.slane %v2813_v40, 4  ;;  %v9301_v25 = vld [vmem:[#allocation8 + $0xe0] ss:$16 sps:$4 sm:$0xff]   ;;  %v9304_v40 = vld [vmem:[#allocation8 + $0xe8] ss:$16 sps:$4 sm:$0xff]  }
 0x608   :  { %v2796_v16 = vmul.f32 %v7180_v38, %v7164_v10  ;;  %v2802_v53 = vpack.c.bf16 %v2794_v26, %v2794_v26  ;;  %v2816_v6 = vunpack.c.l.b16 %v2800_v22  ;;  %v2838_v0 = vrot.slane %v2814_v1, 3  ;;  %v9307_v33 = vld [vmem:[#allocation8 + $0xc4] ss:$16 sps:$4 sm:$0xff]   ;;  %v9310_v26 = vld [vmem:[#allocation8 + $0xcc] ss:$16 sps:$4 sm:$0xff]  }
 0x609   :  { %v2803_v23 = vpack.c.bf16 %v2795_v60, %v2795_v60  ;;  %v2840_v13 = vrot.slane %v2815_v28, 2  ;;  %v2817_v63 = vunpack.c.l.b16 %v2801_v55  ;;  %v9315_v22 = vld [vmem:[#allocation8 + $0xc0] ss:$16 sps:$4 sm:$0xff]   ;;  %v9318_v1 = vld [vmem:[#allocation8 + $0xc8] ss:$16 sps:$4 sm:$0xff]  }
 0x60a   :  { %v2804_v30 = vpack.c.bf16 %v2796_v16, %v2796_v16  ;;  %v2818_v62 = vunpack.c.l.b16 %v2802_v53  ;;  %v2839_v32 = vsel %vm960_vm1, %v2838_v0, %v2837_v3  ;;  %v2842_v9 = vrot.slane %v2816_v6, 1  ;;  %v9321_v38 = vld [vmem:[#allocation8 + $0xa4] ss:$16 sps:$4 sm:$0xff]   ;;  %v9324_v60 = vld [vmem:[#allocation8 + $0xac] ss:$16 sps:$4 sm:$0xff]  }
 0x60b   :  { %v2819_v58 = vunpack.c.l.b16 %v2803_v23  ;;  %v2841_v57 = vsel %vm963_vm2, %v2840_v13, %v2839_v32  ;;  %v9327_v55 = vld [vmem:[#allocation8 + $0xa0] ss:$16 sps:$4 sm:$0xff]   ;;  %v9330_v28 = vld [vmem:[#allocation8 + $0xa8] ss:$16 sps:$4 sm:$0xff]   ;;  %v9333_v3 = vld [vmem:[#allocation8 + $0x84] ss:$16 sps:$4 sm:$0xff]  }
 0x60c   :  { %v2820_v2 = vunpack.c.l.b16 %v2804_v30  ;;  %v2843_v24 = vsel %vm966_vm3, %v2842_v9, %v2841_v57  ;;  %v2845_v35 = vrot.slane %v2818_v62, 7  ;;  %10763 = vst [vmem:[#allocation66_spill] sm:$0xff] %v9333_v3  ;;  %v9336_v16 = vld [vmem:[#allocation8 + $0x8c] ss:$16 sps:$4 sm:$0xff]   ;;  %v9339_v53 = vld [vmem:[#allocation8 + $0x80] ss:$16 sps:$4 sm:$0xff]  }
 0x60d   :  { %v2844_v10 = vsel %vm969_vm4, %v2817_v63, %v2843_v24  ;;  %v2847_v56 = vrot.slane %v2819_v58, 6  ;;  %10764 = vst [vmem:[#allocation67_spill] sm:$0xff] %v9336_v16  ;;  %10765 = vst [vmem:[#allocation68_spill] sm:$0xff] %v9339_v53  ;;  %v9342_v6 = vld [vmem:[#allocation8 + $0x88] ss:$16 sps:$4 sm:$0xff]  }
 0x60e   :  { %v2846_v29 = vsel %vm972_vm5, %v2845_v35, %v2844_v10  ;;  %v2849_v45 = vrot.slane %v2820_v2, 5  ;;  %10766 = vst [vmem:[#allocation69_spill] sm:$0xff] %v9342_v6  ;;  %v9345_v0 = vld [vmem:[#allocation8 + $0x64] ss:$16 sps:$4 sm:$0xff]   ;;  %v9348_v23 = vld [vmem:[#allocation8 + $0x6c] ss:$16 sps:$4 sm:$0xff]  }
 0x60f   :  { %v2848_v4 = vsel %vm975_vm6, %v2847_v56, %v2846_v29  ;;  %10767 = vst [vmem:[#allocation70_spill] sm:$0xff] %v9345_v0  ;;  %10768 = vst [vmem:[#allocation71_spill] sm:$0xff] %v9348_v23  ;;  %v9351_v13 = vld [vmem:[#allocation8 + $0x60] ss:$16 sps:$4 sm:$0xff]   ;;  %v9354_v30 = vld [vmem:[#allocation8 + $0x68] ss:$16 sps:$4 sm:$0xff]  }
 0x610   :  { %v2850_v46 = vsel %vm978_vm7, %v2849_v45, %v2848_v4  ;;  %10769 = vst [vmem:[#allocation72_spill] sm:$0xff] %v9351_v13  ;;  %10770 = vst [vmem:[#allocation73_spill] sm:$0xff] %v9354_v30  ;;  %v9357_v62 = vld [vmem:[#allocation8 + $0x44] ss:$16 sps:$4 sm:$0xff]   ;;  %v9360_v32 = vld [vmem:[#allocation8 + $0x4c] ss:$16 sps:$4 sm:$0xff]  }
 0x611   :  { %v2851_v44 = vpack.c.b16 %v2850_v46, %v2850_v46  ;;  %10771 = vst [vmem:[#allocation22_spill] sm:$0xff] %v9357_v62  ;;  %10772 = vst [vmem:[#allocation44_spill] sm:$0xff] %v9360_v32  ;;  %v9363_v9 = vld [vmem:[#allocation8 + $0x40] ss:$16 sps:$4 sm:$0xff]   ;;  %v9366_v63 = vld [vmem:[#allocation8 + $0x48] ss:$16 sps:$4 sm:$0xff]  }
 0x612   :  { %10773 = vst [vmem:[#allocation45_spill] sm:$0xff] %v9363_v9  ;;  %10774 = vst [vmem:[#allocation46_spill] sm:$0xff] %v9366_v63  ;;  %v9369_v58 = vld [vmem:[#allocation8 + $0x24] ss:$16 sps:$4 sm:$0xff]   ;;  %v9372_v57 = vld [vmem:[#allocation8 + $0x2c] ss:$16 sps:$4 sm:$0xff]  }
 0x613   :  { %2854 = vst [vmem:[#allocation2 + $0x10] sm:$0xf] %v2851_v44  ;;  %2904 = vmatmul.mubr.bf16.vlgmr.msra.gmra.mxu0 %v2851_v44  ;;  %2945 = vmatmul.mubr.bf16.vlgmr.msra.gmra.mxu1 %v2851_v44  ;;  %10775 = vst [vmem:[#allocation47_spill] sm:$0xff] %v9369_v58  ;;  %v9375_v2 = vld [vmem:[#allocation8 + $0x20] ss:$16 sps:$4 sm:$0xff]  }
 0x614   :  { %3340 = vmatpush1.bf16.msra.mxu0 %v9301_v25  ;;  %3381 = vmatpush1.bf16.msra.mxu1 %v9304_v40  ;;  %10776 = vst [vmem:[#allocation48_spill] sm:$0xff] %v9372_v57  ;;  %10777 = vst [vmem:[#allocation49_spill] sm:$0xff] %v9375_v2  ;;  %v9378_v24 = vld [vmem:[#allocation8 + $0x28] ss:$16 sps:$4 sm:$0xff]   ;;  %v9381_v35 = vld [vmem:[#allocation8 + $0x4] ss:$16 sps:$4 sm:$0xff]  }
 0x615   :  { %3341 = vmatprep.subr.bf16.mxu0 %v9307_v33  ;;  %3382 = vmatprep.subr.bf16.mxu1 %v9310_v26  ;;  %10778 = vst [vmem:[#allocation50_spill] sm:$0xff] %v9378_v24  ;;  %10779 = vst [vmem:[#allocation51_spill] sm:$0xff] %v9381_v35  ;;  %v9384_v10 = vld [vmem:[#allocation8 + $0xc] ss:$16 sps:$4 sm:$0xff]   ;;  %v9387_v56 = vld [vmem:[#allocation8] ss:$16 sps:$4 sm:$0xff]  }
 0x616   :  { %3371 = vmatprep.mubr.bf16.mxu0 %v10645_v12  ;;  %3412 = vmatprep.mubr.bf16.mxu1 %v10645_v12  ;;  %10780 = vst [vmem:[#allocation52_spill] sm:$0xff] %v9384_v10  ;;  %10781 = vst [vmem:[#allocation53_spill] sm:$0xff] %v9387_v56  ;;  %v9390_v29 = vld [vmem:[#allocation8 + $0x8] ss:$16 sps:$4 sm:$0xff]   ;;  %v7787_v45 = vld [vmem:[#allocation8 + $0xe4] ss:$16 sps:$4 sm:$0xff]  }
 0x617   :  { %10782 = vst [vmem:[#allocation54_spill] sm:$0xff] %v9390_v29  ;;  %v7788_v4 = vld [vmem:[#allocation8 + $0xec] ss:$16 sps:$4 sm:$0xff]  }
 0x618   :  { %3342 = vmatpush1.bf16.msra.mxu0 %v9315_v22  ;;  %3383 = vmatpush1.bf16.msra.mxu1 %v9318_v1 }
 0x619   :  { %3343 = vmatprep.subr.bf16.mxu0 %v9321_v38  ;;  %3384 = vmatprep.subr.bf16.mxu1 %v9324_v60 }
 0x61c   :  { %3344 = vmatpush1.bf16.msra.mxu0 %v9327_v55  ;;  %3385 = vmatpush1.bf16.msra.mxu1 %v9330_v28 }
 0x61d   :  { %3345 = vmatprep.subr.bf16.mxu0 %v9333_v3  ;;  %3386 = vmatprep.subr.bf16.mxu1 %v9336_v16 }
 0x620   :  { %3346 = vmatpush1.bf16.msra.mxu0 %v9339_v53  ;;  %3387 = vmatpush1.bf16.msra.mxu1 %v9342_v6 }
 0x621   :  { %3347 = vmatprep.subr.bf16.mxu0 %v9345_v0  ;;  %3388 = vmatprep.subr.bf16.mxu1 %v9348_v23 }
 0x624   :  { %3348 = vmatpush1.bf16.msra.mxu0 %v9351_v13  ;;  %3389 = vmatpush1.bf16.msra.mxu1 %v9354_v30 }
 0x625   :  { %3349 = vmatprep.subr.bf16.mxu0 %v9357_v62  ;;  %3390 = vmatprep.subr.bf16.mxu1 %v9360_v32 }
 0x628   :  { %3350 = vmatpush1.bf16.msra.mxu0 %v9363_v9  ;;  %3391 = vmatpush1.bf16.msra.mxu1 %v9366_v63 }
 0x629   :  { %3351 = vmatprep.subr.bf16.mxu0 %v9369_v58  ;;  %3392 = vmatprep.subr.bf16.mxu1 %v9372_v57 }
 0x62c   :  { %3352 = vmatpush1.bf16.msra.mxu0 %v9375_v2  ;;  %3393 = vmatpush1.bf16.msra.mxu1 %v9378_v24 }
 0x62d   :  { %3353 = vmatprep.subr.bf16.mxu0 %v9381_v35  ;;  %3394 = vmatprep.subr.bf16.mxu1 %v9384_v10 }
 0x630   :  { %3354 = vmatpush1.bf16.msra.mxu0 %v9387_v56  ;;  %3395 = vmatpush1.bf16.msra.mxu1 %v9390_v29 }
 0x631   :  { %3807 = vmatprep.subr.bf16.mxu0 %v7787_v45  ;;  %3848 = vmatprep.subr.bf16.mxu1 %v7788_v4 }
 0x6d3   :  { %v2905_v46 = vpop.f32.mrf.mxu0  ;;  %v2946_v44 = vpop.f32.mrf.mxu1 }
 0x6d4   :  { %v2957_v24 = vrot.slane %v2905_v46, 3  ;;  %v2961_v35 = vrot.slane %v2905_v46, 4  ;;  %v2965_v2 = vrot.slane %v2905_v46, 5  ;;  %v2969_v57 = vrot.slane %v2905_v46, 6 }
 0x6d5   :  { %v3037_v10 = vadd.f32 %v2905_v46, %v8250_v43  ;;  %v9394_v58 = vpop.f32.mrf.mxu0  ;;  %v9396_v63 = vpop.f32.mrf.mxu1  ;;  %v2973_v56 = vrot.slane %v2905_v46, 7  ;;  %v2977_v29 = vrot.slane %v2905_v46, 1  ;;  %v2981_v62 = vrot.slane %v2905_v46, 2 }
 0x6d6   :  { %v3017_v9 = vadd.f32 %v2957_v24, %v10742_v47  ;;  %v3021_v45 = vadd.f32 %v2961_v35, %v10675_v5  ;;  %v3025_v30 = vadd.f32 %v2965_v2, %v8237_v31  ;;  %v3029_v13 = vadd.f32 %v2969_v57, %v10743_v27 }
 0x6d7   :  { %v2909_v32 = vpop.f32.mrf.mxu0  ;;  %v2950_v4 = vpop.f32.mrf.mxu1  ;;  %v6084_v23 = vmul.f32 -1.442695, %v3037_v10  ;;  %v3033_v6 = vadd.f32 %v2973_v56, %v8247_v39  ;;  %v3041_v16 = vadd.f32 %v2977_v29, %v8256_v48  ;;  %v3045_v24 = vadd.f32 %v2981_v62, %v8259_v61 }
 0x6d8   :  { %v6069_v53 = vmul.f32 -1.442695, %v3017_v9  ;;  %v6072_v3 = vmul.f32 -1.442695, %v3021_v45  ;;  %v6075_v47 = vmul.f32 -1.442695, %v3025_v30 }
 0x6d9   :  { %v2910_v0 = vpop.f32.mrf.mxu0  ;;  %v2951_v43 = vpop.f32.mrf.mxu1  ;;  %v6078_v35 = vmul.f32 -1.442695, %v3029_v13  ;;  %7181 = vpow2.f32 %v6084_v23  ;;  %v2959_v32 = vrot.slane %v2946_v44, 3  ;;  %v6081_v46 = vmul.f32 -1.442695, %v3033_v6 }
 0x6da   :  { %7183 = vpow2.f32 %v6069_v53  ;;  %v2963_v2 = vrot.slane %v2946_v44, 4  ;;  %v6087_v57 = vmul.f32 -1.442695, %v3041_v16  ;;  %v2967_v10 = vrot.slane %v2946_v44, 5 }
 0x6db   :  { %7185 = vpow2.f32 %v6072_v3  ;;  %v6090_v43 = vmul.f32 -1.442695, %v3045_v24  ;;  %v2971_v0 = vrot.slane %v2946_v44, 6  ;;  %v2975_v9 = vrot.slane %v2946_v44, 7 }
 0x6dc   :  { %7187 = vpow2.f32 %v6075_v47  ;;  %v3019_v56 = vadd.f32 %v2959_v32, %v8265_v42  ;;  %v3023_v62 = vadd.f32 %v2963_v2, %v8269_v18  ;;  %v2979_v13 = vrot.slane %v2946_v44, 1 }
 0x6dd   :  { %7189 = vpow2.f32 %v6078_v35  ;;  %v3027_v23 = vadd.f32 %v2967_v10, %v8273_v36  ;;  %v2983_v53 = vrot.slane %v2946_v44, 2  ;;  %v3031_v3 = vadd.f32 %v2971_v0, %v8277_v50 }
 0x6de   :  { %7191 = vpow2.f32 %v6081_v46  ;;  %v3035_v16 = vadd.f32 %v2975_v9, %v8281_v54  ;;  %v6071_v47 = vmul.f32 -1.442695, %v3019_v56  ;;  %v3039_v6 = vadd.f32 %v2946_v44, %v10744_v14 }
 0x6df   :  { %7193 = vpow2.f32 %v6087_v57  ;;  %v6074_v30 = vmul.f32 -1.442695, %v3023_v62  ;;  %v3043_v29 = vadd.f32 %v2979_v13, %v10745_v20  ;;  %v6077_v45 = vmul.f32 -1.442695, %v3027_v23 }
 0x6e0   :  { %7195 = vpow2.f32 %v6090_v43  ;;  %v3047_v4 = vadd.f32 %v2983_v53, %v10746_v59  ;;  %v6080_v24 = vmul.f32 -1.442695, %v3031_v3  ;;  %v6083_v35 = vmul.f32 -1.442695, %v3035_v16  ;;  %v10793_v59 = vld [vmem:[#allocation43_spill] sm:$0xff] }
 0x6e1   :  { %7197 = vpow2.f32 %v6071_v47  ;;  %v6086_v46 = vmul.f32 -1.442695, %v3039_v6  ;;  %v6089_v57 = vmul.f32 -1.442695, %v3043_v29  ;;  %v2958_v9 = vrot.slane %v9394_v58, 3 }
 0x6e2   :  { %7199 = vpow2.f32 %v6074_v30  ;;  %v6092_v43 = vmul.f32 -1.442695, %v3047_v4  ;;  %v2962_v13 = vrot.slane %v9394_v58, 4  ;;  %v2966_v3 = vrot.slane %v9394_v58, 5 }
 0x6e3   :  { %7201 = vpow2.f32 %v6077_v45  ;;  %v2970_v6 = vrot.slane %v9394_v58, 6  ;;  %v2974_v45 = vrot.slane %v9394_v58, 7  ;;  %v3018_v4 = vadd.f32 %v2958_v9, %v10747_v51 }
 0x6e4   :  { %7203 = vpow2.f32 %v6080_v24 }
 0x6e5   :  { %7205 = vpow2.f32 %v6083_v35  ;;  %v3022_v35 = vadd.f32 %v2962_v13, %v10748_v41 }
 0x6e6   :  { %v7182_v32 = vpop.eup %7181  ;;  %7207 = vpow2.f32 %v6086_v46  ;;  %v2978_v46 = vrot.slane %v9394_v58, 1 }
 0x6e7   :  { %v7184_v2 = vpop.eup %7183  ;;  %v3136_v44 = vadd.f32 1.0, %v7182_v32  ;;  %7209 = vpow2.f32 %v6089_v57  ;;  %v6073_v13 = vmul.f32 -1.442695, %v3022_v35 }
 0x6e8   :  { %v7186_v10 = vpop.eup %7185  ;;  %v3121_v62 = vadd.f32 1.0, %v7184_v2  ;;  %7211 = vpow2.f32 %v6092_v43  ;;  %v3026_v2 = vadd.f32 %v2966_v3, %v10749_v52  ;;  %v3030_v43 = vadd.f32 %v2970_v6, %v10750_v37  ;;  %v10785_v6 = vld [vmem:[#allocation35_spill] sm:$0xff] }
 0x6e9   :  { %v7188_v0 = vpop.eup %7187  ;;  %v3124_v53 = vadd.f32 1.0, %v7186_v10  ;;  %7213 = vrcp.f32 %v3136_v44  ;;  %v2982_v10 = vrot.slane %v9394_v58, 2  ;;  %v6070_v44 = vmul.f32 -1.442695, %v3018_v4  ;;  %v10789_v52 = vld [vmem:[#allocation39_spill] sm:$0xff] }
 0x6ea   :  { %v7190_v56 = vpop.eup %7189  ;;  %v3127_v47 = vadd.f32 1.0, %v7188_v0  ;;  %7215 = vrcp.f32 %v3121_v62  ;;  %v3034_v0 = vadd.f32 %v2974_v45, %v10751_v34 }
 0x6eb   :  { %v7192_v23 = vpop.eup %7191  ;;  %v3130_v29 = vadd.f32 1.0, %v7190_v56  ;;  %7217 = vrcp.f32 %v3124_v53  ;;  %v10783_v56 = vld [vmem:[#allocation33_spill] sm:$0xff]  ;;  %v10784_v53 = vld [vmem:[#allocation34_spill] sm:$0xff] }
 0x6ec   :  { %v7194_v16 = vpop.eup %7193  ;;  %v3133_v24 = vadd.f32 1.0, %v7192_v23  ;;  %7219 = vrcp.f32 %v3127_v47  ;;  %v3038_v62 = vadd.f32 %v9394_v58, %v10783_v56  ;;  %v3042_v3 = vadd.f32 %v2978_v46, %v10784_v53 }
 0x6ed   :  { %v7196_v30 = vpop.eup %7195  ;;  %v3139_v32 = vadd.f32 1.0, %v7194_v16  ;;  %7221 = vrcp.f32 %v3130_v29  ;;  %v6076_v16 = vmul.f32 -1.442695, %v3026_v2  ;;  %v6079_v29 = vmul.f32 -1.442695, %v3030_v43 }
 0x6ee   :  { %v3142_v57 = vadd.f32 1.0, %v7196_v30  ;;  %v9425_v9 = vpop.eup %7197  ;;  %7223 = vrcp.f32 %v3133_v24  ;;  %v3046_v30 = vadd.f32 %v2982_v10, %v10785_v6  ;;  %v6082_v4 = vmul.f32 -1.442695, %v3034_v0 }
 0x6ef   :  { %v9429_v23 = vpop.eup %7199  ;;  %7225 = vrcp.f32 %v3139_v32  ;;  %v2960_v24 = vrot.slane %v9396_v63, 3  ;;  %v6085_v35 = vmul.f32 -1.442695, %v3038_v62  ;;  %v2964_v32 = vrot.slane %v9396_v63, 4  ;;  %v10786_v62 = vld [vmem:[#allocation36_spill] sm:$0xff] }
 0x6f0   :  { %v9432_v47 = vpop.eup %7201  ;;  %7227 = vrcp.f32 %v3142_v57  ;;  %v6088_v2 = vmul.f32 -1.442695, %v3042_v3  ;;  %v2968_v57 = vrot.slane %v9396_v63, 5  ;;  %v6091_v43 = vmul.f32 -1.442695, %v3046_v30  ;;  %v10788_v30 = vld [vmem:[#allocation38_spill] sm:$0xff] }
 0x6f1   :  { %v9435_v45 = vpop.eup %7203  ;;  %7229 = vpow2.f32 %v6070_v44  ;;  %v2972_v0 = vrot.slane %v9396_v63, 6  ;;  %v3020_v6 = vadd.f32 %v2960_v24, %v10786_v62  ;;  %v10790_v62 = vld [vmem:[#allocation40_spill] sm:$0xff] }
 0x6f2   :  { %v9438_v58 = vpop.eup %7205  ;;  %7231 = vpow2.f32 %v6073_v13  ;;  %v2976_v13 = vrot.slane %v9396_v63, 7  ;;  %v3028_v34 = vadd.f32 %v2968_v57, %v10788_v30  ;;  %v10792_v57 = vld [vmem:[#allocation42_spill] sm:$0xff] }
 0x6f3   :  { %v9441_v46 = vpop.eup %7207  ;;  %7233 = vpow2.f32 %v6076_v16  ;;  %v10787_v16 = vld [vmem:[#allocation37_spill] sm:$0xff]  ;;  %v3032_v41 = vadd.f32 %v2972_v0, %v10789_v52 }
 0x6f4   :  { %v9444_v10 = vpop.eup %7209  ;;  %7235 = vpow2.f32 %v6079_v29  ;;  %v3024_v3 = vadd.f32 %v2964_v32, %v10787_v16  ;;  %v2980_v29 = vrot.slane %v9396_v63, 1  ;;  %v10791_v16 = vld [vmem:[#allocation41_spill] sm:$0xff] }
 0x6f5   :  { %v9447_v44 = vpop.eup %7211  ;;  %7237 = vpow2.f32 %v6082_v4  ;;  %v2984_v4 = vrot.slane %v9396_v63, 2 }
 0x6f6   :  { %v9451_v53 = vpop.eup %7213  ;;  %7239 = vpow2.f32 %v6085_v35  ;;  %v3036_v35 = vadd.f32 %v2976_v13, %v10790_v62  ;;  %v3044_v30 = vadd.f32 %v2980_v29, %v10792_v57 }
 0x6f7   :  { %v9454_v56 = vpop.eup %7215  ;;  %7241 = vpow2.f32 %v6088_v2  ;;  %v3040_v2 = vadd.f32 %v9396_v63, %v10791_v16  ;;  %v3048_v0 = vadd.f32 %v2984_v4, %v10793_v59 }
 0x6f8   :  { %v9458_v37 = vpop.eup %7217  ;;  %7243 = vpow2.f32 %v6091_v43 }
 0x6f9   :  { %v9462_v24 = vpop.eup %7219  ;;  %7245 = vtanh.f32 %v3020_v6 }
 0x6fa   :  { %v9465_v32 = vpop.eup %7221  ;;  %7247 = vtanh.f32 %v3024_v3 }
 0x6fb   :  { %v9469_v51 = vpop.eup %7223  ;;  %7249 = vtanh.f32 %v3028_v34 }
 0x6fc   :  { %v9472_v43 = vpop.eup %7225  ;;  %7251 = vtanh.f32 %v3032_v41 }
 0x6fd   :  { %v9475_v52 = vpop.eup %7227  ;;  %7253 = vtanh.f32 %v3036_v35 }
 0x6fe   :  { %v7230_v6 = vpop.eup %7229  ;;  %7255 = vtanh.f32 %v3040_v2 }
 0x6ff   :  { %v7232_v13 = vpop.eup %7231  ;;  %v3122_v62 = vadd.f32 1.0, %v7230_v6  ;;  %7257 = vtanh.f32 %v3044_v30 }
 0x700   :  { %v7234_v63 = vpop.eup %7233  ;;  %v3125_v3 = vadd.f32 1.0, %v7232_v13  ;;  %7259 = vtanh.f32 %v3048_v0  ;;  %v3123_v0 = vadd.f32 1.0, %v9425_v9  ;;  %v3210_v9 = vrot.slane %v9268_v7, 7 }
 0x701   :  { %v7236_v16 = vpop.eup %7235  ;;  %v3128_v20 = vadd.f32 1.0, %v7234_v63  ;;  %7261 = vrcp.f32 %v3122_v62 }
 0x702   :  { %v7238_v34 = vpop.eup %7237  ;;  %v3131_v29 = vadd.f32 1.0, %v7236_v16  ;;  %7263 = vrcp.f32 %v3125_v3  ;;  %v3126_v16 = vadd.f32 1.0, %v9429_v23 }
 0x703   :  { %v7240_v57 = vpop.eup %7239  ;;  %v3134_v4 = vadd.f32 1.0, %v7238_v34  ;;  %7265 = vrcp.f32 %v3128_v20  ;;  %v3129_v20 = vadd.f32 1.0, %v9432_v47  ;;  %v3212_v47 = vrot.slane %v9274_v49, 7 }
 0x704   :  { %v7242_v41 = vpop.eup %7241  ;;  %v3137_v59 = vadd.f32 1.0, %v7240_v57  ;;  %7267 = vrcp.f32 %v3131_v29  ;;  %v3132_v57 = vadd.f32 1.0, %v9435_v45  ;;  %v3135_v29 = vadd.f32 1.0, %v9438_v58 }
 0x705   :  { %v7244_v35 = vpop.eup %7243  ;;  %v3140_v2 = vadd.f32 1.0, %v7242_v41  ;;  %7269 = vrcp.f32 %v3134_v4  ;;  %v3138_v41 = vadd.f32 1.0, %v9441_v46  ;;  %v3213_v58 = vrot.slane %v9279_v8, 7 }
 0x706   :  { %v7246_v6 = vpop.eup %7245  ;;  %v3143_v30 = vadd.f32 1.0, %v7244_v35  ;;  %7271 = vrcp.f32 %v3137_v59  ;;  %v3209_v59 = vrot.slane %v9265_v11, 7  ;;  %v3211_v35 = vrot.slane %v9271_v15, 7 }
 0x707   :  { %v7248_v13 = vpop.eup %7247  ;;  %7273 = vrcp.f32 %v3140_v2  ;;  %v3141_v2 = vadd.f32 1.0, %v9444_v10  ;;  %v3144_v11 = vadd.f32 1.0, %v9447_v44  ;;  %v3215_v46 = vrot.slane %v9286_v19, 7 }
 0x708   :  { %v7250_v62 = vpop.eup %7249  ;;  %7275 = vrcp.f32 %v3143_v30  ;;  %v3214_v30 = vrot.slane %v9283_v21, 7  ;;  %v3233_v15 = vmul.f32 %v7246_v6, %v9454_v56  ;;  %v3216_v49 = vrot.slane %v9289_v17, 7 }
 0x709   :  { %v7252_v63 = vpop.eup %7251  ;;  %7277 = vrcp.f32 %v3123_v0  ;;  %v3235_v44 = vmul.f32 %v7250_v62, %v9462_v24 }
 0x70a   :  { %v7254_v3 = vpop.eup %7253  ;;  %7279 = vrcp.f32 %v3126_v16 }
 0x70b   :  { %v7256_v34 = vpop.eup %7255  ;;  %7281 = vrcp.f32 %v3129_v20  ;;  %v3234_v20 = vmul.f32 %v7248_v13, %v9458_v37  ;;  %v3237_v17 = vmul.f32 %v7254_v3, %v9469_v51 }
 0x70c   :  { %v7258_v4 = vpop.eup %7257  ;;  %7283 = vrcp.f32 %v3132_v57  ;;  %v3238_v24 = vmul.f32 %v7256_v34, %v9451_v53 }
 0x70d   :  { %v7260_v23 = vpop.eup %7259  ;;  %7285 = vrcp.f32 %v3135_v29  ;;  %v3236_v29 = vmul.f32 %v7252_v63, %v9465_v32  ;;  %v3239_v63 = vmul.f32 %v7258_v4, %v9472_v43 }
 0x70e   :  { %v7262_v45 = vpop.eup %7261  ;;  %7287 = vrcp.f32 %v3138_v41  ;;  %v3240_v3 = vmul.f32 %v7260_v23, %v9475_v52 }
 0x70f   :  { %v7264_v7 = vpop.eup %7263  ;;  %v3225_v0 = vmul.f32 %v7262_v45, %v3209_v59  ;;  %7289 = vrcp.f32 %v3141_v2 }
 0x710   :  { %v7266_v16 = vpop.eup %7265  ;;  %v3226_v10 = vmul.f32 %v7264_v7, %v3210_v9  ;;  %7291 = vrcp.f32 %v3144_v11 }
 0x711   :  { %v7268_v8 = vpop.eup %7267  ;;  %v3227_v21 = vmul.f32 %v7266_v16, %v3211_v35  ;;  %v9496_v57 = vadd.f32 %v3233_v15, %v3225_v0 }
 0x712   :  { %v7270_v14 = vpop.eup %7269  ;;  %v3228_v19 = vmul.f32 %v7268_v8, %v3212_v47  ;;  %v9499_v56 = vadd.f32 %v3234_v20, %v3226_v10 }
 0x713   :  { %v7272_v6 = vpop.eup %7271  ;;  %v9502_v59 = vadd.f32 %v3235_v44, %v3227_v21  ;;  %7293 = vtanh.f32 %v9496_v57  ;;  %v3229_v37 = vmul.f32 %v7270_v14, %v3213_v58 }
 0x714   :  { %v7274_v13 = vpop.eup %7273  ;;  %v9506_v62 = vadd.f32 %v3236_v29, %v3228_v19  ;;  %7295 = vtanh.f32 %v9499_v56  ;;  %v3230_v9 = vmul.f32 %v7272_v6, %v3214_v30 }
 0x715   :  { %v7276_v41 = vpop.eup %7275  ;;  %v3231_v32 = vmul.f32 %v7274_v13, %v3215_v46  ;;  %v9510_v35 = vadd.f32 %v3237_v17, %v3229_v37  ;;  %7297 = vtanh.f32 %v9502_v59 }
 0x716   :  { %v3232_v51 = vmul.f32 %v7276_v41, %v3216_v49  ;;  %v9514_v14 = vadd.f32 %v3238_v24, %v3230_v9  ;;  %7299 = vtanh.f32 %v9506_v62  ;;  %v7278_v34 = vpop.eup %7277 }
 0x717   :  { %v9517_v53 = vadd.f32 %v3239_v63, %v3231_v32  ;;  %7301 = vtanh.f32 %v9510_v35  ;;  %v7280_v43 = vpop.eup %7279 }
 0x718   :  { %v9520_v47 = vadd.f32 %v3240_v3, %v3232_v51  ;;  %7303 = vtanh.f32 %v9514_v14  ;;  %v7282_v4 = vpop.eup %7281 }
 0x719   :  { %7305 = vtanh.f32 %v9517_v53  ;;  %v7284_v52 = vpop.eup %7283 }
 0x71a   :  { %7307 = vtanh.f32 %v9520_v47  ;;  %v7286_v23 = vpop.eup %7285 }
 0x71b   :  { %v7288_v2 = vpop.eup %7287 }
 0x71c   :  { %v7290_v45 = vpop.eup %7289 }
 0x71d   :  { %v7292_v58 = vpop.eup %7291 }
 0x720   :  { %v7294_v30 = vpop.eup %7293 }
 0x721   :  { %v7296_v11 = vpop.eup %7295  ;;  %v3257_v7 = vmul.f32 %v7294_v30, %v7278_v34 }
 0x722   :  { %v7298_v46 = vpop.eup %7297  ;;  %v3258_v0 = vmul.f32 %v7296_v11, %v7280_v43 }
 0x723   :  { %v7300_v15 = vpop.eup %7299  ;;  %v3259_v16 = vmul.f32 %v7298_v46, %v7282_v4  ;;  %v3265_v49 = vpack.c.bf16 %v3257_v7, %v3257_v7 }
 0x724   :  { %v7302_v10 = vpop.eup %7301  ;;  %v3260_v20 = vmul.f32 %v7300_v15, %v7284_v52  ;;  %v3266_v8 = vpack.c.bf16 %v3258_v0, %v3258_v0 }
 0x725   :  { %v7304_v21 = vpop.eup %7303  ;;  %v3261_v44 = vmul.f32 %v7302_v10, %v7286_v23  ;;  %v3267_v19 = vpack.c.bf16 %v3259_v16, %v3259_v16  ;;  %v3281_v29 = vunpack.c.l.b16 %v3265_v49 }
 0x726   :  { %v7306_v6 = vpop.eup %7305  ;;  %v3262_v17 = vmul.f32 %v7304_v21, %v7288_v2  ;;  %v3268_v37 = vpack.c.bf16 %v3260_v20, %v3260_v20  ;;  %v3282_v13 = vunpack.c.l.b16 %v3266_v8 }
 0x727   :  { %v7308_v24 = vpop.eup %7307  ;;  %v3263_v9 = vmul.f32 %v7306_v6, %v7290_v45  ;;  %v3269_v41 = vpack.c.bf16 %v3261_v44, %v3261_v44  ;;  %v3283_v32 = vunpack.c.l.b16 %v3267_v19  ;;  %v3305_v63 = vrot.slane %v3281_v29, 5  ;;  %v10798_v19 = vld [vmem:[#allocation70_spill] sm:$0xff]  ;;  %v10806_v6 = vld [vmem:[#allocation47_spill] sm:$0xff] }
 0x728   :  { %v3264_v51 = vmul.f32 %v7308_v24, %v7292_v58  ;;  %v3270_v3 = vpack.c.bf16 %v3262_v17, %v3262_v17  ;;  %v3284_v34 = vunpack.c.l.b16 %v3268_v37  ;;  %v3306_v43 = vrot.slane %v3282_v13, 4  ;;  %v10805_v29 = vld [vmem:[#allocation46_spill] sm:$0xff]  ;;  %v10807_v17 = vld [vmem:[#allocation48_spill] sm:$0xff]  ;;  %v10808_v37 = vld [vmem:[#allocation49_spill] sm:$0xff] }
 0x729   :  { %v3271_v4 = vpack.c.bf16 %v3263_v9, %v3263_v9  ;;  %v3285_v52 = vunpack.c.l.b16 %v3269_v41  ;;  %v3308_v30 = vrot.slane %v3283_v32, 3  ;;  %v10809_v13 = vld [vmem:[#allocation50_spill] sm:$0xff]  ;;  %v10810_v24 = vld [vmem:[#allocation51_spill] sm:$0xff]  ;;  %v10811_v9 = vld [vmem:[#allocation52_spill] sm:$0xff] }
 0x72a   :  { %v3272_v11 = vpack.c.bf16 %v3264_v51, %v3264_v51  ;;  %v3307_v23 = vsel %vm960_vm1, %v3306_v43, %v3305_v63  ;;  %v3310_v7 = vrot.slane %v3284_v34, 2  ;;  %v3286_v15 = vunpack.c.l.b16 %v3270_v3  ;;  %v10812_v41 = vld [vmem:[#allocation53_spill] sm:$0xff]  ;;  %v10813_v32 = vld [vmem:[#allocation54_spill] sm:$0xff] }
 0x72b   :  { %v3287_v46 = vunpack.c.l.b16 %v3271_v4  ;;  %v3309_v2 = vsel %vm963_vm2, %v3308_v30, %v3307_v23  ;;  %v3312_v0 = vrot.slane %v3285_v52, 1  ;;  %v6435_v63 = vld [vmem:[#allocation9 + $0xe4] ss:$16 sps:$4 sm:$0xff]   ;;  %v6438_v51 = vld [vmem:[#allocation9 + $0xec] ss:$16 sps:$4 sm:$0xff]  }
 0x72c   :  { %v3288_v45 = vunpack.c.l.b16 %v3272_v11  ;;  %v3311_v16 = vsel %vm966_vm3, %v3310_v7, %v3309_v2  ;;  %v10814_v2 = vld [vmem:[#allocation21_spill] sm:$0xff] }
 0x72d   :  { %v3313_v58 = vsel %vm969_vm4, %v3312_v0, %v3311_v16  ;;  %v3315_v49 = vrot.slane %v3287_v46, 7 }
 0x72e   :  { %v3314_v10 = vsel %vm972_vm5, %v3286_v15, %v3313_v58  ;;  %v3317_v20 = vrot.slane %v3288_v45, 6 }
 0x72f   :  { %v3316_v8 = vsel %vm975_vm6, %v3315_v49, %v3314_v10 }
 0x730   :  { %v3318_v21 = vsel %vm978_vm7, %v3317_v20, %v3316_v8 }
 0x731   :  { %v3319_v44 = vpack.c.b16 %v3318_v21, %v3318_v21 }
 0x733   :  { %3322 = vst [vmem:[#allocation2 + $0x14] sm:$0xf] %v3319_v44  ;;  %3372 = vmatmul.mubr.bf16.vlgmr.msra.gmra.mxu0 %v3319_v44  ;;  %3413 = vmatmul.mubr.bf16.vlgmr.msra.gmra.mxu1 %v3319_v44 }
 0x734   :  { %3808 = vmatpush1.bf16.msra.mxu0 %v9301_v25  ;;  %3849 = vmatpush1.bf16.msra.mxu1 %v9304_v40  ;;  %v10794_v25 = vld [vmem:[#allocation66_spill] sm:$0xff]  ;;  %v10795_v40 = vld [vmem:[#allocation67_spill] sm:$0xff] }
 0x735   :  { %3809 = vmatprep.subr.bf16.mxu0 %v9307_v33  ;;  %3850 = vmatprep.subr.bf16.mxu1 %v9310_v26  ;;  %v10796_v33 = vld [vmem:[#allocation68_spill] sm:$0xff]  ;;  %v10797_v26 = vld [vmem:[#allocation69_spill] sm:$0xff] }
 0x736   :  { %3839 = vmatprep.mubr.bf16.mxu0 %v10645_v12  ;;  %3880 = vmatprep.mubr.bf16.mxu1 %v10645_v12 }
 0x738   :  { %3810 = vmatpush1.bf16.msra.mxu0 %v9315_v22  ;;  %3851 = vmatpush1.bf16.msra.mxu1 %v9318_v1  ;;  %v10799_v22 = vld [vmem:[#allocation71_spill] sm:$0xff]  ;;  %v10800_v1 = vld [vmem:[#allocation72_spill] sm:$0xff] }
 0x739   :  { %3811 = vmatprep.subr.bf16.mxu0 %v9321_v38  ;;  %3852 = vmatprep.subr.bf16.mxu1 %v9324_v60  ;;  %v10801_v38 = vld [vmem:[#allocation73_spill] sm:$0xff]  ;;  %v10802_v60 = vld [vmem:[#allocation22_spill] sm:$0xff] }
 0x73c   :  { %3812 = vmatpush1.bf16.msra.mxu0 %v9327_v55  ;;  %3853 = vmatpush1.bf16.msra.mxu1 %v9330_v28  ;;  %v10803_v55 = vld [vmem:[#allocation44_spill] sm:$0xff]  ;;  %v10804_v28 = vld [vmem:[#allocation45_spill] sm:$0xff] }
 0x73d   :  { %3813 = vmatprep.subr.bf16.mxu0 %v10794_v25  ;;  %3854 = vmatprep.subr.bf16.mxu1 %v10795_v40 }
 0x740   :  { %3814 = vmatpush1.bf16.msra.mxu0 %v10796_v33  ;;  %3855 = vmatpush1.bf16.msra.mxu1 %v10797_v26  ;;  %v10815_v33 = vld [vmem:[#allocation24_spill] sm:$0xff] }
 0x741   :  { %3815 = vmatprep.subr.bf16.mxu0 %v10798_v19  ;;  %3856 = vmatprep.subr.bf16.mxu1 %v10799_v22 }
 0x744   :  { %3816 = vmatpush1.bf16.msra.mxu0 %v10800_v1  ;;  %3857 = vmatpush1.bf16.msra.mxu1 %v10801_v38 }
 0x745   :  { %3817 = vmatprep.subr.bf16.mxu0 %v10802_v60  ;;  %3858 = vmatprep.subr.bf16.mxu1 %v10803_v55 }
 0x748   :  { %3818 = vmatpush1.bf16.msra.mxu0 %v10804_v28  ;;  %3859 = vmatpush1.bf16.msra.mxu1 %v10805_v29 }
 0x749   :  { %3819 = vmatprep.subr.bf16.mxu0 %v10806_v6  ;;  %3860 = vmatprep.subr.bf16.mxu1 %v10807_v17 }
 0x74c   :  { %3820 = vmatpush1.bf16.msra.mxu0 %v10808_v37  ;;  %3861 = vmatpush1.bf16.msra.mxu1 %v10809_v13 }
 0x74d   :  { %3821 = vmatprep.subr.bf16.mxu0 %v10810_v24  ;;  %3862 = vmatprep.subr.bf16.mxu1 %v10811_v9 }
 0x750   :  { %3822 = vmatpush1.bf16.msra.mxu0 %v10812_v41  ;;  %3863 = vmatpush1.bf16.msra.mxu1 %v10813_v32 }
 0x751   :  { %4505 = vmatprep.subr.bf16.mxu0 %v6435_v63  ;;  %4578 = vmatprep.subr.bf16.mxu1 %v6438_v51 }
 0x7f3   :  { %v3373_v3 = vpop.f32.mrf.mxu0  ;;  %v3414_v34 = vpop.f32.mrf.mxu1 }
 0x7f4   :  { %v3425_v43 = vrot.slane %v3373_v3, 2  ;;  %v3429_v4 = vrot.slane %v3373_v3, 3  ;;  %v3433_v52 = vrot.slane %v3373_v3, 4  ;;  %v3437_v30 = vrot.slane %v3373_v3, 5 }
 0x7f5   :  { %v3509_v11 = vadd.f32 %v3373_v3, %v8256_v48  ;;  %v9565_v23 = vpop.f32.mrf.mxu0  ;;  %v9567_v7 = vpop.f32.mrf.mxu1  ;;  %v3441_v46 = vrot.slane %v3373_v3, 6  ;;  %v3445_v15 = vrot.slane %v3373_v3, 7  ;;  %v3449_v49 = vrot.slane %v3373_v3, 1 }
 0x7f6   :  { %v3485_v0 = vadd.f32 %v3425_v43, %v10814_v2  ;;  %v3489_v45 = vadd.f32 %v3429_v4, %v10675_v5  ;;  %v3493_v10 = vadd.f32 %v3433_v52, %v8237_v31  ;;  %v3497_v20 = vadd.f32 %v3437_v30, %v10743_v27  ;;  %v10816_v4 = vld [vmem:[#allocation25_spill] sm:$0xff] }
 0x7f7   :  { %v3377_v16 = vpop.f32.mrf.mxu0  ;;  %v3418_v58 = vpop.f32.mrf.mxu1  ;;  %v6119_v8 = vmul.f32 -1.442695, %v3509_v11  ;;  %v3501_v25 = vadd.f32 %v3441_v46, %v8247_v39  ;;  %v3505_v26 = vadd.f32 %v3445_v15, %v10815_v33  ;;  %v3513_v22 = vadd.f32 %v3449_v49, %v8259_v61  ;;  %v10817_v11 = vld [vmem:[#allocation26_spill] sm:$0xff]  ;;  %v10818_v15 = vld [vmem:[#allocation27_spill] sm:$0xff] }
 0x7f8   :  { %v6101_v40 = vmul.f32 -1.442695, %v3485_v0  ;;  %v6104_v19 = vmul.f32 -1.442695, %v3489_v45  ;;  %v6107_v1 = vmul.f32 -1.442695, %v3493_v10  ;;  %v3511_v46 = vadd.f32 %v3414_v34, %v10817_v11 }
 0x7f9   :  { %v3378_v21 = vpop.f32.mrf.mxu0  ;;  %v3419_v44 = vpop.f32.mrf.mxu1  ;;  %v6110_v38 = vmul.f32 -1.442695, %v3497_v20  ;;  %7309 = vpow2.f32 %v6119_v8  ;;  %v3427_v60 = vrot.slane %v3414_v34, 2  ;;  %v6113_v55 = vmul.f32 -1.442695, %v3501_v25 }
 0x7fa   :  { %7311 = vpow2.f32 %v6101_v40  ;;  %v3431_v28 = vrot.slane %v3414_v34, 3  ;;  %v6116_v29 = vmul.f32 -1.442695, %v3505_v26  ;;  %v3435_v6 = vrot.slane %v3414_v34, 4 }
 0x7fb   :  { %7313 = vpow2.f32 %v6104_v19  ;;  %v6122_v17 = vmul.f32 -1.442695, %v3513_v22  ;;  %v3439_v37 = vrot.slane %v3414_v34, 5  ;;  %v3443_v13 = vrot.slane %v3414_v34, 6 }
 0x7fc   :  { %7315 = vpow2.f32 %v6107_v1  ;;  %v3487_v24 = vadd.f32 %v3427_v60, %v8265_v42  ;;  %v3447_v9 = vrot.slane %v3414_v34, 7  ;;  %v3491_v41 = vadd.f32 %v3431_v28, %v8269_v18 }
 0x7fd   :  { %7317 = vpow2.f32 %v6110_v38  ;;  %v3495_v32 = vadd.f32 %v3435_v6, %v8273_v36  ;;  %v3451_v63 = vrot.slane %v3414_v34, 1  ;;  %v3499_v51 = vadd.f32 %v3439_v37, %v8277_v50 }
 0x7fe   :  { %7319 = vpow2.f32 %v6113_v55  ;;  %v3503_v3 = vadd.f32 %v3443_v13, %v8281_v54  ;;  %v6103_v43 = vmul.f32 -1.442695, %v3487_v24  ;;  %v3507_v52 = vadd.f32 %v3447_v9, %v10816_v4  ;;  %v10819_v13 = vld [vmem:[#allocation28_spill] sm:$0xff] }
 0x7ff   :  { %7321 = vpow2.f32 %v6116_v29  ;;  %v6106_v30 = vmul.f32 -1.442695, %v3491_v41  ;;  %v6109_v0 = vmul.f32 -1.442695, %v3495_v32  ;;  %v3515_v45 = vadd.f32 %v3451_v63, %v10818_v15  ;;  %v10820_v32 = vld [vmem:[#allocation29_spill] sm:$0xff] }
 0x800   :  { %7323 = vpow2.f32 %v6122_v17  ;;  %v6112_v16 = vmul.f32 -1.442695, %v3499_v51  ;;  %v6115_v58 = vmul.f32 -1.442695, %v3503_v3  ;;  %v6118_v10 = vmul.f32 -1.442695, %v3507_v52 }
 0x801   :  { %7325 = vpow2.f32 %v6103_v43  ;;  %v6121_v8 = vmul.f32 -1.442695, %v3511_v46  ;;  %v6124_v44 = vmul.f32 -1.442695, %v3515_v45  ;;  %v3426_v34 = vrot.slane %v9565_v23, 2  ;;  %v10821_v3 = vld [vmem:[#allocation30_spill] sm:$0xff] }
 0x802   :  { %7327 = vpow2.f32 %v6106_v30  ;;  %v3430_v22 = vrot.slane %v9565_v23, 3  ;;  %v3434_v60 = vrot.slane %v9565_v23, 4  ;;  %v3438_v29 = vrot.slane %v9565_v23, 5  ;;  %v10822_v46 = vld [vmem:[#allocation31_spill] sm:$0xff]  ;;  %v10823_v45 = vld [vmem:[#allocation32_spill] sm:$0xff] }
 0x803   :  { %7329 = vpow2.f32 %v6109_v0  ;;  %v3442_v37 = vrot.slane %v9565_v23, 6  ;;  %v3486_v24 = vadd.f32 %v3426_v34, %v10819_v13  ;;  %v3446_v41 = vrot.slane %v9565_v23, 7 }
 0x804   :  { %7331 = vpow2.f32 %v6112_v16  ;;  %v3490_v63 = vadd.f32 %v3430_v22, %v10820_v32  ;;  %v3494_v43 = vadd.f32 %v3434_v60, %v10821_v3  ;;  %v3450_v30 = vrot.slane %v9565_v23, 1 }
 0x805   :  { %7333 = vpow2.f32 %v6115_v58  ;;  %v3498_v0 = vadd.f32 %v3438_v29, %v10822_v46  ;;  %v3502_v16 = vadd.f32 %v3442_v37, %v10823_v45  ;;  %v6102_v58 = vmul.f32 -1.442695, %v3486_v24 }
 0x806   :  { %v7310_v49 = vpop.eup %7309  ;;  %7335 = vpow2.f32 %v6118_v10  ;;  %v10824_v10 = vld [vmem:[#allocation33_spill] sm:$0xff]  ;;  %v3428_v60 = vrot.slane %v9567_v7, 2  ;;  %v3432_v29 = vrot.slane %v9567_v7, 3 }
 0x807   :  { %v7312_v20 = vpop.eup %7311  ;;  %v3607_v40 = vadd.f32 1.0, %v7310_v49  ;;  %7337 = vpow2.f32 %v6121_v8  ;;  %v6105_v8 = vmul.f32 -1.442695, %v3490_v63  ;;  %v6111_v22 = vmul.f32 -1.442695, %v3498_v0  ;;  %v10828_v0 = vld [vmem:[#allocation37_spill] sm:$0xff] }
 0x808   :  { %v7314_v21 = vpop.eup %7313  ;;  %v3589_v19 = vadd.f32 1.0, %v7312_v20  ;;  %7339 = vpow2.f32 %v6124_v44  ;;  %v3506_v20 = vadd.f32 %v3446_v41, %v10824_v10  ;;  %v10825_v44 = vld [vmem:[#allocation34_spill] sm:$0xff]  ;;  %v3444_v63 = vrot.slane %v9567_v7, 6 }
 0x809   :  { %v7316_v25 = vpop.eup %7315  ;;  %v3592_v38 = vadd.f32 1.0, %v7314_v21  ;;  %7341 = vrcp.f32 %v3607_v40  ;;  %v6108_v40 = vmul.f32 -1.442695, %v3494_v43 }
 0x80a   :  { %v7318_v26 = vpop.eup %7317  ;;  %v3595_v28 = vadd.f32 1.0, %v7316_v25  ;;  %7343 = vrcp.f32 %v3589_v19  ;;  %v3510_v25 = vadd.f32 %v9565_v23, %v10825_v44 }
 0x80b   :  { %v7320_v1 = vpop.eup %7319  ;;  %v3598_v17 = vadd.f32 1.0, %v7318_v26  ;;  %7345 = vrcp.f32 %v3592_v38  ;;  %v10826_v26 = vld [vmem:[#allocation35_spill] sm:$0xff]  ;;  %v6114_v38 = vmul.f32 -1.442695, %v3502_v16  ;;  %v3492_v16 = vadd.f32 %v3432_v29, %v10828_v0  ;;  %v10832_v29 = vld [vmem:[#allocation41_spill] sm:$0xff] }
 0x80c   :  { %v7322_v55 = vpop.eup %7321  ;;  %v3601_v9 = vadd.f32 1.0, %v7320_v1  ;;  %7347 = vrcp.f32 %v3595_v28  ;;  %v3514_v19 = vadd.f32 %v3450_v30, %v10826_v26  ;;  %v6117_v28 = vmul.f32 -1.442695, %v3506_v20  ;;  %v10829_v20 = vld [vmem:[#allocation38_spill] sm:$0xff]  ;;  %v10834_v26 = vld [vmem:[#allocation43_spill] sm:$0xff] }
 0x80d   :  { %v7324_v6 = vpop.eup %7323  ;;  %v3604_v51 = vadd.f32 1.0, %v7322_v55  ;;  %7349 = vrcp.f32 %v3598_v17  ;;  %v3436_v17 = vrot.slane %v9567_v7, 4  ;;  %v3448_v30 = vrot.slane %v9567_v7, 7 }
 0x80e   :  { %v3610_v52 = vadd.f32 1.0, %v7324_v6  ;;  %v9596_v49 = vpop.eup %7325  ;;  %7351 = vrcp.f32 %v3601_v9  ;;  %v6120_v6 = vmul.f32 -1.442695, %v3510_v25  ;;  %v6123_v24 = vmul.f32 -1.442695, %v3514_v19  ;;  %v10830_v19 = vld [vmem:[#allocation39_spill] sm:$0xff] }
 0x80f   :  { %v9599_v21 = vpop.eup %7327  ;;  %7353 = vrcp.f32 %v3604_v51  ;;  %v3440_v9 = vrot.slane %v9567_v7, 5  ;;  %v10827_v51 = vld [vmem:[#allocation36_spill] sm:$0xff]  ;;  %v3508_v0 = vadd.f32 %v3448_v30, %v10832_v29 }
 0x810   :  { %v9603_v34 = vpop.eup %7329  ;;  %7355 = vrcp.f32 %v3610_v52  ;;  %v3488_v43 = vadd.f32 %v3428_v60, %v10827_v51  ;;  %v10831_v60 = vld [vmem:[#allocation40_spill] sm:$0xff] }
 0x811   :  { %v9606_v1 = vpop.eup %7331  ;;  %7357 = vpow2.f32 %v6102_v58 }
 0x812   :  { %v9609_v55 = vpop.eup %7333  ;;  %7359 = vpow2.f32 %v6105_v8  ;;  %v3496_v8 = vadd.f32 %v3436_v17, %v10829_v20  ;;  %v10833_v17 = vld [vmem:[#allocation42_spill] sm:$0xff] }
 0x813   :  { %v9612_v23 = vpop.eup %7335  ;;  %7361 = vpow2.f32 %v6108_v40  ;;  %v3452_v40 = vrot.slane %v9567_v7, 1  ;;  %v3512_v20 = vadd.f32 %v9567_v7, %v10833_v17 }
 0x814   :  { %v9615_v37 = vpop.eup %7337  ;;  %7363 = vpow2.f32 %v6111_v22  ;;  %v3500_v22 = vadd.f32 %v3440_v9, %v10830_v19 }
 0x815   :  { %v9618_v41 = vpop.eup %7339  ;;  %7365 = vpow2.f32 %v6114_v38  ;;  %v3516_v9 = vadd.f32 %v3452_v40, %v10834_v26 }
 0x816   :  { %v9622_v52 = vpop.eup %7341  ;;  %7367 = vpow2.f32 %v6117_v28  ;;  %v3504_v28 = vadd.f32 %v3444_v63, %v10831_v60 }
 0x817   :  { %v9626_v58 = vpop.eup %7343  ;;  %7369 = vpow2.f32 %v6120_v6 }
 0x818   :  { %v9629_v25 = vpop.eup %7345  ;;  %7371 = vpow2.f32 %v6123_v24 }
 0x819   :  { %v9633_v38 = vpop.eup %7347  ;;  %7373 = vtanh.f32 %v3488_v43 }
 0x81a   :  { %v9636_v51 = vpop.eup %7349  ;;  %7375 = vtanh.f32 %v3492_v16 }
 0x81b   :  { %v9639_v6 = vpop.eup %7351  ;;  %7377 = vtanh.f32 %v3496_v8 }
 0x81c   :  { %v9643_v24 = vpop.eup %7353  ;;  %7379 = vtanh.f32 %v3500_v22 }
 0x81d   :  { %v9646_v19 = vpop.eup %7355  ;;  %7381 = vtanh.f32 %v3504_v28 }
 0x81e   :  { %v7358_v63 = vpop.eup %7357  ;;  %7383 = vtanh.f32 %v3508_v0 }
 0x81f   :  { %v7360_v43 = vpop.eup %7359  ;;  %v3590_v60 = vadd.f32 1.0, %v7358_v63  ;;  %7385 = vtanh.f32 %v3512_v20 }
 0x820   :  { %v7362_v30 = vpop.eup %7361  ;;  %v3593_v16 = vadd.f32 1.0, %v7360_v43  ;;  %7387 = vtanh.f32 %v3516_v9  ;;  %v3591_v9 = vadd.f32 1.0, %v9596_v49  ;;  %v3678_v49 = vrot.slane %v9499_v56, 7 }
 0x821   :  { %v7364_v29 = vpop.eup %7363  ;;  %v3596_v44 = vadd.f32 1.0, %v7362_v30  ;;  %7389 = vrcp.f32 %v3590_v60 }
 0x822   :  { %v7366_v7 = vpop.eup %7365  ;;  %v3599_v8 = vadd.f32 1.0, %v7364_v29  ;;  %7391 = vrcp.f32 %v3593_v16  ;;  %v3594_v29 = vadd.f32 1.0, %v9599_v21 }
 0x823   :  { %v7368_v17 = vpop.eup %7367  ;;  %v3602_v40 = vadd.f32 1.0, %v7366_v7  ;;  %7393 = vrcp.f32 %v3596_v44  ;;  %v3597_v44 = vadd.f32 1.0, %v9603_v34  ;;  %v3680_v34 = vrot.slane %v9506_v62, 7 }
 0x824   :  { %v7370_v22 = vpop.eup %7369  ;;  %v3605_v26 = vadd.f32 1.0, %v7368_v17  ;;  %7395 = vrcp.f32 %v3599_v8  ;;  %v3600_v17 = vadd.f32 1.0, %v9606_v1  ;;  %v3603_v8 = vadd.f32 1.0, %v9609_v55 }
 0x825   :  { %v7372_v28 = vpop.eup %7371  ;;  %v3608_v0 = vadd.f32 1.0, %v7370_v22  ;;  %7397 = vrcp.f32 %v3602_v40  ;;  %v3606_v22 = vadd.f32 1.0, %v9612_v23  ;;  %v3681_v55 = vrot.slane %v9510_v35, 7 }
 0x826   :  { %v7374_v63 = vpop.eup %7373  ;;  %v3611_v20 = vadd.f32 1.0, %v7372_v28  ;;  %7399 = vrcp.f32 %v3605_v26  ;;  %v3677_v26 = vrot.slane %v9496_v57, 7  ;;  %v3679_v28 = vrot.slane %v9502_v59, 7 }
 0x827   :  { %v7376_v43 = vpop.eup %7375  ;;  %7401 = vrcp.f32 %v3608_v0  ;;  %v3609_v0 = vadd.f32 1.0, %v9615_v37  ;;  %v3612_v57 = vadd.f32 1.0, %v9618_v41  ;;  %v3683_v23 = vrot.slane %v9517_v53, 7 }
 0x828   :  { %v7378_v60 = vpop.eup %7377  ;;  %7403 = vrcp.f32 %v3611_v20  ;;  %v3682_v20 = vrot.slane %v9514_v14, 7  ;;  %v3701_v59 = vmul.f32 %v7374_v63, %v9626_v58  ;;  %v3684_v62 = vrot.slane %v9520_v47, 7 }
 0x829   :  { %v7380_v30 = vpop.eup %7379  ;;  %7405 = vrcp.f32 %v3591_v9  ;;  %v3703_v41 = vmul.f32 %v7378_v60, %v9633_v38 }
 0x82a   :  { %v7382_v16 = vpop.eup %7381  ;;  %7407 = vrcp.f32 %v3594_v29 }
 0x82b   :  { %v7384_v7 = vpop.eup %7383  ;;  %7409 = vrcp.f32 %v3597_v44  ;;  %v3702_v44 = vmul.f32 %v7376_v43, %v9629_v25  ;;  %v3705_v47 = vmul.f32 %v7382_v16, %v9639_v6 }
 0x82c   :  { %v7386_v40 = vpop.eup %7385  ;;  %7411 = vrcp.f32 %v3600_v17  ;;  %v3706_v60 = vmul.f32 %v7384_v7, %v9643_v24 }
 0x82d   :  { %v7388_v21 = vpop.eup %7387  ;;  %7413 = vrcp.f32 %v3603_v8  ;;  %v3704_v8 = vmul.f32 %v7380_v30, %v9636_v51  ;;  %v3707_v30 = vmul.f32 %v7386_v40, %v9622_v52 }
 0x82e   :  { %v7390_v1 = vpop.eup %7389  ;;  %7415 = vrcp.f32 %v3606_v22  ;;  %v3708_v16 = vmul.f32 %v7388_v21, %v9646_v19 }
 0x82f   :  { %v7392_v56 = vpop.eup %7391  ;;  %v3693_v9 = vmul.f32 %v7390_v1, %v3677_v26  ;;  %7417 = vrcp.f32 %v3609_v0 }
 0x830   :  { %v7394_v29 = vpop.eup %7393  ;;  %v3694_v37 = vmul.f32 %v7392_v56, %v3678_v49  ;;  %7419 = vrcp.f32 %v3612_v57 }
 0x831   :  { %v7396_v35 = vpop.eup %7395  ;;  %v3695_v14 = vmul.f32 %v7394_v29, %v3679_v28  ;;  %v9667_v17 = vadd.f32 %v3701_v59, %v3693_v9 }
 0x832   :  { %v7398_v10 = vpop.eup %7397  ;;  %v3696_v53 = vmul.f32 %v7396_v35, %v3680_v34  ;;  %v9670_v58 = vadd.f32 %v3702_v44, %v3694_v37 }
 0x833   :  { %v7400_v63 = vpop.eup %7399  ;;  %v9673_v26 = vadd.f32 %v3703_v41, %v3695_v14  ;;  %7421 = vtanh.f32 %v9667_v17  ;;  %v3697_v25 = vmul.f32 %v7398_v10, %v3681_v55 }
 0x834   :  { %v7402_v43 = vpop.eup %7401  ;;  %v9676_v49 = vadd.f32 %v3704_v8, %v3696_v53  ;;  %7423 = vtanh.f32 %v9670_v58  ;;  %v3698_v38 = vmul.f32 %v7400_v63, %v3682_v20 }
 0x835   :  { %v7404_v22 = vpop.eup %7403  ;;  %v3699_v51 = vmul.f32 %v7402_v43, %v3683_v23  ;;  %v9681_v28 = vadd.f32 %v3705_v47, %v3697_v25  ;;  %7425 = vtanh.f32 %v9673_v26 }
 0x836   :  { %v3700_v6 = vmul.f32 %v7404_v22, %v3684_v62  ;;  %v9685_v10 = vadd.f32 %v3706_v60, %v3698_v38  ;;  %7427 = vtanh.f32 %v9676_v49  ;;  %v7406_v24 = vpop.eup %7405 }
 0x837   :  { %v9688_v34 = vadd.f32 %v3707_v30, %v3699_v51  ;;  %7429 = vtanh.f32 %v9681_v28  ;;  %v7408_v52 = vpop.eup %7407 }
 0x838   :  { %v9691_v7 = vadd.f32 %v3708_v16, %v3700_v6  ;;  %7431 = vtanh.f32 %v9685_v10  ;;  %v7410_v40 = vpop.eup %7409 }
 0x839   :  { %7433 = vtanh.f32 %v9688_v34  ;;  %v7412_v19 = vpop.eup %7411 }
 0x83a   :  { %7435 = vtanh.f32 %v9691_v7  ;;  %v7414_v21 = vpop.eup %7413 }
 0x83b   :  { %v7416_v0 = vpop.eup %7415 }
 0x83c   :  { %v7418_v1 = vpop.eup %7417 }
 0x83d   :  { %v7420_v55 = vpop.eup %7419 }
 0x840   :  { %v7422_v20 = vpop.eup %7421 }
 0x841   :  { %v7424_v57 = vpop.eup %7423  ;;  %v3725_v56 = vmul.f32 %v7422_v20, %v7406_v24 }
 0x842   :  { %v7426_v23 = vpop.eup %7425  ;;  %v3726_v9 = vmul.f32 %v7424_v57, %v7408_v52 }
 0x843   :  { %v7428_v59 = vpop.eup %7427  ;;  %v3727_v29 = vmul.f32 %v7426_v23, %v7410_v40  ;;  %v3733_v62 = vpack.c.bf16 %v3725_v56, %v3725_v56 }
 0x844   :  { %v7430_v37 = vpop.eup %7429  ;;  %v3728_v44 = vmul.f32 %v7428_v59, %v7412_v19  ;;  %v3734_v35 = vpack.c.bf16 %v3726_v9, %v3726_v9 }
 0x845   :  { %v7432_v14 = vpop.eup %7431  ;;  %v3729_v41 = vmul.f32 %v7430_v37, %v7414_v21  ;;  %v3735_v53 = vpack.c.bf16 %v3727_v29, %v3727_v29  ;;  %v3749_v8 = vunpack.c.l.b16 %v3733_v62 }
 0x846   :  { %v7434_v63 = vpop.eup %7433  ;;  %v3730_v47 = vmul.f32 %v7432_v14, %v7416_v0  ;;  %v3736_v25 = vpack.c.bf16 %v3728_v44, %v3728_v44  ;;  %v3750_v43 = vunpack.c.l.b16 %v3734_v35  ;;  %v6433_v14 = vld [vmem:[#allocation9 + $0xe0] ss:$16 sps:$4 sm:$0xff]  }
 0x847   :  { %v7436_v38 = vpop.eup %7435  ;;  %v3731_v60 = vmul.f32 %v7434_v63, %v7418_v1  ;;  %v3737_v22 = vpack.c.bf16 %v3729_v41, %v3729_v41  ;;  %v3751_v51 = vunpack.c.l.b16 %v3735_v53  ;;  %v3773_v30 = vrot.slane %v3749_v8, 6  ;;  %v6436_v41 = vld [vmem:[#allocation9 + $0xe8] ss:$16 sps:$4 sm:$0xff]   ;;  %v6441_v63 = vld [vmem:[#allocation9 + $0xc4] ss:$16 sps:$4 sm:$0xff]  }
 0x848   :  { %v3732_v6 = vmul.f32 %v7436_v38, %v7420_v55  ;;  %v3738_v16 = vpack.c.bf16 %v3730_v47, %v3730_v47  ;;  %v3752_v24 = vunpack.c.l.b16 %v3736_v25  ;;  %v3774_v52 = vrot.slane %v3750_v43, 5  ;;  %v6444_v47 = vld [vmem:[#allocation9 + $0xcc] ss:$16 sps:$4 sm:$0xff]   ;;  %v6439_v25 = vld [vmem:[#allocation9 + $0xc0] ss:$16 sps:$4 sm:$0xff]  }
 0x849   :  { %v3739_v40 = vpack.c.bf16 %v3731_v60, %v3731_v60  ;;  %v3753_v19 = vunpack.c.l.b16 %v3737_v22  ;;  %v3776_v20 = vrot.slane %v3751_v51, 4  ;;  %v6442_v43 = vld [vmem:[#allocation9 + $0xc8] ss:$16 sps:$4 sm:$0xff]   ;;  %v6447_v38 = vld [vmem:[#allocation9 + $0xa4] ss:$16 sps:$4 sm:$0xff]  }
 0x84a   :  { %v3740_v57 = vpack.c.bf16 %v3732_v6, %v3732_v6  ;;  %v3754_v21 = vunpack.c.l.b16 %v3738_v16  ;;  %v3775_v56 = vsel %vm960_vm1, %v3774_v52, %v3773_v30  ;;  %v3778_v23 = vrot.slane %v3752_v24, 3  ;;  %v6450_v60 = vld [vmem:[#allocation9 + $0xac] ss:$16 sps:$4 sm:$0xff]   ;;  %v6445_v22 = vld [vmem:[#allocation9 + $0xa0] ss:$16 sps:$4 sm:$0xff]  }
 0x84b   :  { %v3777_v0 = vsel %vm963_vm2, %v3776_v20, %v3775_v56  ;;  %v3780_v9 = vrot.slane %v3753_v19, 2  ;;  %v3755_v62 = vunpack.c.l.b16 %v3739_v40  ;;  %v6448_v51 = vld [vmem:[#allocation9 + $0xa8] ss:$16 sps:$4 sm:$0xff]   ;;  %v6453_v30 = vld [vmem:[#allocation9 + $0x84] ss:$16 sps:$4 sm:$0xff]  }
 0x84c   :  { %v3756_v59 = vunpack.c.l.b16 %v3740_v57  ;;  %v3779_v1 = vsel %vm966_vm3, %v3778_v23, %v3777_v0  ;;  %v3782_v29 = vrot.slane %v3754_v21, 1  ;;  %v6456_v6 = vld [vmem:[#allocation9 + $0x8c] ss:$16 sps:$4 sm:$0xff]   ;;  %v6451_v16 = vld [vmem:[#allocation9 + $0x80] ss:$16 sps:$4 sm:$0xff]  }
 0x84d   :  { %v3781_v55 = vsel %vm969_vm4, %v3780_v9, %v3779_v1  ;;  %v6454_v24 = vld [vmem:[#allocation9 + $0x88] ss:$16 sps:$4 sm:$0xff]   ;;  %v6459_v52 = vld [vmem:[#allocation9 + $0x64] ss:$16 sps:$4 sm:$0xff]   ;;  %v6462_v40 = vld [vmem:[#allocation9 + $0x6c] ss:$16 sps:$4 sm:$0xff]  }
 0x84e   :  { %v3783_v37 = vsel %vm972_vm5, %v3782_v29, %v3781_v55  ;;  %v3785_v44 = vrot.slane %v3756_v59, 7  ;;  %v6457_v19 = vld [vmem:[#allocation9 + $0x60] ss:$16 sps:$4 sm:$0xff]   ;;  %v6460_v20 = vld [vmem:[#allocation9 + $0x68] ss:$16 sps:$4 sm:$0xff]  }
 0x84f   :  { %v3784_v35 = vsel %vm975_vm6, %v3755_v62, %v3783_v37  ;;  %v6465_v57 = vld [vmem:[#allocation9 + $0x44] ss:$16 sps:$4 sm:$0xff]   ;;  %v6468_v21 = vld [vmem:[#allocation9 + $0x4c] ss:$16 sps:$4 sm:$0xff]   ;;  %v6463_v56 = vld [vmem:[#allocation9 + $0x40] ss:$16 sps:$4 sm:$0xff]  }
 0x850   :  { %v3786_v53 = vsel %vm978_vm7, %v3785_v44, %v3784_v35  ;;  %v6466_v23 = vld [vmem:[#allocation9 + $0x48] ss:$16 sps:$4 sm:$0xff]   ;;  %v6471_v0 = vld [vmem:[#allocation9 + $0x24] ss:$16 sps:$4 sm:$0xff]   ;;  %v6474_v9 = vld [vmem:[#allocation9 + $0x2c] ss:$16 sps:$4 sm:$0xff]  }
 0x851   :  { %v3787_v8 = vpack.c.b16 %v3786_v53, %v3786_v53  ;;  %v6469_v59 = vld [vmem:[#allocation9 + $0x20] ss:$16 sps:$4 sm:$0xff]   ;;  %v6472_v1 = vld [vmem:[#allocation9 + $0x28] ss:$16 sps:$4 sm:$0xff]   ;;  %v6477_v29 = vld [vmem:[#allocation9 + $0x4] ss:$16 sps:$4 sm:$0xff]  }
 0x852   :  { %v6480_v62 = vld [vmem:[#allocation9 + $0xc] ss:$16 sps:$4 sm:$0xff]   ;;  %v6475_v55 = vld [vmem:[#allocation9] ss:$16 sps:$4 sm:$0xff]   ;;  %v6478_v37 = vld [vmem:[#allocation9 + $0x8] ss:$16 sps:$4 sm:$0xff]  }
 0x853   :  { %3790 = vst [vmem:[#allocation2 + $0x18] sm:$0xf] %v3787_v8  ;;  %3840 = vmatmul.mubr.bf16.vlgmr.msra.gmra.mxu0 %v3787_v8  ;;  %3881 = vmatmul.mubr.bf16.vlgmr.msra.gmra.mxu1 %v3787_v8  ;;  %v6481_v44 = vld [vmem:[#allocation2] sm:$0xff]   ;;  %v6482_v35 = vld [vmem:[#allocation2 + $0x8] sm:$0xff]  }
 0x854   :  { %4506 = vmatpush1.bf16.msra.mxu0 %v6433_v14  ;;  %4579 = vmatpush1.bf16.msra.mxu1 %v6436_v41  ;;  %v6483_v14 = vld [vmem:[#allocation2 + $0x10] sm:$0xff]   ;;  %v9713_v53 = vld [vmem:[#allocation11 + $0xec] ss:$16 sps:$4 sm:$0xff]  }
 0x855   :  { %4507 = vmatprep.subr.bf16.mxu0 %v6441_v63  ;;  %4580 = vmatprep.subr.bf16.mxu1 %v6444_v47  ;;  %v9711_v41 = vld [vmem:[#allocation11 + $0xe4] ss:$16 sps:$4 sm:$0xff]   ;;  %10836 = vst [vmem:[#allocation56_spill] sm:$0xff] %v9713_v53  ;;  %v9715_v8 = vld [vmem:[#allocation11 + $0xe0] ss:$16 sps:$4 sm:$0xff]  }
 0x856   :  { %4537 = vmatprep.mubr.bf16.mxu0 %v10645_v12  ;;  %4610 = vmatprep.mubr.bf16.mxu1 %v10645_v12  ;;  %10835 = vst [vmem:[#allocation55_spill] sm:$0xff] %v9711_v41  ;;  %v9717_v63 = vld [vmem:[#allocation11 + $0xe8] ss:$16 sps:$4 sm:$0xff]   ;;  %v9719_v47 = vld [vmem:[#allocation11 + $0xc4] ss:$16 sps:$4 sm:$0xff]  }
 0x858   :  { %4508 = vmatpush1.bf16.msra.mxu0 %v6439_v25  ;;  %4581 = vmatpush1.bf16.msra.mxu1 %v6442_v43  ;;  %v9721_v25 = vld [vmem:[#allocation11 + $0xcc] ss:$16 sps:$4 sm:$0xff]   ;;  %v9727_v43 = vld [vmem:[#allocation11 + $0xc0] ss:$16 sps:$4 sm:$0xff]  }
 0x859   :  { %4509 = vmatprep.subr.bf16.mxu0 %v6447_v38  ;;  %4582 = vmatprep.subr.bf16.mxu1 %v6450_v60  ;;  %v9729_v38 = vld [vmem:[#allocation11 + $0xc8] ss:$16 sps:$4 sm:$0xff]   ;;  %v9733_v60 = vld [vmem:[#allocation11 + $0xa4] ss:$16 sps:$4 sm:$0xff]  }
 0x85c   :  { %4510 = vmatpush1.bf16.msra.mxu0 %v6445_v22  ;;  %4583 = vmatpush1.bf16.msra.mxu1 %v6448_v51  ;;  %v9735_v22 = vld [vmem:[#allocation11 + $0xac] ss:$16 sps:$4 sm:$0xff]   ;;  %v9739_v51 = vld [vmem:[#allocation11 + $0xa0] ss:$16 sps:$4 sm:$0xff]  }
 0x85d   :  { %4511 = vmatprep.subr.bf16.mxu0 %v6453_v30  ;;  %4584 = vmatprep.subr.bf16.mxu1 %v6456_v6  ;;  %v9741_v30 = vld [vmem:[#allocation11 + $0xa8] ss:$16 sps:$4 sm:$0xff]   ;;  %v9745_v6 = vld [vmem:[#allocation11 + $0x84] ss:$16 sps:$4 sm:$0xff]  }
 0x85e   :  { %10837 = vst [vmem:[#allocation57_spill] sm:$0xff] %v9745_v6 }
 0x860   :  { %4512 = vmatpush1.bf16.msra.mxu0 %v6451_v16  ;;  %4585 = vmatpush1.bf16.msra.mxu1 %v6454_v24  ;;  %v9747_v16 = vld [vmem:[#allocation11 + $0x8c] ss:$16 sps:$4 sm:$0xff]   ;;  %v9751_v24 = vld [vmem:[#allocation11 + $0x80] ss:$16 sps:$4 sm:$0xff]  }
 0x861   :  { %4513 = vmatprep.subr.bf16.mxu0 %v6459_v52  ;;  %4586 = vmatprep.subr.bf16.mxu1 %v6462_v40  ;;  %10838 = vst [vmem:[#allocation58_spill] sm:$0xff] %v9747_v16  ;;  %10839 = vst [vmem:[#allocation59_spill] sm:$0xff] %v9751_v24  ;;  %v9753_v52 = vld [vmem:[#allocation11 + $0x88] ss:$16 sps:$4 sm:$0xff]   ;;  %v9757_v40 = vld [vmem:[#allocation11 + $0x64] ss:$16 sps:$4 sm:$0xff]  }
 0x862   :  { %10840 = vst [vmem:[#allocation60_spill] sm:$0xff] %v9753_v52  ;;  %10841 = vst [vmem:[#allocation61_spill] sm:$0xff] %v9757_v40 }
 0x864   :  { %4514 = vmatpush1.bf16.msra.mxu0 %v6457_v19  ;;  %4587 = vmatpush1.bf16.msra.mxu1 %v6460_v20  ;;  %v9759_v19 = vld [vmem:[#allocation11 + $0x6c] ss:$16 sps:$4 sm:$0xff]   ;;  %v9763_v20 = vld [vmem:[#allocation11 + $0x60] ss:$16 sps:$4 sm:$0xff]  }
 0x865   :  { %4515 = vmatprep.subr.bf16.mxu0 %v6465_v57  ;;  %4588 = vmatprep.subr.bf16.mxu1 %v6468_v21  ;;  %10842 = vst [vmem:[#allocation62_spill] sm:$0xff] %v9759_v19  ;;  %10843 = vst [vmem:[#allocation63_spill] sm:$0xff] %v9763_v20  ;;  %v9765_v57 = vld [vmem:[#allocation11 + $0x68] ss:$16 sps:$4 sm:$0xff]   ;;  %v9769_v21 = vld [vmem:[#allocation11 + $0x44] ss:$16 sps:$4 sm:$0xff]  }
 0x866   :  { %10844 = vst [vmem:[#allocation64_spill] sm:$0xff] %v9765_v57  ;;  %10845 = vst [vmem:[#allocation65_spill] sm:$0xff] %v9769_v21 }
 0x868   :  { %4516 = vmatpush1.bf16.msra.mxu0 %v6463_v56  ;;  %4589 = vmatpush1.bf16.msra.mxu1 %v6466_v23  ;;  %v9771_v56 = vld [vmem:[#allocation11 + $0x4c] ss:$16 sps:$4 sm:$0xff]   ;;  %v9775_v23 = vld [vmem:[#allocation11 + $0x40] ss:$16 sps:$4 sm:$0xff]  }
 0x869   :  { %4517 = vmatprep.subr.bf16.mxu0 %v6471_v0  ;;  %4590 = vmatprep.subr.bf16.mxu1 %v6474_v9  ;;  %10846 = vst [vmem:[#allocation23_spill] sm:$0xff] %v9771_v56  ;;  %10847 = vst [vmem:[#allocation66_spill] sm:$0xff] %v9775_v23  ;;  %v9777_v0 = vld [vmem:[#allocation11 + $0x48] ss:$16 sps:$4 sm:$0xff]   ;;  %v9781_v9 = vld [vmem:[#allocation11 + $0x24] ss:$16 sps:$4 sm:$0xff]  }
 0x86a   :  { %10848 = vst [vmem:[#allocation67_spill] sm:$0xff] %v9777_v0  ;;  %10849 = vst [vmem:[#allocation68_spill] sm:$0xff] %v9781_v9 }
 0x86c   :  { %4518 = vmatpush1.bf16.msra.mxu0 %v6469_v59  ;;  %4591 = vmatpush1.bf16.msra.mxu1 %v6472_v1  ;;  %v9783_v59 = vld [vmem:[#allocation11 + $0x2c] ss:$16 sps:$4 sm:$0xff]   ;;  %v9787_v1 = vld [vmem:[#allocation11 + $0x20] ss:$16 sps:$4 sm:$0xff]  }
 0x86d   :  { %4519 = vmatprep.subr.bf16.mxu0 %v6477_v29  ;;  %4592 = vmatprep.subr.bf16.mxu1 %v6480_v62  ;;  %10850 = vst [vmem:[#allocation69_spill] sm:$0xff] %v9783_v59  ;;  %10851 = vst [vmem:[#allocation70_spill] sm:$0xff] %v9787_v1  ;;  %v9789_v29 = vld [vmem:[#allocation11 + $0x28] ss:$16 sps:$4 sm:$0xff]   ;;  %v9793_v62 = vld [vmem:[#allocation11 + $0x4] ss:$16 sps:$4 sm:$0xff]  }
 0x86e   :  { %10852 = vst [vmem:[#allocation71_spill] sm:$0xff] %v9789_v29  ;;  %10853 = vst [vmem:[#allocation72_spill] sm:$0xff] %v9793_v62 }
 0x870   :  { %4520 = vmatpush1.bf16.msra.mxu0 %v6475_v55  ;;  %4593 = vmatpush1.bf16.msra.mxu1 %v6478_v37  ;;  %v9795_v55 = vld [vmem:[#allocation11 + $0xc] ss:$16 sps:$4 sm:$0xff]   ;;  %v9799_v37 = vld [vmem:[#allocation11] ss:$16 sps:$4 sm:$0xff]  }
 0x871   :  { %4843 = vmatprep.subr.bf16.mxu0 %v9711_v41  ;;  %4884 = vmatprep.subr.bf16.mxu1 %v9713_v53  ;;  %10854 = vst [vmem:[#allocation73_spill] sm:$0xff] %v9795_v55  ;;  %10855 = vst [vmem:[#allocation22_spill] sm:$0xff] %v9799_v37 }
 0x873   :  { %4538 = vmatmul.mubr.bf16.vlgmr.msra.gmra.mxu0 %v6481_v44  ;;  %4611 = vmatmul.mubr.bf16.vlgmr.msra.gmra.mxu1 %v6481_v44  ;;  %v9801_v44 = vld [vmem:[#allocation11 + $0x8] ss:$16 sps:$4 sm:$0xff]  }
 0x874   :  { %4547 = vmatprep.mubr.bf16.mxu0 %v10645_v12  ;;  %4620 = vmatprep.mubr.bf16.mxu1 %v10645_v12  ;;  %10856 = vst [vmem:[#allocation44_spill] sm:$0xff] %v9801_v44 }
 0x875   :  { %4844 = vmatpush1.bf16.msra.mxu0 %v9715_v8  ;;  %4885 = vmatpush1.bf16.msra.mxu1 %v9717_v63 }
 0x876   :  { %4845 = vmatprep.subr.bf16.mxu0 %v9719_v47  ;;  %4886 = vmatprep.subr.bf16.mxu1 %v9721_v25 }
 0x879   :  { %4846 = vmatpush1.bf16.msra.mxu0 %v9727_v43  ;;  %4887 = vmatpush1.bf16.msra.mxu1 %v9729_v38 }
 0x87a   :  { %4847 = vmatprep.subr.bf16.mxu0 %v9733_v60  ;;  %4888 = vmatprep.subr.bf16.mxu1 %v9735_v22 }
 0x87b   :  { %4548 = vmatmul.mubr.bf16.gmra.mxu0 %v6482_v35  ;;  %4621 = vmatmul.mubr.bf16.gmra.mxu1 %v6482_v35 }
 0x87c   :  { %4557 = vmatprep.mubr.bf16.mxu0 %v10645_v12  ;;  %4630 = vmatprep.mubr.bf16.mxu1 %v10645_v12 }
 0x87d   :  { %4848 = vmatpush1.bf16.msra.mxu0 %v9739_v51  ;;  %4889 = vmatpush1.bf16.msra.mxu1 %v9741_v30 }
 0x87e   :  { %4849 = vmatprep.subr.bf16.mxu0 %v9745_v6  ;;  %4890 = vmatprep.subr.bf16.mxu1 %v9747_v16 }
 0x881   :  { %4850 = vmatpush1.bf16.msra.mxu0 %v9751_v24  ;;  %4891 = vmatpush1.bf16.msra.mxu1 %v9753_v52 }
 0x882   :  { %4851 = vmatprep.subr.bf16.mxu0 %v9757_v40  ;;  %4892 = vmatprep.subr.bf16.mxu1 %v9759_v19 }
 0x883   :  { %4558 = vmatmul.mubr.bf16.gmra.mxu0 %v6483_v14  ;;  %4631 = vmatmul.mubr.bf16.gmra.mxu1 %v6483_v14 }
 0x884   :  { %4567 = vmatprep.mubr.bf16.mxu0 %v10645_v12  ;;  %4640 = vmatprep.mubr.bf16.mxu1 %v10645_v12 }
 0x885   :  { %4852 = vmatpush1.bf16.msra.mxu0 %v9763_v20  ;;  %4893 = vmatpush1.bf16.msra.mxu1 %v9765_v57 }
 0x886   :  { %4853 = vmatprep.subr.bf16.mxu0 %v9769_v21  ;;  %4894 = vmatprep.subr.bf16.mxu1 %v9771_v56 }
 0x889   :  { %4854 = vmatpush1.bf16.msra.mxu0 %v9775_v23  ;;  %4895 = vmatpush1.bf16.msra.mxu1 %v9777_v0 }
 0x88a   :  { %4855 = vmatprep.subr.bf16.mxu0 %v9781_v9  ;;  %4896 = vmatprep.subr.bf16.mxu1 %v9783_v59 }
 0x88d   :  { %4856 = vmatpush1.bf16.msra.mxu0 %v9787_v1  ;;  %4897 = vmatpush1.bf16.msra.mxu1 %v9789_v29 }
 0x88e   :  { %4857 = vmatprep.subr.bf16.mxu0 %v9793_v62  ;;  %4898 = vmatprep.subr.bf16.mxu1 %v9795_v55 }
 0x891   :  { %4858 = vmatpush1.bf16.msra.mxu0 %v9799_v37  ;;  %4899 = vmatpush1.bf16.msra.mxu1 %v9801_v44 }
 0x892   :  { %4954 = vmatprep.subr.bf16.mxu0 %v9711_v41  ;;  %4995 = vmatprep.subr.bf16.mxu1 %v9713_v53 }
 0x913   :  { %v3841_v35 = vpop.f32.mrf.mxu0  ;;  %v3882_v14 = vpop.f32.mrf.mxu1 }
 0x914   :  { %v3893_v1 = vrot.slane %v3841_v35, 1  ;;  %v3897_v29 = vrot.slane %v3841_v35, 2  ;;  %v3901_v59 = vrot.slane %v3841_v35, 3  ;;  %v3905_v9 = vrot.slane %v3841_v35, 4 }
 0x915   :  { %v3981_v0 = vadd.f32 %v3841_v35, %v8259_v61  ;;  %v9810_v23 = vpop.f32.mrf.mxu0  ;;  %v9812_v62 = vpop.f32.mrf.mxu1  ;;  %v3909_v55 = vrot.slane %v3841_v35, 5  ;;  %v3913_v44 = vrot.slane %v3841_v35, 6  ;;  %v3917_v21 = vrot.slane %v3841_v35, 7 }
 0x916   :  { %v3953_v37 = vadd.f32 %v3893_v1, %v10814_v2  ;;  %v3957_v41 = vadd.f32 %v3897_v29, %v10675_v5  ;;  %v3961_v57 = vadd.f32 %v3901_v59, %v8237_v31  ;;  %v3965_v20 = vadd.f32 %v3905_v9, %v10743_v27 }
 0x917   :  { %v3845_v56 = vpop.f32.mrf.mxu0  ;;  %v3886_v53 = vpop.f32.mrf.mxu1  ;;  %v6154_v19 = vmul.f32 -1.442695, %v3981_v0  ;;  %v3969_v52 = vadd.f32 %v3909_v55, %v8247_v39  ;;  %v3973_v16 = vadd.f32 %v3913_v44, %v10815_v33  ;;  %v3977_v2 = vadd.f32 %v3917_v21, %v8256_v48 }
 0x918   :  { %v6133_v24 = vmul.f32 -1.442695, %v3953_v37  ;;  %v6136_v6 = vmul.f32 -1.442695, %v3957_v41  ;;  %v6139_v1 = vmul.f32 -1.442695, %v3961_v57  ;;  %v3983_v59 = vadd.f32 %v3882_v14, %v10818_v15 }
 0x919   :  { %v3846_v40 = vpop.f32.mrf.mxu0  ;;  %v3887_v61 = vpop.f32.mrf.mxu1  ;;  %v6142_v5 = vmul.f32 -1.442695, %v3965_v20  ;;  %7437 = vpow2.f32 %v6154_v19  ;;  %v3895_v53 = vrot.slane %v3882_v14, 1  ;;  %v6145_v56 = vmul.f32 -1.442695, %v3969_v52 }
 0x91a   :  { %7439 = vpow2.f32 %v6133_v24  ;;  %v3899_v31 = vrot.slane %v3882_v14, 2  ;;  %v6148_v27 = vmul.f32 -1.442695, %v3973_v16  ;;  %v3903_v0 = vrot.slane %v3882_v14, 3 }
 0x91b   :  { %7441 = vpow2.f32 %v6136_v6  ;;  %v6151_v40 = vmul.f32 -1.442695, %v3977_v2  ;;  %v3907_v9 = vrot.slane %v3882_v14, 4  ;;  %v3911_v39 = vrot.slane %v3882_v14, 5 }
 0x91c   :  { %7443 = vpow2.f32 %v6139_v1  ;;  %v3955_v33 = vadd.f32 %v3895_v53, %v8265_v42  ;;  %v3915_v41 = vrot.slane %v3882_v14, 6  ;;  %v3959_v48 = vadd.f32 %v3899_v31, %v8269_v18 }
 0x91d   :  { %7445 = vpow2.f32 %v6142_v5  ;;  %v3919_v19 = vrot.slane %v3882_v14, 7  ;;  %v3963_v24 = vadd.f32 %v3903_v0, %v8273_v36  ;;  %v3967_v6 = vadd.f32 %v3907_v9, %v8277_v50 }
 0x91e   :  { %7447 = vpow2.f32 %v6145_v56  ;;  %v3971_v16 = vadd.f32 %v3911_v39, %v8281_v54  ;;  %v6135_v52 = vmul.f32 -1.442695, %v3955_v33  ;;  %v3975_v20 = vadd.f32 %v3915_v41, %v10816_v4 }
 0x91f   :  { %7449 = vpow2.f32 %v6148_v27  ;;  %v6138_v57 = vmul.f32 -1.442695, %v3959_v48  ;;  %v3979_v21 = vadd.f32 %v3919_v19, %v10817_v11  ;;  %v6141_v42 = vmul.f32 -1.442695, %v3963_v24 }
 0x920   :  { %7451 = vpow2.f32 %v6151_v40  ;;  %v6144_v29 = vmul.f32 -1.442695, %v3967_v6  ;;  %v6147_v18 = vmul.f32 -1.442695, %v3971_v16  ;;  %v6150_v36 = vmul.f32 -1.442695, %v3975_v20 }
 0x921   :  { %7453 = vpow2.f32 %v6135_v52  ;;  %v6153_v50 = vmul.f32 -1.442695, %v3979_v21  ;;  %v6156_v54 = vmul.f32 -1.442695, %v3983_v59  ;;  %v3894_v11 = vrot.slane %v9810_v23, 1  ;;  %v10858_v59 = vld [vmem:[#allocation34_spill] sm:$0xff] }
 0x922   :  { %7455 = vpow2.f32 %v6138_v57  ;;  %v3898_v15 = vrot.slane %v9810_v23, 2  ;;  %v3902_v5 = vrot.slane %v9810_v23, 3  ;;  %v3906_v31 = vrot.slane %v9810_v23, 4  ;;  %v10857_v57 = vld [vmem:[#allocation33_spill] sm:$0xff] }
 0x923   :  { %7457 = vpow2.f32 %v6141_v42  ;;  %v3910_v40 = vrot.slane %v9810_v23, 5  ;;  %v3954_v9 = vadd.f32 %v3894_v11, %v10819_v13  ;;  %v3914_v33 = vrot.slane %v9810_v23, 6 }
 0x924   :  { %7459 = vpow2.f32 %v6144_v29  ;;  %v3958_v41 = vadd.f32 %v3898_v15, %v10820_v32  ;;  %v3918_v19 = vrot.slane %v9810_v23, 7  ;;  %v3962_v24 = vadd.f32 %v3902_v5, %v10821_v3  ;;  %v10860_v5 = vld [vmem:[#allocation36_spill] sm:$0xff] }
 0x925   :  { %7461 = vpow2.f32 %v6147_v18  ;;  %v3966_v16 = vadd.f32 %v3906_v31, %v10822_v46  ;;  %v3970_v52 = vadd.f32 %v3910_v40, %v10823_v45  ;;  %v6134_v13 = vmul.f32 -1.442695, %v3954_v9  ;;  %v10859_v46 = vld [vmem:[#allocation35_spill] sm:$0xff] }
 0x926   :  { %v7438_v55 = vpop.eup %7437  ;;  %7463 = vpow2.f32 %v6150_v36  ;;  %v3974_v21 = vadd.f32 %v3914_v33, %v10857_v57  ;;  %v6137_v32 = vmul.f32 -1.442695, %v3958_v41  ;;  %v3978_v29 = vadd.f32 %v3918_v19, %v10858_v59 }
 0x927   :  { %v7440_v37 = vpop.eup %7439  ;;  %v4078_v4 = vadd.f32 1.0, %v7438_v55  ;;  %7465 = vpow2.f32 %v6153_v50  ;;  %v6140_v3 = vmul.f32 -1.442695, %v3962_v24  ;;  %v3982_v55 = vadd.f32 %v9810_v23, %v10859_v46 }
 0x928   :  { %v7442_v44 = vpop.eup %7441  ;;  %v4057_v2 = vadd.f32 1.0, %v7440_v37  ;;  %7467 = vpow2.f32 %v6156_v54  ;;  %v6143_v45 = vmul.f32 -1.442695, %v3966_v16  ;;  %v6146_v37 = vmul.f32 -1.442695, %v3970_v52 }
 0x929   :  { %v7444_v35 = vpop.eup %7443  ;;  %v4060_v1 = vadd.f32 1.0, %v7442_v44  ;;  %7469 = vrcp.f32 %v4078_v4  ;;  %v3896_v50 = vrot.slane %v9812_v62, 1  ;;  %v6149_v54 = vmul.f32 -1.442695, %v3974_v21 }
 0x92a   :  { %v7446_v61 = vpop.eup %7445  ;;  %v4063_v56 = vadd.f32 1.0, %v7444_v35  ;;  %7471 = vrcp.f32 %v4057_v2  ;;  %v3900_v35 = vrot.slane %v9812_v62, 2  ;;  %v6152_v11 = vmul.f32 -1.442695, %v3978_v29 }
 0x92b   :  { %v7448_v14 = vpop.eup %7447  ;;  %v4066_v0 = vadd.f32 1.0, %v7446_v61  ;;  %7473 = vrcp.f32 %v4060_v1  ;;  %v3904_v61 = vrot.slane %v9812_v62, 3  ;;  %v6155_v2 = vmul.f32 -1.442695, %v3982_v55 }
 0x92c   :  { %v7450_v53 = vpop.eup %7449  ;;  %v4069_v39 = vadd.f32 1.0, %v7448_v14  ;;  %7475 = vrcp.f32 %v4063_v56  ;;  %v3908_v15 = vrot.slane %v9812_v62, 4  ;;  %v3912_v1 = vrot.slane %v9812_v62, 5 }
 0x92d   :  { %v7452_v27 = vpop.eup %7451  ;;  %v4072_v48 = vadd.f32 1.0, %v7450_v53  ;;  %7477 = vrcp.f32 %v4066_v0  ;;  %v3956_v53 = vadd.f32 %v3896_v50, %v10860_v5  ;;  %v3916_v31 = vrot.slane %v9812_v62, 6 }
 0x92e   :  { %v4075_v6 = vadd.f32 1.0, %v7452_v27  ;;  %v9841_v20 = vpop.eup %7453  ;;  %7479 = vrcp.f32 %v4069_v39  ;;  %v10861_v27 = vld [vmem:[#allocation37_spill] sm:$0xff]  ;;  %v3920_v9 = vrot.slane %v9812_v62, 7  ;;  %v10862_v39 = vld [vmem:[#allocation38_spill] sm:$0xff] }
 0x92f   :  { %v9844_v42 = vpop.eup %7455  ;;  %7481 = vrcp.f32 %v4072_v48  ;;  %v3960_v0 = vadd.f32 %v3900_v35, %v10861_v27  ;;  %v3964_v33 = vadd.f32 %v3904_v61, %v10862_v39  ;;  %v10863_v48 = vld [vmem:[#allocation39_spill] sm:$0xff] }
 0x930   :  { %v9847_v18 = vpop.eup %7457  ;;  %7483 = vrcp.f32 %v4075_v6  ;;  %v3968_v19 = vadd.f32 %v3908_v15, %v10863_v48  ;;  %v10864_v6 = vld [vmem:[#allocation40_spill] sm:$0xff] }
 0x931   :  { %v9851_v36 = vpop.eup %7459  ;;  %7485 = vpow2.f32 %v6134_v13  ;;  %v3972_v16 = vadd.f32 %v3912_v1, %v10864_v6  ;;  %v10865_v13 = vld [vmem:[#allocation41_spill] sm:$0xff] }
 0x932   :  { %v9854_v44 = vpop.eup %7461  ;;  %7487 = vpow2.f32 %v6137_v32  ;;  %v3976_v57 = vadd.f32 %v3916_v31, %v10865_v13  ;;  %v10866_v32 = vld [vmem:[#allocation42_spill] sm:$0xff] }
 0x933   :  { %v9857_v4 = vpop.eup %7463  ;;  %7489 = vpow2.f32 %v6140_v3  ;;  %v3980_v59 = vadd.f32 %v3920_v9, %v10866_v32  ;;  %v10867_v3 = vld [vmem:[#allocation43_spill] sm:$0xff] }
 0x934   :  { %v9860_v23 = vpop.eup %7465  ;;  %7491 = vpow2.f32 %v6143_v45  ;;  %v3984_v46 = vadd.f32 %v9812_v62, %v10867_v3 }
 0x935   :  { %v9863_v14 = vpop.eup %7467  ;;  %7493 = vpow2.f32 %v6146_v37 }
 0x936   :  { %v9867_v56 = vpop.eup %7469  ;;  %7495 = vpow2.f32 %v6149_v54 }
 0x937   :  { %v9871_v40 = vpop.eup %7471  ;;  %7497 = vpow2.f32 %v6152_v11 }
 0x938   :  { %v9875_v41 = vpop.eup %7473  ;;  %7499 = vpow2.f32 %v6155_v2 }
 0x939   :  { %v9878_v24 = vpop.eup %7475  ;;  %7501 = vtanh.f32 %v3956_v53 }
 0x93a   :  { %v9881_v52 = vpop.eup %7477  ;;  %7503 = vtanh.f32 %v3960_v0 }
 0x93b   :  { %v9884_v21 = vpop.eup %7479  ;;  %7505 = vtanh.f32 %v3964_v33  ;;  %v4059_v33 = vadd.f32 1.0, %v9841_v20  ;;  %v4146_v20 = vrot.slane %v9670_v58, 7 }
 0x93c   :  { %v9887_v29 = vpop.eup %7481  ;;  %7507 = vtanh.f32 %v3968_v19  ;;  %v4062_v19 = vadd.f32 1.0, %v9844_v42 }
 0x93d   :  { %v9891_v55 = vpop.eup %7483  ;;  %7509 = vtanh.f32 %v3972_v16  ;;  %v4065_v16 = vadd.f32 1.0, %v9847_v18  ;;  %v4148_v18 = vrot.slane %v9676_v49, 7  ;;  %v4152_v49 = vrot.slane %v9691_v7, 7 }
 0x93e   :  { %v7486_v45 = vpop.eup %7485  ;;  %7511 = vtanh.f32 %v3976_v57  ;;  %v4068_v57 = vadd.f32 1.0, %v9851_v36 }
 0x93f   :  { %v7488_v37 = vpop.eup %7487  ;;  %v4058_v50 = vadd.f32 1.0, %v7486_v45  ;;  %7513 = vtanh.f32 %v3980_v59  ;;  %v4071_v59 = vadd.f32 1.0, %v9854_v44  ;;  %v4074_v45 = vadd.f32 1.0, %v9857_v4 }
 0x940   :  { %v7490_v54 = vpop.eup %7489  ;;  %v4061_v35 = vadd.f32 1.0, %v7488_v37  ;;  %7515 = vtanh.f32 %v3984_v46  ;;  %v4145_v46 = vrot.slane %v9667_v17, 7  ;;  %v4147_v37 = vrot.slane %v9673_v26, 7 }
 0x941   :  { %v7492_v11 = vpop.eup %7491  ;;  %v4064_v61 = vadd.f32 1.0, %v7490_v54  ;;  %7517 = vrcp.f32 %v4058_v50  ;;  %v4077_v50 = vadd.f32 1.0, %v9860_v23  ;;  %v4149_v44 = vrot.slane %v9681_v28, 7 }
 0x942   :  { %v7494_v2 = vpop.eup %7493  ;;  %v4067_v15 = vadd.f32 1.0, %v7492_v11  ;;  %7519 = vrcp.f32 %v4061_v35  ;;  %v4150_v54 = vrot.slane %v9685_v10, 7  ;;  %v4080_v17 = vadd.f32 1.0, %v9863_v14 }
 0x943   :  { %v7496_v1 = vpop.eup %7495  ;;  %v4070_v62 = vadd.f32 1.0, %v7494_v2  ;;  %7521 = vrcp.f32 %v4064_v61  ;;  %v4151_v4 = vrot.slane %v9688_v34, 7 }
 0x944   :  { %v7498_v5 = vpop.eup %7497  ;;  %v4073_v53 = vadd.f32 1.0, %v7496_v1  ;;  %7523 = vrcp.f32 %v4067_v15 }
 0x945   :  { %v7500_v31 = vpop.eup %7499  ;;  %v4076_v27 = vadd.f32 1.0, %v7498_v5  ;;  %7525 = vrcp.f32 %v4070_v62 }
 0x946   :  { %v7502_v0 = vpop.eup %7501  ;;  %v4079_v9 = vadd.f32 1.0, %v7500_v31  ;;  %7527 = vrcp.f32 %v4073_v53 }
 0x947   :  { %v7504_v39 = vpop.eup %7503  ;;  %7529 = vrcp.f32 %v4076_v27  ;;  %v4169_v26 = vmul.f32 %v7502_v0, %v9871_v40 }
 0x948   :  { %v7506_v48 = vpop.eup %7505  ;;  %7531 = vrcp.f32 %v4079_v9  ;;  %v4170_v61 = vmul.f32 %v7504_v39, %v9875_v41 }
 0x949   :  { %v7508_v6 = vpop.eup %7507  ;;  %7533 = vrcp.f32 %v4059_v33  ;;  %v4171_v14 = vmul.f32 %v7506_v48, %v9878_v24 }
 0x94a   :  { %v7510_v13 = vpop.eup %7509  ;;  %7535 = vrcp.f32 %v4062_v19  ;;  %v4172_v1 = vmul.f32 %v7508_v6, %v9881_v52 }
 0x94b   :  { %v7512_v32 = vpop.eup %7511  ;;  %7537 = vrcp.f32 %v4065_v16  ;;  %v4173_v7 = vmul.f32 %v7510_v13, %v9884_v21 }
 0x94c   :  { %v7514_v3 = vpop.eup %7513  ;;  %7539 = vrcp.f32 %v4068_v57  ;;  %v4174_v27 = vmul.f32 %v7512_v32, %v9887_v29 }
 0x94d   :  { %v7516_v42 = vpop.eup %7515  ;;  %7541 = vrcp.f32 %v4071_v59  ;;  %v4175_v39 = vmul.f32 %v7514_v3, %v9891_v55 }
 0x94e   :  { %v7518_v36 = vpop.eup %7517  ;;  %7543 = vrcp.f32 %v4074_v45  ;;  %v4176_v48 = vmul.f32 %v7516_v42, %v9867_v56 }
 0x94f   :  { %v7520_v58 = vpop.eup %7519  ;;  %v4161_v35 = vmul.f32 %v7518_v36, %v4145_v46  ;;  %7545 = vrcp.f32 %v4077_v50 }
 0x950   :  { %v7522_v11 = vpop.eup %7521  ;;  %v4162_v23 = vmul.f32 %v7520_v58, %v4146_v20  ;;  %7547 = vrcp.f32 %v4080_v17 }
 0x951   :  { %v7524_v28 = vpop.eup %7523  ;;  %v4163_v10 = vmul.f32 %v7522_v11, %v4147_v37  ;;  %v4177_v2 = vadd.f32 %v4169_v26, %v4161_v35 }
 0x952   :  { %v7526_v15 = vpop.eup %7525  ;;  %v4164_v34 = vmul.f32 %v7524_v28, %v4148_v18  ;;  %v4178_v62 = vadd.f32 %v4170_v61, %v4162_v23 }
 0x953   :  { %v7528_v40 = vpop.eup %7527  ;;  %v4165_v5 = vmul.f32 %v7526_v15, %v4149_v44  ;;  %v4179_v53 = vadd.f32 %v4171_v14, %v4163_v10  ;;  %7549 = vtanh.f32 %v4177_v2 }
 0x954   :  { %v7530_v31 = vpop.eup %7529  ;;  %v4166_v41 = vmul.f32 %v7528_v40, %v4150_v54  ;;  %v4180_v0 = vadd.f32 %v4172_v1, %v4164_v34  ;;  %7551 = vtanh.f32 %v4178_v62 }
 0x955   :  { %v7532_v24 = vpop.eup %7531  ;;  %v4167_v9 = vmul.f32 %v7530_v31, %v4151_v4  ;;  %v4181_v33 = vadd.f32 %v4173_v7, %v4165_v5  ;;  %7553 = vtanh.f32 %v4179_v53 }
 0x956   :  { %v4168_v52 = vmul.f32 %v7532_v24, %v4152_v49  ;;  %v4182_v19 = vadd.f32 %v4174_v27, %v4166_v41  ;;  %7555 = vtanh.f32 %v4180_v0  ;;  %v7534_v6 = vpop.eup %7533 }
 0x957   :  { %v4183_v21 = vadd.f32 %v4175_v39, %v4167_v9  ;;  %7557 = vtanh.f32 %v4181_v33  ;;  %v7536_v13 = vpop.eup %7535 }
 0x958   :  { %v4184_v16 = vadd.f32 %v4176_v48, %v4168_v52  ;;  %7559 = vtanh.f32 %v4182_v19  ;;  %v7538_v29 = vpop.eup %7537 }
 0x959   :  { %7561 = vtanh.f32 %v4183_v21  ;;  %v7540_v57 = vpop.eup %7539 }
 0x95a   :  { %7563 = vtanh.f32 %v4184_v16  ;;  %v7542_v32 = vpop.eup %7541 }
 0x95b   :  { %v7544_v59 = vpop.eup %7543 }
 0x95c   :  { %v7546_v55 = vpop.eup %7545 }
 0x95d   :  { %v7548_v3 = vpop.eup %7547 }
 0x960   :  { %v7550_v46 = vpop.eup %7549 }
 0x961   :  { %v7552_v20 = vpop.eup %7551  ;;  %v4193_v45 = vmul.f32 %v7550_v46, %v7534_v6  ;;  %v10873_v46 = vld [vmem:[#allocation62_spill] sm:$0xff] }
 0x962   :  { %v7554_v56 = vpop.eup %7553  ;;  %v4194_v42 = vmul.f32 %v7552_v20, %v7536_v13  ;;  %v10874_v20 = vld [vmem:[#allocation63_spill] sm:$0xff] }
 0x963   :  { %v7556_v37 = vpop.eup %7555  ;;  %v4195_v18 = vmul.f32 %v7554_v56, %v7538_v29  ;;  %v6326_v50 = vpack.c.bf16 %v4193_v45, %v4193_v45  ;;  %v10875_v45 = vld [vmem:[#allocation64_spill] sm:$0xff]  ;;  %v10876_v56 = vld [vmem:[#allocation65_spill] sm:$0xff] }
 0x964   :  { %v7558_v36 = vpop.eup %7557  ;;  %v4196_v44 = vmul.f32 %v7556_v37, %v7540_v57  ;;  %v6327_v54 = vpack.c.bf16 %v4194_v42, %v4194_v42  ;;  %v10868_v57 = vld [vmem:[#allocation57_spill] sm:$0xff]  ;;  %v10877_v42 = vld [vmem:[#allocation23_spill] sm:$0xff]  ;;  %v10878_v37 = vld [vmem:[#allocation66_spill] sm:$0xff] }
 0x965   :  { %v7560_v17 = vpop.eup %7559  ;;  %v6328_v58 = vpack.c.bf16 %v4195_v18, %v4195_v18  ;;  %v4233_v4 = vunpack.c.l.b16 %v6326_v50  ;;  %v4197_v35 = vmul.f32 %v7558_v36, %v7542_v32  ;;  %v10869_v32 = vld [vmem:[#allocation58_spill] sm:$0xff]  ;;  %v10879_v18 = vld [vmem:[#allocation67_spill] sm:$0xff]  ;;  %v10880_v50 = vld [vmem:[#allocation68_spill] sm:$0xff] }
 0x966   :  { %v7562_v26 = vpop.eup %7561  ;;  %v6329_v11 = vpack.c.bf16 %v4196_v44, %v4196_v44  ;;  %v4234_v49 = vunpack.c.l.b16 %v6327_v54  ;;  %v4198_v23 = vmul.f32 %v7560_v17, %v7544_v59  ;;  %v10870_v59 = vld [vmem:[#allocation59_spill] sm:$0xff]  ;;  %v10881_v36 = vld [vmem:[#allocation69_spill] sm:$0xff]  ;;  %v10882_v44 = vld [vmem:[#allocation70_spill] sm:$0xff] }
 0x967   :  { %v7564_v61 = vpop.eup %7563  ;;  %v4235_v28 = vunpack.c.l.b16 %v6328_v58  ;;  %v4241_v10 = vrot.slane %v4233_v4, 7  ;;  %v4199_v14 = vmul.f32 %v7562_v26, %v7546_v55  ;;  %v6330_v2 = vpack.c.bf16 %v4197_v35, %v4197_v35  ;;  %v10871_v55 = vld [vmem:[#allocation60_spill] sm:$0xff]  ;;  %v10883_v54 = vld [vmem:[#allocation71_spill] sm:$0xff]  ;;  %v10885_v58 = vld [vmem:[#allocation73_spill] sm:$0xff] }
 0x968   :  { %v4242_v15 = vrot.slane %v4234_v49, 6  ;;  %v4200_v34 = vmul.f32 %v7564_v61, %v7548_v3  ;;  %v6331_v1 = vpack.c.bf16 %v4198_v23, %v4198_v23  ;;  %v4236_v62 = vunpack.c.l.b16 %v6329_v11  ;;  %v10872_v3 = vld [vmem:[#allocation61_spill] sm:$0xff]  ;;  %v10884_v17 = vld [vmem:[#allocation72_spill] sm:$0xff]  ;;  %v10886_v4 = vld [vmem:[#allocation22_spill] sm:$0xff]  ;;  %v4539_v49 = vpop.f32.mrf.mxu0  ;;  %v4612_v23 = vpop.f32.mrf.mxu1 }
 0x969   :  { %v4244_v40 = vrot.slane %v4235_v28, 5  ;;  %v6332_v5 = vpack.c.bf16 %v4199_v14, %v4199_v14  ;;  %v4237_v7 = vunpack.c.l.b16 %v6330_v2  ;;  %v10887_v35 = vld [vmem:[#allocation44_spill] sm:$0xff]  ;;  %v10888_v26 = vld [vmem:[#allocation55_spill] sm:$0xff] }
 0x96a   :  { %v6333_v53 = vpack.c.bf16 %v4200_v34, %v4200_v34  ;;  %v4238_v31 = vunpack.c.l.b16 %v6331_v1  ;;  %v4243_v41 = vsel %vm960_vm1, %v4242_v15, %v4241_v10  ;;  %v4246_v27 = vrot.slane %v4236_v62, 4  ;;  %v10889_v11 = vld [vmem:[#allocation56_spill] sm:$0xff]  ;;  %v4541_v61 = vpop.f32.mrf.mxu0  ;;  %v4614_v28 = vpop.f32.mrf.mxu1 }
 0x96b   :  { %v4239_v0 = vunpack.c.l.b16 %v6332_v5  ;;  %v4245_v24 = vsel %vm963_vm2, %v4244_v40, %v4243_v41  ;;  %v4248_v9 = vrot.slane %v4237_v7, 3 }
 0x96c   :  { %v4247_v39 = vsel %vm966_vm3, %v4246_v27, %v4245_v24  ;;  %v4250_v33 = vrot.slane %v4238_v31, 2  ;;  %v4240_v19 = vunpack.c.l.b16 %v6333_v53  ;;  %v9962_v10 = vpop.f32.mrf.mxu0  ;;  %v9964_v14 = vpop.f32.mrf.mxu1 }
 0x96d   :  { %v4249_v52 = vsel %vm969_vm4, %v4248_v9, %v4247_v39  ;;  %v4252_v48 = vrot.slane %v4239_v0, 1 }
 0x96e   :  { %v4251_v21 = vsel %vm972_vm5, %v4250_v33, %v4249_v52  ;;  %v9966_v2 = vpop.f32.mrf.mxu0  ;;  %v9968_v15 = vpop.f32.mrf.mxu1 }
 0x96f   :  { %v4253_v6 = vsel %vm975_vm6, %v4252_v48, %v4251_v21  ;;  %v4299_v48 = vld [vmem:[%s10403_s6] sm:$0xf] }
 0x970   :  { %v4254_v16 = vsel %vm978_vm7, %v4240_v19, %v4253_v6  ;;  %v9970_v34 = vpop.f32.mrf.mxu0  ;;  %v9972_v1 = vpop.f32.mrf.mxu1 }
 0x971   :  { %v4255_v13 = vpack.c.b16 %v4254_v16, %v4254_v16 }
 0x972   :  { %v9974_v62 = vpop.f32.mrf.mxu0  ;;  %v9976_v40 = vpop.f32.mrf.mxu1 }
 0x973   :  { %4258 = vst [vmem:[#allocation2 + $0x1c] sm:$0xf] %v4255_v13  ;;  %v10905_v13 = vld [vmem:[#allocation20_spill] sm:$0xff] }
 0x974   :  { %v9978_v5 = vpop.f32.mrf.mxu0  ;;  %v9980_v7 = vpop.f32.mrf.mxu1 }
 0x975   :  { %10890 = vst [vmem:[#allocation45_spill] sm:$0xff] %v9980_v7  ;;  %v10912_v7 = vsub.s32 2, %v10905_v13 }
 0x976   :  { %v9982_v53 = vpop.f32.mrf.mxu0  ;;  %v9984_v31 = vpop.f32.mrf.mxu1 }
 0x977   :  { %10891 = vst [vmem:[#allocation46_spill] sm:$0xff] %v9982_v53  ;;  %10892 = vst [vmem:[#allocation47_spill] sm:$0xff] %v9984_v31 }
 0x978   :  { %v9986_v41 = vpop.f32.mrf.mxu0  ;;  %v9988_v27 = vpop.f32.mrf.mxu1 }
 0x979   :  { %10893 = vst [vmem:[#allocation48_spill] sm:$0xff] %v9986_v41  ;;  %10894 = vst [vmem:[#allocation49_spill] sm:$0xff] %v9988_v27 }
 0x97a   :  { %v6520_v29 = vld [vmem:[#allocation2 + $0x18] sm:$0xff]   ;;  %v9990_v0 = vpop.f32.mrf.mxu0  ;;  %v9992_v24 = vpop.f32.mrf.mxu1 }
 0x97b   :  { %4568 = vmatmul.mubr.bf16.gmra.mxu0 %v6520_v29  ;;  %4641 = vmatmul.mubr.bf16.gmra.mxu1 %v6520_v29  ;;  %10895 = vst [vmem:[#allocation50_spill] sm:$0xff] %v9990_v0  ;;  %10896 = vst [vmem:[#allocation51_spill] sm:$0xff] %v9992_v24  ;;  %v10906_v29 = vsub.s32 0, %v10905_v13 }
 0x97c   :  { %4875 = vmatprep.mubr.bf16.mxu0 %v10645_v12  ;;  %4916 = vmatprep.mubr.bf16.mxu1 %v10645_v12  ;;  %v9994_v9 = vpop.f32.mrf.mxu0  ;;  %v9996_v39 = vpop.f32.mrf.mxu1 }
 0x97d   :  { %10897 = vst [vmem:[#allocation52_spill] sm:$0xff] %v9994_v9  ;;  %10898 = vst [vmem:[#allocation53_spill] sm:$0xff] %v9996_v39 }
 0x97e   :  { %v9998_v33 = vpop.f32.mrf.mxu0  ;;  %v10000_v52 = vpop.f32.mrf.mxu1 }
 0x97f   :  { %10899 = vst [vmem:[#allocation54_spill] sm:$0xff] %v9998_v33  ;;  %10900 = vst [vmem:[#allocation21_spill] sm:$0xff] %v10000_v52  ;;  %v10909_v52 = vsub.s32 1, %v10905_v13 }
 0x981   :  { %v10023_v33 = vrot.slane %v4299_v48, %v10909_v52 }
 0x983   :  { %4876 = vmatmul.mubr.bf16.vlgmr.msra.gmra.mxu0 %v10645_v12  ;;  %4917 = vmatmul.mubr.bf16.vlgmr.msra.gmra.mxu1 %v10645_v12  ;;  %v4542_v24 = vadd.f32 %v4541_v61, %v10023_v33  ;;  %v10913_v61 = vsub.s32 3, %v10905_v13 }
 0x984   :  { %4955 = vmatpush1.bf16.msra.mxu0 %v9715_v8  ;;  %4996 = vmatpush1.bf16.msra.mxu1 %v9717_v63 }
 0x985   :  { %4956 = vmatprep.subr.bf16.mxu0 %v9719_v47  ;;  %4997 = vmatprep.subr.bf16.mxu1 %v9721_v25 }
 0x986   :  { %4986 = vmatprep.mubr.bf16.mxu0 %v10645_v12  ;;  %5027 = vmatprep.mubr.bf16.mxu1 %v10645_v12 }
 0x988   :  { %4957 = vmatpush1.bf16.msra.mxu0 %v9727_v43  ;;  %4998 = vmatpush1.bf16.msra.mxu1 %v9729_v38 }
 0x989   :  { %4958 = vmatprep.subr.bf16.mxu0 %v9733_v60  ;;  %4999 = vmatprep.subr.bf16.mxu1 %v9735_v22 }
 0x98c   :  { %4959 = vmatpush1.bf16.msra.mxu0 %v9739_v51  ;;  %5000 = vmatpush1.bf16.msra.mxu1 %v9741_v30 }
 0x98d   :  { %4960 = vmatprep.subr.bf16.mxu0 %v10868_v57  ;;  %5001 = vmatprep.subr.bf16.mxu1 %v10869_v32 }
 0x990   :  { %4961 = vmatpush1.bf16.msra.mxu0 %v10870_v59  ;;  %5002 = vmatpush1.bf16.msra.mxu1 %v10871_v55 }
 0x991   :  { %4962 = vmatprep.subr.bf16.mxu0 %v10872_v3  ;;  %5003 = vmatprep.subr.bf16.mxu1 %v10873_v46 }
 0x994   :  { %4963 = vmatpush1.bf16.msra.mxu0 %v10874_v20  ;;  %5004 = vmatpush1.bf16.msra.mxu1 %v10875_v45 }
 0x995   :  { %4964 = vmatprep.subr.bf16.mxu0 %v10876_v56  ;;  %5005 = vmatprep.subr.bf16.mxu1 %v10877_v42 }
 0x998   :  { %4965 = vmatpush1.bf16.msra.mxu0 %v10878_v37  ;;  %5006 = vmatpush1.bf16.msra.mxu1 %v10879_v18 }
 0x999   :  { %4966 = vmatprep.subr.bf16.mxu0 %v10880_v50  ;;  %5007 = vmatprep.subr.bf16.mxu1 %v10881_v36 }
 0x99c   :  { %4967 = vmatpush1.bf16.msra.mxu0 %v10882_v44  ;;  %5008 = vmatpush1.bf16.msra.mxu1 %v10883_v54 }
 0x99d   :  { %4968 = vmatprep.subr.bf16.mxu0 %v10884_v17  ;;  %5009 = vmatprep.subr.bf16.mxu1 %v10885_v58 }
 0x9a0   :  { %4969 = vmatpush1.bf16.msra.mxu0 %v10886_v4  ;;  %5010 = vmatpush1.bf16.msra.mxu1 %v10887_v35 }
 0x9a1   :  { %5065 = vmatprep.subr.bf16.mxu0 %v10888_v26  ;;  %5106 = vmatprep.subr.bf16.mxu1 %v10889_v11  ;;  %v10015_v26 = vrot.slane %v4299_v48, %v10906_v29 }
 0xa3b   :  { %v10005_v19 = vpop.f32.mrf.mxu0  ;;  %v10007_v21 = vpop.f32.mrf.mxu1 }
 0xa3c   :  { %10901 = vst [vmem:[#allocation24_spill] sm:$0xff] %v10005_v19  ;;  %10902 = vst [vmem:[#allocation25_spill] sm:$0xff] %v10007_v21  ;;  %v4540_v21 = vadd.f32 %v4539_v49, %v10015_v26 }
 0xa3d   :  { %v10009_v6 = vpop.f32.mrf.mxu0  ;;  %v10011_v16 = vpop.f32.mrf.mxu1 }
 0xa3e   :  { %10903 = vst [vmem:[#allocation26_spill] sm:$0xff] %v10009_v6  ;;  %10904 = vst [vmem:[#allocation27_spill] sm:$0xff] %v10011_v16 }
 0xa3f   :  { %v10017_v11 = vpop.f32.mrf.mxu0  ;;  %v10019_v39 = vpop.f32.mrf.mxu1 }
 0xa40   :  { %10907 = vst [vmem:[#allocation28_spill] sm:$0xff] %v10017_v11  ;;  %10908 = vst [vmem:[#allocation29_spill] sm:$0xff] %v10019_v39 }
 0xa41   :  { %v10025_v9 = vpop.f32.mrf.mxu0  ;;  %v10027_v19 = vpop.f32.mrf.mxu1 }
 0xa42   :  { %10910 = vst [vmem:[#allocation30_spill] sm:$0xff] %v10025_v9  ;;  %10911 = vst [vmem:[#allocation31_spill] sm:$0xff] %v10027_v19  ;;  %v10033_v9 = vrot.slane %v4299_v48, %v10912_v7 }
 0xa43   :  { %v4877_v6 = vpop.f32.mrf.mxu0  ;;  %v4918_v16 = vpop.f32.mrf.mxu1 }
 0xa44   :  { %v4925_v29 = vadd.f32 %v4877_v6, %v4540_v21  ;;  %v4613_v49 = vadd.f32 %v4612_v23, %v10033_v9  ;;  %v10038_v21 = vrot.slane %v4299_v48, %v10913_v61 }
 0xa45   :  { %v4879_v27 = vpop.f32.mrf.mxu0  ;;  %v4920_v0 = vpop.f32.mrf.mxu1 }
 0xa46   :  { %v6233_v11 = vmul.f32 -1.442695, %v4925_v29  ;;  %v4926_v41 = vadd.f32 %v4879_v27, %v4542_v24  ;;  %v4927_v6 = vadd.f32 %v4918_v16, %v4613_v49  ;;  %v4615_v27 = vadd.f32 %v4614_v28, %v10038_v21 }
 0xa47   :  { %v4881_v39 = vpop.f32.mrf.mxu0  ;;  %v4922_v31 = vpop.f32.mrf.mxu1 }
 0xa48   :  { %7565 = vpow2.f32 %v6233_v11  ;;  %v6234_v52 = vmul.f32 -1.442695, %v4926_v41  ;;  %v6235_v24 = vmul.f32 -1.442695, %v4927_v6  ;;  %v4928_v39 = vadd.f32 %v4920_v0, %v4615_v27 }
 0xa49   :  { %v4882_v19 = vpop.f32.mrf.mxu0  ;;  %v4923_v53 = vpop.f32.mrf.mxu1 }
 0xa4a   :  { %7567 = vpow2.f32 %v6234_v52 }
 0xa4b   :  { %7569 = vpow2.f32 %v6235_v24 }
 0xa55   :  { %v7566_v31 = vpop.eup %7565 }
 0xa56   :  { %v4938_v41 = vadd.f32 1.0, %v7566_v31  ;;  %v10094_v31 = vld [vmem:[#allocation11 + $0xe0] ss:$16 sps:$4 sm:$0xff]  }
 0xa57   :  { %v7568_v11 = vpop.eup %7567 }
 0xa58   :  { %7571 = vrcp.f32 %v4938_v41  ;;  %v4939_v7 = vadd.f32 1.0, %v7568_v11  ;;  %v7570_v53 = vpop.eup %7569  ;;  %v10100_v41 = vld [vmem:[#allocation11 + $0xc4] ss:$16 sps:$4 sm:$0xff]   ;;  %v10103_v11 = vld [vmem:[#allocation11 + $0xcc] ss:$16 sps:$4 sm:$0xff]  }
 0xa59   :  { %7573 = vtanh.f32 %v4928_v39  ;;  %v4940_v13 = vadd.f32 1.0, %v7570_v53  ;;  %v10097_v39 = vld [vmem:[#allocation11 + $0xe8] ss:$16 sps:$4 sm:$0xff]  }
 0xa5a   :  { %7575 = vrcp.f32 %v4939_v7  ;;  %v10108_v7 = vld [vmem:[#allocation11 + $0xc0] ss:$16 sps:$4 sm:$0xff]   ;;  %v10111_v53 = vld [vmem:[#allocation11 + $0xc8] ss:$16 sps:$4 sm:$0xff]  }
 0xa5b   :  { %7577 = vrcp.f32 %v4940_v13  ;;  %v10123_v13 = vld [vmem:[#allocation11 + $0xa8] ss:$16 sps:$4 sm:$0xff]  }
 0xa65   :  { %v7572_v19 = vpop.eup %7571 }
 0xa66   :  { %v7574_v23 = vpop.eup %7573 }
 0xa67   :  { %v7576_v29 = vpop.eup %7575  ;;  %v4949_v52 = vmul.f32 %v7574_v23, %v7572_v19  ;;  %v10114_v19 = vld [vmem:[#allocation11 + $0xa4] ss:$16 sps:$4 sm:$0xff]   ;;  %v10117_v23 = vld [vmem:[#allocation11 + $0xac] ss:$16 sps:$4 sm:$0xff]  }
 0xa68   :  { %v4948_v48 = vmul.f32 0.0, %v7576_v29  ;;  %v7578_v28 = vpop.eup %7577  ;;  %v10120_v29 = vld [vmem:[#allocation11 + $0xa0] ss:$16 sps:$4 sm:$0xff]  }
 0xa6a   :  { %v10041_v16 = vadd.f32 %v4949_v52, %v4948_v48  ;;  %v10126_v48 = vld [vmem:[#allocation11 + $0x84] ss:$16 sps:$4 sm:$0xff]   ;;  %v10129_v52 = vld [vmem:[#allocation11 + $0x8c] ss:$16 sps:$4 sm:$0xff]  }
 0xa6c   :  { %7579 = vtanh.f32 %v10041_v16 }
 0xa79   :  { %v7580_v0 = vpop.eup %7579 }
 0xa7a   :  { %v4952_v49 = vmul.f32 %v7580_v0, %v7578_v28  ;;  %v10135_v28 = vld [vmem:[#allocation11 + $0x88] ss:$16 sps:$4 sm:$0xff]   ;;  %v10138_v0 = vld [vmem:[#allocation11 + $0x64] ss:$16 sps:$4 sm:$0xff]  }
 0xa7c   :  { %v4953_v61 = vpack.c.bf16 %v4952_v49, %v4952_v49  ;;  %v10141_v49 = vld [vmem:[#allocation11 + $0x6c] ss:$16 sps:$4 sm:$0xff]  }
 0xa7e   :  { %4987 = vmatmul.mubr.bf16.vlgmr.msra.gmra.mxu0 %v4953_v61  ;;  %5028 = vmatmul.mubr.bf16.vlgmr.msra.gmra.mxu1 %v4953_v61  ;;  %v10144_v61 = vld [vmem:[#allocation11 + $0x60] ss:$16 sps:$4 sm:$0xff]  }
 0xa7f   :  { %5066 = vmatpush1.bf16.msra.mxu0 %v9715_v8  ;;  %5107 = vmatpush1.bf16.msra.mxu1 %v9717_v63  ;;  %v10076_v8 = vld [vmem:[#allocation11 + $0xe4] ss:$16 sps:$4 sm:$0xff]   ;;  %v10079_v63 = vld [vmem:[#allocation11 + $0xec] ss:$16 sps:$4 sm:$0xff]  }
 0xa80   :  { %5067 = vmatprep.subr.bf16.mxu0 %v9719_v47  ;;  %5108 = vmatprep.subr.bf16.mxu1 %v9721_v25  ;;  %v4544_v47 = vadd.f32 %v9962_v10, %v10015_v26 }
 0xa81   :  { %5097 = vmatprep.mubr.bf16.mxu0 %v10645_v12  ;;  %5138 = vmatprep.mubr.bf16.mxu1 %v10645_v12 }
 0xa83   :  { %5068 = vmatpush1.bf16.msra.mxu0 %v9727_v43  ;;  %5109 = vmatpush1.bf16.msra.mxu1 %v9729_v38  ;;  %v4546_v38 = vadd.f32 %v9966_v2, %v10023_v33 }
 0xa84   :  { %5069 = vmatprep.subr.bf16.mxu0 %v9733_v60  ;;  %5110 = vmatprep.subr.bf16.mxu1 %v9735_v22 }
 0xa87   :  { %5070 = vmatpush1.bf16.msra.mxu0 %v9739_v51  ;;  %5111 = vmatpush1.bf16.msra.mxu1 %v9741_v30 }
 0xa88   :  { %5071 = vmatprep.subr.bf16.mxu0 %v10868_v57  ;;  %5112 = vmatprep.subr.bf16.mxu1 %v10869_v32 }
 0xa8b   :  { %5072 = vmatpush1.bf16.msra.mxu0 %v10870_v59  ;;  %5113 = vmatpush1.bf16.msra.mxu1 %v10871_v55 }
 0xa8c   :  { %5073 = vmatprep.subr.bf16.mxu0 %v10872_v3  ;;  %5114 = vmatprep.subr.bf16.mxu1 %v10873_v46 }
 0xa8f   :  { %5074 = vmatpush1.bf16.msra.mxu0 %v10874_v20  ;;  %5115 = vmatpush1.bf16.msra.mxu1 %v10875_v45  ;;  %v4617_v20 = vadd.f32 %v9964_v14, %v10033_v9 }
 0xa90   :  { %5075 = vmatprep.subr.bf16.mxu0 %v10876_v56  ;;  %5116 = vmatprep.subr.bf16.mxu1 %v10877_v42  ;;  %v4619_v56 = vadd.f32 %v9968_v15, %v10038_v21 }
 0xa93   :  { %5076 = vmatpush1.bf16.msra.mxu0 %v10878_v37  ;;  %5117 = vmatpush1.bf16.msra.mxu1 %v10879_v18 }
 0xa94   :  { %5077 = vmatprep.subr.bf16.mxu0 %v10880_v50  ;;  %5118 = vmatprep.subr.bf16.mxu1 %v10881_v36 }
 0xa97   :  { %5078 = vmatpush1.bf16.msra.mxu0 %v10882_v44  ;;  %5119 = vmatpush1.bf16.msra.mxu1 %v10883_v54 }
 0xa98   :  { %5079 = vmatprep.subr.bf16.mxu0 %v10884_v17  ;;  %5120 = vmatprep.subr.bf16.mxu1 %v10885_v58 }
 0xa9b   :  { %5080 = vmatpush1.bf16.msra.mxu0 %v10886_v4  ;;  %5121 = vmatpush1.bf16.msra.mxu1 %v10887_v35 }
 0xa9c   :  { %5176 = vmatprep.subr.bf16.mxu0 %v10076_v8  ;;  %5217 = vmatprep.subr.bf16.mxu1 %v10079_v63 }
 0xb3e   :  { %v4988_v25 = vpop.f32.mrf.mxu0  ;;  %v5029_v43 = vpop.f32.mrf.mxu1 }
 0xb3f   :  { %v5036_v60 = vadd.f32 %v4988_v25, %v4544_v47  ;;  %v5038_v45 = vadd.f32 %v5029_v43, %v4617_v20  ;;  %v10147_v47 = vld [vmem:[#allocation11 + $0x68] ss:$16 sps:$4 sm:$0xff]   ;;  %v10150_v25 = vld [vmem:[#allocation11 + $0x44] ss:$16 sps:$4 sm:$0xff]   ;;  %v10153_v43 = vld [vmem:[#allocation11 + $0x4c] ss:$16 sps:$4 sm:$0xff]  }
 0xb40   :  { %v4990_v22 = vpop.f32.mrf.mxu0  ;;  %v5031_v51 = vpop.f32.mrf.mxu1 }
 0xb41   :  { %v6236_v30 = vmul.f32 -1.442695, %v5036_v60  ;;  %v5037_v57 = vadd.f32 %v4990_v22, %v4546_v38  ;;  %v6238_v42 = vmul.f32 -1.442695, %v5038_v45  ;;  %v5039_v37 = vadd.f32 %v5031_v51, %v4619_v56  ;;  %v10156_v38 = vld [vmem:[#allocation11 + $0x40] ss:$16 sps:$4 sm:$0xff]  }
 0xb42   :  { %v4992_v32 = vpop.f32.mrf.mxu0  ;;  %v5033_v59 = vpop.f32.mrf.mxu1  ;;  %v10159_v60 = vld [vmem:[#allocation11 + $0x48] ss:$16 sps:$4 sm:$0xff]   ;;  %v10162_v22 = vld [vmem:[#allocation11 + $0x24] ss:$16 sps:$4 sm:$0xff]   ;;  %v10165_v51 = vld [vmem:[#allocation11 + $0x2c] ss:$16 sps:$4 sm:$0xff]   ;;  %v4552_v56 = vadd.f32 %v9974_v62, %v10023_v33 }
 0xb43   :  { %7581 = vpow2.f32 %v6236_v30  ;;  %v6237_v55 = vmul.f32 -1.442695, %v5037_v57  ;;  %v10168_v30 = vld [vmem:[#allocation11 + $0x20] ss:$16 sps:$4 sm:$0xff]   ;;  %v10171_v57 = vld [vmem:[#allocation11 + $0x28] ss:$16 sps:$4 sm:$0xff]  }
 0xb44   :  { %v4993_v3 = vpop.f32.mrf.mxu0  ;;  %v5034_v46 = vpop.f32.mrf.mxu1  ;;  %v10174_v32 = vld [vmem:[#allocation11 + $0x4] ss:$16 sps:$4 sm:$0xff]   ;;  %v10177_v59 = vld [vmem:[#allocation11 + $0xc] ss:$16 sps:$4 sm:$0xff]  }
 0xb45   :  { %7583 = vpow2.f32 %v6237_v55  ;;  %v10180_v55 = vld [vmem:[#allocation11] ss:$16 sps:$4 sm:$0xff]   ;;  %v10183_v3 = vld [vmem:[#allocation11 + $0x8] ss:$16 sps:$4 sm:$0xff]   ;;  %v4550_v46 = vadd.f32 %v9970_v34, %v10015_v26  ;;  %v4623_v34 = vadd.f32 %v9972_v1, %v10033_v9 }
 0xb46   :  { %7585 = vpow2.f32 %v6238_v42 }
 0xb47   :  { %7587 = vtanh.f32 %v5039_v37 }
 0xb50   :  { %v7582_v18 = vpop.eup %7581 }
 0xb51   :  { %v5049_v50 = vadd.f32 1.0, %v7582_v18 }
 0xb52   :  { %v7584_v36 = vpop.eup %7583 }
 0xb53   :  { %7589 = vrcp.f32 %v5049_v50  ;;  %v5050_v44 = vadd.f32 1.0, %v7584_v36  ;;  %v7586_v54 = vpop.eup %7585 }
 0xb54   :  { %v7588_v17 = vpop.eup %7587  ;;  %v5051_v10 = vadd.f32 1.0, %v7586_v54 }
 0xb55   :  { %7591 = vrcp.f32 %v5050_v44 }
 0xb56   :  { %7593 = vrcp.f32 %v5051_v10  ;;  %v4625_v10 = vadd.f32 %v9976_v40, %v10038_v21 }
 0xb60   :  { %v7590_v58 = vpop.eup %7589 }
 0xb61   :  { %v5060_v4 = vmul.f32 %v7590_v58, %v7588_v17 }
 0xb62   :  { %v7592_v35 = vpop.eup %7591 }
 0xb63   :  { %v5059_v14 = vmul.f32 %v7592_v35, %v10041_v16  ;;  %v7594_v15 = vpop.eup %7593  ;;  %v10132_v16 = vld [vmem:[#allocation11 + $0x80] ss:$16 sps:$4 sm:$0xff]  }
 0xb65   :  { %v10091_v2 = vadd.f32 %v5060_v4, %v5059_v14 }
 0xb67   :  { %7595 = vtanh.f32 %v10091_v2 }
 0xb74   :  { %v7596_v6 = vpop.eup %7595 }
 0xb75   :  { %v5063_v27 = vmul.f32 %v7596_v6, %v7594_v15 }
 0xb77   :  { %v5064_v24 = vpack.c.bf16 %v5063_v27, %v5063_v27 }
 0xb79   :  { %5098 = vmatmul.mubr.bf16.vlgmr.msra.gmra.mxu0 %v5064_v24  ;;  %5139 = vmatmul.mubr.bf16.vlgmr.msra.gmra.mxu1 %v5064_v24 }
 0xb7a   :  { %5177 = vmatpush1.bf16.msra.mxu0 %v10094_v31  ;;  %5218 = vmatpush1.bf16.msra.mxu1 %v10097_v39 }
 0xb7b   :  { %5178 = vmatprep.subr.bf16.mxu0 %v10100_v41  ;;  %5219 = vmatprep.subr.bf16.mxu1 %v10103_v11 }
 0xb7c   :  { %5208 = vmatprep.mubr.bf16.mxu0 %v10645_v12  ;;  %5249 = vmatprep.mubr.bf16.mxu1 %v10645_v12 }
 0xb7e   :  { %5179 = vmatpush1.bf16.msra.mxu0 %v10108_v7  ;;  %5220 = vmatpush1.bf16.msra.mxu1 %v10111_v53 }
 0xb7f   :  { %5180 = vmatprep.subr.bf16.mxu0 %v10114_v19  ;;  %5221 = vmatprep.subr.bf16.mxu1 %v10117_v23 }
 0xb82   :  { %5181 = vmatpush1.bf16.msra.mxu0 %v10120_v29  ;;  %5222 = vmatpush1.bf16.msra.mxu1 %v10123_v13 }
 0xb83   :  { %5182 = vmatprep.subr.bf16.mxu0 %v10126_v48  ;;  %5223 = vmatprep.subr.bf16.mxu1 %v10129_v52 }
 0xb86   :  { %5183 = vmatpush1.bf16.msra.mxu0 %v10132_v16  ;;  %5224 = vmatpush1.bf16.msra.mxu1 %v10135_v28 }
 0xb87   :  { %5184 = vmatprep.subr.bf16.mxu0 %v10138_v0  ;;  %5225 = vmatprep.subr.bf16.mxu1 %v10141_v49 }
 0xb8a   :  { %5185 = vmatpush1.bf16.msra.mxu0 %v10144_v61  ;;  %5226 = vmatpush1.bf16.msra.mxu1 %v10147_v47 }
 0xb8b   :  { %5186 = vmatprep.subr.bf16.mxu0 %v10150_v25  ;;  %5227 = vmatprep.subr.bf16.mxu1 %v10153_v43 }
 0xb8e   :  { %5187 = vmatpush1.bf16.msra.mxu0 %v10156_v38  ;;  %5228 = vmatpush1.bf16.msra.mxu1 %v10159_v60 }
 0xb8f   :  { %5188 = vmatprep.subr.bf16.mxu0 %v10162_v22  ;;  %5229 = vmatprep.subr.bf16.mxu1 %v10165_v51 }
 0xb92   :  { %5189 = vmatpush1.bf16.msra.mxu0 %v10168_v30  ;;  %5230 = vmatpush1.bf16.msra.mxu1 %v10171_v57 }
 0xb93   :  { %5190 = vmatprep.subr.bf16.mxu0 %v10174_v32  ;;  %5231 = vmatprep.subr.bf16.mxu1 %v10177_v59 }
 0xb96   :  { %5191 = vmatpush1.bf16.msra.mxu0 %v10180_v55  ;;  %5232 = vmatpush1.bf16.msra.mxu1 %v10183_v3 }
 0xb97   :  { %5287 = vmatprep.subr.bf16.mxu0 %v10076_v8  ;;  %5328 = vmatprep.subr.bf16.mxu1 %v10079_v63 }
 0xc39   :  { %v5099_v20 = vpop.f32.mrf.mxu0  ;;  %v5140_v45 = vpop.f32.mrf.mxu1 }
 0xc3a   :  { %v5147_v42 = vadd.f32 %v5099_v20, %v4550_v46  ;;  %v5149_v35 = vadd.f32 %v5140_v45, %v4623_v34 }
 0xc3b   :  { %v5101_v37 = vpop.f32.mrf.mxu0  ;;  %v5142_v18 = vpop.f32.mrf.mxu1 }
 0xc3c   :  { %v6239_v50 = vmul.f32 -1.442695, %v5147_v42  ;;  %v5148_v36 = vadd.f32 %v5101_v37, %v4552_v56  ;;  %v6241_v62 = vmul.f32 -1.442695, %v5149_v35  ;;  %v5150_v14 = vadd.f32 %v5142_v18, %v4625_v10 }
 0xc3d   :  { %v5103_v44 = vpop.f32.mrf.mxu0  ;;  %v5144_v54 = vpop.f32.mrf.mxu1 }
 0xc3e   :  { %7597 = vpow2.f32 %v6239_v50  ;;  %v6240_v17 = vmul.f32 -1.442695, %v5148_v36 }
 0xc3f   :  { %v5104_v58 = vpop.f32.mrf.mxu0  ;;  %v5145_v4 = vpop.f32.mrf.mxu1 }
 0xc40   :  { %7599 = vpow2.f32 %v6240_v17  ;;  %v10914_v58 = vld [vmem:[#allocation46_spill] sm:$0xff] }
 0xc41   :  { %7601 = vpow2.f32 %v6241_v62  ;;  %v4556_v4 = vadd.f32 %v10914_v58, %v10023_v33 }
 0xc42   :  { %7603 = vtanh.f32 %v5150_v14 }
 0xc4b   :  { %v7598_v15 = vpop.eup %7597 }
 0xc4c   :  { %v5160_v6 = vadd.f32 1.0, %v7598_v15 }
 0xc4d   :  { %v7600_v27 = vpop.eup %7599 }
 0xc4e   :  { %7605 = vrcp.f32 %v5160_v6  ;;  %v5161_v24 = vadd.f32 1.0, %v7600_v27  ;;  %v7602_v46 = vpop.eup %7601 }
 0xc4f   :  { %v7604_v20 = vpop.eup %7603  ;;  %v5162_v1 = vadd.f32 1.0, %v7602_v46 }
 0xc50   :  { %7607 = vrcp.f32 %v5161_v24 }
 0xc51   :  { %7609 = vrcp.f32 %v5162_v1 }
 0xc5b   :  { %v7606_v56 = vpop.eup %7605 }
 0xc5c   :  { %v5171_v42 = vmul.f32 %v7606_v56, %v7604_v20  ;;  %v10915_v20 = vld [vmem:[#allocation45_spill] sm:$0xff] }
 0xc5d   :  { %v7608_v37 = vpop.eup %7607 }
 0xc5e   :  { %v5170_v45 = vmul.f32 %v7608_v37, %v10091_v2  ;;  %v7610_v40 = vpop.eup %7609  ;;  %v4554_v2 = vadd.f32 %v9978_v5, %v10015_v26  ;;  %v4627_v5 = vadd.f32 %v10915_v20, %v10033_v9  ;;  %v10918_v20 = vld [vmem:[#allocation50_spill] sm:$0xff] }
 0xc60   :  { %v10197_v50 = vadd.f32 %v5171_v42, %v5170_v45  ;;  %v10916_v42 = vld [vmem:[#allocation47_spill] sm:$0xff] }
 0xc61   :  { %v4629_v37 = vadd.f32 %v10916_v42, %v10038_v21 }
 0xc62   :  { %7611 = vtanh.f32 %v10197_v50 }
 0xc6f   :  { %v7612_v18 = vpop.eup %7611 }
 0xc70   :  { %v5174_v36 = vmul.f32 %v7612_v18, %v7610_v40 }
 0xc72   :  { %v5175_v44 = vpack.c.bf16 %v5174_v36, %v5174_v36 }
 0xc74   :  { %5209 = vmatmul.mubr.bf16.vlgmr.msra.gmra.mxu0 %v5175_v44  ;;  %5250 = vmatmul.mubr.bf16.vlgmr.msra.gmra.mxu1 %v5175_v44 }
 0xc75   :  { %5288 = vmatpush1.bf16.msra.mxu0 %v10094_v31  ;;  %5329 = vmatpush1.bf16.msra.mxu1 %v10097_v39 }
 0xc76   :  { %5289 = vmatprep.subr.bf16.mxu0 %v10100_v41  ;;  %5330 = vmatprep.subr.bf16.mxu1 %v10103_v11 }
 0xc77   :  { %5319 = vmatprep.mubr.bf16.mxu0 %v10645_v12  ;;  %5360 = vmatprep.mubr.bf16.mxu1 %v10645_v12 }
 0xc79   :  { %5290 = vmatpush1.bf16.msra.mxu0 %v10108_v7  ;;  %5331 = vmatpush1.bf16.msra.mxu1 %v10111_v53 }
 0xc7a   :  { %5291 = vmatprep.subr.bf16.mxu0 %v10114_v19  ;;  %5332 = vmatprep.subr.bf16.mxu1 %v10117_v23 }
 0xc7d   :  { %5292 = vmatpush1.bf16.msra.mxu0 %v10120_v29  ;;  %5333 = vmatpush1.bf16.msra.mxu1 %v10123_v13 }
 0xc7e   :  { %5293 = vmatprep.subr.bf16.mxu0 %v10126_v48  ;;  %5334 = vmatprep.subr.bf16.mxu1 %v10129_v52 }
 0xc81   :  { %5294 = vmatpush1.bf16.msra.mxu0 %v10132_v16  ;;  %5335 = vmatpush1.bf16.msra.mxu1 %v10135_v28 }
 0xc82   :  { %5295 = vmatprep.subr.bf16.mxu0 %v10138_v0  ;;  %5336 = vmatprep.subr.bf16.mxu1 %v10141_v49 }
 0xc85   :  { %5296 = vmatpush1.bf16.msra.mxu0 %v10144_v61  ;;  %5337 = vmatpush1.bf16.msra.mxu1 %v10147_v47 }
 0xc86   :  { %5297 = vmatprep.subr.bf16.mxu0 %v10150_v25  ;;  %5338 = vmatprep.subr.bf16.mxu1 %v10153_v43 }
 0xc89   :  { %5298 = vmatpush1.bf16.msra.mxu0 %v10156_v38  ;;  %5339 = vmatpush1.bf16.msra.mxu1 %v10159_v60 }
 0xc8a   :  { %5299 = vmatprep.subr.bf16.mxu0 %v10162_v22  ;;  %5340 = vmatprep.subr.bf16.mxu1 %v10165_v51 }
 0xc8d   :  { %5300 = vmatpush1.bf16.msra.mxu0 %v10168_v30  ;;  %5341 = vmatpush1.bf16.msra.mxu1 %v10171_v57 }
 0xc8e   :  { %5301 = vmatprep.subr.bf16.mxu0 %v10174_v32  ;;  %5342 = vmatprep.subr.bf16.mxu1 %v10177_v59 }
 0xc91   :  { %5302 = vmatpush1.bf16.msra.mxu0 %v10180_v55  ;;  %5343 = vmatpush1.bf16.msra.mxu1 %v10183_v3 }
 0xc92   :  { %5398 = vmatprep.subr.bf16.mxu0 %v10076_v8  ;;  %5439 = vmatprep.subr.bf16.mxu1 %v10079_v63 }
 0xd34   :  { %v5210_v54 = vpop.f32.mrf.mxu0  ;;  %v5251_v17 = vpop.f32.mrf.mxu1 }
 0xd35   :  { %v5258_v34 = vadd.f32 %v5210_v54, %v4554_v2  ;;  %v5260_v56 = vadd.f32 %v5251_v17, %v4627_v5  ;;  %v4562_v5 = vadd.f32 %v10918_v20, %v10023_v33 }
 0xd36   :  { %v5212_v35 = vpop.f32.mrf.mxu0  ;;  %v5253_v10 = vpop.f32.mrf.mxu1 }
 0xd37   :  { %v6242_v62 = vmul.f32 -1.442695, %v5258_v34  ;;  %v5259_v14 = vadd.f32 %v5212_v35, %v4556_v4  ;;  %v6244_v1 = vmul.f32 -1.442695, %v5260_v56  ;;  %v5261_v45 = vadd.f32 %v5253_v10, %v4629_v37 }
 0xd38   :  { %v5214_v15 = vpop.f32.mrf.mxu0  ;;  %v5255_v6 = vpop.f32.mrf.mxu1 }
 0xd39   :  { %7613 = vpow2.f32 %v6242_v62  ;;  %v6243_v27 = vmul.f32 -1.442695, %v5259_v14 }
 0xd3a   :  { %v5215_v24 = vpop.f32.mrf.mxu0  ;;  %v5256_v46 = vpop.f32.mrf.mxu1 }
 0xd3b   :  { %7615 = vpow2.f32 %v6243_v27 }
 0xd3c   :  { %7617 = vpow2.f32 %v6244_v1 }
 0xd3d   :  { %7619 = vtanh.f32 %v5261_v45 }
 0xd46   :  { %v7614_v40 = vpop.eup %7613 }
 0xd47   :  { %v5271_v18 = vadd.f32 1.0, %v7614_v40 }
 0xd48   :  { %v7616_v36 = vpop.eup %7615 }
 0xd49   :  { %7621 = vrcp.f32 %v5271_v18  ;;  %v5272_v44 = vadd.f32 1.0, %v7616_v36  ;;  %v7618_v2 = vpop.eup %7617 }
 0xd4a   :  { %v7620_v54 = vpop.eup %7619  ;;  %v5273_v35 = vadd.f32 1.0, %v7618_v2 }
 0xd4b   :  { %7623 = vrcp.f32 %v5272_v44 }
 0xd4c   :  { %7625 = vrcp.f32 %v5273_v35 }
 0xd56   :  { %v7622_v58 = vpop.eup %7621 }
 0xd57   :  { %v5282_v4 = vmul.f32 %v7622_v58, %v7620_v54  ;;  %v10919_v54 = vld [vmem:[#allocation49_spill] sm:$0xff] }
 0xd58   :  { %v7624_v34 = vpop.eup %7623  ;;  %v4633_v58 = vadd.f32 %v10919_v54, %v10033_v9  ;;  %v10922_v54 = vld [vmem:[#allocation54_spill] sm:$0xff] }
 0xd59   :  { %v5281_v17 = vmul.f32 %v7624_v34, %v10197_v50  ;;  %v7626_v10 = vpop.eup %7625  ;;  %v10917_v50 = vld [vmem:[#allocation48_spill] sm:$0xff]  ;;  %v10920_v34 = vld [vmem:[#allocation51_spill] sm:$0xff] }
 0xd5a   :  { %v4560_v27 = vadd.f32 %v10917_v50, %v10015_v26  ;;  %v4635_v35 = vadd.f32 %v10920_v34, %v10038_v21 }
 0xd5b   :  { %v10243_v62 = vadd.f32 %v5282_v4, %v5281_v17 }
 0xd5d   :  { %7627 = vtanh.f32 %v10243_v62 }
 0xd6a   :  { %v7628_v14 = vpop.eup %7627 }
 0xd6b   :  { %v5285_v15 = vmul.f32 %v7628_v14, %v7626_v10 }
 0xd6d   :  { %v5286_v6 = vpack.c.bf16 %v5285_v15, %v5285_v15 }
 0xd6f   :  { %5320 = vmatmul.mubr.bf16.vlgmr.msra.gmra.mxu0 %v5286_v6  ;;  %5361 = vmatmul.mubr.bf16.vlgmr.msra.gmra.mxu1 %v5286_v6 }
 0xd70   :  { %5399 = vmatpush1.bf16.msra.mxu0 %v10094_v31  ;;  %5440 = vmatpush1.bf16.msra.mxu1 %v10097_v39 }
 0xd71   :  { %5400 = vmatprep.subr.bf16.mxu0 %v10100_v41  ;;  %5441 = vmatprep.subr.bf16.mxu1 %v10103_v11 }
 0xd72   :  { %5430 = vmatprep.mubr.bf16.mxu0 %v10645_v12  ;;  %5471 = vmatprep.mubr.bf16.mxu1 %v10645_v12 }
 0xd74   :  { %5401 = vmatpush1.bf16.msra.mxu0 %v10108_v7  ;;  %5442 = vmatpush1.bf16.msra.mxu1 %v10111_v53 }
 0xd75   :  { %5402 = vmatprep.subr.bf16.mxu0 %v10114_v19  ;;  %5443 = vmatprep.subr.bf16.mxu1 %v10117_v23 }
 0xd78   :  { %5403 = vmatpush1.bf16.msra.mxu0 %v10120_v29  ;;  %5444 = vmatpush1.bf16.msra.mxu1 %v10123_v13 }
 0xd79   :  { %5404 = vmatprep.subr.bf16.mxu0 %v10126_v48  ;;  %5445 = vmatprep.subr.bf16.mxu1 %v10129_v52 }
 0xd7c   :  { %5405 = vmatpush1.bf16.msra.mxu0 %v10132_v16  ;;  %5446 = vmatpush1.bf16.msra.mxu1 %v10135_v28 }
 0xd7d   :  { %5406 = vmatprep.subr.bf16.mxu0 %v10138_v0  ;;  %5447 = vmatprep.subr.bf16.mxu1 %v10141_v49 }
 0xd80   :  { %5407 = vmatpush1.bf16.msra.mxu0 %v10144_v61  ;;  %5448 = vmatpush1.bf16.msra.mxu1 %v10147_v47 }
 0xd81   :  { %5408 = vmatprep.subr.bf16.mxu0 %v10150_v25  ;;  %5449 = vmatprep.subr.bf16.mxu1 %v10153_v43 }
 0xd84   :  { %5409 = vmatpush1.bf16.msra.mxu0 %v10156_v38  ;;  %5450 = vmatpush1.bf16.msra.mxu1 %v10159_v60 }
 0xd85   :  { %5410 = vmatprep.subr.bf16.mxu0 %v10162_v22  ;;  %5451 = vmatprep.subr.bf16.mxu1 %v10165_v51 }
 0xd88   :  { %5411 = vmatpush1.bf16.msra.mxu0 %v10168_v30  ;;  %5452 = vmatpush1.bf16.msra.mxu1 %v10171_v57 }
 0xd89   :  { %5412 = vmatprep.subr.bf16.mxu0 %v10174_v32  ;;  %5453 = vmatprep.subr.bf16.mxu1 %v10177_v59 }
 0xd8c   :  { %5413 = vmatpush1.bf16.msra.mxu0 %v10180_v55  ;;  %5454 = vmatpush1.bf16.msra.mxu1 %v10183_v3 }
 0xd8d   :  { %5509 = vmatprep.subr.bf16.mxu0 %v10076_v8  ;;  %5550 = vmatprep.subr.bf16.mxu1 %v10079_v63 }
 0xe2f   :  { %v5321_v24 = vpop.f32.mrf.mxu0  ;;  %v5362_v46 = vpop.f32.mrf.mxu1 }
 0xe30   :  { %v5369_v56 = vadd.f32 %v5321_v24, %v4560_v27  ;;  %v5371_v4 = vadd.f32 %v5362_v46, %v4633_v58  ;;  %v4566_v58 = vadd.f32 %v10922_v54, %v10023_v33 }
 0xe31   :  { %v5323_v42 = vpop.f32.mrf.mxu0  ;;  %v5364_v37 = vpop.f32.mrf.mxu1 }
 0xe32   :  { %v6245_v1 = vmul.f32 -1.442695, %v5369_v56  ;;  %v5370_v45 = vadd.f32 %v5323_v42, %v4562_v5  ;;  %v6247_v17 = vmul.f32 -1.442695, %v5371_v4  ;;  %v5372_v10 = vadd.f32 %v5364_v37, %v4635_v35 }
 0xe33   :  { %v5325_v40 = vpop.f32.mrf.mxu0  ;;  %v5366_v18 = vpop.f32.mrf.mxu1 }
 0xe34   :  { %7629 = vpow2.f32 %v6245_v1  ;;  %v6246_v36 = vmul.f32 -1.442695, %v5370_v45 }
 0xe35   :  { %v5326_v44 = vpop.f32.mrf.mxu0  ;;  %v5367_v2 = vpop.f32.mrf.mxu1 }
 0xe36   :  { %7631 = vpow2.f32 %v6246_v36 }
 0xe37   :  { %7633 = vpow2.f32 %v6247_v17 }
 0xe38   :  { %7635 = vtanh.f32 %v5372_v10 }
 0xe41   :  { %v7630_v14 = vpop.eup %7629 }
 0xe42   :  { %v5382_v15 = vadd.f32 1.0, %v7630_v14 }
 0xe43   :  { %v7632_v6 = vpop.eup %7631 }
 0xe44   :  { %7637 = vrcp.f32 %v5382_v15  ;;  %v5383_v50 = vadd.f32 1.0, %v7632_v6  ;;  %v7634_v27 = vpop.eup %7633 }
 0xe45   :  { %v7636_v24 = vpop.eup %7635  ;;  %v5384_v42 = vadd.f32 1.0, %v7634_v27 }
 0xe46   :  { %7639 = vrcp.f32 %v5383_v50 }
 0xe47   :  { %7641 = vrcp.f32 %v5384_v42 }
 0xe51   :  { %v7638_v20 = vpop.eup %7637 }
 0xe52   :  { %v5393_v5 = vmul.f32 %v7638_v20, %v7636_v24  ;;  %v10924_v20 = vld [vmem:[#allocation21_spill] sm:$0xff] }
 0xe53   :  { %v7640_v56 = vpop.eup %7639 }
 0xe54   :  { %v5392_v46 = vmul.f32 %v7640_v56, %v10243_v62  ;;  %v7642_v37 = vpop.eup %7641  ;;  %v10921_v62 = vld [vmem:[#allocation52_spill] sm:$0xff] }
 0xe55   :  { %v4564_v36 = vadd.f32 %v10921_v62, %v10015_v26 }
 0xe56   :  { %v10289_v1 = vadd.f32 %v5393_v5, %v5392_v46  ;;  %v4639_v5 = vadd.f32 %v10924_v20, %v10038_v21  ;;  %v7984_v20 = vmov 0.0  }
 0xe58   :  { %7643 = vtanh.f32 %v10289_v1 }
 0xe65   :  { %v7644_v45 = vpop.eup %7643 }
 0xe66   :  { %v5396_v40 = vmul.f32 %v7644_v45, %v7642_v37 }
 0xe68   :  { %v5397_v18 = vpack.c.bf16 %v5396_v40, %v5396_v40 }
 0xe6a   :  { %5431 = vmatmul.mubr.bf16.vlgmr.msra.gmra.mxu0 %v5397_v18  ;;  %5472 = vmatmul.mubr.bf16.vlgmr.msra.gmra.mxu1 %v5397_v18 }
 0xe6b   :  { %5510 = vmatpush1.bf16.msra.mxu0 %v10094_v31  ;;  %5551 = vmatpush1.bf16.msra.mxu1 %v10097_v39 }
 0xe6c   :  { %5511 = vmatprep.subr.bf16.mxu0 %v10100_v41  ;;  %5552 = vmatprep.subr.bf16.mxu1 %v10103_v11 }
 0xe6d   :  { %5541 = vmatprep.mubr.bf16.mxu0 %v10645_v12  ;;  %5582 = vmatprep.mubr.bf16.mxu1 %v10645_v12 }
 0xe6f   :  { %5512 = vmatpush1.bf16.msra.mxu0 %v10108_v7  ;;  %5553 = vmatpush1.bf16.msra.mxu1 %v10111_v53 }
 0xe70   :  { %5513 = vmatprep.subr.bf16.mxu0 %v10114_v19  ;;  %5554 = vmatprep.subr.bf16.mxu1 %v10117_v23 }
 0xe73   :  { %5514 = vmatpush1.bf16.msra.mxu0 %v10120_v29  ;;  %5555 = vmatpush1.bf16.msra.mxu1 %v10123_v13 }
 0xe74   :  { %5515 = vmatprep.subr.bf16.mxu0 %v10126_v48  ;;  %5556 = vmatprep.subr.bf16.mxu1 %v10129_v52 }
 0xe77   :  { %5516 = vmatpush1.bf16.msra.mxu0 %v10132_v16  ;;  %5557 = vmatpush1.bf16.msra.mxu1 %v10135_v28 }
 0xe78   :  { %5517 = vmatprep.subr.bf16.mxu0 %v10138_v0  ;;  %5558 = vmatprep.subr.bf16.mxu1 %v10141_v49 }
 0xe7b   :  { %5518 = vmatpush1.bf16.msra.mxu0 %v10144_v61  ;;  %5559 = vmatpush1.bf16.msra.mxu1 %v10147_v47 }
 0xe7c   :  { %5519 = vmatprep.subr.bf16.mxu0 %v10150_v25  ;;  %5560 = vmatprep.subr.bf16.mxu1 %v10153_v43 }
 0xe7f   :  { %5520 = vmatpush1.bf16.msra.mxu0 %v10156_v38  ;;  %5561 = vmatpush1.bf16.msra.mxu1 %v10159_v60 }
 0xe80   :  { %5521 = vmatprep.subr.bf16.mxu0 %v10162_v22  ;;  %5562 = vmatprep.subr.bf16.mxu1 %v10165_v51 }
 0xe83   :  { %5522 = vmatpush1.bf16.msra.mxu0 %v10168_v30  ;;  %5563 = vmatpush1.bf16.msra.mxu1 %v10171_v57 }
 0xe84   :  { %5523 = vmatprep.subr.bf16.mxu0 %v10174_v32  ;;  %5564 = vmatprep.subr.bf16.mxu1 %v10177_v59 }
 0xe87   :  { %5524 = vmatpush1.bf16.msra.mxu0 %v10180_v55  ;;  %5565 = vmatpush1.bf16.msra.mxu1 %v10183_v3 }
 0xe88   :  { %5620 = vmatprep.subr.bf16.mxu0 %v10076_v8  ;;  %5661 = vmatprep.subr.bf16.mxu1 %v10079_v63  ;;  %v10923_v63 = vld [vmem:[#allocation53_spill] sm:$0xff] }
 0xe89   :  { %v4637_v27 = vadd.f32 %v10923_v63, %v10033_v9 }
 0xf2a   :  { %v5432_v44 = vpop.f32.mrf.mxu0  ;;  %v5473_v2 = vpop.f32.mrf.mxu1 }
 0xf2b   :  { %v5480_v4 = vadd.f32 %v5432_v44, %v4564_v36  ;;  %v5482_v24 = vadd.f32 %v5473_v2, %v4637_v27 }
 0xf2c   :  { %v5434_v34 = vpop.f32.mrf.mxu0  ;;  %v5475_v35 = vpop.f32.mrf.mxu1 }
 0xf2d   :  { %v6248_v17 = vmul.f32 -1.442695, %v5480_v4  ;;  %v5481_v10 = vadd.f32 %v5434_v34, %v4566_v58  ;;  %v6250_v56 = vmul.f32 -1.442695, %v5482_v24  ;;  %v5483_v46 = vadd.f32 %v5475_v35, %v4639_v5  ;;  %v6533_v24 = vld [vmem:[#allocation12 + $0x38] sm:$0xff]   ;;  %v6534_v5 = vld [vmem:[#allocation12 + $0x30] sm:$0xff]  }
 0xf2e   :  { %v5436_v14 = vpop.f32.mrf.mxu0  ;;  %v5477_v15 = vpop.f32.mrf.mxu1 }
 0xf2f   :  { %7645 = vpow2.f32 %v6248_v17  ;;  %v6249_v6 = vmul.f32 -1.442695, %v5481_v10 }
 0xf30   :  { %v5437_v8 = vpop.f32.mrf.mxu0  ;;  %v5478_v50 = vpop.f32.mrf.mxu1 }
 0xf31   :  { %7647 = vpow2.f32 %v6249_v6 }
 0xf32   :  { %7649 = vpow2.f32 %v6250_v56  ;;  %v6535_v56 = vld [vmem:[#allocation12 + $0x28] sm:$0xff]  }
 0xf3c   :  { %v7646_v42 = vpop.eup %7645 }
 0xf3d   :  { %v5493_v37 = vadd.f32 1.0, %v7646_v42  ;;  %v6536_v42 = vld [vmem:[#allocation12 + $0x20] sm:$0xff]  }
 0xf3e   :  { %v7648_v45 = vpop.eup %7647 }
 0xf3f   :  { %7651 = vrcp.f32 %v5493_v37  ;;  %v5494_v40 = vadd.f32 1.0, %v7648_v45  ;;  %v7650_v18 = vpop.eup %7649  ;;  %v6538_v37 = vld [vmem:[#allocation12 + $0x10] sm:$0xff]   ;;  %v6539_v45 = vld [vmem:[#allocation12 + $0x8] sm:$0xff]  }
 0xf40   :  { %7653 = vtanh.f32 %v5483_v46  ;;  %v5495_v54 = vadd.f32 1.0, %v7650_v18  ;;  %v6537_v46 = vld [vmem:[#allocation12 + $0x18] sm:$0xff]   ;;  %v10929_v18 = vld [vmem:[#allocation28_spill] sm:$0xff] }
 0xf41   :  { %7655 = vrcp.f32 %v5494_v40  ;;  %v6540_v40 = vld [vmem:[#allocation12] sm:$0xff]  }
 0xf42   :  { %7657 = vrcp.f32 %v5495_v54  ;;  %v10930_v54 = vld [vmem:[#allocation30_spill] sm:$0xff] }
 0xf4c   :  { %v7652_v62 = vpop.eup %7651 }
 0xf4d   :  { %v7654_v36 = vpop.eup %7653 }
 0xf4e   :  { %v7656_v44 = vpop.eup %7655  ;;  %v5504_v58 = vmul.f32 %v7654_v36, %v7652_v62  ;;  %v4574_v62 = vadd.f32 %v10929_v18, %v10015_v26 }
 0xf4f   :  { %v5503_v2 = vmul.f32 %v7656_v44, %v10289_v1  ;;  %v7658_v34 = vpop.eup %7657 }
 0xf51   :  { %v10335_v4 = vadd.f32 %v5504_v58, %v5503_v2  ;;  %v4576_v2 = vadd.f32 %v10930_v54, %v10023_v33 }
 0xf53   :  { %7659 = vtanh.f32 %v10335_v4 }
 0xf60   :  { %v7660_v35 = vpop.eup %7659 }
 0xf61   :  { %v5507_v17 = vmul.f32 %v7660_v35, %v7658_v34 }
 0xf63   :  { %v5508_v10 = vpack.c.bf16 %v5507_v17, %v5507_v17 }
 0xf65   :  { %5542 = vmatmul.mubr.bf16.vlgmr.msra.gmra.mxu0 %v5508_v10  ;;  %5583 = vmatmul.mubr.bf16.vlgmr.msra.gmra.mxu1 %v5508_v10 }
 0xf66   :  { %5621 = vmatpush1.bf16.msra.mxu0 %v10094_v31  ;;  %5662 = vmatpush1.bf16.msra.mxu1 %v10097_v39 }
 0xf67   :  { %5622 = vmatprep.subr.bf16.mxu0 %v10100_v41  ;;  %5663 = vmatprep.subr.bf16.mxu1 %v10103_v11  ;;  %v10926_v11 = vld [vmem:[#allocation26_spill] sm:$0xff] }
 0xf68   :  { %5652 = vmatprep.mubr.bf16.mxu0 %v10645_v12  ;;  %5693 = vmatprep.mubr.bf16.mxu1 %v10645_v12  ;;  %v10925_v12 = vld [vmem:[#allocation24_spill] sm:$0xff] }
 0xf69   :  { %v4570_v31 = vadd.f32 %v10925_v12, %v10015_v26 }
 0xf6a   :  { %5623 = vmatpush1.bf16.msra.mxu0 %v10108_v7  ;;  %5664 = vmatpush1.bf16.msra.mxu1 %v10111_v53  ;;  %v4572_v7 = vadd.f32 %v10926_v11, %v10023_v33  ;;  %v10931_v11 = vld [vmem:[#allocation29_spill] sm:$0xff] }
 0xf6b   :  { %5624 = vmatprep.subr.bf16.mxu0 %v10114_v19  ;;  %5665 = vmatprep.subr.bf16.mxu1 %v10117_v23  ;;  %v4647_v26 = vadd.f32 %v10931_v11, %v10033_v9 }
 0xf6e   :  { %5625 = vmatpush1.bf16.msra.mxu0 %v10120_v29  ;;  %5666 = vmatpush1.bf16.msra.mxu1 %v10123_v13 }
 0xf6f   :  { %5626 = vmatprep.subr.bf16.mxu0 %v10126_v48  ;;  %5667 = vmatprep.subr.bf16.mxu1 %v10129_v52 }
 0xf72   :  { %5627 = vmatpush1.bf16.msra.mxu0 %v10132_v16  ;;  %5668 = vmatpush1.bf16.msra.mxu1 %v10135_v28 }
 0xf73   :  { %5628 = vmatprep.subr.bf16.mxu0 %v10138_v0  ;;  %5669 = vmatprep.subr.bf16.mxu1 %v10141_v49  ;;  %v10927_v49 = vld [vmem:[#allocation25_spill] sm:$0xff] }
 0xf76   :  { %5629 = vmatpush1.bf16.msra.mxu0 %v10144_v61  ;;  %5670 = vmatpush1.bf16.msra.mxu1 %v10147_v47  ;;  %v4643_v61 = vadd.f32 %v10927_v49, %v10033_v9 }
 0xf77   :  { %5630 = vmatprep.subr.bf16.mxu0 %v10150_v25  ;;  %5671 = vmatprep.subr.bf16.mxu1 %v10153_v43  ;;  %v10928_v25 = vld [vmem:[#allocation27_spill] sm:$0xff] }
 0xf78   :  { %v4645_v43 = vadd.f32 %v10928_v25, %v10038_v21 }
 0xf7a   :  { %5631 = vmatpush1.bf16.msra.mxu0 %v10156_v38  ;;  %5672 = vmatpush1.bf16.msra.mxu1 %v10159_v60 }
 0xf7b   :  { %5632 = vmatprep.subr.bf16.mxu0 %v10162_v22  ;;  %5673 = vmatprep.subr.bf16.mxu1 %v10165_v51 }
 0xf7e   :  { %5633 = vmatpush1.bf16.msra.mxu0 %v10168_v30  ;;  %5674 = vmatpush1.bf16.msra.mxu1 %v10171_v57 }
 0xf7f   :  { %5634 = vmatprep.subr.bf16.mxu0 %v10174_v32  ;;  %5675 = vmatprep.subr.bf16.mxu1 %v10177_v59 }
 0xf82   :  { %5635 = vmatpush1.bf16.msra.mxu0 %v10180_v55  ;;  %5676 = vmatpush1.bf16.msra.mxu1 %v10183_v3 }
 0xf83   :  { %6343 = vmatprep.subr.bf16.mxu0 %v7984_v20 }
0x1025   :  { %v5543_v39 = vpop.f32.mrf.mxu0  ;;  %v5584_v41 = vpop.f32.mrf.mxu1 }
0x1026   :  { %v5591_v53 = vadd.f32 %v5543_v39, %v4570_v31  ;;  %v5593_v47 = vadd.f32 %v5584_v41, %v4643_v61 }
0x1027   :  { %v5545_v19 = vpop.f32.mrf.mxu0  ;;  %v5586_v23 = vpop.f32.mrf.mxu1 }
0x1028   :  { %v6251_v29 = vmul.f32 -1.442695, %v5591_v53  ;;  %v5592_v13 = vadd.f32 %v5545_v19, %v4572_v7  ;;  %v6253_v38 = vmul.f32 -1.442695, %v5593_v47  ;;  %v5594_v60 = vadd.f32 %v5586_v23, %v4645_v43  ;;  %v10932_v53 = vld [vmem:[#allocation31_spill] sm:$0xff] }
0x1029   :  { %v5547_v48 = vpop.f32.mrf.mxu0  ;;  %v5588_v52 = vpop.f32.mrf.mxu1  ;;  %v4649_v19 = vadd.f32 %v10932_v53, %v10038_v21 }
0x102a   :  { %7661 = vpow2.f32 %v6251_v29  ;;  %v6252_v16 = vmul.f32 -1.442695, %v5592_v13 }
0x102b   :  { %v5548_v28 = vpop.f32.mrf.mxu0  ;;  %v5589_v0 = vpop.f32.mrf.mxu1 }
0x102c   :  { %7663 = vpow2.f32 %v6252_v16 }
0x102d   :  { %7665 = vpow2.f32 %v6253_v38 }
0x102e   :  { %7667 = vtanh.f32 %v5594_v60 }
0x1037   :  { %v7662_v22 = vpop.eup %7661 }
0x1038   :  { %v5604_v51 = vadd.f32 1.0, %v7662_v22  ;;  %v6257_v22 = vld [vmem:[%s10405_s8] ss:$0 sm:$0xff] }
0x1039   :  { %v7664_v30 = vpop.eup %7663 }
0x103a   :  { %7669 = vrcp.f32 %v5604_v51  ;;  %v5605_v57 = vadd.f32 1.0, %v7664_v30  ;;  %v7666_v32 = vpop.eup %7665 }
0x103b   :  { %v7668_v59 = vpop.eup %7667  ;;  %v5606_v14 = vadd.f32 1.0, %v7666_v32 }
0x103c   :  { %7671 = vrcp.f32 %v5605_v57 }
0x103d   :  { %7673 = vrcp.f32 %v5606_v14 }
0x1047   :  { %v7670_v55 = vpop.eup %7669 }
0x1048   :  { %v5615_v3 = vmul.f32 %v7670_v55, %v7668_v59 }
0x1049   :  { %v7672_v1 = vpop.eup %7671 }
0x104a   :  { %v5614_v15 = vmul.f32 %v7672_v1, %v10335_v4  ;;  %v7674_v8 = vpop.eup %7673 }
0x104c   :  { %v10379_v6 = vadd.f32 %v5615_v3, %v5614_v15 }
0x104e   :  { %7675 = vtanh.f32 %v10379_v6 }
0x105b   :  { %v7676_v50 = vpop.eup %7675 }
0x105c   :  { %v5618_v63 = vmul.f32 %v7676_v50, %v7674_v8 }
0x105e   :  { %v5619_v27 = vpack.c.bf16 %v5618_v63, %v5618_v63 }
0x1060   :  { %5653 = vmatmul.mubr.bf16.vlgmr.msra.gmra.mxu0 %v5619_v27  ;;  %5694 = vmatmul.mubr.bf16.vlgmr.msra.gmra.mxu1 %v5619_v27 }
0x1061   :  { %6359 = vmatprep.mubr.msk.bf16.mxu0 %vm7985_vm8, %v7984_v20  ;;  %6344 = vmatpush3.bf16.msra.mxu0 %v6533_v24 }
0x1062   :  { %6345 = vmatprep.subr.bf16.mxu0 %v7984_v20 }
0x1065   :  { %6346 = vmatpush3.bf16.msra.mxu0 %v6534_v5 }
0x1066   :  { %6347 = vmatprep.subr.bf16.mxu0 %v7984_v20 }
0x1069   :  { %6348 = vmatpush3.bf16.msra.mxu0 %v6535_v56 }
0x106a   :  { %6349 = vmatprep.subr.bf16.mxu0 %v7984_v20 }
0x106d   :  { %6350 = vmatpush3.bf16.msra.mxu0 %v6536_v42 }
0x106e   :  { %6351 = vmatprep.subr.bf16.mxu0 %v7984_v20 }
0x1071   :  { %6352 = vmatpush3.bf16.msra.mxu0 %v6537_v46 }
0x1072   :  { %6353 = vmatprep.subr.bf16.mxu0 %v7984_v20 }
0x1075   :  { %6354 = vmatpush3.bf16.msra.mxu0 %v6538_v37 }
0x1076   :  { %6355 = vmatprep.subr.bf16.mxu0 %v7984_v20 }
0x1079   :  { %6356 = vmatpush3.bf16.msra.mxu0 %v6539_v45 }
0x107a   :  { %6357 = vmatprep.subr.bf16.mxu0 %v7984_v20 }
0x107d   :  { %6358 = vmatpush3.bf16.msra.mxu0 %v6540_v40 }
0x1120   :  { %v5654_v36 = vpop.f32.mrf.mxu0  ;;  %v5695_v44 = vpop.f32.mrf.mxu1 }
0x1121   :  { %v5702_v58 = vadd.f32 %v5654_v36, %v4574_v62  ;;  %v5704_v7 = vadd.f32 %v5695_v44, %v4647_v26 }
0x1122   :  { %v5656_v4 = vpop.f32.mrf.mxu0  ;;  %v5697_v34 = vpop.f32.mrf.mxu1 }
0x1123   :  { %v6254_v35 = vmul.f32 -1.442695, %v5702_v58  ;;  %v5703_v17 = vadd.f32 %v5656_v4, %v4576_v2  ;;  %v6256_v33 = vmul.f32 -1.442695, %v5704_v7  ;;  %v5705_v23 = vadd.f32 %v5697_v34, %v4649_v19 }
0x1124   :  { %v5658_v10 = vpop.f32.mrf.mxu0  ;;  %v5699_v12 = vpop.f32.mrf.mxu1 }
0x1125   :  { %7677 = vpow2.f32 %v6254_v35  ;;  %v6255_v31 = vmul.f32 -1.442695, %v5703_v17 }
0x1126   :  { %v5659_v39 = vpop.f32.mrf.mxu0  ;;  %v5700_v41 = vpop.f32.mrf.mxu1 }
0x1127   :  { %7679 = vpow2.f32 %v6255_v31 }
0x1128   :  { %7681 = vpow2.f32 %v6256_v33 }
0x1129   :  { %7683 = vtanh.f32 %v5705_v23 }
0x1132   :  { %v7678_v29 = vpop.eup %7677 }
0x1133   :  { %v5715_v13 = vadd.f32 1.0, %v7678_v29 }
0x1134   :  { %v7680_v48 = vpop.eup %7679 }
0x1135   :  { %7685 = vrcp.f32 %v5715_v13  ;;  %v5716_v52 = vadd.f32 1.0, %v7680_v48  ;;  %v7682_v16 = vpop.eup %7681 }
0x1136   :  { %v7684_v28 = vpop.eup %7683  ;;  %v5717_v9 = vadd.f32 1.0, %v7682_v16 }
0x1137   :  { %7687 = vrcp.f32 %v5716_v52 }
0x1138   :  { %7689 = vrcp.f32 %v5717_v9 }
0x1142   :  { %v7686_v0 = vpop.eup %7685 }
0x1143   :  { %v5726_v49 = vmul.f32 %v7686_v0, %v7684_v28 }
0x1144   :  { %v7688_v61 = vpop.eup %7687 }
0x1145   :  { %v5725_v47 = vmul.f32 %v7688_v61, %v10379_v6  ;;  %v7690_v21 = vpop.eup %7689 }
0x1147   :  { %v5727_v25 = vadd.f32 %v5726_v49, %v5725_v47 }
0x1149   :  { %7691 = vtanh.f32 %v5727_v25 }
0x1156   :  { %v7692_v43 = vpop.eup %7691 }
0x1157   :  { %v5729_v38 = vmul.f32 %v7692_v43, %v7690_v21 }
0x1159   :  { %v5730_v60 = vpack.c.bf16 %v5729_v38, %v5729_v38 }
0x115b   :  { %6360 = vmatmul.mubr.bf16.vlgmr.msra.gmra.mxu0 %v5730_v60 }
0x121b   :  { %v5836_v51 = vpop.f32.mrf.mxu0 }
0x121c   :  { %v5837_v30 = vadd.f32 %v6257_v22, %v5836_v51 }
0x121d   :  { %v6361_v57 = vpop.f32.mrf.mxu0 }
0x121e   :  { %5842 = vst [vmem:[#allocation14] sm:$0xff] %v5837_v30 }
0x121f   :  { %v5839_v32 = vpop.f32.mrf.mxu0 }
0x1220   :  { %7952 = shalt.err (!%p7949_p6)
}
0x1221   :  { %5852 = dma.vmem_to_hbm [thread:$0]  %s5850_s1, 128, %s10406_s9, [#allocation5]   ;;  %v6362_v59 = vpop.f32.mrf.mxu0 }
0x1222   :  { %7969 = dma.done.wait [#allocation5], 128  }
0x1223   :  { %7970 = vsyncadd [#allocation5], 4294967168 }
0x1224   :  { %5856 = vsyncpa [#allocation4], 1 }
0x1225   :  { %5857 = vsyncpa [#allocation7], 1 }
0x1226   :  { %5858 = vsyncpa [#allocation10], 1 }
0x1227   :  { %5859 = vsyncpa [#allocation13], 1 }
0x1228   :  { %5860 = vsyncpa [#allocation5], 1 }

</bundles_post_ra>
